<compile_context>
chip_gen: v6e
topology: v6e:2x2x1
jax: 0.10.0
libtpu: 0.0.40
codegen_flags: <defaults>
</compile_context>

<pallas_src>
import functools

import jax
import jax.numpy as jnp
from jax import lax
from jax.experimental import pallas as pl
from jax.experimental.pallas import tpu as pltpu

K = 5     # conv1 kernel size
PAD = 2   # conv1 padding


def _conv1_kernel(x_ref, w_ref, b_ref, y_ref, bmean_ref, bm2_ref, *,
                  H, W, HP, WP, CIN, TD):
    """Grid (n, t, s): accumulate one padded depth slice into a resident block.

    x_ref     : (1, 1, CIN, HP*WP)  bf16 padded depth slice  pd = t*TD + s
    w_ref     : (K, 2*K*K, CIN)     bf16 conv1 weights (resident, constant idx)
    b_ref     : SMEM (2,)           f32 conv1 bias
    y_ref     : (1, TD, 2, H, W)    f32 resident output block (accumulator)
    bmean_ref : (1, 1, 2, 1)        per-block channel mean   (written at last s)
    bm2_ref   : (1, 1, 2, 1)        per-block channel M2     (written at last s)
    """
    s = pl.program_id(2)

    @pl.when(s == 0)
    def _init():
        y_ref[0, :, 0] = jnp.zeros((TD, H, W), jnp.float32) + b_ref[0]
        y_ref[0, :, 1] = jnp.zeros((TD, H, W), jnp.float32) + b_ref[1]

    x_flat = x_ref[0, 0]                                   # (CIN, HP*WP) bf16

    # Padded depth slice pd = t*TD + s contributes (via depth tap kd) to the
    # local output depth dloc = s - kd.
    for kd in range(K):
        dloc = s - kd

        @pl.when(jnp.logical_and(dloc >= 0, dloc < TD))
        def _acc(kd=kd, dloc=dloc):
            # Channel contraction first: one M=50 dot over the whole padded
            # plane (no CIN-channel patch copies, far better MXU fill).
            t = jnp.dot(w_ref[kd], x_flat, preferred_element_type=jnp.float32)
            t3 = t.reshape(2 * K * K, HP, WP)              # rows = (o, kh, kw)
            acc0 = jnp.zeros((H, W), jnp.float32)
            acc1 = jnp.zeros((H, W), jnp.float32)
            for kh in range(K):
                for kw in range(K):
                    r = kh * K + kw
                    acc0 = acc0 + t3[r, kh:kh + H, kw:kw + W]
                    acc1 = acc1 + t3[K * K + r, kh:kh + H, kw:kw + W]
            y_ref[0, dloc, 0] += acc0
            y_ref[0, dloc, 1] += acc1

    # Fused BN partial statistics (block mean + M2, merged outside with a
    # Welford-style combine -> no E[x^2]-E[x]^2 cancellation, and no extra
    # HBM passes over y).
    @pl.when(s == TD + K - 2)
    def _stats():
        nb = jnp.float32(TD * H * W)
        y0 = y_ref[0, :, 0]
        y1 = y_ref[0, :, 1]
        m0 = jnp.sum(y0) / nb
        m1 = jnp.sum(y1) / nb
        q0 = jnp.sum(jnp.square(y0 - m0))
        q1 = jnp.sum(jnp.square(y1 - m1))
        ch = lax.broadcasted_iota(jnp.int32, (1, 1, 2, 1), 2)
        bmean_ref[...] = jnp.where(ch == 0, m0, m1)
        bm2_ref[...] = jnp.where(ch == 0, q0, q1)


def _post_kernel(p_ref, y_ref, o_ref):
    """Fused BN affine + PReLU + 1x1 conv (VPU FMAs) + exact sigmoid.

    p_ref : SMEM (12,) = [scale0,1, shift0,1, alpha0,1, w00,w01,w10,w11, b0,b1]
    y_ref : (1, TDp, 2, H, W) f32
    o_ref : (1, TDp, 2, H, W) f32
    """
    s0, s1 = p_ref[0], p_ref[1]
    t0, t1 = p_ref[2], p_ref[3]
    a0, a1 = p_ref[4], p_ref[5]
    w00, w01 = p_ref[6], p_ref[7]
    w10, w11 = p_ref[8], p_ref[9]
    b0, b1 = p_ref[10], p_ref[11]

    y0 = y_ref[0, :, 0]                       # (TDp, H, W), channel dim untiled
    y1 = y_ref[0, :, 1]
    z0 = y0 * s0 + t0                         # batch-norm (folded affine)
    z1 = y1 * s1 + t1
    z0 = jnp.where(z0 >= 0, z0, a0 * z0)      # PReLU
    z1 = jnp.where(z1 >= 0, z1, a1 * z1)
    o0 = w00 * z0 + w01 * z1 + b0             # 1x1 conv as two VPU FMAs
    o1 = w10 * z0 + w11 * z1 + b1
    o_ref[0, :, 0] = 1.0 / (1.0 + jnp.exp(-o0))   # exact sigmoid (EUP exp)
    o_ref[0, :, 1] = 1.0 / (1.0 + jnp.exp(-o1))


def _pick_conv_td(N, D, CIN, HP, WP, H, W, budget_bytes=24 << 20):
    """Largest divisor of D fitting the VMEM budget, keeping >=2 parallel blocks."""
    fitting = []
    for td in range(D, 0, -1):
        if D % td != 0:
            continue
        x_bytes = 2 * CIN * HP * WP * 2            # double-buffered bf16 slice
        y_bytes = 2 * td * 2 * H * W * 4           # resident f32 out block
        t_bytes = 2 * 2 * K * K * HP * WP * 4      # per-tap dot-result scratch
        w_bytes = K * 2 * K * K * CIN * 2
        if x_bytes + y_bytes + t_bytes + w_bytes <= budget_bytes:
            fitting.append(td)
    if not fitting:
        return 1
    for td in fitting:                              # descending
        if N * (D // td) >= 2:                      # feed both v7x TensorCores
            return td
    return fitting[0]


def _pick_post_td(D, H, W, target_bytes=4 << 20):
    """Largest divisor of D whose (TDp, 2, H, W) f32 block stays under ~4 MiB."""
    best = 1
    for td in range(1, D + 1):
        if D % td == 0 and td * 2 * H * W * 4 <= target_bytes:
            best = td
    return best


def output_transition(x_ncdhw, params, eps=1e-5):
    w1, b1 = params["w1"], params["b1"]
    gamma, beta = params["gamma"], params["beta"]
    alpha = params["alpha"]
    w2, b2 = params["w2"], params["b2"]

    N, CIN, D, H, W = x_ncdhw.shape
    HP, WP = H + 2 * PAD, W + 2 * PAD
    DP = D + 2 * PAD

    # conv1 input: bf16, depth-major, spatially/depth padded, flat (HP*WP) lanes.
    # One fused XLA cast+transpose+pad pass; bf16 halves its HBM cost.
    # TODO(synk): this remaining pre-pass could be removed entirely by indexing
    # the raw NCDHW tensor and masking boundary taps in-kernel.
    x_p = jnp.transpose(x_ncdhw.astype(jnp.bfloat16), (0, 2, 1, 3, 4))
    x_p = jnp.pad(x_p, ((0, 0), (PAD, PAD), (0, 0), (PAD, PAD), (PAD, PAD)))
    x_p = x_p.reshape(N, DP, CIN, HP * WP)          # free: merges trailing dims

    # conv1 weights -> (kd, (o, kh, kw), cin), bf16; bias stays f32 in SMEM.
    w_r = jnp.transpose(w1, (2, 0, 3, 4, 1)).reshape(K, 2 * K * K, CIN)
    w_r = w_r.astype(jnp.bfloat16)
    b1_s = b1.astype(jnp.float32)

    TD = _pick_conv_td(N, D, CIN, HP, WP, H, W)
    T = D // TD

    conv1 = pl.pallas_call(
        functools.partial(_conv1_kernel, H=H, W=W, HP=HP, WP=WP, CIN=CIN, TD=TD),
        out_shape=(
            jax.ShapeDtypeStruct((N, D, 2, H, W), jnp.float32),
            jax.ShapeDtypeStruct((N, T, 2, 1), jnp.float32),
            jax.ShapeDtypeStruct((N, T, 2, 1), jnp.float32),
        ),
        grid=(N, T, TD + K - 1),
        in_specs=[
            pl.BlockSpec((1, 1, CIN, HP * WP),
                         lambda n, t, s: (n, t * TD + s, 0, 0)),
            pl.BlockSpec((K, 2 * K * K, CIN), lambda n, t, s: (0, 0, 0)),
            pl.BlockSpec(memory_space=pltpu.MemorySpace.SMEM),
        ],
        out_specs=(
            pl.BlockSpec((1, TD, 2, H, W), lambda n, t, s: (n, t, 0, 0, 0)),
            pl.BlockSpec((1, 1, 2, 1), lambda n, t, s: (n, t, 0, 0)),
            pl.BlockSpec((1, 1, 2, 1), lambda n, t, s: (n, t, 0, 0)),
        ),
        compiler_params=pltpu.CompilerParams(
            dimension_semantics=("parallel", "parallel", "arbitrary"),
            vmem_limit_bytes=48 * 1024 * 1024),
    )
    y, bmean, bm2 = conv1(x_p, w_r, b1_s)           # y: (N, D, 2, H, W) f32

    # ContBatchNorm3d: always training-mode batch statistics (biased variance),
    # merged from the per-block (mean, M2) partials (exact parallel combine).
    nb = TD * H * W
    bm = bmean.reshape(N * T, 2)
    m2 = bm2.reshape(N * T, 2)
    mean = jnp.mean(bm, axis=0)                                         # (2,)
    var = (jnp.sum(m2, axis=0)
           + nb * jnp.sum(jnp.square(bm - mean[None, :]), axis=0)) / (N * T * nb)
    scale = gamma.astype(jnp.float32) / jnp.sqrt(var + eps)
    shift = beta.astype(jnp.float32) - mean * scale
    # TODO(synk): BatchNorm running_mean/var momentum update is a stateful
    # buffer update and does not affect the forward output; not reproduced.

    w2m = w2[:, :, 0, 0, 0].astype(jnp.float32)                         # (2, 2)
    p12 = jnp.concatenate([scale, shift, alpha.astype(jnp.float32),
                           w2m.reshape(-1), b2.astype(jnp.float32)])    # (12,)

    TDp = _pick_post_td(D, H, W)
    post = pl.pallas_call(
        _post_kernel,
        out_shape=jax.ShapeDtypeStruct((N, D, 2, H, W), jnp.float32),
        grid=(N, D // TDp),
        in_specs=[
            pl.BlockSpec(memory_space=pltpu.MemorySpace.SMEM),
            pl.BlockSpec((1, TDp, 2, H, W), lambda n, t: (n, t, 0, 0, 0)),
        ],
        out_specs=pl.BlockSpec((1, TDp, 2, H, W), lambda n, t: (n, t, 0, 0, 0)),
        compiler_params=pltpu.CompilerParams(
            dimension_semantics=("parallel", "parallel"),
            vmem_limit_bytes=48 * 1024 * 1024),
    )
    out = post(p12, y)                                  # (N, D, 2, H, W)
    # TODO(synk): at real sizes the post stage could read/write bf16 (math in
    # f32 in-kernel) to halve its HBM traffic; kept f32 here for tight numerics.

    # (N, D, 2, H, W) -> channels-last == permute(0,2,3,4,1), then view(-1, 2).
    return jnp.transpose(out, (0, 1, 3, 4, 2)).reshape(N * D * H * W, 2)


def reference(x, params, eps=1e-5):
    """Pure-JAX reference (mirrors the PyTorch forward)."""
    w1, b1 = params["w1"], params["b1"]
    gamma, beta = params["gamma"], params["beta"]
    alpha = params["alpha"]
    w2, b2 = params["w2"], params["b2"]

    y = lax.conv_general_dilated(
        x, w1, window_strides=(1, 1, 1), padding=((PAD, PAD),) * 3,
        dimension_numbers=("NCDHW", "OIDHW", "NCDHW"),
        precision=lax.Precision.HIGHEST) + b1.reshape(1, 2, 1, 1, 1)
    mean = y.mean(axis=(0, 2, 3, 4), keepdims=True)
    var = y.var(axis=(0, 2, 3, 4), keepdims=True)        # biased, like F.batch_norm
    z = (y - mean) / jnp.sqrt(var + eps)
    z = z * gamma.reshape(1, 2, 1, 1, 1) + beta.reshape(1, 2, 1, 1, 1)
    z = jnp.where(z >= 0, z, alpha.reshape(1, 2, 1, 1, 1) * z)
    o = jnp.einsum("ncdhw,oc->nodhw", z, w2[:, :, 0, 0, 0],
                   precision=lax.Precision.HIGHEST) + b2.reshape(1, 2, 1, 1, 1)
    o = jnp.transpose(o, (0, 2, 3, 4, 1)).reshape(-1, 2)
    return jax.nn.sigmoid(o)


if __name__ == "__main__":
    N, CIN, D, H, W = 2, 4, 8, 8, 8

    key = jax.random.PRNGKey(0)
    ks = jax.random.split(key, 8)
    params = dict(
        w1=0.1 * jax.random.normal(ks[0], (2, CIN, K, K, K), jnp.float32),
        b1=0.1 * jax.random.normal(ks[1], (2,), jnp.float32),
        gamma=1.0 + 0.1 * jax.random.normal(ks[5], (2,), jnp.float32),
        beta=0.1 * jax.random.normal(ks[6], (2,), jnp.float32),
        alpha=jnp.full((2,), 0.25, jnp.float32),   # PReLU default init
        w2=0.5 * jax.random.normal(ks[2], (2, 2, 1, 1, 1), jnp.float32),
        b2=0.1 * jax.random.normal(ks[3], (2,), jnp.float32),
    )
    x = jax.random.normal(ks[4], (N, CIN, D, H, W), jnp.float32)

    out = jax.block_until_ready(output_transition(x, params))
    assert out.shape == (N * D * H * W, 2), out.shape

    ref = reference(x, params)
    err = float(jnp.max(jnp.abs(out - ref)))
    assert err < 1e-2, f"max abs err too large: {err}"

    print("KERNEL_OK")
</pallas_src>

<mosaic_0001>
module attributes {stable_mosaic.version = 11 : i64} {
  func.func @_conv1_kernel(%arg0: i32, %arg1: i32, %arg2: i32, %arg3: memref<1x1x4x144xbf16, #tpu.memory_space<vmem>>, %arg4: memref<5x50x4xbf16, #tpu.memory_space<vmem>>, %arg5: memref<2xf32, #tpu.memory_space<smem>>, %arg6: memref<1x8x2x8x8xf32, #tpu.memory_space<vmem>>, %arg7: memref<1x1x2x1xf32, #tpu.memory_space<vmem>>, %arg8: memref<1x1x2x1xf32, #tpu.memory_space<vmem>>) attributes {dimension_semantics = [#tpu.dimension_semantics<parallel>, #tpu.dimension_semantics<parallel>, #tpu.dimension_semantics<arbitrary>], iteration_bounds = array<i64: 2, 1, 12>, scalar_prefetch = 0 : i64, scratch_operands = 0 : i64, tpu.core_type = #tpu.core_type<tc>, window_params = [{transform_indices = @transform_0, window_bounds = array<i64: 1, 1, 4, 144>}, {pipeline_mode = #tpu.pipeline_mode<synchronous>, transform_indices = @transform_1, window_bounds = array<i64: 5, 50, 4>}, {transform_indices = @transform_2, window_bounds = array<i64: 2>}, {transform_indices = @transform_3, window_bounds = array<i64: 1, 8, 2, 8, 8>}, {transform_indices = @transform_4, window_bounds = array<i64: 1, 1, 2, 1>}, {transform_indices = @transform_5, window_bounds = array<i64: 1, 1, 2, 1>}]} {
    %c0_i32 = arith.constant 0 : i32
    %0 = arith.cmpi eq, %arg2, %c0_i32 : i32
    %1 = arith.extui %0 : i1 to i32
    %c0_i32_0 = arith.constant 0 : i32
    %2 = arith.cmpi ne, %1, %c0_i32_0 : i32
    scf.if %2 {
      %cst = arith.constant 0.000000e+00 : f32
      %38 = vector.broadcast %cst : f32 to vector<8x8x8xf32>
      %c0_20 = arith.constant 0 : index
      %39 = memref.load %arg5[%c0_20] : memref<2xf32, #tpu.memory_space<smem>>
      %40 = vector.broadcast %39 : f32 to vector<8x8x8xf32>
      %41 = arith.addf %38, %40 : vector<8x8x8xf32>
      %c0_21 = arith.constant 0 : index
      %c0_22 = arith.constant 0 : index
      %c0_23 = arith.constant 0 : index
      %c0_24 = arith.constant 0 : index
      %c0_25 = arith.constant 0 : index
      %42 = vector.load %arg6[%c0_21, %c0_22, %c0_23, %c0_24, %c0_25] : memref<1x8x2x8x8xf32, #tpu.memory_space<vmem>>, vector<1x8x1x8x8xf32>
      %43 = vector.shape_cast %42 : vector<1x8x1x8x8xf32> to vector<8x8x8xf32>
      %44 = vector.shape_cast %41 : vector<8x8x8xf32> to vector<1x8x1x8x8xf32>
      tpu.vector_store %arg6[%c0_21, %c0_22, %c0_23, %c0_24, %c0_25], %44 {strides = array<i32>} : memref<1x8x2x8x8xf32, #tpu.memory_space<vmem>>, vector<1x8x1x8x8xf32>,
      %cst_26 = arith.constant 0.000000e+00 : f32
      %45 = vector.broadcast %cst_26 : f32 to vector<8x8x8xf32>
      %c1 = arith.constant 1 : index
      %46 = memref.load %arg5[%c1] : memref<2xf32, #tpu.memory_space<smem>>
      %47 = vector.broadcast %46 : f32 to vector<8x8x8xf32>
      %48 = arith.addf %45, %47 : vector<8x8x8xf32>
      %c0_27 = arith.constant 0 : index
      %c0_28 = arith.constant 0 : index
      %c1_29 = arith.constant 1 : index
      %c0_30 = arith.constant 0 : index
      %c0_31 = arith.constant 0 : index
      %49 = vector.load %arg6[%c0_27, %c0_28, %c1_29, %c0_30, %c0_31] : memref<1x8x2x8x8xf32, #tpu.memory_space<vmem>>, vector<1x8x1x8x8xf32>
      %50 = vector.shape_cast %49 : vector<1x8x1x8x8xf32> to vector<8x8x8xf32>
      %51 = vector.shape_cast %48 : vector<8x8x8xf32> to vector<1x8x1x8x8xf32>
      tpu.vector_store %arg6[%c0_27, %c0_28, %c1_29, %c0_30, %c0_31], %51 {strides = array<i32>} : memref<1x8x2x8x8xf32, #tpu.memory_space<vmem>>, vector<1x8x1x8x8xf32>,
    } else {
    }
    %c0 = arith.constant 0 : index
    %c0_1 = arith.constant 0 : index
    %c0_2 = arith.constant 0 : index
    %c0_3 = arith.constant 0 : index
    %3 = vector.load %arg3[%c0, %c0_1, %c0_2, %c0_3] : memref<1x1x4x144xbf16, #tpu.memory_space<vmem>>, vector<1x1x4x144xbf16>
    %4 = vector.shape_cast %3 : vector<1x1x4x144xbf16> to vector<4x144xbf16>
    %c0_i32_4 = arith.constant 0 : i32
    %5 = arith.subi %arg2, %c0_i32_4 : i32
    %c0_i32_5 = arith.constant 0 : i32
    %6 = arith.cmpi sge, %5, %c0_i32_5 : i32
    %c8_i32 = arith.constant 8 : i32
    %7 = arith.cmpi slt, %5, %c8_i32 : i32
    %8 = arith.andi %6, %7 : i1
    %9 = arith.extui %8 : i1 to i32
    %c0_i32_6 = arith.constant 0 : i32
    %10 = arith.cmpi ne, %9, %c0_i32_6 : i32
    scf.if %10 {
      %c0_20 = arith.constant 0 : index
      %c0_21 = arith.constant 0 : index
      %c0_22 = arith.constant 0 : index
      %38 = vector.load %arg4[%c0_20, %c0_21, %c0_22] : memref<5x50x4xbf16, #tpu.memory_space<vmem>>, vector<1x50x4xbf16>
      %39 = vector.shape_cast %38 : vector<1x50x4xbf16> to vector<50x4xbf16>
      %cst = arith.constant dense<0.000000e+00> : vector<50x144xf32>
      %40 = tpu.matmul %39, %4, %cst {dimension_numbers = #tpu.dot_dimension_numbers<[1], [0], [0], [1], [0, 0, 1, 1], [], []>} : vector<50x4xbf16>, vector<4x144xbf16>, vector<50x144xf32> -> vector<50x144xf32>
      %41 = vector.shape_cast %40 : vector<50x144xf32> to vector<50x12x12xf32>
      %cst_23 = arith.constant 0.000000e+00 : f32
      %42 = vector.broadcast %cst_23 : f32 to vector<8x8xf32>
      %cst_24 = arith.constant 0.000000e+00 : f32
      %43 = vector.broadcast %cst_24 : f32 to vector<8x8xf32>
      %44 = vector.extract_strided_slice %41 {offsets = [0, 0, 0], sizes = [1, 8, 8], strides = [1, 1, 1]} : vector<50x12x12xf32> to vector<1x8x8xf32>
      %45 = vector.shape_cast %44 : vector<1x8x8xf32> to vector<8x8xf32>
      %46 = arith.addf %42, %45 : vector<8x8xf32>
      %47 = vector.extract_strided_slice %41 {offsets = [25, 0, 0], sizes = [1, 8, 8], strides = [1, 1, 1]} : vector<50x12x12xf32> to vector<1x8x8xf32>
      %48 = vector.shape_cast %47 : vector<1x8x8xf32> to vector<8x8xf32>
      %49 = arith.addf %43, %48 : vector<8x8xf32>
      %50 = vector.extract_strided_slice %41 {offsets = [1, 0, 1], sizes = [1, 8, 8], strides = [1, 1, 1]} : vector<50x12x12xf32> to vector<1x8x8xf32>
      %51 = vector.shape_cast %50 : vector<1x8x8xf32> to vector<8x8xf32>
      %52 = arith.addf %46, %51 : vector<8x8xf32>
      %53 = vector.extract_strided_slice %41 {offsets = [26, 0, 1], sizes = [1, 8, 8], strides = [1, 1, 1]} : vector<50x12x12xf32> to vector<1x8x8xf32>
      %54 = vector.shape_cast %53 : vector<1x8x8xf32> to vector<8x8xf32>
      %55 = arith.addf %49, %54 : vector<8x8xf32>
      %56 = vector.extract_strided_slice %41 {offsets = [2, 0, 2], sizes = [1, 8, 8], strides = [1, 1, 1]} : vector<50x12x12xf32> to vector<1x8x8xf32>
      %57 = vector.shape_cast %56 : vector<1x8x8xf32> to vector<8x8xf32>
      %58 = arith.addf %52, %57 : vector<8x8xf32>
      %59 = vector.extract_strided_slice %41 {offsets = [27, 0, 2], sizes = [1, 8, 8], strides = [1, 1, 1]} : vector<50x12x12xf32> to vector<1x8x8xf32>
      %60 = vector.shape_cast %59 : vector<1x8x8xf32> to vector<8x8xf32>
      %61 = arith.addf %55, %60 : vector<8x8xf32>
      %62 = vector.extract_strided_slice %41 {offsets = [3, 0, 3], sizes = [1, 8, 8], strides = [1, 1, 1]} : vector<50x12x12xf32> to vector<1x8x8xf32>
      %63 = vector.shape_cast %62 : vector<1x8x8xf32> to vector<8x8xf32>
      %64 = arith.addf %58, %63 : vector<8x8xf32>
      %65 = vector.extract_strided_slice %41 {offsets = [28, 0, 3], sizes = [1, 8, 8], strides = [1, 1, 1]} : vector<50x12x12xf32> to vector<1x8x8xf32>
      %66 = vector.shape_cast %65 : vector<1x8x8xf32> to vector<8x8xf32>
      %67 = arith.addf %61, %66 : vector<8x8xf32>
      %68 = vector.extract_strided_slice %41 {offsets = [4, 0, 4], sizes = [1, 8, 8], strides = [1, 1, 1]} : vector<50x12x12xf32> to vector<1x8x8xf32>
      %69 = vector.shape_cast %68 : vector<1x8x8xf32> to vector<8x8xf32>
      %70 = arith.addf %64, %69 : vector<8x8xf32>
      %71 = vector.extract_strided_slice %41 {offsets = [29, 0, 4], sizes = [1, 8, 8], strides = [1, 1, 1]} : vector<50x12x12xf32> to vector<1x8x8xf32>
      %72 = vector.shape_cast %71 : vector<1x8x8xf32> to vector<8x8xf32>
      %73 = arith.addf %67, %72 : vector<8x8xf32>
      %74 = vector.extract_strided_slice %41 {offsets = [5, 1, 0], sizes = [1, 8, 8], strides = [1, 1, 1]} : vector<50x12x12xf32> to vector<1x8x8xf32>
      %75 = vector.shape_cast %74 : vector<1x8x8xf32> to vector<8x8xf32>
      %76 = arith.addf %70, %75 : vector<8x8xf32>
      %77 = vector.extract_strided_slice %41 {offsets = [30, 1, 0], sizes = [1, 8, 8], strides = [1, 1, 1]} : vector<50x12x12xf32> to vector<1x8x8xf32>
      %78 = vector.shape_cast %77 : vector<1x8x8xf32> to vector<8x8xf32>
      %79 = arith.addf %73, %78 : vector<8x8xf32>
      %80 = vector.extract_strided_slice %41 {offsets = [6, 1, 1], sizes = [1, 8, 8], strides = [1, 1, 1]} : vector<50x12x12xf32> to vector<1x8x8xf32>
      %81 = vector.shape_cast %80 : vector<1x8x8xf32> to vector<8x8xf32>
      %82 = arith.addf %76, %81 : vector<8x8xf32>
      %83 = vector.extract_strided_slice %41 {offsets = [31, 1, 1], sizes = [1, 8, 8], strides = [1, 1, 1]} : vector<50x12x12xf32> to vector<1x8x8xf32>
      %84 = vector.shape_cast %83 : vector<1x8x8xf32> to vector<8x8xf32>
      %85 = arith.addf %79, %84 : vector<8x8xf32>
      %86 = vector.extract_strided_slice %41 {offsets = [7, 1, 2], sizes = [1, 8, 8], strides = [1, 1, 1]} : vector<50x12x12xf32> to vector<1x8x8xf32>
      %87 = vector.shape_cast %86 : vector<1x8x8xf32> to vector<8x8xf32>
      %88 = arith.addf %82, %87 : vector<8x8xf32>
      %89 = vector.extract_strided_slice %41 {offsets = [32, 1, 2], sizes = [1, 8, 8], strides = [1, 1, 1]} : vector<50x12x12xf32> to vector<1x8x8xf32>
      %90 = vector.shape_cast %89 : vector<1x8x8xf32> to vector<8x8xf32>
      %91 = arith.addf %85, %90 : vector<8x8xf32>
      %92 = vector.extract_strided_slice %41 {offsets = [8, 1, 3], sizes = [1, 8, 8], strides = [1, 1, 1]} : vector<50x12x12xf32> to vector<1x8x8xf32>
      %93 = vector.shape_cast %92 : vector<1x8x8xf32> to vector<8x8xf32>
      %94 = arith.addf %88, %93 : vector<8x8xf32>
      %95 = vector.extract_strided_slice %41 {offsets = [33, 1, 3], sizes = [1, 8, 8], strides = [1, 1, 1]} : vector<50x12x12xf32> to vector<1x8x8xf32>
      %96 = vector.shape_cast %95 : vector<1x8x8xf32> to vector<8x8xf32>
      %97 = arith.addf %91, %96 : vector<8x8xf32>
      %98 = vector.extract_strided_slice %41 {offsets = [9, 1, 4], sizes = [1, 8, 8], strides = [1, 1, 1]} : vector<50x12x12xf32> to vector<1x8x8xf32>
      %99 = vector.shape_cast %98 : vector<1x8x8xf32> to vector<8x8xf32>
      %100 = arith.addf %94, %99 : vector<8x8xf32>
      %101 = vector.extract_strided_slice %41 {offsets = [34, 1, 4], sizes = [1, 8, 8], strides = [1, 1, 1]} : vector<50x12x12xf32> to vector<1x8x8xf32>
      %102 = vector.shape_cast %101 : vector<1x8x8xf32> to vector<8x8xf32>
      %103 = arith.addf %97, %102 : vector<8x8xf32>
      %104 = vector.extract_strided_slice %41 {offsets = [10, 2, 0], sizes = [1, 8, 8], strides = [1, 1, 1]} : vector<50x12x12xf32> to vector<1x8x8xf32>
      %105 = vector.shape_cast %104 : vector<1x8x8xf32> to vector<8x8xf32>
      %106 = arith.addf %100, %105 : vector<8x8xf32>
      %107 = vector.extract_strided_slice %41 {offsets = [35, 2, 0], sizes = [1, 8, 8], strides = [1, 1, 1]} : vector<50x12x12xf32> to vector<1x8x8xf32>
      %108 = vector.shape_cast %107 : vector<1x8x8xf32> to vector<8x8xf32>
      %109 = arith.addf %103, %108 : vector<8x8xf32>
      %110 = vector.extract_strided_slice %41 {offsets = [11, 2, 1], sizes = [1, 8, 8], strides = [1, 1, 1]} : vector<50x12x12xf32> to vector<1x8x8xf32>
      %111 = vector.shape_cast %110 : vector<1x8x8xf32> to vector<8x8xf32>
      %112 = arith.addf %106, %111 : vector<8x8xf32>
      %113 = vector.extract_strided_slice %41 {offsets = [36, 2, 1], sizes = [1, 8, 8], strides = [1, 1, 1]} : vector<50x12x12xf32> to vector<1x8x8xf32>
      %114 = vector.shape_cast %113 : vector<1x8x8xf32> to vector<8x8xf32>
      %115 = arith.addf %109, %114 : vector<8x8xf32>
      %116 = vector.extract_strided_slice %41 {offsets = [12, 2, 2], sizes = [1, 8, 8], strides = [1, 1, 1]} : vector<50x12x12xf32> to vector<1x8x8xf32>
      %117 = vector.shape_cast %116 : vector<1x8x8xf32> to vector<8x8xf32>
      %118 = arith.addf %112, %117 : vector<8x8xf32>
      %119 = vector.extract_strided_slice %41 {offsets = [37, 2, 2], sizes = [1, 8, 8], strides = [1, 1, 1]} : vector<50x12x12xf32> to vector<1x8x8xf32>
      %120 = vector.shape_cast %119 : vector<1x8x8xf32> to vector<8x8xf32>
      %121 = arith.addf %115, %120 : vector<8x8xf32>
      %122 = vector.extract_strided_slice %41 {offsets = [13, 2, 3], sizes = [1, 8, 8], strides = [1, 1, 1]} : vector<50x12x12xf32> to vector<1x8x8xf32>
      %123 = vector.shape_cast %122 : vector<1x8x8xf32> to vector<8x8xf32>
      %124 = arith.addf %118, %123 : vector<8x8xf32>
      %125 = vector.extract_strided_slice %41 {offsets = [38, 2, 3], sizes = [1, 8, 8], strides = [1, 1, 1]} : vector<50x12x12xf32> to vector<1x8x8xf32>
      %126 = vector.shape_cast %125 : vector<1x8x8xf32> to vector<8x8xf32>
      %127 = arith.addf %121, %126 : vector<8x8xf32>
      %128 = vector.extract_strided_slice %41 {offsets = [14, 2, 4], sizes = [1, 8, 8], strides = [1, 1, 1]} : vector<50x12x12xf32> to vector<1x8x8xf32>
      %129 = vector.shape_cast %128 : vector<1x8x8xf32> to vector<8x8xf32>
      %130 = arith.addf %124, %129 : vector<8x8xf32>
      %131 = vector.extract_strided_slice %41 {offsets = [39, 2, 4], sizes = [1, 8, 8], strides = [1, 1, 1]} : vector<50x12x12xf32> to vector<1x8x8xf32>
      %132 = vector.shape_cast %131 : vector<1x8x8xf32> to vector<8x8xf32>
      %133 = arith.addf %127, %132 : vector<8x8xf32>
      %134 = vector.extract_strided_slice %41 {offsets = [15, 3, 0], sizes = [1, 8, 8], strides = [1, 1, 1]} : vector<50x12x12xf32> to vector<1x8x8xf32>
      %135 = vector.shape_cast %134 : vector<1x8x8xf32> to vector<8x8xf32>
      %136 = arith.addf %130, %135 : vector<8x8xf32>
      %137 = vector.extract_strided_slice %41 {offsets = [40, 3, 0], sizes = [1, 8, 8], strides = [1, 1, 1]} : vector<50x12x12xf32> to vector<1x8x8xf32>
      %138 = vector.shape_cast %137 : vector<1x8x8xf32> to vector<8x8xf32>
      %139 = arith.addf %133, %138 : vector<8x8xf32>
      %140 = vector.extract_strided_slice %41 {offsets = [16, 3, 1], sizes = [1, 8, 8], strides = [1, 1, 1]} : vector<50x12x12xf32> to vector<1x8x8xf32>
      %141 = vector.shape_cast %140 : vector<1x8x8xf32> to vector<8x8xf32>
      %142 = arith.addf %136, %141 : vector<8x8xf32>
      %143 = vector.extract_strided_slice %41 {offsets = [41, 3, 1], sizes = [1, 8, 8], strides = [1, 1, 1]} : vector<50x12x12xf32> to vector<1x8x8xf32>
      %144 = vector.shape_cast %143 : vector<1x8x8xf32> to vector<8x8xf32>
      %145 = arith.addf %139, %144 : vector<8x8xf32>
      %146 = vector.extract_strided_slice %41 {offsets = [17, 3, 2], sizes = [1, 8, 8], strides = [1, 1, 1]} : vector<50x12x12xf32> to vector<1x8x8xf32>
      %147 = vector.shape_cast %146 : vector<1x8x8xf32> to vector<8x8xf32>
      %148 = arith.addf %142, %147 : vector<8x8xf32>
      %149 = vector.extract_strided_slice %41 {offsets = [42, 3, 2], sizes = [1, 8, 8], strides = [1, 1, 1]} : vector<50x12x12xf32> to vector<1x8x8xf32>
      %150 = vector.shape_cast %149 : vector<1x8x8xf32> to vector<8x8xf32>
      %151 = arith.addf %145, %150 : vector<8x8xf32>
      %152 = vector.extract_strided_slice %41 {offsets = [18, 3, 3], sizes = [1, 8, 8], strides = [1, 1, 1]} : vector<50x12x12xf32> to vector<1x8x8xf32>
      %153 = vector.shape_cast %152 : vector<1x8x8xf32> to vector<8x8xf32>
      %154 = arith.addf %148, %153 : vector<8x8xf32>
      %155 = vector.extract_strided_slice %41 {offsets = [43, 3, 3], sizes = [1, 8, 8], strides = [1, 1, 1]} : vector<50x12x12xf32> to vector<1x8x8xf32>
      %156 = vector.shape_cast %155 : vector<1x8x8xf32> to vector<8x8xf32>
      %157 = arith.addf %151, %156 : vector<8x8xf32>
      %158 = vector.extract_strided_slice %41 {offsets = [19, 3, 4], sizes = [1, 8, 8], strides = [1, 1, 1]} : vector<50x12x12xf32> to vector<1x8x8xf32>
      %159 = vector.shape_cast %158 : vector<1x8x8xf32> to vector<8x8xf32>
      %160 = arith.addf %154, %159 : vector<8x8xf32>
      %161 = vector.extract_strided_slice %41 {offsets = [44, 3, 4], sizes = [1, 8, 8], strides = [1, 1, 1]} : vector<50x12x12xf32> to vector<1x8x8xf32>
      %162 = vector.shape_cast %161 : vector<1x8x8xf32> to vector<8x8xf32>
      %163 = arith.addf %157, %162 : vector<8x8xf32>
      %164 = vector.extract_strided_slice %41 {offsets = [20, 4, 0], sizes = [1, 8, 8], strides = [1, 1, 1]} : vector<50x12x12xf32> to vector<1x8x8xf32>
      %165 = vector.shape_cast %164 : vector<1x8x8xf32> to vector<8x8xf32>
      %166 = arith.addf %160, %165 : vector<8x8xf32>
      %167 = vector.extract_strided_slice %41 {offsets = [45, 4, 0], sizes = [1, 8, 8], strides = [1, 1, 1]} : vector<50x12x12xf32> to vector<1x8x8xf32>
      %168 = vector.shape_cast %167 : vector<1x8x8xf32> to vector<8x8xf32>
      %169 = arith.addf %163, %168 : vector<8x8xf32>
      %170 = vector.extract_strided_slice %41 {offsets = [21, 4, 1], sizes = [1, 8, 8], strides = [1, 1, 1]} : vector<50x12x12xf32> to vector<1x8x8xf32>
      %171 = vector.shape_cast %170 : vector<1x8x8xf32> to vector<8x8xf32>
      %172 = arith.addf %166, %171 : vector<8x8xf32>
      %173 = vector.extract_strided_slice %41 {offsets = [46, 4, 1], sizes = [1, 8, 8], strides = [1, 1, 1]} : vector<50x12x12xf32> to vector<1x8x8xf32>
      %174 = vector.shape_cast %173 : vector<1x8x8xf32> to vector<8x8xf32>
      %175 = arith.addf %169, %174 : vector<8x8xf32>
      %176 = vector.extract_strided_slice %41 {offsets = [22, 4, 2], sizes = [1, 8, 8], strides = [1, 1, 1]} : vector<50x12x12xf32> to vector<1x8x8xf32>
      %177 = vector.shape_cast %176 : vector<1x8x8xf32> to vector<8x8xf32>
      %178 = arith.addf %172, %177 : vector<8x8xf32>
      %179 = vector.extract_strided_slice %41 {offsets = [47, 4, 2], sizes = [1, 8, 8], strides = [1, 1, 1]} : vector<50x12x12xf32> to vector<1x8x8xf32>
      %180 = vector.shape_cast %179 : vector<1x8x8xf32> to vector<8x8xf32>
      %181 = arith.addf %175, %180 : vector<8x8xf32>
      %182 = vector.extract_strided_slice %41 {offsets = [23, 4, 3], sizes = [1, 8, 8], strides = [1, 1, 1]} : vector<50x12x12xf32> to vector<1x8x8xf32>
      %183 = vector.shape_cast %182 : vector<1x8x8xf32> to vector<8x8xf32>
      %184 = arith.addf %178, %183 : vector<8x8xf32>
      %185 = vector.extract_strided_slice %41 {offsets = [48, 4, 3], sizes = [1, 8, 8], strides = [1, 1, 1]} : vector<50x12x12xf32> to vector<1x8x8xf32>
      %186 = vector.shape_cast %185 : vector<1x8x8xf32> to vector<8x8xf32>
      %187 = arith.addf %181, %186 : vector<8x8xf32>
      %188 = vector.extract_strided_slice %41 {offsets = [24, 4, 4], sizes = [1, 8, 8], strides = [1, 1, 1]} : vector<50x12x12xf32> to vector<1x8x8xf32>
      %189 = vector.shape_cast %188 : vector<1x8x8xf32> to vector<8x8xf32>
      %190 = arith.addf %184, %189 : vector<8x8xf32>
      %191 = vector.extract_strided_slice %41 {offsets = [49, 4, 4], sizes = [1, 8, 8], strides = [1, 1, 1]} : vector<50x12x12xf32> to vector<1x8x8xf32>
      %192 = vector.shape_cast %191 : vector<1x8x8xf32> to vector<8x8xf32>
      %193 = arith.addf %187, %192 : vector<8x8xf32>
      %c0_25 = arith.constant 0 : index
      %194 = arith.index_cast %5 : i32 to index
      %c0_26 = arith.constant 0 : index
      %c0_27 = arith.constant 0 : index
      %c0_28 = arith.constant 0 : index
      %195 = vector.load %arg6[%c0_25, %194, %c0_26, %c0_27, %c0_28] : memref<1x8x2x8x8xf32, #tpu.memory_space<vmem>>, vector<1x1x1x8x8xf32>
      %196 = vector.shape_cast %195 : vector<1x1x1x8x8xf32> to vector<8x8xf32>
      %197 = arith.addf %196, %190 : vector<8x8xf32>
      %c0_29 = arith.constant 0 : index
      %198 = arith.index_cast %5 : i32 to index
      %c0_30 = arith.constant 0 : index
      %c0_31 = arith.constant 0 : index
      %c0_32 = arith.constant 0 : index
      %199 = vector.load %arg6[%c0_29, %198, %c0_30, %c0_31, %c0_32] : memref<1x8x2x8x8xf32, #tpu.memory_space<vmem>>, vector<1x1x1x8x8xf32>
      %200 = vector.shape_cast %199 : vector<1x1x1x8x8xf32> to vector<8x8xf32>
      %201 = vector.shape_cast %197 : vector<8x8xf32> to vector<1x1x1x8x8xf32>
      tpu.vector_store %arg6[%c0_29, %198, %c0_30, %c0_31, %c0_32], %201 {strides = array<i32>} : memref<1x8x2x8x8xf32, #tpu.memory_space<vmem>>, vector<1x1x1x8x8xf32>,
      %c0_33 = arith.constant 0 : index
      %202 = arith.index_cast %5 : i32 to index
      %c1 = arith.constant 1 : index
      %c0_34 = arith.constant 0 : index
      %c0_35 = arith.constant 0 : index
      %203 = vector.load %arg6[%c0_33, %202, %c1, %c0_34, %c0_35] : memref<1x8x2x8x8xf32, #tpu.memory_space<vmem>>, vector<1x1x1x8x8xf32>
      %204 = vector.shape_cast %203 : vector<1x1x1x8x8xf32> to vector<8x8xf32>
      %205 = arith.addf %204, %193 : vector<8x8xf32>
      %c0_36 = arith.constant 0 : index
      %206 = arith.index_cast %5 : i32 to index
      %c1_37 = arith.constant 1 : index
      %c0_38 = arith.constant 0 : index
      %c0_39 = arith.constant 0 : index
      %207 = vector.load %arg6[%c0_36, %206, %c1_37, %c0_38, %c0_39] : memref<1x8x2x8x8xf32, #tpu.memory_space<vmem>>, vector<1x1x1x8x8xf32>
      %208 = vector.shape_cast %207 : vector<1x1x1x8x8xf32> to vector<8x8xf32>
      %209 = vector.shape_cast %205 : vector<8x8xf32> to vector<1x1x1x8x8xf32>
      tpu.vector_store %arg6[%c0_36, %206, %c1_37, %c0_38, %c0_39], %209 {strides = array<i32>} : memref<1x8x2x8x8xf32, #tpu.memory_space<vmem>>, vector<1x1x1x8x8xf32>,
    } else {
    }
    %c1_i32 = arith.constant 1 : i32
    %11 = arith.subi %arg2, %c1_i32 : i32
    %c0_i32_7 = arith.constant 0 : i32
    %12 = arith.cmpi sge, %11, %c0_i32_7 : i32
    %c8_i32_8 = arith.constant 8 : i32
    %13 = arith.cmpi slt, %11, %c8_i32_8 : i32
    %14 = arith.andi %12, %13 : i1
    %15 = arith.extui %14 : i1 to i32
    %c0_i32_9 = arith.constant 0 : i32
    %16 = arith.cmpi ne, %15, %c0_i32_9 : i32
    scf.if %16 {
      %c1 = arith.constant 1 : index
      %c0_20 = arith.constant 0 : index
      %c0_21 = arith.constant 0 : index
      %38 = vector.load %arg4[%c1, %c0_20, %c0_21] : memref<5x50x4xbf16, #tpu.memory_space<vmem>>, vector<1x50x4xbf16>
      %39 = vector.shape_cast %38 : vector<1x50x4xbf16> to vector<50x4xbf16>
      %cst = arith.constant dense<0.000000e+00> : vector<50x144xf32>
      %40 = tpu.matmul %39, %4, %cst {dimension_numbers = #tpu.dot_dimension_numbers<[1], [0], [0], [1], [0, 0, 1, 1], [], []>} : vector<50x4xbf16>, vector<4x144xbf16>, vector<50x144xf32> -> vector<50x144xf32>
      %41 = vector.shape_cast %40 : vector<50x144xf32> to vector<50x12x12xf32>
      %cst_22 = arith.constant 0.000000e+00 : f32
      %42 = vector.broadcast %cst_22 : f32 to vector<8x8xf32>
      %cst_23 = arith.constant 0.000000e+00 : f32
      %43 = vector.broadcast %cst_23 : f32 to vector<8x8xf32>
      %44 = vector.extract_strided_slice %41 {offsets = [0, 0, 0], sizes = [1, 8, 8], strides = [1, 1, 1]} : vector<50x12x12xf32> to vector<1x8x8xf32>
      %45 = vector.shape_cast %44 : vector<1x8x8xf32> to vector<8x8xf32>
      %46 = arith.addf %42, %45 : vector<8x8xf32>
      %47 = vector.extract_strided_slice %41 {offsets = [25, 0, 0], sizes = [1, 8, 8], strides = [1, 1, 1]} : vector<50x12x12xf32> to vector<1x8x8xf32>
      %48 = vector.shape_cast %47 : vector<1x8x8xf32> to vector<8x8xf32>
      %49 = arith.addf %43, %48 : vector<8x8xf32>
      %50 = vector.extract_strided_slice %41 {offsets = [1, 0, 1], sizes = [1, 8, 8], strides = [1, 1, 1]} : vector<50x12x12xf32> to vector<1x8x8xf32>
      %51 = vector.shape_cast %50 : vector<1x8x8xf32> to vector<8x8xf32>
      %52 = arith.addf %46, %51 : vector<8x8xf32>
      %53 = vector.extract_strided_slice %41 {offsets = [26, 0, 1], sizes = [1, 8, 8], strides = [1, 1, 1]} : vector<50x12x12xf32> to vector<1x8x8xf32>
      %54 = vector.shape_cast %53 : vector<1x8x8xf32> to vector<8x8xf32>
      %55 = arith.addf %49, %54 : vector<8x8xf32>
      %56 = vector.extract_strided_slice %41 {offsets = [2, 0, 2], sizes = [1, 8, 8], strides = [1, 1, 1]} : vector<50x12x12xf32> to vector<1x8x8xf32>
      %57 = vector.shape_cast %56 : vector<1x8x8xf32> to vector<8x8xf32>
      %58 = arith.addf %52, %57 : vector<8x8xf32>
      %59 = vector.extract_strided_slice %41 {offsets = [27, 0, 2], sizes = [1, 8, 8], strides = [1, 1, 1]} : vector<50x12x12xf32> to vector<1x8x8xf32>
      %60 = vector.shape_cast %59 : vector<1x8x8xf32> to vector<8x8xf32>
      %61 = arith.addf %55, %60 : vector<8x8xf32>
      %62 = vector.extract_strided_slice %41 {offsets = [3, 0, 3], sizes = [1, 8, 8], strides = [1, 1, 1]} : vector<50x12x12xf32> to vector<1x8x8xf32>
      %63 = vector.shape_cast %62 : vector<1x8x8xf32> to vector<8x8xf32>
      %64 = arith.addf %58, %63 : vector<8x8xf32>
      %65 = vector.extract_strided_slice %41 {offsets = [28, 0, 3], sizes = [1, 8, 8], strides = [1, 1, 1]} : vector<50x12x12xf32> to vector<1x8x8xf32>
      %66 = vector.shape_cast %65 : vector<1x8x8xf32> to vector<8x8xf32>
      %67 = arith.addf %61, %66 : vector<8x8xf32>
      %68 = vector.extract_strided_slice %41 {offsets = [4, 0, 4], sizes = [1, 8, 8], strides = [1, 1, 1]} : vector<50x12x12xf32> to vector<1x8x8xf32>
      %69 = vector.shape_cast %68 : vector<1x8x8xf32> to vector<8x8xf32>
      %70 = arith.addf %64, %69 : vector<8x8xf32>
      %71 = vector.extract_strided_slice %41 {offsets = [29, 0, 4], sizes = [1, 8, 8], strides = [1, 1, 1]} : vector<50x12x12xf32> to vector<1x8x8xf32>
      %72 = vector.shape_cast %71 : vector<1x8x8xf32> to vector<8x8xf32>
      %73 = arith.addf %67, %72 : vector<8x8xf32>
      %74 = vector.extract_strided_slice %41 {offsets = [5, 1, 0], sizes = [1, 8, 8], strides = [1, 1, 1]} : vector<50x12x12xf32> to vector<1x8x8xf32>
      %75 = vector.shape_cast %74 : vector<1x8x8xf32> to vector<8x8xf32>
      %76 = arith.addf %70, %75 : vector<8x8xf32>
      %77 = vector.extract_strided_slice %41 {offsets = [30, 1, 0], sizes = [1, 8, 8], strides = [1, 1, 1]} : vector<50x12x12xf32> to vector<1x8x8xf32>
      %78 = vector.shape_cast %77 : vector<1x8x8xf32> to vector<8x8xf32>
      %79 = arith.addf %73, %78 : vector<8x8xf32>
      %80 = vector.extract_strided_slice %41 {offsets = [6, 1, 1], sizes = [1, 8, 8], strides = [1, 1, 1]} : vector<50x12x12xf32> to vector<1x8x8xf32>
      %81 = vector.shape_cast %80 : vector<1x8x8xf32> to vector<8x8xf32>
      %82 = arith.addf %76, %81 : vector<8x8xf32>
      %83 = vector.extract_strided_slice %41 {offsets = [31, 1, 1], sizes = [1, 8, 8], strides = [1, 1, 1]} : vector<50x12x12xf32> to vector<1x8x8xf32>
      %84 = vector.shape_cast %83 : vector<1x8x8xf32> to vector<8x8xf32>
      %85 = arith.addf %79, %84 : vector<8x8xf32>
      %86 = vector.extract_strided_slice %41 {offsets = [7, 1, 2], sizes = [1, 8, 8], strides = [1, 1, 1]} : vector<50x12x12xf32> to vector<1x8x8xf32>
      %87 = vector.shape_cast %86 : vector<1x8x8xf32> to vector<8x8xf32>
      %88 = arith.addf %82, %87 : vector<8x8xf32>
      %89 = vector.extract_strided_slice %41 {offsets = [32, 1, 2], sizes = [1, 8, 8], strides = [1, 1, 1]} : vector<50x12x12xf32> to vector<1x8x8xf32>
      %90 = vector.shape_cast %89 : vector<1x8x8xf32> to vector<8x8xf32>
      %91 = arith.addf %85, %90 : vector<8x8xf32>
      %92 = vector.extract_strided_slice %41 {offsets = [8, 1, 3], sizes = [1, 8, 8], strides = [1, 1, 1]} : vector<50x12x12xf32> to vector<1x8x8xf32>
      %93 = vector.shape_cast %92 : vector<1x8x8xf32> to vector<8x8xf32>
      %94 = arith.addf %88, %93 : vector<8x8xf32>
      %95 = vector.extract_strided_slice %41 {offsets = [33, 1, 3], sizes = [1, 8, 8], strides = [1, 1, 1]} : vector<50x12x12xf32> to vector<1x8x8xf32>
      %96 = vector.shape_cast %95 : vector<1x8x8xf32> to vector<8x8xf32>
      %97 = arith.addf %91, %96 : vector<8x8xf32>
      %98 = vector.extract_strided_slice %41 {offsets = [9, 1, 4], sizes = [1, 8, 8], strides = [1, 1, 1]} : vector<50x12x12xf32> to vector<1x8x8xf32>
      %99 = vector.shape_cast %98 : vector<1x8x8xf32> to vector<8x8xf32>
      %100 = arith.addf %94, %99 : vector<8x8xf32>
      %101 = vector.extract_strided_slice %41 {offsets = [34, 1, 4], sizes = [1, 8, 8], strides = [1, 1, 1]} : vector<50x12x12xf32> to vector<1x8x8xf32>
      %102 = vector.shape_cast %101 : vector<1x8x8xf32> to vector<8x8xf32>
      %103 = arith.addf %97, %102 : vector<8x8xf32>
      %104 = vector.extract_strided_slice %41 {offsets = [10, 2, 0], sizes = [1, 8, 8], strides = [1, 1, 1]} : vector<50x12x12xf32> to vector<1x8x8xf32>
      %105 = vector.shape_cast %104 : vector<1x8x8xf32> to vector<8x8xf32>
      %106 = arith.addf %100, %105 : vector<8x8xf32>
      %107 = vector.extract_strided_slice %41 {offsets = [35, 2, 0], sizes = [1, 8, 8], strides = [1, 1, 1]} : vector<50x12x12xf32> to vector<1x8x8xf32>
      %108 = vector.shape_cast %107 : vector<1x8x8xf32> to vector<8x8xf32>
      %109 = arith.addf %103, %108 : vector<8x8xf32>
      %110 = vector.extract_strided_slice %41 {offsets = [11, 2, 1], sizes = [1, 8, 8], strides = [1, 1, 1]} : vector<50x12x12xf32> to vector<1x8x8xf32>
      %111 = vector.shape_cast %110 : vector<1x8x8xf32> to vector<8x8xf32>
      %112 = arith.addf %106, %111 : vector<8x8xf32>
      %113 = vector.extract_strided_slice %41 {offsets = [36, 2, 1], sizes = [1, 8, 8], strides = [1, 1, 1]} : vector<50x12x12xf32> to vector<1x8x8xf32>
      %114 = vector.shape_cast %113 : vector<1x8x8xf32> to vector<8x8xf32>
      %115 = arith.addf %109, %114 : vector<8x8xf32>
      %116 = vector.extract_strided_slice %41 {offsets = [12, 2, 2], sizes = [1, 8, 8], strides = [1, 1, 1]} : vector<50x12x12xf32> to vector<1x8x8xf32>
      %117 = vector.shape_cast %116 : vector<1x8x8xf32> to vector<8x8xf32>
      %118 = arith.addf %112, %117 : vector<8x8xf32>
      %119 = vector.extract_strided_slice %41 {offsets = [37, 2, 2], sizes = [1, 8, 8], strides = [1, 1, 1]} : vector<50x12x12xf32> to vector<1x8x8xf32>
      %120 = vector.shape_cast %119 : vector<1x8x8xf32> to vector<8x8xf32>
      %121 = arith.addf %115, %120 : vector<8x8xf32>
      %122 = vector.extract_strided_slice %41 {offsets = [13, 2, 3], sizes = [1, 8, 8], strides = [1, 1, 1]} : vector<50x12x12xf32> to vector<1x8x8xf32>
      %123 = vector.shape_cast %122 : vector<1x8x8xf32> to vector<8x8xf32>
      %124 = arith.addf %118, %123 : vector<8x8xf32>
      %125 = vector.extract_strided_slice %41 {offsets = [38, 2, 3], sizes = [1, 8, 8], strides = [1, 1, 1]} : vector<50x12x12xf32> to vector<1x8x8xf32>
      %126 = vector.shape_cast %125 : vector<1x8x8xf32> to vector<8x8xf32>
      %127 = arith.addf %121, %126 : vector<8x8xf32>
      %128 = vector.extract_strided_slice %41 {offsets = [14, 2, 4], sizes = [1, 8, 8], strides = [1, 1, 1]} : vector<50x12x12xf32> to vector<1x8x8xf32>
      %129 = vector.shape_cast %128 : vector<1x8x8xf32> to vector<8x8xf32>
      %130 = arith.addf %124, %129 : vector<8x8xf32>
      %131 = vector.extract_strided_slice %41 {offsets = [39, 2, 4], sizes = [1, 8, 8], strides = [1, 1, 1]} : vector<50x12x12xf32> to vector<1x8x8xf32>
      %132 = vector.shape_cast %131 : vector<1x8x8xf32> to vector<8x8xf32>
      %133 = arith.addf %127, %132 : vector<8x8xf32>
      %134 = vector.extract_strided_slice %41 {offsets = [15, 3, 0], sizes = [1, 8, 8], strides = [1, 1, 1]} : vector<50x12x12xf32> to vector<1x8x8xf32>
      %135 = vector.shape_cast %134 : vector<1x8x8xf32> to vector<8x8xf32>
      %136 = arith.addf %130, %135 : vector<8x8xf32>
      %137 = vector.extract_strided_slice %41 {offsets = [40, 3, 0], sizes = [1, 8, 8], strides = [1, 1, 1]} : vector<50x12x12xf32> to vector<1x8x8xf32>
      %138 = vector.shape_cast %137 : vector<1x8x8xf32> to vector<8x8xf32>
      %139 = arith.addf %133, %138 : vector<8x8xf32>
      %140 = vector.extract_strided_slice %41 {offsets = [16, 3, 1], sizes = [1, 8, 8], strides = [1, 1, 1]} : vector<50x12x12xf32> to vector<1x8x8xf32>
      %141 = vector.shape_cast %140 : vector<1x8x8xf32> to vector<8x8xf32>
      %142 = arith.addf %136, %141 : vector<8x8xf32>
      %143 = vector.extract_strided_slice %41 {offsets = [41, 3, 1], sizes = [1, 8, 8], strides = [1, 1, 1]} : vector<50x12x12xf32> to vector<1x8x8xf32>
      %144 = vector.shape_cast %143 : vector<1x8x8xf32> to vector<8x8xf32>
      %145 = arith.addf %139, %144 : vector<8x8xf32>
      %146 = vector.extract_strided_slice %41 {offsets = [17, 3, 2], sizes = [1, 8, 8], strides = [1, 1, 1]} : vector<50x12x12xf32> to vector<1x8x8xf32>
      %147 = vector.shape_cast %146 : vector<1x8x8xf32> to vector<8x8xf32>
      %148 = arith.addf %142, %147 : vector<8x8xf32>
      %149 = vector.extract_strided_slice %41 {offsets = [42, 3, 2], sizes = [1, 8, 8], strides = [1, 1, 1]} : vector<50x12x12xf32> to vector<1x8x8xf32>
      %150 = vector.shape_cast %149 : vector<1x8x8xf32> to vector<8x8xf32>
      %151 = arith.addf %145, %150 : vector<8x8xf32>
      %152 = vector.extract_strided_slice %41 {offsets = [18, 3, 3], sizes = [1, 8, 8], strides = [1, 1, 1]} : vector<50x12x12xf32> to vector<1x8x8xf32>
      %153 = vector.shape_cast %152 : vector<1x8x8xf32> to vector<8x8xf32>
      %154 = arith.addf %148, %153 : vector<8x8xf32>
      %155 = vector.extract_strided_slice %41 {offsets = [43, 3, 3], sizes = [1, 8, 8], strides = [1, 1, 1]} : vector<50x12x12xf32> to vector<1x8x8xf32>
      %156 = vector.shape_cast %155 : vector<1x8x8xf32> to vector<8x8xf32>
      %157 = arith.addf %151, %156 : vector<8x8xf32>
      %158 = vector.extract_strided_slice %41 {offsets = [19, 3, 4], sizes = [1, 8, 8], strides = [1, 1, 1]} : vector<50x12x12xf32> to vector<1x8x8xf32>
      %159 = vector.shape_cast %158 : vector<1x8x8xf32> to vector<8x8xf32>
      %160 = arith.addf %154, %159 : vector<8x8xf32>
      %161 = vector.extract_strided_slice %41 {offsets = [44, 3, 4], sizes = [1, 8, 8], strides = [1, 1, 1]} : vector<50x12x12xf32> to vector<1x8x8xf32>
      %162 = vector.shape_cast %161 : vector<1x8x8xf32> to vector<8x8xf32>
      %163 = arith.addf %157, %162 : vector<8x8xf32>
      %164 = vector.extract_strided_slice %41 {offsets = [20, 4, 0], sizes = [1, 8, 8], strides = [1, 1, 1]} : vector<50x12x12xf32> to vector<1x8x8xf32>
      %165 = vector.shape_cast %164 : vector<1x8x8xf32> to vector<8x8xf32>
      %166 = arith.addf %160, %165 : vector<8x8xf32>
      %167 = vector.extract_strided_slice %41 {offsets = [45, 4, 0], sizes = [1, 8, 8], strides = [1, 1, 1]} : vector<50x12x12xf32> to vector<1x8x8xf32>
      %168 = vector.shape_cast %167 : vector<1x8x8xf32> to vector<8x8xf32>
      %169 = arith.addf %163, %168 : vector<8x8xf32>
      %170 = vector.extract_strided_slice %41 {offsets = [21, 4, 1], sizes = [1, 8, 8], strides = [1, 1, 1]} : vector<50x12x12xf32> to vector<1x8x8xf32>
      %171 = vector.shape_cast %170 : vector<1x8x8xf32> to vector<8x8xf32>
      %172 = arith.addf %166, %171 : vector<8x8xf32>
      %173 = vector.extract_strided_slice %41 {offsets = [46, 4, 1], sizes = [1, 8, 8], strides = [1, 1, 1]} : vector<50x12x12xf32> to vector<1x8x8xf32>
      %174 = vector.shape_cast %173 : vector<1x8x8xf32> to vector<8x8xf32>
      %175 = arith.addf %169, %174 : vector<8x8xf32>
      %176 = vector.extract_strided_slice %41 {offsets = [22, 4, 2], sizes = [1, 8, 8], strides = [1, 1, 1]} : vector<50x12x12xf32> to vector<1x8x8xf32>
      %177 = vector.shape_cast %176 : vector<1x8x8xf32> to vector<8x8xf32>
      %178 = arith.addf %172, %177 : vector<8x8xf32>
      %179 = vector.extract_strided_slice %41 {offsets = [47, 4, 2], sizes = [1, 8, 8], strides = [1, 1, 1]} : vector<50x12x12xf32> to vector<1x8x8xf32>
      %180 = vector.shape_cast %179 : vector<1x8x8xf32> to vector<8x8xf32>
      %181 = arith.addf %175, %180 : vector<8x8xf32>
      %182 = vector.extract_strided_slice %41 {offsets = [23, 4, 3], sizes = [1, 8, 8], strides = [1, 1, 1]} : vector<50x12x12xf32> to vector<1x8x8xf32>
      %183 = vector.shape_cast %182 : vector<1x8x8xf32> to vector<8x8xf32>
      %184 = arith.addf %178, %183 : vector<8x8xf32>
      %185 = vector.extract_strided_slice %41 {offsets = [48, 4, 3], sizes = [1, 8, 8], strides = [1, 1, 1]} : vector<50x12x12xf32> to vector<1x8x8xf32>
      %186 = vector.shape_cast %185 : vector<1x8x8xf32> to vector<8x8xf32>
      %187 = arith.addf %181, %186 : vector<8x8xf32>
      %188 = vector.extract_strided_slice %41 {offsets = [24, 4, 4], sizes = [1, 8, 8], strides = [1, 1, 1]} : vector<50x12x12xf32> to vector<1x8x8xf32>
      %189 = vector.shape_cast %188 : vector<1x8x8xf32> to vector<8x8xf32>
      %190 = arith.addf %184, %189 : vector<8x8xf32>
      %191 = vector.extract_strided_slice %41 {offsets = [49, 4, 4], sizes = [1, 8, 8], strides = [1, 1, 1]} : vector<50x12x12xf32> to vector<1x8x8xf32>
      %192 = vector.shape_cast %191 : vector<1x8x8xf32> to vector<8x8xf32>
      %193 = arith.addf %187, %192 : vector<8x8xf32>
      %c0_24 = arith.constant 0 : index
      %194 = arith.index_cast %11 : i32 to index
      %c0_25 = arith.constant 0 : index
      %c0_26 = arith.constant 0 : index
      %c0_27 = arith.constant 0 : index
      %195 = vector.load %arg6[%c0_24, %194, %c0_25, %c0_26, %c0_27] : memref<1x8x2x8x8xf32, #tpu.memory_space<vmem>>, vector<1x1x1x8x8xf32>
      %196 = vector.shape_cast %195 : vector<1x1x1x8x8xf32> to vector<8x8xf32>
      %197 = arith.addf %196, %190 : vector<8x8xf32>
      %c0_28 = arith.constant 0 : index
      %198 = arith.index_cast %11 : i32 to index
      %c0_29 = arith.constant 0 : index
      %c0_30 = arith.constant 0 : index
      %c0_31 = arith.constant 0 : index
      %199 = vector.load %arg6[%c0_28, %198, %c0_29, %c0_30, %c0_31] : memref<1x8x2x8x8xf32, #tpu.memory_space<vmem>>, vector<1x1x1x8x8xf32>
      %200 = vector.shape_cast %199 : vector<1x1x1x8x8xf32> to vector<8x8xf32>
      %201 = vector.shape_cast %197 : vector<8x8xf32> to vector<1x1x1x8x8xf32>
      tpu.vector_store %arg6[%c0_28, %198, %c0_29, %c0_30, %c0_31], %201 {strides = array<i32>} : memref<1x8x2x8x8xf32, #tpu.memory_space<vmem>>, vector<1x1x1x8x8xf32>,
      %c0_32 = arith.constant 0 : index
      %202 = arith.index_cast %11 : i32 to index
      %c1_33 = arith.constant 1 : index
      %c0_34 = arith.constant 0 : index
      %c0_35 = arith.constant 0 : index
      %203 = vector.load %arg6[%c0_32, %202, %c1_33, %c0_34, %c0_35] : memref<1x8x2x8x8xf32, #tpu.memory_space<vmem>>, vector<1x1x1x8x8xf32>
      %204 = vector.shape_cast %203 : vector<1x1x1x8x8xf32> to vector<8x8xf32>
      %205 = arith.addf %204, %193 : vector<8x8xf32>
      %c0_36 = arith.constant 0 : index
      %206 = arith.index_cast %11 : i32 to index
      %c1_37 = arith.constant 1 : index
      %c0_38 = arith.constant 0 : index
      %c0_39 = arith.constant 0 : index
      %207 = vector.load %arg6[%c0_36, %206, %c1_37, %c0_38, %c0_39] : memref<1x8x2x8x8xf32, #tpu.memory_space<vmem>>, vector<1x1x1x8x8xf32>
      %208 = vector.shape_cast %207 : vector<1x1x1x8x8xf32> to vector<8x8xf32>
      %209 = vector.shape_cast %205 : vector<8x8xf32> to vector<1x1x1x8x8xf32>
      tpu.vector_store %arg6[%c0_36, %206, %c1_37, %c0_38, %c0_39], %209 {strides = array<i32>} : memref<1x8x2x8x8xf32, #tpu.memory_space<vmem>>, vector<1x1x1x8x8xf32>,
    } else {
    }
    %c2_i32 = arith.constant 2 : i32
    %17 = arith.subi %arg2, %c2_i32 : i32
    %c0_i32_10 = arith.constant 0 : i32
    %18 = arith.cmpi sge, %17, %c0_i32_10 : i32
    %c8_i32_11 = arith.constant 8 : i32
    %19 = arith.cmpi slt, %17, %c8_i32_11 : i32
    %20 = arith.andi %18, %19 : i1
    %21 = arith.extui %20 : i1 to i32
    %c0_i32_12 = arith.constant 0 : i32
    %22 = arith.cmpi ne, %21, %c0_i32_12 : i32
    scf.if %22 {
      %c2 = arith.constant 2 : index
      %c0_20 = arith.constant 0 : index
      %c0_21 = arith.constant 0 : index
      %38 = vector.load %arg4[%c2, %c0_20, %c0_21] : memref<5x50x4xbf16, #tpu.memory_space<vmem>>, vector<1x50x4xbf16>
      %39 = vector.shape_cast %38 : vector<1x50x4xbf16> to vector<50x4xbf16>
      %cst = arith.constant dense<0.000000e+00> : vector<50x144xf32>
      %40 = tpu.matmul %39, %4, %cst {dimension_numbers = #tpu.dot_dimension_numbers<[1], [0], [0], [1], [0, 0, 1, 1], [], []>} : vector<50x4xbf16>, vector<4x144xbf16>, vector<50x144xf32> -> vector<50x144xf32>
      %41 = vector.shape_cast %40 : vector<50x144xf32> to vector<50x12x12xf32>
      %cst_22 = arith.constant 0.000000e+00 : f32
      %42 = vector.broadcast %cst_22 : f32 to vector<8x8xf32>
      %cst_23 = arith.constant 0.000000e+00 : f32
      %43 = vector.broadcast %cst_23 : f32 to vector<8x8xf32>
      %44 = vector.extract_strided_slice %41 {offsets = [0, 0, 0], sizes = [1, 8, 8], strides = [1, 1, 1]} : vector<50x12x12xf32> to vector<1x8x8xf32>
      %45 = vector.shape_cast %44 : vector<1x8x8xf32> to vector<8x8xf32>
      %46 = arith.addf %42, %45 : vector<8x8xf32>
      %47 = vector.extract_strided_slice %41 {offsets = [25, 0, 0], sizes = [1, 8, 8], strides = [1, 1, 1]} : vector<50x12x12xf32> to vector<1x8x8xf32>
      %48 = vector.shape_cast %47 : vector<1x8x8xf32> to vector<8x8xf32>
      %49 = arith.addf %43, %48 : vector<8x8xf32>
      %50 = vector.extract_strided_slice %41 {offsets = [1, 0, 1], sizes = [1, 8, 8], strides = [1, 1, 1]} : vector<50x12x12xf32> to vector<1x8x8xf32>
      %51 = vector.shape_cast %50 : vector<1x8x8xf32> to vector<8x8xf32>
      %52 = arith.addf %46, %51 : vector<8x8xf32>
      %53 = vector.extract_strided_slice %41 {offsets = [26, 0, 1], sizes = [1, 8, 8], strides = [1, 1, 1]} : vector<50x12x12xf32> to vector<1x8x8xf32>
      %54 = vector.shape_cast %53 : vector<1x8x8xf32> to vector<8x8xf32>
      %55 = arith.addf %49, %54 : vector<8x8xf32>
      %56 = vector.extract_strided_slice %41 {offsets = [2, 0, 2], sizes = [1, 8, 8], strides = [1, 1, 1]} : vector<50x12x12xf32> to vector<1x8x8xf32>
      %57 = vector.shape_cast %56 : vector<1x8x8xf32> to vector<8x8xf32>
      %58 = arith.addf %52, %57 : vector<8x8xf32>
      %59 = vector.extract_strided_slice %41 {offsets = [27, 0, 2], sizes = [1, 8, 8], strides = [1, 1, 1]} : vector<50x12x12xf32> to vector<1x8x8xf32>
      %60 = vector.shape_cast %59 : vector<1x8x8xf32> to vector<8x8xf32>
      %61 = arith.addf %55, %60 : vector<8x8xf32>
      %62 = vector.extract_strided_slice %41 {offsets = [3, 0, 3], sizes = [1, 8, 8], strides = [1, 1, 1]} : vector<50x12x12xf32> to vector<1x8x8xf32>
      %63 = vector.shape_cast %62 : vector<1x8x8xf32> to vector<8x8xf32>
      %64 = arith.addf %58, %63 : vector<8x8xf32>
      %65 = vector.extract_strided_slice %41 {offsets = [28, 0, 3], sizes = [1, 8, 8], strides = [1, 1, 1]} : vector<50x12x12xf32> to vector<1x8x8xf32>
      %66 = vector.shape_cast %65 : vector<1x8x8xf32> to vector<8x8xf32>
      %67 = arith.addf %61, %66 : vector<8x8xf32>
      %68 = vector.extract_strided_slice %41 {offsets = [4, 0, 4], sizes = [1, 8, 8], strides = [1, 1, 1]} : vector<50x12x12xf32> to vector<1x8x8xf32>
      %69 = vector.shape_cast %68 : vector<1x8x8xf32> to vector<8x8xf32>
      %70 = arith.addf %64, %69 : vector<8x8xf32>
      %71 = vector.extract_strided_slice %41 {offsets = [29, 0, 4], sizes = [1, 8, 8], strides = [1, 1, 1]} : vector<50x12x12xf32> to vector<1x8x8xf32>
      %72 = vector.shape_cast %71 : vector<1x8x8xf32> to vector<8x8xf32>
      %73 = arith.addf %67, %72 : vector<8x8xf32>
      %74 = vector.extract_strided_slice %41 {offsets = [5, 1, 0], sizes = [1, 8, 8], strides = [1, 1, 1]} : vector<50x12x12xf32> to vector<1x8x8xf32>
      %75 = vector.shape_cast %74 : vector<1x8x8xf32> to vector<8x8xf32>
      %76 = arith.addf %70, %75 : vector<8x8xf32>
      %77 = vector.extract_strided_slice %41 {offsets = [30, 1, 0], sizes = [1, 8, 8], strides = [1, 1, 1]} : vector<50x12x12xf32> to vector<1x8x8xf32>
      %78 = vector.shape_cast %77 : vector<1x8x8xf32> to vector<8x8xf32>
      %79 = arith.addf %73, %78 : vector<8x8xf32>
      %80 = vector.extract_strided_slice %41 {offsets = [6, 1, 1], sizes = [1, 8, 8], strides = [1, 1, 1]} : vector<50x12x12xf32> to vector<1x8x8xf32>
      %81 = vector.shape_cast %80 : vector<1x8x8xf32> to vector<8x8xf32>
      %82 = arith.addf %76, %81 : vector<8x8xf32>
      %83 = vector.extract_strided_slice %41 {offsets = [31, 1, 1], sizes = [1, 8, 8], strides = [1, 1, 1]} : vector<50x12x12xf32> to vector<1x8x8xf32>
      %84 = vector.shape_cast %83 : vector<1x8x8xf32> to vector<8x8xf32>
      %85 = arith.addf %79, %84 : vector<8x8xf32>
      %86 = vector.extract_strided_slice %41 {offsets = [7, 1, 2], sizes = [1, 8, 8], strides = [1, 1, 1]} : vector<50x12x12xf32> to vector<1x8x8xf32>
      %87 = vector.shape_cast %86 : vector<1x8x8xf32> to vector<8x8xf32>
      %88 = arith.addf %82, %87 : vector<8x8xf32>
      %89 = vector.extract_strided_slice %41 {offsets = [32, 1, 2], sizes = [1, 8, 8], strides = [1, 1, 1]} : vector<50x12x12xf32> to vector<1x8x8xf32>
      %90 = vector.shape_cast %89 : vector<1x8x8xf32> to vector<8x8xf32>
      %91 = arith.addf %85, %90 : vector<8x8xf32>
      %92 = vector.extract_strided_slice %41 {offsets = [8, 1, 3], sizes = [1, 8, 8], strides = [1, 1, 1]} : vector<50x12x12xf32> to vector<1x8x8xf32>
      %93 = vector.shape_cast %92 : vector<1x8x8xf32> to vector<8x8xf32>
      %94 = arith.addf %88, %93 : vector<8x8xf32>
      %95 = vector.extract_strided_slice %41 {offsets = [33, 1, 3], sizes = [1, 8, 8], strides = [1, 1, 1]} : vector<50x12x12xf32> to vector<1x8x8xf32>
      %96 = vector.shape_cast %95 : vector<1x8x8xf32> to vector<8x8xf32>
      %97 = arith.addf %91, %96 : vector<8x8xf32>
      %98 = vector.extract_strided_slice %41 {offsets = [9, 1, 4], sizes = [1, 8, 8], strides = [1, 1, 1]} : vector<50x12x12xf32> to vector<1x8x8xf32>
      %99 = vector.shape_cast %98 : vector<1x8x8xf32> to vector<8x8xf32>
      %100 = arith.addf %94, %99 : vector<8x8xf32>
      %101 = vector.extract_strided_slice %41 {offsets = [34, 1, 4], sizes = [1, 8, 8], strides = [1, 1, 1]} : vector<50x12x12xf32> to vector<1x8x8xf32>
      %102 = vector.shape_cast %101 : vector<1x8x8xf32> to vector<8x8xf32>
      %103 = arith.addf %97, %102 : vector<8x8xf32>
      %104 = vector.extract_strided_slice %41 {offsets = [10, 2, 0], sizes = [1, 8, 8], strides = [1, 1, 1]} : vector<50x12x12xf32> to vector<1x8x8xf32>
      %105 = vector.shape_cast %104 : vector<1x8x8xf32> to vector<8x8xf32>
      %106 = arith.addf %100, %105 : vector<8x8xf32>
      %107 = vector.extract_strided_slice %41 {offsets = [35, 2, 0], sizes = [1, 8, 8], strides = [1, 1, 1]} : vector<50x12x12xf32> to vector<1x8x8xf32>
      %108 = vector.shape_cast %107 : vector<1x8x8xf32> to vector<8x8xf32>
      %109 = arith.addf %103, %108 : vector<8x8xf32>
      %110 = vector.extract_strided_slice %41 {offsets = [11, 2, 1], sizes = [1, 8, 8], strides = [1, 1, 1]} : vector<50x12x12xf32> to vector<1x8x8xf32>
      %111 = vector.shape_cast %110 : vector<1x8x8xf32> to vector<8x8xf32>
      %112 = arith.addf %106, %111 : vector<8x8xf32>
      %113 = vector.extract_strided_slice %41 {offsets = [36, 2, 1], sizes = [1, 8, 8], strides = [1, 1, 1]} : vector<50x12x12xf32> to vector<1x8x8xf32>
      %114 = vector.shape_cast %113 : vector<1x8x8xf32> to vector<8x8xf32>
      %115 = arith.addf %109, %114 : vector<8x8xf32>
      %116 = vector.extract_strided_slice %41 {offsets = [12, 2, 2], sizes = [1, 8, 8], strides = [1, 1, 1]} : vector<50x12x12xf32> to vector<1x8x8xf32>
      %117 = vector.shape_cast %116 : vector<1x8x8xf32> to vector<8x8xf32>
      %118 = arith.addf %112, %117 : vector<8x8xf32>
      %119 = vector.extract_strided_slice %41 {offsets = [37, 2, 2], sizes = [1, 8, 8], strides = [1, 1, 1]} : vector<50x12x12xf32> to vector<1x8x8xf32>
      %120 = vector.shape_cast %119 : vector<1x8x8xf32> to vector<8x8xf32>
      %121 = arith.addf %115, %120 : vector<8x8xf32>
      %122 = vector.extract_strided_slice %41 {offsets = [13, 2, 3], sizes = [1, 8, 8], strides = [1, 1, 1]} : vector<50x12x12xf32> to vector<1x8x8xf32>
      %123 = vector.shape_cast %122 : vector<1x8x8xf32> to vector<8x8xf32>
      %124 = arith.addf %118, %123 : vector<8x8xf32>
      %125 = vector.extract_strided_slice %41 {offsets = [38, 2, 3], sizes = [1, 8, 8], strides = [1, 1, 1]} : vector<50x12x12xf32> to vector<1x8x8xf32>
      %126 = vector.shape_cast %125 : vector<1x8x8xf32> to vector<8x8xf32>
      %127 = arith.addf %121, %126 : vector<8x8xf32>
      %128 = vector.extract_strided_slice %41 {offsets = [14, 2, 4], sizes = [1, 8, 8], strides = [1, 1, 1]} : vector<50x12x12xf32> to vector<1x8x8xf32>
      %129 = vector.shape_cast %128 : vector<1x8x8xf32> to vector<8x8xf32>
      %130 = arith.addf %124, %129 : vector<8x8xf32>
      %131 = vector.extract_strided_slice %41 {offsets = [39, 2, 4], sizes = [1, 8, 8], strides = [1, 1, 1]} : vector<50x12x12xf32> to vector<1x8x8xf32>
      %132 = vector.shape_cast %131 : vector<1x8x8xf32> to vector<8x8xf32>
      %133 = arith.addf %127, %132 : vector<8x8xf32>
      %134 = vector.extract_strided_slice %41 {offsets = [15, 3, 0], sizes = [1, 8, 8], strides = [1, 1, 1]} : vector<50x12x12xf32> to vector<1x8x8xf32>
      %135 = vector.shape_cast %134 : vector<1x8x8xf32> to vector<8x8xf32>
      %136 = arith.addf %130, %135 : vector<8x8xf32>
      %137 = vector.extract_strided_slice %41 {offsets = [40, 3, 0], sizes = [1, 8, 8], strides = [1, 1, 1]} : vector<50x12x12xf32> to vector<1x8x8xf32>
      %138 = vector.shape_cast %137 : vector<1x8x8xf32> to vector<8x8xf32>
      %139 = arith.addf %133, %138 : vector<8x8xf32>
      %140 = vector.extract_strided_slice %41 {offsets = [16, 3, 1], sizes = [1, 8, 8], strides = [1, 1, 1]} : vector<50x12x12xf32> to vector<1x8x8xf32>
      %141 = vector.shape_cast %140 : vector<1x8x8xf32> to vector<8x8xf32>
      %142 = arith.addf %136, %141 : vector<8x8xf32>
      %143 = vector.extract_strided_slice %41 {offsets = [41, 3, 1], sizes = [1, 8, 8], strides = [1, 1, 1]} : vector<50x12x12xf32> to vector<1x8x8xf32>
      %144 = vector.shape_cast %143 : vector<1x8x8xf32> to vector<8x8xf32>
      %145 = arith.addf %139, %144 : vector<8x8xf32>
      %146 = vector.extract_strided_slice %41 {offsets = [17, 3, 2], sizes = [1, 8, 8], strides = [1, 1, 1]} : vector<50x12x12xf32> to vector<1x8x8xf32>
      %147 = vector.shape_cast %146 : vector<1x8x8xf32> to vector<8x8xf32>
      %148 = arith.addf %142, %147 : vector<8x8xf32>
      %149 = vector.extract_strided_slice %41 {offsets = [42, 3, 2], sizes = [1, 8, 8], strides = [1, 1, 1]} : vector<50x12x12xf32> to vector<1x8x8xf32>
      %150 = vector.shape_cast %149 : vector<1x8x8xf32> to vector<8x8xf32>
      %151 = arith.addf %145, %150 : vector<8x8xf32>
      %152 = vector.extract_strided_slice %41 {offsets = [18, 3, 3], sizes = [1, 8, 8], strides = [1, 1, 1]} : vector<50x12x12xf32> to vector<1x8x8xf32>
      %153 = vector.shape_cast %152 : vector<1x8x8xf32> to vector<8x8xf32>
      %154 = arith.addf %148, %153 : vector<8x8xf32>
      %155 = vector.extract_strided_slice %41 {offsets = [43, 3, 3], sizes = [1, 8, 8], strides = [1, 1, 1]} : vector<50x12x12xf32> to vector<1x8x8xf32>
      %156 = vector.shape_cast %155 : vector<1x8x8xf32> to vector<8x8xf32>
      %157 = arith.addf %151, %156 : vector<8x8xf32>
      %158 = vector.extract_strided_slice %41 {offsets = [19, 3, 4], sizes = [1, 8, 8], strides = [1, 1, 1]} : vector<50x12x12xf32> to vector<1x8x8xf32>
      %159 = vector.shape_cast %158 : vector<1x8x8xf32> to vector<8x8xf32>
      %160 = arith.addf %154, %159 : vector<8x8xf32>
      %161 = vector.extract_strided_slice %41 {offsets = [44, 3, 4], sizes = [1, 8, 8], strides = [1, 1, 1]} : vector<50x12x12xf32> to vector<1x8x8xf32>
      %162 = vector.shape_cast %161 : vector<1x8x8xf32> to vector<8x8xf32>
      %163 = arith.addf %157, %162 : vector<8x8xf32>
      %164 = vector.extract_strided_slice %41 {offsets = [20, 4, 0], sizes = [1, 8, 8], strides = [1, 1, 1]} : vector<50x12x12xf32> to vector<1x8x8xf32>
      %165 = vector.shape_cast %164 : vector<1x8x8xf32> to vector<8x8xf32>
      %166 = arith.addf %160, %165 : vector<8x8xf32>
      %167 = vector.extract_strided_slice %41 {offsets = [45, 4, 0], sizes = [1, 8, 8], strides = [1, 1, 1]} : vector<50x12x12xf32> to vector<1x8x8xf32>
      %168 = vector.shape_cast %167 : vector<1x8x8xf32> to vector<8x8xf32>
      %169 = arith.addf %163, %168 : vector<8x8xf32>
      %170 = vector.extract_strided_slice %41 {offsets = [21, 4, 1], sizes = [1, 8, 8], strides = [1, 1, 1]} : vector<50x12x12xf32> to vector<1x8x8xf32>
      %171 = vector.shape_cast %170 : vector<1x8x8xf32> to vector<8x8xf32>
      %172 = arith.addf %166, %171 : vector<8x8xf32>
      %173 = vector.extract_strided_slice %41 {offsets = [46, 4, 1], sizes = [1, 8, 8], strides = [1, 1, 1]} : vector<50x12x12xf32> to vector<1x8x8xf32>
      %174 = vector.shape_cast %173 : vector<1x8x8xf32> to vector<8x8xf32>
      %175 = arith.addf %169, %174 : vector<8x8xf32>
      %176 = vector.extract_strided_slice %41 {offsets = [22, 4, 2], sizes = [1, 8, 8], strides = [1, 1, 1]} : vector<50x12x12xf32> to vector<1x8x8xf32>
      %177 = vector.shape_cast %176 : vector<1x8x8xf32> to vector<8x8xf32>
      %178 = arith.addf %172, %177 : vector<8x8xf32>
      %179 = vector.extract_strided_slice %41 {offsets = [47, 4, 2], sizes = [1, 8, 8], strides = [1, 1, 1]} : vector<50x12x12xf32> to vector<1x8x8xf32>
      %180 = vector.shape_cast %179 : vector<1x8x8xf32> to vector<8x8xf32>
      %181 = arith.addf %175, %180 : vector<8x8xf32>
      %182 = vector.extract_strided_slice %41 {offsets = [23, 4, 3], sizes = [1, 8, 8], strides = [1, 1, 1]} : vector<50x12x12xf32> to vector<1x8x8xf32>
      %183 = vector.shape_cast %182 : vector<1x8x8xf32> to vector<8x8xf32>
      %184 = arith.addf %178, %183 : vector<8x8xf32>
      %185 = vector.extract_strided_slice %41 {offsets = [48, 4, 3], sizes = [1, 8, 8], strides = [1, 1, 1]} : vector<50x12x12xf32> to vector<1x8x8xf32>
      %186 = vector.shape_cast %185 : vector<1x8x8xf32> to vector<8x8xf32>
      %187 = arith.addf %181, %186 : vector<8x8xf32>
      %188 = vector.extract_strided_slice %41 {offsets = [24, 4, 4], sizes = [1, 8, 8], strides = [1, 1, 1]} : vector<50x12x12xf32> to vector<1x8x8xf32>
      %189 = vector.shape_cast %188 : vector<1x8x8xf32> to vector<8x8xf32>
      %190 = arith.addf %184, %189 : vector<8x8xf32>
      %191 = vector.extract_strided_slice %41 {offsets = [49, 4, 4], sizes = [1, 8, 8], strides = [1, 1, 1]} : vector<50x12x12xf32> to vector<1x8x8xf32>
      %192 = vector.shape_cast %191 : vector<1x8x8xf32> to vector<8x8xf32>
      %193 = arith.addf %187, %192 : vector<8x8xf32>
      %c0_24 = arith.constant 0 : index
      %194 = arith.index_cast %17 : i32 to index
      %c0_25 = arith.constant 0 : index
      %c0_26 = arith.constant 0 : index
      %c0_27 = arith.constant 0 : index
      %195 = vector.load %arg6[%c0_24, %194, %c0_25, %c0_26, %c0_27] : memref<1x8x2x8x8xf32, #tpu.memory_space<vmem>>, vector<1x1x1x8x8xf32>
      %196 = vector.shape_cast %195 : vector<1x1x1x8x8xf32> to vector<8x8xf32>
      %197 = arith.addf %196, %190 : vector<8x8xf32>
      %c0_28 = arith.constant 0 : index
      %198 = arith.index_cast %17 : i32 to index
      %c0_29 = arith.constant 0 : index
      %c0_30 = arith.constant 0 : index
      %c0_31 = arith.constant 0 : index
      %199 = vector.load %arg6[%c0_28, %198, %c0_29, %c0_30, %c0_31] : memref<1x8x2x8x8xf32, #tpu.memory_space<vmem>>, vector<1x1x1x8x8xf32>
      %200 = vector.shape_cast %199 : vector<1x1x1x8x8xf32> to vector<8x8xf32>
      %201 = vector.shape_cast %197 : vector<8x8xf32> to vector<1x1x1x8x8xf32>
      tpu.vector_store %arg6[%c0_28, %198, %c0_29, %c0_30, %c0_31], %201 {strides = array<i32>} : memref<1x8x2x8x8xf32, #tpu.memory_space<vmem>>, vector<1x1x1x8x8xf32>,
      %c0_32 = arith.constant 0 : index
      %202 = arith.index_cast %17 : i32 to index
      %c1 = arith.constant 1 : index
      %c0_33 = arith.constant 0 : index
      %c0_34 = arith.constant 0 : index
      %203 = vector.load %arg6[%c0_32, %202, %c1, %c0_33, %c0_34] : memref<1x8x2x8x8xf32, #tpu.memory_space<vmem>>, vector<1x1x1x8x8xf32>
      %204 = vector.shape_cast %203 : vector<1x1x1x8x8xf32> to vector<8x8xf32>
      %205 = arith.addf %204, %193 : vector<8x8xf32>
      %c0_35 = arith.constant 0 : index
      %206 = arith.index_cast %17 : i32 to index
      %c1_36 = arith.constant 1 : index
      %c0_37 = arith.constant 0 : index
      %c0_38 = arith.constant 0 : index
      %207 = vector.load %arg6[%c0_35, %206, %c1_36, %c0_37, %c0_38] : memref<1x8x2x8x8xf32, #tpu.memory_space<vmem>>, vector<1x1x1x8x8xf32>
      %208 = vector.shape_cast %207 : vector<1x1x1x8x8xf32> to vector<8x8xf32>
      %209 = vector.shape_cast %205 : vector<8x8xf32> to vector<1x1x1x8x8xf32>
      tpu.vector_store %arg6[%c0_35, %206, %c1_36, %c0_37, %c0_38], %209 {strides = array<i32>} : memref<1x8x2x8x8xf32, #tpu.memory_space<vmem>>, vector<1x1x1x8x8xf32>,
    } else {
    }
    %c3_i32 = arith.constant 3 : i32
    %23 = arith.subi %arg2, %c3_i32 : i32
    %c0_i32_13 = arith.constant 0 : i32
    %24 = arith.cmpi sge, %23, %c0_i32_13 : i32
    %c8_i32_14 = arith.constant 8 : i32
    %25 = arith.cmpi slt, %23, %c8_i32_14 : i32
    %26 = arith.andi %24, %25 : i1
    %27 = arith.extui %26 : i1 to i32
    %c0_i32_15 = arith.constant 0 : i32
    %28 = arith.cmpi ne, %27, %c0_i32_15 : i32
    scf.if %28 {
      %c3 = arith.constant 3 : index
      %c0_20 = arith.constant 0 : index
      %c0_21 = arith.constant 0 : index
      %38 = vector.load %arg4[%c3, %c0_20, %c0_21] : memref<5x50x4xbf16, #tpu.memory_space<vmem>>, vector<1x50x4xbf16>
      %39 = vector.shape_cast %38 : vector<1x50x4xbf16> to vector<50x4xbf16>
      %cst = arith.constant dense<0.000000e+00> : vector<50x144xf32>
      %40 = tpu.matmul %39, %4, %cst {dimension_numbers = #tpu.dot_dimension_numbers<[1], [0], [0], [1], [0, 0, 1, 1], [], []>} : vector<50x4xbf16>, vector<4x144xbf16>, vector<50x144xf32> -> vector<50x144xf32>
      %41 = vector.shape_cast %40 : vector<50x144xf32> to vector<50x12x12xf32>
      %cst_22 = arith.constant 0.000000e+00 : f32
      %42 = vector.broadcast %cst_22 : f32 to vector<8x8xf32>
      %cst_23 = arith.constant 0.000000e+00 : f32
      %43 = vector.broadcast %cst_23 : f32 to vector<8x8xf32>
      %44 = vector.extract_strided_slice %41 {offsets = [0, 0, 0], sizes = [1, 8, 8], strides = [1, 1, 1]} : vector<50x12x12xf32> to vector<1x8x8xf32>
      %45 = vector.shape_cast %44 : vector<1x8x8xf32> to vector<8x8xf32>
      %46 = arith.addf %42, %45 : vector<8x8xf32>
      %47 = vector.extract_strided_slice %41 {offsets = [25, 0, 0], sizes = [1, 8, 8], strides = [1, 1, 1]} : vector<50x12x12xf32> to vector<1x8x8xf32>
      %48 = vector.shape_cast %47 : vector<1x8x8xf32> to vector<8x8xf32>
      %49 = arith.addf %43, %48 : vector<8x8xf32>
      %50 = vector.extract_strided_slice %41 {offsets = [1, 0, 1], sizes = [1, 8, 8], strides = [1, 1, 1]} : vector<50x12x12xf32> to vector<1x8x8xf32>
      %51 = vector.shape_cast %50 : vector<1x8x8xf32> to vector<8x8xf32>
      %52 = arith.addf %46, %51 : vector<8x8xf32>
      %53 = vector.extract_strided_slice %41 {offsets = [26, 0, 1], sizes = [1, 8, 8], strides = [1, 1, 1]} : vector<50x12x12xf32> to vector<1x8x8xf32>
      %54 = vector.shape_cast %53 : vector<1x8x8xf32> to vector<8x8xf32>
      %55 = arith.addf %49, %54 : vector<8x8xf32>
      %56 = vector.extract_strided_slice %41 {offsets = [2, 0, 2], sizes = [1, 8, 8], strides = [1, 1, 1]} : vector<50x12x12xf32> to vector<1x8x8xf32>
      %57 = vector.shape_cast %56 : vector<1x8x8xf32> to vector<8x8xf32>
      %58 = arith.addf %52, %57 : vector<8x8xf32>
      %59 = vector.extract_strided_slice %41 {offsets = [27, 0, 2], sizes = [1, 8, 8], strides = [1, 1, 1]} : vector<50x12x12xf32> to vector<1x8x8xf32>
      %60 = vector.shape_cast %59 : vector<1x8x8xf32> to vector<8x8xf32>
      %61 = arith.addf %55, %60 : vector<8x8xf32>
      %62 = vector.extract_strided_slice %41 {offsets = [3, 0, 3], sizes = [1, 8, 8], strides = [1, 1, 1]} : vector<50x12x12xf32> to vector<1x8x8xf32>
      %63 = vector.shape_cast %62 : vector<1x8x8xf32> to vector<8x8xf32>
      %64 = arith.addf %58, %63 : vector<8x8xf32>
      %65 = vector.extract_strided_slice %41 {offsets = [28, 0, 3], sizes = [1, 8, 8], strides = [1, 1, 1]} : vector<50x12x12xf32> to vector<1x8x8xf32>
      %66 = vector.shape_cast %65 : vector<1x8x8xf32> to vector<8x8xf32>
      %67 = arith.addf %61, %66 : vector<8x8xf32>
      %68 = vector.extract_strided_slice %41 {offsets = [4, 0, 4], sizes = [1, 8, 8], strides = [1, 1, 1]} : vector<50x12x12xf32> to vector<1x8x8xf32>
      %69 = vector.shape_cast %68 : vector<1x8x8xf32> to vector<8x8xf32>
      %70 = arith.addf %64, %69 : vector<8x8xf32>
      %71 = vector.extract_strided_slice %41 {offsets = [29, 0, 4], sizes = [1, 8, 8], strides = [1, 1, 1]} : vector<50x12x12xf32> to vector<1x8x8xf32>
      %72 = vector.shape_cast %71 : vector<1x8x8xf32> to vector<8x8xf32>
      %73 = arith.addf %67, %72 : vector<8x8xf32>
      %74 = vector.extract_strided_slice %41 {offsets = [5, 1, 0], sizes = [1, 8, 8], strides = [1, 1, 1]} : vector<50x12x12xf32> to vector<1x8x8xf32>
      %75 = vector.shape_cast %74 : vector<1x8x8xf32> to vector<8x8xf32>
      %76 = arith.addf %70, %75 : vector<8x8xf32>
      %77 = vector.extract_strided_slice %41 {offsets = [30, 1, 0], sizes = [1, 8, 8], strides = [1, 1, 1]} : vector<50x12x12xf32> to vector<1x8x8xf32>
      %78 = vector.shape_cast %77 : vector<1x8x8xf32> to vector<8x8xf32>
      %79 = arith.addf %73, %78 : vector<8x8xf32>
      %80 = vector.extract_strided_slice %41 {offsets = [6, 1, 1], sizes = [1, 8, 8], strides = [1, 1, 1]} : vector<50x12x12xf32> to vector<1x8x8xf32>
      %81 = vector.shape_cast %80 : vector<1x8x8xf32> to vector<8x8xf32>
      %82 = arith.addf %76, %81 : vector<8x8xf32>
      %83 = vector.extract_strided_slice %41 {offsets = [31, 1, 1], sizes = [1, 8, 8], strides = [1, 1, 1]} : vector<50x12x12xf32> to vector<1x8x8xf32>
      %84 = vector.shape_cast %83 : vector<1x8x8xf32> to vector<8x8xf32>
      %85 = arith.addf %79, %84 : vector<8x8xf32>
      %86 = vector.extract_strided_slice %41 {offsets = [7, 1, 2], sizes = [1, 8, 8], strides = [1, 1, 1]} : vector<50x12x12xf32> to vector<1x8x8xf32>
      %87 = vector.shape_cast %86 : vector<1x8x8xf32> to vector<8x8xf32>
      %88 = arith.addf %82, %87 : vector<8x8xf32>
      %89 = vector.extract_strided_slice %41 {offsets = [32, 1, 2], sizes = [1, 8, 8], strides = [1, 1, 1]} : vector<50x12x12xf32> to vector<1x8x8xf32>
      %90 = vector.shape_cast %89 : vector<1x8x8xf32> to vector<8x8xf32>
      %91 = arith.addf %85, %90 : vector<8x8xf32>
      %92 = vector.extract_strided_slice %41 {offsets = [8, 1, 3], sizes = [1, 8, 8], strides = [1, 1, 1]} : vector<50x12x12xf32> to vector<1x8x8xf32>
      %93 = vector.shape_cast %92 : vector<1x8x8xf32> to vector<8x8xf32>
      %94 = arith.addf %88, %93 : vector<8x8xf32>
      %95 = vector.extract_strided_slice %41 {offsets = [33, 1, 3], sizes = [1, 8, 8], strides = [1, 1, 1]} : vector<50x12x12xf32> to vector<1x8x8xf32>
      %96 = vector.shape_cast %95 : vector<1x8x8xf32> to vector<8x8xf32>
      %97 = arith.addf %91, %96 : vector<8x8xf32>
      %98 = vector.extract_strided_slice %41 {offsets = [9, 1, 4], sizes = [1, 8, 8], strides = [1, 1, 1]} : vector<50x12x12xf32> to vector<1x8x8xf32>
      %99 = vector.shape_cast %98 : vector<1x8x8xf32> to vector<8x8xf32>
      %100 = arith.addf %94, %99 : vector<8x8xf32>
      %101 = vector.extract_strided_slice %41 {offsets = [34, 1, 4], sizes = [1, 8, 8], strides = [1, 1, 1]} : vector<50x12x12xf32> to vector<1x8x8xf32>
      %102 = vector.shape_cast %101 : vector<1x8x8xf32> to vector<8x8xf32>
      %103 = arith.addf %97, %102 : vector<8x8xf32>
      %104 = vector.extract_strided_slice %41 {offsets = [10, 2, 0], sizes = [1, 8, 8], strides = [1, 1, 1]} : vector<50x12x12xf32> to vector<1x8x8xf32>
      %105 = vector.shape_cast %104 : vector<1x8x8xf32> to vector<8x8xf32>
      %106 = arith.addf %100, %105 : vector<8x8xf32>
      %107 = vector.extract_strided_slice %41 {offsets = [35, 2, 0], sizes = [1, 8, 8], strides = [1, 1, 1]} : vector<50x12x12xf32> to vector<1x8x8xf32>
      %108 = vector.shape_cast %107 : vector<1x8x8xf32> to vector<8x8xf32>
      %109 = arith.addf %103, %108 : vector<8x8xf32>
      %110 = vector.extract_strided_slice %41 {offsets = [11, 2, 1], sizes = [1, 8, 8], strides = [1, 1, 1]} : vector<50x12x12xf32> to vector<1x8x8xf32>
      %111 = vector.shape_cast %110 : vector<1x8x8xf32> to vector<8x8xf32>
      %112 = arith.addf %106, %111 : vector<8x8xf32>
      %113 = vector.extract_strided_slice %41 {offsets = [36, 2, 1], sizes = [1, 8, 8], strides = [1, 1, 1]} : vector<50x12x12xf32> to vector<1x8x8xf32>
      %114 = vector.shape_cast %113 : vector<1x8x8xf32> to vector<8x8xf32>
      %115 = arith.addf %109, %114 : vector<8x8xf32>
      %116 = vector.extract_strided_slice %41 {offsets = [12, 2, 2], sizes = [1, 8, 8], strides = [1, 1, 1]} : vector<50x12x12xf32> to vector<1x8x8xf32>
      %117 = vector.shape_cast %116 : vector<1x8x8xf32> to vector<8x8xf32>
      %118 = arith.addf %112, %117 : vector<8x8xf32>
      %119 = vector.extract_strided_slice %41 {offsets = [37, 2, 2], sizes = [1, 8, 8], strides = [1, 1, 1]} : vector<50x12x12xf32> to vector<1x8x8xf32>
      %120 = vector.shape_cast %119 : vector<1x8x8xf32> to vector<8x8xf32>
      %121 = arith.addf %115, %120 : vector<8x8xf32>
      %122 = vector.extract_strided_slice %41 {offsets = [13, 2, 3], sizes = [1, 8, 8], strides = [1, 1, 1]} : vector<50x12x12xf32> to vector<1x8x8xf32>
      %123 = vector.shape_cast %122 : vector<1x8x8xf32> to vector<8x8xf32>
      %124 = arith.addf %118, %123 : vector<8x8xf32>
      %125 = vector.extract_strided_slice %41 {offsets = [38, 2, 3], sizes = [1, 8, 8], strides = [1, 1, 1]} : vector<50x12x12xf32> to vector<1x8x8xf32>
      %126 = vector.shape_cast %125 : vector<1x8x8xf32> to vector<8x8xf32>
      %127 = arith.addf %121, %126 : vector<8x8xf32>
      %128 = vector.extract_strided_slice %41 {offsets = [14, 2, 4], sizes = [1, 8, 8], strides = [1, 1, 1]} : vector<50x12x12xf32> to vector<1x8x8xf32>
      %129 = vector.shape_cast %128 : vector<1x8x8xf32> to vector<8x8xf32>
      %130 = arith.addf %124, %129 : vector<8x8xf32>
      %131 = vector.extract_strided_slice %41 {offsets = [39, 2, 4], sizes = [1, 8, 8], strides = [1, 1, 1]} : vector<50x12x12xf32> to vector<1x8x8xf32>
      %132 = vector.shape_cast %131 : vector<1x8x8xf32> to vector<8x8xf32>
      %133 = arith.addf %127, %132 : vector<8x8xf32>
      %134 = vector.extract_strided_slice %41 {offsets = [15, 3, 0], sizes = [1, 8, 8], strides = [1, 1, 1]} : vector<50x12x12xf32> to vector<1x8x8xf32>
      %135 = vector.shape_cast %134 : vector<1x8x8xf32> to vector<8x8xf32>
      %136 = arith.addf %130, %135 : vector<8x8xf32>
      %137 = vector.extract_strided_slice %41 {offsets = [40, 3, 0], sizes = [1, 8, 8], strides = [1, 1, 1]} : vector<50x12x12xf32> to vector<1x8x8xf32>
      %138 = vector.shape_cast %137 : vector<1x8x8xf32> to vector<8x8xf32>
      %139 = arith.addf %133, %138 : vector<8x8xf32>
      %140 = vector.extract_strided_slice %41 {offsets = [16, 3, 1], sizes = [1, 8, 8], strides = [1, 1, 1]} : vector<50x12x12xf32> to vector<1x8x8xf32>
      %141 = vector.shape_cast %140 : vector<1x8x8xf32> to vector<8x8xf32>
      %142 = arith.addf %136, %141 : vector<8x8xf32>
      %143 = vector.extract_strided_slice %41 {offsets = [41, 3, 1], sizes = [1, 8, 8], strides = [1, 1, 1]} : vector<50x12x12xf32> to vector<1x8x8xf32>
      %144 = vector.shape_cast %143 : vector<1x8x8xf32> to vector<8x8xf32>
      %145 = arith.addf %139, %144 : vector<8x8xf32>
      %146 = vector.extract_strided_slice %41 {offsets = [17, 3, 2], sizes = [1, 8, 8], strides = [1, 1, 1]} : vector<50x12x12xf32> to vector<1x8x8xf32>
      %147 = vector.shape_cast %146 : vector<1x8x8xf32> to vector<8x8xf32>
      %148 = arith.addf %142, %147 : vector<8x8xf32>
      %149 = vector.extract_strided_slice %41 {offsets = [42, 3, 2], sizes = [1, 8, 8], strides = [1, 1, 1]} : vector<50x12x12xf32> to vector<1x8x8xf32>
      %150 = vector.shape_cast %149 : vector<1x8x8xf32> to vector<8x8xf32>
      %151 = arith.addf %145, %150 : vector<8x8xf32>
      %152 = vector.extract_strided_slice %41 {offsets = [18, 3, 3], sizes = [1, 8, 8], strides = [1, 1, 1]} : vector<50x12x12xf32> to vector<1x8x8xf32>
      %153 = vector.shape_cast %152 : vector<1x8x8xf32> to vector<8x8xf32>
      %154 = arith.addf %148, %153 : vector<8x8xf32>
      %155 = vector.extract_strided_slice %41 {offsets = [43, 3, 3], sizes = [1, 8, 8], strides = [1, 1, 1]} : vector<50x12x12xf32> to vector<1x8x8xf32>
      %156 = vector.shape_cast %155 : vector<1x8x8xf32> to vector<8x8xf32>
      %157 = arith.addf %151, %156 : vector<8x8xf32>
      %158 = vector.extract_strided_slice %41 {offsets = [19, 3, 4], sizes = [1, 8, 8], strides = [1, 1, 1]} : vector<50x12x12xf32> to vector<1x8x8xf32>
      %159 = vector.shape_cast %158 : vector<1x8x8xf32> to vector<8x8xf32>
      %160 = arith.addf %154, %159 : vector<8x8xf32>
      %161 = vector.extract_strided_slice %41 {offsets = [44, 3, 4], sizes = [1, 8, 8], strides = [1, 1, 1]} : vector<50x12x12xf32> to vector<1x8x8xf32>
      %162 = vector.shape_cast %161 : vector<1x8x8xf32> to vector<8x8xf32>
      %163 = arith.addf %157, %162 : vector<8x8xf32>
      %164 = vector.extract_strided_slice %41 {offsets = [20, 4, 0], sizes = [1, 8, 8], strides = [1, 1, 1]} : vector<50x12x12xf32> to vector<1x8x8xf32>
      %165 = vector.shape_cast %164 : vector<1x8x8xf32> to vector<8x8xf32>
      %166 = arith.addf %160, %165 : vector<8x8xf32>
      %167 = vector.extract_strided_slice %41 {offsets = [45, 4, 0], sizes = [1, 8, 8], strides = [1, 1, 1]} : vector<50x12x12xf32> to vector<1x8x8xf32>
      %168 = vector.shape_cast %167 : vector<1x8x8xf32> to vector<8x8xf32>
      %169 = arith.addf %163, %168 : vector<8x8xf32>
      %170 = vector.extract_strided_slice %41 {offsets = [21, 4, 1], sizes = [1, 8, 8], strides = [1, 1, 1]} : vector<50x12x12xf32> to vector<1x8x8xf32>
      %171 = vector.shape_cast %170 : vector<1x8x8xf32> to vector<8x8xf32>
      %172 = arith.addf %166, %171 : vector<8x8xf32>
      %173 = vector.extract_strided_slice %41 {offsets = [46, 4, 1], sizes = [1, 8, 8], strides = [1, 1, 1]} : vector<50x12x12xf32> to vector<1x8x8xf32>
      %174 = vector.shape_cast %173 : vector<1x8x8xf32> to vector<8x8xf32>
      %175 = arith.addf %169, %174 : vector<8x8xf32>
      %176 = vector.extract_strided_slice %41 {offsets = [22, 4, 2], sizes = [1, 8, 8], strides = [1, 1, 1]} : vector<50x12x12xf32> to vector<1x8x8xf32>
      %177 = vector.shape_cast %176 : vector<1x8x8xf32> to vector<8x8xf32>
      %178 = arith.addf %172, %177 : vector<8x8xf32>
      %179 = vector.extract_strided_slice %41 {offsets = [47, 4, 2], sizes = [1, 8, 8], strides = [1, 1, 1]} : vector<50x12x12xf32> to vector<1x8x8xf32>
      %180 = vector.shape_cast %179 : vector<1x8x8xf32> to vector<8x8xf32>
      %181 = arith.addf %175, %180 : vector<8x8xf32>
      %182 = vector.extract_strided_slice %41 {offsets = [23, 4, 3], sizes = [1, 8, 8], strides = [1, 1, 1]} : vector<50x12x12xf32> to vector<1x8x8xf32>
      %183 = vector.shape_cast %182 : vector<1x8x8xf32> to vector<8x8xf32>
      %184 = arith.addf %178, %183 : vector<8x8xf32>
      %185 = vector.extract_strided_slice %41 {offsets = [48, 4, 3], sizes = [1, 8, 8], strides = [1, 1, 1]} : vector<50x12x12xf32> to vector<1x8x8xf32>
      %186 = vector.shape_cast %185 : vector<1x8x8xf32> to vector<8x8xf32>
      %187 = arith.addf %181, %186 : vector<8x8xf32>
      %188 = vector.extract_strided_slice %41 {offsets = [24, 4, 4], sizes = [1, 8, 8], strides = [1, 1, 1]} : vector<50x12x12xf32> to vector<1x8x8xf32>
      %189 = vector.shape_cast %188 : vector<1x8x8xf32> to vector<8x8xf32>
      %190 = arith.addf %184, %189 : vector<8x8xf32>
      %191 = vector.extract_strided_slice %41 {offsets = [49, 4, 4], sizes = [1, 8, 8], strides = [1, 1, 1]} : vector<50x12x12xf32> to vector<1x8x8xf32>
      %192 = vector.shape_cast %191 : vector<1x8x8xf32> to vector<8x8xf32>
      %193 = arith.addf %187, %192 : vector<8x8xf32>
      %c0_24 = arith.constant 0 : index
      %194 = arith.index_cast %23 : i32 to index
      %c0_25 = arith.constant 0 : index
      %c0_26 = arith.constant 0 : index
      %c0_27 = arith.constant 0 : index
      %195 = vector.load %arg6[%c0_24, %194, %c0_25, %c0_26, %c0_27] : memref<1x8x2x8x8xf32, #tpu.memory_space<vmem>>, vector<1x1x1x8x8xf32>
      %196 = vector.shape_cast %195 : vector<1x1x1x8x8xf32> to vector<8x8xf32>
      %197 = arith.addf %196, %190 : vector<8x8xf32>
      %c0_28 = arith.constant 0 : index
      %198 = arith.index_cast %23 : i32 to index
      %c0_29 = arith.constant 0 : index
      %c0_30 = arith.constant 0 : index
      %c0_31 = arith.constant 0 : index
      %199 = vector.load %arg6[%c0_28, %198, %c0_29, %c0_30, %c0_31] : memref<1x8x2x8x8xf32, #tpu.memory_space<vmem>>, vector<1x1x1x8x8xf32>
      %200 = vector.shape_cast %199 : vector<1x1x1x8x8xf32> to vector<8x8xf32>
      %201 = vector.shape_cast %197 : vector<8x8xf32> to vector<1x1x1x8x8xf32>
      tpu.vector_store %arg6[%c0_28, %198, %c0_29, %c0_30, %c0_31], %201 {strides = array<i32>} : memref<1x8x2x8x8xf32, #tpu.memory_space<vmem>>, vector<1x1x1x8x8xf32>,
      %c0_32 = arith.constant 0 : index
      %202 = arith.index_cast %23 : i32 to index
      %c1 = arith.constant 1 : index
      %c0_33 = arith.constant 0 : index
      %c0_34 = arith.constant 0 : index
      %203 = vector.load %arg6[%c0_32, %202, %c1, %c0_33, %c0_34] : memref<1x8x2x8x8xf32, #tpu.memory_space<vmem>>, vector<1x1x1x8x8xf32>
      %204 = vector.shape_cast %203 : vector<1x1x1x8x8xf32> to vector<8x8xf32>
      %205 = arith.addf %204, %193 : vector<8x8xf32>
      %c0_35 = arith.constant 0 : index
      %206 = arith.index_cast %23 : i32 to index
      %c1_36 = arith.constant 1 : index
      %c0_37 = arith.constant 0 : index
      %c0_38 = arith.constant 0 : index
      %207 = vector.load %arg6[%c0_35, %206, %c1_36, %c0_37, %c0_38] : memref<1x8x2x8x8xf32, #tpu.memory_space<vmem>>, vector<1x1x1x8x8xf32>
      %208 = vector.shape_cast %207 : vector<1x1x1x8x8xf32> to vector<8x8xf32>
      %209 = vector.shape_cast %205 : vector<8x8xf32> to vector<1x1x1x8x8xf32>
      tpu.vector_store %arg6[%c0_35, %206, %c1_36, %c0_37, %c0_38], %209 {strides = array<i32>} : memref<1x8x2x8x8xf32, #tpu.memory_space<vmem>>, vector<1x1x1x8x8xf32>,
    } else {
    }
    %c4_i32 = arith.constant 4 : i32
    %29 = arith.subi %arg2, %c4_i32 : i32
    %c0_i32_16 = arith.constant 0 : i32
    %30 = arith.cmpi sge, %29, %c0_i32_16 : i32
    %c8_i32_17 = arith.constant 8 : i32
    %31 = arith.cmpi slt, %29, %c8_i32_17 : i32
    %32 = arith.andi %30, %31 : i1
    %33 = arith.extui %32 : i1 to i32
    %c0_i32_18 = arith.constant 0 : i32
    %34 = arith.cmpi ne, %33, %c0_i32_18 : i32
    scf.if %34 {
      %c4 = arith.constant 4 : index
      %c0_20 = arith.constant 0 : index
      %c0_21 = arith.constant 0 : index
      %38 = vector.load %arg4[%c4, %c0_20, %c0_21] : memref<5x50x4xbf16, #tpu.memory_space<vmem>>, vector<1x50x4xbf16>
      %39 = vector.shape_cast %38 : vector<1x50x4xbf16> to vector<50x4xbf16>
      %cst = arith.constant dense<0.000000e+00> : vector<50x144xf32>
      %40 = tpu.matmul %39, %4, %cst {dimension_numbers = #tpu.dot_dimension_numbers<[1], [0], [0], [1], [0, 0, 1, 1], [], []>} : vector<50x4xbf16>, vector<4x144xbf16>, vector<50x144xf32> -> vector<50x144xf32>
      %41 = vector.shape_cast %40 : vector<50x144xf32> to vector<50x12x12xf32>
      %cst_22 = arith.constant 0.000000e+00 : f32
      %42 = vector.broadcast %cst_22 : f32 to vector<8x8xf32>
      %cst_23 = arith.constant 0.000000e+00 : f32
      %43 = vector.broadcast %cst_23 : f32 to vector<8x8xf32>
      %44 = vector.extract_strided_slice %41 {offsets = [0, 0, 0], sizes = [1, 8, 8], strides = [1, 1, 1]} : vector<50x12x12xf32> to vector<1x8x8xf32>
      %45 = vector.shape_cast %44 : vector<1x8x8xf32> to vector<8x8xf32>
      %46 = arith.addf %42, %45 : vector<8x8xf32>
      %47 = vector.extract_strided_slice %41 {offsets = [25, 0, 0], sizes = [1, 8, 8], strides = [1, 1, 1]} : vector<50x12x12xf32> to vector<1x8x8xf32>
      %48 = vector.shape_cast %47 : vector<1x8x8xf32> to vector<8x8xf32>
      %49 = arith.addf %43, %48 : vector<8x8xf32>
      %50 = vector.extract_strided_slice %41 {offsets = [1, 0, 1], sizes = [1, 8, 8], strides = [1, 1, 1]} : vector<50x12x12xf32> to vector<1x8x8xf32>
      %51 = vector.shape_cast %50 : vector<1x8x8xf32> to vector<8x8xf32>
      %52 = arith.addf %46, %51 : vector<8x8xf32>
      %53 = vector.extract_strided_slice %41 {offsets = [26, 0, 1], sizes = [1, 8, 8], strides = [1, 1, 1]} : vector<50x12x12xf32> to vector<1x8x8xf32>
      %54 = vector.shape_cast %53 : vector<1x8x8xf32> to vector<8x8xf32>
      %55 = arith.addf %49, %54 : vector<8x8xf32>
      %56 = vector.extract_strided_slice %41 {offsets = [2, 0, 2], sizes = [1, 8, 8], strides = [1, 1, 1]} : vector<50x12x12xf32> to vector<1x8x8xf32>
      %57 = vector.shape_cast %56 : vector<1x8x8xf32> to vector<8x8xf32>
      %58 = arith.addf %52, %57 : vector<8x8xf32>
      %59 = vector.extract_strided_slice %41 {offsets = [27, 0, 2], sizes = [1, 8, 8], strides = [1, 1, 1]} : vector<50x12x12xf32> to vector<1x8x8xf32>
      %60 = vector.shape_cast %59 : vector<1x8x8xf32> to vector<8x8xf32>
      %61 = arith.addf %55, %60 : vector<8x8xf32>
      %62 = vector.extract_strided_slice %41 {offsets = [3, 0, 3], sizes = [1, 8, 8], strides = [1, 1, 1]} : vector<50x12x12xf32> to vector<1x8x8xf32>
      %63 = vector.shape_cast %62 : vector<1x8x8xf32> to vector<8x8xf32>
      %64 = arith.addf %58, %63 : vector<8x8xf32>
      %65 = vector.extract_strided_slice %41 {offsets = [28, 0, 3], sizes = [1, 8, 8], strides = [1, 1, 1]} : vector<50x12x12xf32> to vector<1x8x8xf32>
      %66 = vector.shape_cast %65 : vector<1x8x8xf32> to vector<8x8xf32>
      %67 = arith.addf %61, %66 : vector<8x8xf32>
      %68 = vector.extract_strided_slice %41 {offsets = [4, 0, 4], sizes = [1, 8, 8], strides = [1, 1, 1]} : vector<50x12x12xf32> to vector<1x8x8xf32>
      %69 = vector.shape_cast %68 : vector<1x8x8xf32> to vector<8x8xf32>
      %70 = arith.addf %64, %69 : vector<8x8xf32>
      %71 = vector.extract_strided_slice %41 {offsets = [29, 0, 4], sizes = [1, 8, 8], strides = [1, 1, 1]} : vector<50x12x12xf32> to vector<1x8x8xf32>
      %72 = vector.shape_cast %71 : vector<1x8x8xf32> to vector<8x8xf32>
      %73 = arith.addf %67, %72 : vector<8x8xf32>
      %74 = vector.extract_strided_slice %41 {offsets = [5, 1, 0], sizes = [1, 8, 8], strides = [1, 1, 1]} : vector<50x12x12xf32> to vector<1x8x8xf32>
      %75 = vector.shape_cast %74 : vector<1x8x8xf32> to vector<8x8xf32>
      %76 = arith.addf %70, %75 : vector<8x8xf32>
      %77 = vector.extract_strided_slice %41 {offsets = [30, 1, 0], sizes = [1, 8, 8], strides = [1, 1, 1]} : vector<50x12x12xf32> to vector<1x8x8xf32>
      %78 = vector.shape_cast %77 : vector<1x8x8xf32> to vector<8x8xf32>
      %79 = arith.addf %73, %78 : vector<8x8xf32>
      %80 = vector.extract_strided_slice %41 {offsets = [6, 1, 1], sizes = [1, 8, 8], strides = [1, 1, 1]} : vector<50x12x12xf32> to vector<1x8x8xf32>
      %81 = vector.shape_cast %80 : vector<1x8x8xf32> to vector<8x8xf32>
      %82 = arith.addf %76, %81 : vector<8x8xf32>
      %83 = vector.extract_strided_slice %41 {offsets = [31, 1, 1], sizes = [1, 8, 8], strides = [1, 1, 1]} : vector<50x12x12xf32> to vector<1x8x8xf32>
      %84 = vector.shape_cast %83 : vector<1x8x8xf32> to vector<8x8xf32>
      %85 = arith.addf %79, %84 : vector<8x8xf32>
      %86 = vector.extract_strided_slice %41 {offsets = [7, 1, 2], sizes = [1, 8, 8], strides = [1, 1, 1]} : vector<50x12x12xf32> to vector<1x8x8xf32>
      %87 = vector.shape_cast %86 : vector<1x8x8xf32> to vector<8x8xf32>
      %88 = arith.addf %82, %87 : vector<8x8xf32>
      %89 = vector.extract_strided_slice %41 {offsets = [32, 1, 2], sizes = [1, 8, 8], strides = [1, 1, 1]} : vector<50x12x12xf32> to vector<1x8x8xf32>
      %90 = vector.shape_cast %89 : vector<1x8x8xf32> to vector<8x8xf32>
      %91 = arith.addf %85, %90 : vector<8x8xf32>
      %92 = vector.extract_strided_slice %41 {offsets = [8, 1, 3], sizes = [1, 8, 8], strides = [1, 1, 1]} : vector<50x12x12xf32> to vector<1x8x8xf32>
      %93 = vector.shape_cast %92 : vector<1x8x8xf32> to vector<8x8xf32>
      %94 = arith.addf %88, %93 : vector<8x8xf32>
      %95 = vector.extract_strided_slice %41 {offsets = [33, 1, 3], sizes = [1, 8, 8], strides = [1, 1, 1]} : vector<50x12x12xf32> to vector<1x8x8xf32>
      %96 = vector.shape_cast %95 : vector<1x8x8xf32> to vector<8x8xf32>
      %97 = arith.addf %91, %96 : vector<8x8xf32>
      %98 = vector.extract_strided_slice %41 {offsets = [9, 1, 4], sizes = [1, 8, 8], strides = [1, 1, 1]} : vector<50x12x12xf32> to vector<1x8x8xf32>
      %99 = vector.shape_cast %98 : vector<1x8x8xf32> to vector<8x8xf32>
      %100 = arith.addf %94, %99 : vector<8x8xf32>
      %101 = vector.extract_strided_slice %41 {offsets = [34, 1, 4], sizes = [1, 8, 8], strides = [1, 1, 1]} : vector<50x12x12xf32> to vector<1x8x8xf32>
      %102 = vector.shape_cast %101 : vector<1x8x8xf32> to vector<8x8xf32>
      %103 = arith.addf %97, %102 : vector<8x8xf32>
      %104 = vector.extract_strided_slice %41 {offsets = [10, 2, 0], sizes = [1, 8, 8], strides = [1, 1, 1]} : vector<50x12x12xf32> to vector<1x8x8xf32>
      %105 = vector.shape_cast %104 : vector<1x8x8xf32> to vector<8x8xf32>
      %106 = arith.addf %100, %105 : vector<8x8xf32>
      %107 = vector.extract_strided_slice %41 {offsets = [35, 2, 0], sizes = [1, 8, 8], strides = [1, 1, 1]} : vector<50x12x12xf32> to vector<1x8x8xf32>
      %108 = vector.shape_cast %107 : vector<1x8x8xf32> to vector<8x8xf32>
      %109 = arith.addf %103, %108 : vector<8x8xf32>
      %110 = vector.extract_strided_slice %41 {offsets = [11, 2, 1], sizes = [1, 8, 8], strides = [1, 1, 1]} : vector<50x12x12xf32> to vector<1x8x8xf32>
      %111 = vector.shape_cast %110 : vector<1x8x8xf32> to vector<8x8xf32>
      %112 = arith.addf %106, %111 : vector<8x8xf32>
      %113 = vector.extract_strided_slice %41 {offsets = [36, 2, 1], sizes = [1, 8, 8], strides = [1, 1, 1]} : vector<50x12x12xf32> to vector<1x8x8xf32>
      %114 = vector.shape_cast %113 : vector<1x8x8xf32> to vector<8x8xf32>
      %115 = arith.addf %109, %114 : vector<8x8xf32>
      %116 = vector.extract_strided_slice %41 {offsets = [12, 2, 2], sizes = [1, 8, 8], strides = [1, 1, 1]} : vector<50x12x12xf32> to vector<1x8x8xf32>
      %117 = vector.shape_cast %116 : vector<1x8x8xf32> to vector<8x8xf32>
      %118 = arith.addf %112, %117 : vector<8x8xf32>
      %119 = vector.extract_strided_slice %41 {offsets = [37, 2, 2], sizes = [1, 8, 8], strides = [1, 1, 1]} : vector<50x12x12xf32> to vector<1x8x8xf32>
      %120 = vector.shape_cast %119 : vector<1x8x8xf32> to vector<8x8xf32>
      %121 = arith.addf %115, %120 : vector<8x8xf32>
      %122 = vector.extract_strided_slice %41 {offsets = [13, 2, 3], sizes = [1, 8, 8], strides = [1, 1, 1]} : vector<50x12x12xf32> to vector<1x8x8xf32>
      %123 = vector.shape_cast %122 : vector<1x8x8xf32> to vector<8x8xf32>
      %124 = arith.addf %118, %123 : vector<8x8xf32>
      %125 = vector.extract_strided_slice %41 {offsets = [38, 2, 3], sizes = [1, 8, 8], strides = [1, 1, 1]} : vector<50x12x12xf32> to vector<1x8x8xf32>
      %126 = vector.shape_cast %125 : vector<1x8x8xf32> to vector<8x8xf32>
      %127 = arith.addf %121, %126 : vector<8x8xf32>
      %128 = vector.extract_strided_slice %41 {offsets = [14, 2, 4], sizes = [1, 8, 8], strides = [1, 1, 1]} : vector<50x12x12xf32> to vector<1x8x8xf32>
      %129 = vector.shape_cast %128 : vector<1x8x8xf32> to vector<8x8xf32>
      %130 = arith.addf %124, %129 : vector<8x8xf32>
      %131 = vector.extract_strided_slice %41 {offsets = [39, 2, 4], sizes = [1, 8, 8], strides = [1, 1, 1]} : vector<50x12x12xf32> to vector<1x8x8xf32>
      %132 = vector.shape_cast %131 : vector<1x8x8xf32> to vector<8x8xf32>
      %133 = arith.addf %127, %132 : vector<8x8xf32>
      %134 = vector.extract_strided_slice %41 {offsets = [15, 3, 0], sizes = [1, 8, 8], strides = [1, 1, 1]} : vector<50x12x12xf32> to vector<1x8x8xf32>
      %135 = vector.shape_cast %134 : vector<1x8x8xf32> to vector<8x8xf32>
      %136 = arith.addf %130, %135 : vector<8x8xf32>
      %137 = vector.extract_strided_slice %41 {offsets = [40, 3, 0], sizes = [1, 8, 8], strides = [1, 1, 1]} : vector<50x12x12xf32> to vector<1x8x8xf32>
      %138 = vector.shape_cast %137 : vector<1x8x8xf32> to vector<8x8xf32>
      %139 = arith.addf %133, %138 : vector<8x8xf32>
      %140 = vector.extract_strided_slice %41 {offsets = [16, 3, 1], sizes = [1, 8, 8], strides = [1, 1, 1]} : vector<50x12x12xf32> to vector<1x8x8xf32>
      %141 = vector.shape_cast %140 : vector<1x8x8xf32> to vector<8x8xf32>
      %142 = arith.addf %136, %141 : vector<8x8xf32>
      %143 = vector.extract_strided_slice %41 {offsets = [41, 3, 1], sizes = [1, 8, 8], strides = [1, 1, 1]} : vector<50x12x12xf32> to vector<1x8x8xf32>
      %144 = vector.shape_cast %143 : vector<1x8x8xf32> to vector<8x8xf32>
      %145 = arith.addf %139, %144 : vector<8x8xf32>
      %146 = vector.extract_strided_slice %41 {offsets = [17, 3, 2], sizes = [1, 8, 8], strides = [1, 1, 1]} : vector<50x12x12xf32> to vector<1x8x8xf32>
      %147 = vector.shape_cast %146 : vector<1x8x8xf32> to vector<8x8xf32>
      %148 = arith.addf %142, %147 : vector<8x8xf32>
      %149 = vector.extract_strided_slice %41 {offsets = [42, 3, 2], sizes = [1, 8, 8], strides = [1, 1, 1]} : vector<50x12x12xf32> to vector<1x8x8xf32>
      %150 = vector.shape_cast %149 : vector<1x8x8xf32> to vector<8x8xf32>
      %151 = arith.addf %145, %150 : vector<8x8xf32>
      %152 = vector.extract_strided_slice %41 {offsets = [18, 3, 3], sizes = [1, 8, 8], strides = [1, 1, 1]} : vector<50x12x12xf32> to vector<1x8x8xf32>
      %153 = vector.shape_cast %152 : vector<1x8x8xf32> to vector<8x8xf32>
      %154 = arith.addf %148, %153 : vector<8x8xf32>
      %155 = vector.extract_strided_slice %41 {offsets = [43, 3, 3], sizes = [1, 8, 8], strides = [1, 1, 1]} : vector<50x12x12xf32> to vector<1x8x8xf32>
      %156 = vector.shape_cast %155 : vector<1x8x8xf32> to vector<8x8xf32>
      %157 = arith.addf %151, %156 : vector<8x8xf32>
      %158 = vector.extract_strided_slice %41 {offsets = [19, 3, 4], sizes = [1, 8, 8], strides = [1, 1, 1]} : vector<50x12x12xf32> to vector<1x8x8xf32>
      %159 = vector.shape_cast %158 : vector<1x8x8xf32> to vector<8x8xf32>
      %160 = arith.addf %154, %159 : vector<8x8xf32>
      %161 = vector.extract_strided_slice %41 {offsets = [44, 3, 4], sizes = [1, 8, 8], strides = [1, 1, 1]} : vector<50x12x12xf32> to vector<1x8x8xf32>
      %162 = vector.shape_cast %161 : vector<1x8x8xf32> to vector<8x8xf32>
      %163 = arith.addf %157, %162 : vector<8x8xf32>
      %164 = vector.extract_strided_slice %41 {offsets = [20, 4, 0], sizes = [1, 8, 8], strides = [1, 1, 1]} : vector<50x12x12xf32> to vector<1x8x8xf32>
      %165 = vector.shape_cast %164 : vector<1x8x8xf32> to vector<8x8xf32>
      %166 = arith.addf %160, %165 : vector<8x8xf32>
      %167 = vector.extract_strided_slice %41 {offsets = [45, 4, 0], sizes = [1, 8, 8], strides = [1, 1, 1]} : vector<50x12x12xf32> to vector<1x8x8xf32>
      %168 = vector.shape_cast %167 : vector<1x8x8xf32> to vector<8x8xf32>
      %169 = arith.addf %163, %168 : vector<8x8xf32>
      %170 = vector.extract_strided_slice %41 {offsets = [21, 4, 1], sizes = [1, 8, 8], strides = [1, 1, 1]} : vector<50x12x12xf32> to vector<1x8x8xf32>
      %171 = vector.shape_cast %170 : vector<1x8x8xf32> to vector<8x8xf32>
      %172 = arith.addf %166, %171 : vector<8x8xf32>
      %173 = vector.extract_strided_slice %41 {offsets = [46, 4, 1], sizes = [1, 8, 8], strides = [1, 1, 1]} : vector<50x12x12xf32> to vector<1x8x8xf32>
      %174 = vector.shape_cast %173 : vector<1x8x8xf32> to vector<8x8xf32>
      %175 = arith.addf %169, %174 : vector<8x8xf32>
      %176 = vector.extract_strided_slice %41 {offsets = [22, 4, 2], sizes = [1, 8, 8], strides = [1, 1, 1]} : vector<50x12x12xf32> to vector<1x8x8xf32>
      %177 = vector.shape_cast %176 : vector<1x8x8xf32> to vector<8x8xf32>
      %178 = arith.addf %172, %177 : vector<8x8xf32>
      %179 = vector.extract_strided_slice %41 {offsets = [47, 4, 2], sizes = [1, 8, 8], strides = [1, 1, 1]} : vector<50x12x12xf32> to vector<1x8x8xf32>
      %180 = vector.shape_cast %179 : vector<1x8x8xf32> to vector<8x8xf32>
      %181 = arith.addf %175, %180 : vector<8x8xf32>
      %182 = vector.extract_strided_slice %41 {offsets = [23, 4, 3], sizes = [1, 8, 8], strides = [1, 1, 1]} : vector<50x12x12xf32> to vector<1x8x8xf32>
      %183 = vector.shape_cast %182 : vector<1x8x8xf32> to vector<8x8xf32>
      %184 = arith.addf %178, %183 : vector<8x8xf32>
      %185 = vector.extract_strided_slice %41 {offsets = [48, 4, 3], sizes = [1, 8, 8], strides = [1, 1, 1]} : vector<50x12x12xf32> to vector<1x8x8xf32>
      %186 = vector.shape_cast %185 : vector<1x8x8xf32> to vector<8x8xf32>
      %187 = arith.addf %181, %186 : vector<8x8xf32>
      %188 = vector.extract_strided_slice %41 {offsets = [24, 4, 4], sizes = [1, 8, 8], strides = [1, 1, 1]} : vector<50x12x12xf32> to vector<1x8x8xf32>
      %189 = vector.shape_cast %188 : vector<1x8x8xf32> to vector<8x8xf32>
      %190 = arith.addf %184, %189 : vector<8x8xf32>
      %191 = vector.extract_strided_slice %41 {offsets = [49, 4, 4], sizes = [1, 8, 8], strides = [1, 1, 1]} : vector<50x12x12xf32> to vector<1x8x8xf32>
      %192 = vector.shape_cast %191 : vector<1x8x8xf32> to vector<8x8xf32>
      %193 = arith.addf %187, %192 : vector<8x8xf32>
      %c0_24 = arith.constant 0 : index
      %194 = arith.index_cast %29 : i32 to index
      %c0_25 = arith.constant 0 : index
      %c0_26 = arith.constant 0 : index
      %c0_27 = arith.constant 0 : index
      %195 = vector.load %arg6[%c0_24, %194, %c0_25, %c0_26, %c0_27] : memref<1x8x2x8x8xf32, #tpu.memory_space<vmem>>, vector<1x1x1x8x8xf32>
      %196 = vector.shape_cast %195 : vector<1x1x1x8x8xf32> to vector<8x8xf32>
      %197 = arith.addf %196, %190 : vector<8x8xf32>
      %c0_28 = arith.constant 0 : index
      %198 = arith.index_cast %29 : i32 to index
      %c0_29 = arith.constant 0 : index
      %c0_30 = arith.constant 0 : index
      %c0_31 = arith.constant 0 : index
      %199 = vector.load %arg6[%c0_28, %198, %c0_29, %c0_30, %c0_31] : memref<1x8x2x8x8xf32, #tpu.memory_space<vmem>>, vector<1x1x1x8x8xf32>
      %200 = vector.shape_cast %199 : vector<1x1x1x8x8xf32> to vector<8x8xf32>
      %201 = vector.shape_cast %197 : vector<8x8xf32> to vector<1x1x1x8x8xf32>
      tpu.vector_store %arg6[%c0_28, %198, %c0_29, %c0_30, %c0_31], %201 {strides = array<i32>} : memref<1x8x2x8x8xf32, #tpu.memory_space<vmem>>, vector<1x1x1x8x8xf32>,
      %c0_32 = arith.constant 0 : index
      %202 = arith.index_cast %29 : i32 to index
      %c1 = arith.constant 1 : index
      %c0_33 = arith.constant 0 : index
      %c0_34 = arith.constant 0 : index
      %203 = vector.load %arg6[%c0_32, %202, %c1, %c0_33, %c0_34] : memref<1x8x2x8x8xf32, #tpu.memory_space<vmem>>, vector<1x1x1x8x8xf32>
      %204 = vector.shape_cast %203 : vector<1x1x1x8x8xf32> to vector<8x8xf32>
      %205 = arith.addf %204, %193 : vector<8x8xf32>
      %c0_35 = arith.constant 0 : index
      %206 = arith.index_cast %29 : i32 to index
      %c1_36 = arith.constant 1 : index
      %c0_37 = arith.constant 0 : index
      %c0_38 = arith.constant 0 : index
      %207 = vector.load %arg6[%c0_35, %206, %c1_36, %c0_37, %c0_38] : memref<1x8x2x8x8xf32, #tpu.memory_space<vmem>>, vector<1x1x1x8x8xf32>
      %208 = vector.shape_cast %207 : vector<1x1x1x8x8xf32> to vector<8x8xf32>
      %209 = vector.shape_cast %205 : vector<8x8xf32> to vector<1x1x1x8x8xf32>
      tpu.vector_store %arg6[%c0_35, %206, %c1_36, %c0_37, %c0_38], %209 {strides = array<i32>} : memref<1x8x2x8x8xf32, #tpu.memory_space<vmem>>, vector<1x1x1x8x8xf32>,
    } else {
    }
    %c11_i32 = arith.constant 11 : i32
    %35 = arith.cmpi eq, %arg2, %c11_i32 : i32
    %36 = arith.extui %35 : i1 to i32
    %c0_i32_19 = arith.constant 0 : i32
    %37 = arith.cmpi ne, %36, %c0_i32_19 : i32
    scf.if %37 {
      %c0_20 = arith.constant 0 : index
      %c0_21 = arith.constant 0 : index
      %c0_22 = arith.constant 0 : index
      %c0_23 = arith.constant 0 : index
      %c0_24 = arith.constant 0 : index
      %38 = vector.load %arg6[%c0_20, %c0_21, %c0_22, %c0_23, %c0_24] : memref<1x8x2x8x8xf32, #tpu.memory_space<vmem>>, vector<1x8x1x8x8xf32>
      %39 = vector.shape_cast %38 : vector<1x8x1x8x8xf32> to vector<8x8x8xf32>
      %c0_25 = arith.constant 0 : index
      %c0_26 = arith.constant 0 : index
      %c1 = arith.constant 1 : index
      %c0_27 = arith.constant 0 : index
      %c0_28 = arith.constant 0 : index
      %40 = vector.load %arg6[%c0_25, %c0_26, %c1, %c0_27, %c0_28] : memref<1x8x2x8x8xf32, #tpu.memory_space<vmem>>, vector<1x8x1x8x8xf32>
      %41 = vector.shape_cast %40 : vector<1x8x1x8x8xf32> to vector<8x8x8xf32>
      %42 = vector.shape_cast %39 : vector<8x8x8xf32> to vector<1x8x8x8xf32>
      %cst = arith.constant dense<0.000000e+00> : vector<1xf32>
      %43 = vector.multi_reduction <add>, %42, %cst [1, 2, 3] : vector<1x8x8x8xf32> to vector<1xf32>
      %44 = vector.shape_cast %43 : vector<1xf32> to vector<1x1x1x1xf32>
      %45 = vector.extract %44[0, 0, 0, 0] : f32 from vector<1x1x1x1xf32>
      %cst_29 = arith.constant 5.120000e+02 : f32
      %46 = arith.divf %45, %cst_29 : f32
      %47 = vector.shape_cast %41 : vector<8x8x8xf32> to vector<1x8x8x8xf32>
      %cst_30 = arith.constant dense<0.000000e+00> : vector<1xf32>
      %48 = vector.multi_reduction <add>, %47, %cst_30 [1, 2, 3] : vector<1x8x8x8xf32> to vector<1xf32>
      %49 = vector.shape_cast %48 : vector<1xf32> to vector<1x1x1x1xf32>
      %50 = vector.extract %49[0, 0, 0, 0] : f32 from vector<1x1x1x1xf32>
      %cst_31 = arith.constant 5.120000e+02 : f32
      %51 = arith.divf %50, %cst_31 : f32
      %52 = vector.broadcast %46 : f32 to vector<8x8x8xf32>
      %53 = arith.subf %39, %52 : vector<8x8x8xf32>
      %54 = arith.mulf %53, %53 : vector<8x8x8xf32>
      %55 = vector.shape_cast %54 : vector<8x8x8xf32> to vector<1x8x8x8xf32>
      %cst_32 = arith.constant dense<0.000000e+00> : vector<1xf32>
      %56 = vector.multi_reduction <add>, %55, %cst_32 [1, 2, 3] : vector<1x8x8x8xf32> to vector<1xf32>
      %57 = vector.shape_cast %56 : vector<1xf32> to vector<1x1x1x1xf32>
      %58 = vector.extract %57[0, 0, 0, 0] : f32 from vector<1x1x1x1xf32>
      %59 = vector.broadcast %51 : f32 to vector<8x8x8xf32>
      %60 = arith.subf %41, %59 : vector<8x8x8xf32>
      %61 = arith.mulf %60, %60 : vector<8x8x8xf32>
      %62 = vector.shape_cast %61 : vector<8x8x8xf32> to vector<1x8x8x8xf32>
      %cst_33 = arith.constant dense<0.000000e+00> : vector<1xf32>
      %63 = vector.multi_reduction <add>, %62, %cst_33 [1, 2, 3] : vector<1x8x8x8xf32> to vector<1xf32>
      %64 = vector.shape_cast %63 : vector<1xf32> to vector<1x1x1x1xf32>
      %65 = vector.extract %64[0, 0, 0, 0] : f32 from vector<1x1x1x1xf32>
      %66 = tpu.iota {dimensions = array<i32: 2>} : vector<1x1x2x1xi32>
      %c0_i32_34 = arith.constant 0 : i32
      %67 = vector.broadcast %c0_i32_34 : i32 to vector<1x1x2x1xi32>
      %68 = arith.cmpi eq, %66, %67 : vector<1x1x2x1xi32>
      %69 = vector.broadcast %46 : f32 to vector<1x1x2x1xf32>
      %70 = vector.broadcast %51 : f32 to vector<1x1x2x1xf32>
      %71 = arith.select %68, %69, %70 : vector<1x1x2x1xi1>, vector<1x1x2x1xf32>
      %c0_35 = arith.constant 0 : index
      %c0_36 = arith.constant 0 : index
      %c0_37 = arith.constant 0 : index
      %c0_38 = arith.constant 0 : index
      %72 = vector.load %arg7[%c0_35, %c0_36, %c0_37, %c0_38] : memref<1x1x2x1xf32, #tpu.memory_space<vmem>>, vector<1x1x2x1xf32>
      tpu.vector_store %arg7[%c0_35, %c0_36, %c0_37, %c0_38], %71 {strides = array<i32>} : memref<1x1x2x1xf32, #tpu.memory_space<vmem>>, vector<1x1x2x1xf32>,
      %c0_i32_39 = arith.constant 0 : i32
      %73 = vector.broadcast %c0_i32_39 : i32 to vector<1x1x2x1xi32>
      %74 = arith.cmpi eq, %66, %73 : vector<1x1x2x1xi32>
      %75 = vector.broadcast %58 : f32 to vector<1x1x2x1xf32>
      %76 = vector.broadcast %65 : f32 to vector<1x1x2x1xf32>
      %77 = arith.select %74, %75, %76 : vector<1x1x2x1xi1>, vector<1x1x2x1xf32>
      %c0_40 = arith.constant 0 : index
      %c0_41 = arith.constant 0 : index
      %c0_42 = arith.constant 0 : index
      %c0_43 = arith.constant 0 : index
      %78 = vector.load %arg8[%c0_40, %c0_41, %c0_42, %c0_43] : memref<1x1x2x1xf32, #tpu.memory_space<vmem>>, vector<1x1x2x1xf32>
      tpu.vector_store %arg8[%c0_40, %c0_41, %c0_42, %c0_43], %77 {strides = array<i32>} : memref<1x1x2x1xf32, #tpu.memory_space<vmem>>, vector<1x1x2x1xf32>,
    } else {
    }
    return
  }
  func.func @transform_0(%arg0: i32, %arg1: i32, %arg2: i32) -> (i32, i32, i32, i32) {
    %c8_i32 = arith.constant 8 : i32
    %0 = arith.muli %arg1, %c8_i32 : i32
    %1 = arith.addi %0, %arg2 : i32
    %c0_i32 = arith.constant 0 : i32
    %c0_i32_0 = arith.constant 0 : i32
    %c0_i32_1 = arith.constant 0 : i32
    return %arg0, %1, %c0_i32, %c0_i32_0 : i32, i32, i32, i32
  }
  func.func @transform_1(%arg0: i32, %arg1: i32, %arg2: i32) -> (i32, i32, i32) {
    %c0_i32 = arith.constant 0 : i32
    %c0_i32_0 = arith.constant 0 : i32
    %c0_i32_1 = arith.constant 0 : i32
    %c0_i32_2 = arith.constant 0 : i32
    return %c0_i32, %c0_i32_0, %c0_i32_1 : i32, i32, i32
  }
  func.func @transform_2(%arg0: i32, %arg1: i32, %arg2: i32) -> i32 {
    %c0_i32 = arith.constant 0 : i32
    %c0_i32_0 = arith.constant 0 : i32
    return %c0_i32 : i32
  }
  func.func @transform_3(%arg0: i32, %arg1: i32, %arg2: i32) -> (i32, i32, i32, i32, i32) {
    %c0_i32 = arith.constant 0 : i32
    %c0_i32_0 = arith.constant 0 : i32
    %c0_i32_1 = arith.constant 0 : i32
    %c0_i32_2 = arith.constant 0 : i32
    return %arg0, %arg1, %c0_i32, %c0_i32_0, %c0_i32_1 : i32, i32, i32, i32, i32
  }
  func.func @transform_4(%arg0: i32, %arg1: i32, %arg2: i32) -> (i32, i32, i32, i32) {
    %c0_i32 = arith.constant 0 : i32
    %c0_i32_0 = arith.constant 0 : i32
    %c0_i32_1 = arith.constant 0 : i32
    return %arg0, %arg1, %c0_i32, %c0_i32_0 : i32, i32, i32, i32
  }
  func.func @transform_5(%arg0: i32, %arg1: i32, %arg2: i32) -> (i32, i32, i32, i32) {
    %c0_i32 = arith.constant 0 : i32
    %c0_i32_0 = arith.constant 0 : i32
    %c0_i32_1 = arith.constant 0 : i32
    return %arg0, %arg1, %c0_i32, %c0_i32_0 : i32, i32, i32, i32
  }
}

</mosaic_0001>

<bundles_post_ra>
// kernel: tpu_custom_call.1
= control target key start
LH: loop header
LB: loop body
LE: loop exit
PB: predicated region body
PF: predicated region fallthrough
CT: control target
= control target key end

     0   :  { %s16999_s0 = inlined_call_operand.vmem [shape: bf16[2,12,4,144], index: 0, kind: input, shape index: {}]   ;;  %s17000_s1 = inlined_call_operand.vmem [shape: bf16[5,50,4], index: 1, kind: input, shape index: {}]   ;;  %s17001_s2 = inlined_call_operand.vmem [shape: f32[2], index: 2, kind: input, shape index: {}]   ;;  %s17002_s3 = inlined_call_operand.hbm [shape: f32[2,8,2,8,8], index: 3, kind: output, shape index: {0}]   ;;  %s17003_s4 = inlined_call_operand.vmem [shape: f32[2,1,2,1], index: 4, kind: output, shape index: {1}]   ;;  %s17004_s5 = inlined_call_operand.vmem [shape: f32[2,1,2,1], index: 5, kind: output, shape index: {2}]  }
   0x1   :  { %17030 = sst [smem:[#allocation34_spill]] %s17001_s2 }
   0x2   :  { %11 = vsyncpa [#allocation4], 0 }
   0x3   :  { %12 = vsyncpa [#allocation3], 0 }
   0x4   :  { %14 = vsyncpa [#allocation3 + $0x1], 0  ;;  %s11558_s18 = smov 0   ;;  %s11560_s19 = smov 0  }
   0x5   :  { %s11562_s20 = smov 0   ;;  %s11564_s21 = smov 0  }
   0x6   :  { %s11566_s22 = smov 0   ;;  %s11568_s23 = smov 0  }
   0x7   :  { %s11570_s24 = smov 0   ;;  %s11572_s25 = smov 0  }
   0x8 LB: > { %17031 = sst [smem:[#allocation8_spill]] %s11424_s23  ;;  %s10974_s26 = sadd.s32 4294967295, %s11432_s25   ;;  %s11432_s25 = sphi %s11572_s25, %s20_s25   ;;  %s11428_s24 = sphi %s11570_s24, %s17153_s24   ;;  %s11424_s23 = sphi %s11568_s23, %s17152_s23   ;;  %s11420_s22 = sphi %s11566_s22, %s17151_s22   ;;  %s11416_s21 = sphi %s11564_s21, %s17150_s21   ;;  %s11412_s20 = sphi %s11562_s20, %s17156_s20   ;;  %s11408_s19 = sphi %s11560_s19, %s17155_s19   ;;  %s11404_s18 = sphi %s11558_s18, %s17154_s18  }
   0x9   : > { %17032 = sst [smem:[#allocation9_spill]] %s11428_s24  ;;  %s10975_s27 = sadd.s32 4294967294, %s11432_s25  }
   0xa   : > { %s32_s28 = sadd.s32 1, %s11424_s23  ;;  %s39_s29 = sadd.s32 1, %s11428_s24 }
   0xb   : > { %p33_p0 = scmp.ge.s32.totalorder %s32_s28, 12  ;;  %s122_s30 = sadd.s32 1, %s11412_s20 }
   0xc   : > { %p132_p1 = scmp.ne.s32.totalorder %s11412_s20, %s11408_s19  ;;  %p133_p2 = scmp.eq.s32.totalorder %s10974_s26, 23 }
   0xd   : > { %s17158_s28 = smov (%p33_p0, %s32_s28), 0  ;;  %s17160_s29 = smov (!%p33_p0, %s39_s29), %s11428_s24 }
   0xe   : > { %17033 = sst [smem:[#allocation10_spill]] %s17158_s28  ;;  %p11608_p3 = por %p133_p2, %p132_p1 }
   0xf   : > { %p138_p4 = scmp.ne.s32.totalorder %s11408_s19, %s11404_s18  ;;  %p41_p5 = scmp.ge.s32.totalorder %s17160_s29, 2 }
  0x10   : > { %p139_p6 = scmp.eq.s32.totalorder %s10975_s27, 23  ;;  %p10976_p7 = scmp.ge.s32.totalorder %s11432_s25, 1 }
  0x11   : > { %p202_p8 = scmp.lt.s32.totalorder %s11432_s25, 25  ;;  %s17162_s29 = smov (%p41_p5, %s17160_s29), 0 }
  0x12   : > { %17035 = sst [smem:[#allocation11_spill]] %s17162_s29  ;;  %p11618_p9 = por %p139_p6, %p138_p4 }
  0x13   : > { %p11622_p10 = pnand %p10976_p7, %p202_p8  ;;  %s117_s9 = ssub.s32 %s11428_s24, %s17162_s29 }
  0x14   : > { %s17036_s7 = scalar_select %p11618_p9, 1, 0 }
  0x15   : > { %p120_p11 = scmp.eq.s32.totalorder %s117_s9, 0  ;;  %p11133_p12 = pneg %p11622_p10 }
  0x16   : > { %p11630_p13 = scmp.eq.s32.totalorder %s10974_s26, 0  ;;  %s17039_s2 = sld [smem:[#allocation34_spill]] }
  0x17   : > { %s11638_s14 = scalar_select %p120_p11, %s11412_s20, %s122_s30  }
  0x18   : > { %p11134_p0 = pnand %p11630_p13, %p11133_p12 }
  0x19   : > { %17040 = sst [smem:[#allocation12_spill]] %s11638_s14 }
  0x1a   : > { %p11323_p2 = pneg %p11134_p0 }
  0x1c   : > { %s218_s13 = sshll.u32 %s17039_s2, 4  ;;  %s219_s13 = int_to_ptr.vmem [resolvable:$true] %s218_s13 }
  0x1d   : > { %s11321_s15 = scalar_lea.vmem %s219_s13, 16  ;;  %p11329_p6 = scmp.lt.s32.totalorder %s219_s13, %s219_s13 }
  0x1e   : > { %p11322_p1 = scmp.ne.s32.totalorder %s219_s13, %s11321_s15  ;;  %p11330_p7 = scmp.lt.s32.totalorder %s11321_s15, %s11321_s15 }
  0x20   : > { %p11324_p4 = pnand %p11323_p2, %p11322_p1  ;;  %p11331_p8 = por %p11330_p7, %p11329_p6 }
  0x22   : > { %p11325_p5 = pneg %p11324_p4 }
  0x24   : > { %p11332_p9 = pnand %p11331_p8, %p11325_p5 }
  0x26   : > { %11335 = shalt.err (!%p11332_p9)
}
  0x27   : > { %s11434_s16 = smov [#allocation2]   ;;  %247 = sbr.rel (%p11622_p10) target bundleno = 3768 (0xeb8), region = 32 }
  0x28   : > { %11136 = dma.vmem_to_smem (!%p11134_p0), %s219_s13, 16, %s11434_s16, [#allocation4]  }
  0x2c   : > { %11395 = dma.done.wait (%p11630_p13), [#allocation4], 16  }
  0x2d   : > { %11397 = vsyncadd (%p11630_p13), [#allocation4], 4294967280 }
  0x2e   : > { %253 = sfence }
  0x2f   : > { %s17007_s17 = sand.u32 1, %s11408_s19   ;;  %p298_p9 = scmp.lt.s32.totalorder %s11420_s22, 1 }
  0x30   : > { %s10981_s26 = sshll.u32 %s17007_s17, 7  ;;  %p300_p11 = scmp.lt.s32.totalorder %s11416_s21, 11 }
  0x31   : > { %s299_s27 = scalar_select %p298_p9, %s11420_s22, 1 }
  0x32   : > { %s301_s30 = scalar_select %p300_p11, %s11416_s21, 11 }
  0x33   : > { %s11118_s8 = smul.u32 24, %s299_s27  ;;  %s10984_s9 = sshll.u32 %s299_s27, 1 }
  0x34   : > { %s10982_s11 = sshll.u32 %s301_s30, 1  ;;  %s11658_s13 = scalar_lea.vmem %s17003_s4, %s10984_s9 }
  0x35   : > { %s304_s15 = sadd.s32 %s11118_s8, %s10982_s11  ;;  %s11663_s29 = scalar_lea.vmem %s17004_s5, %s10984_s9 }
  0x36   : > { %s10983_s28 = sshll.u32 %s304_s15, 1  ;;  %s11668_s14 = scalar_lea.vmem [#allocation5], %s10981_s26 }
  0x37   : > { %s306_s23 = scalar_lea.vmem %s16999_s0, %s10983_s28  ;;  %p10986_p10 = scmp.ne.s32.totalorder %s11416_s21, 0 }
  0x38   : > { %s329_s27 = sld [smem:[#allocation2]] (!%p10986_p10) }
  0x39   : > { %328 = sbr.rel (%p10986_p10) target bundleno = 71 (0x47), region = 40  ;;  %s10987_s2 = sld [smem:[#allocation2 + $0x1]] (!%p10986_p10) }
  0x3e   : > { %vm332_vm0 = vcmask 64512   ;;  %v330_v0 = vstv %s329_s27 }
  0x3f   : > { %333 = vst.msk [vmem:[%s11668_s14] sm:$0xff] %vm332_vm0, %v330_v0  ;;  %334 = vst.msk [vmem:[%s11668_s14 + $0x10] sm:$0xff] %vm332_vm0, %v330_v0  ;;  %v342_v1 = vstv %s10987_s2 }
  0x40   : > { %335 = vst.msk [vmem:[%s11668_s14 + $0x20] sm:$0xff] %vm332_vm0, %v330_v0  ;;  %336 = vst.msk [vmem:[%s11668_s14 + $0x30] sm:$0xff] %vm332_vm0, %v330_v0 }
  0x41   : > { %337 = vst.msk [vmem:[%s11668_s14 + $0x40] sm:$0xff] %vm332_vm0, %v330_v0  ;;  %338 = vst.msk [vmem:[%s11668_s14 + $0x50] sm:$0xff] %vm332_vm0, %v330_v0 }
  0x42   : > { %339 = vst.msk [vmem:[%s11668_s14 + $0x60] sm:$0xff] %vm332_vm0, %v330_v0  ;;  %340 = vst.msk [vmem:[%s11668_s14 + $0x70] sm:$0xff] %vm332_vm0, %v330_v0 }
  0x43   : > { %10988 = vst.msk [vmem:[%s11668_s14 + $0x8] sm:$0xff] %vm332_vm0, %v342_v1  ;;  %10989 = vst.msk [vmem:[%s11668_s14 + $0x18] sm:$0xff] %vm332_vm0, %v342_v1 }
  0x44   : > { %10990 = vst.msk [vmem:[%s11668_s14 + $0x28] sm:$0xff] %vm332_vm0, %v342_v1  ;;  %10991 = vst.msk [vmem:[%s11668_s14 + $0x38] sm:$0xff] %vm332_vm0, %v342_v1 }
  0x45   : > { %10992 = vst.msk [vmem:[%s11668_s14 + $0x48] sm:$0xff] %vm332_vm0, %v342_v1  ;;  %10993 = vst.msk [vmem:[%s11668_s14 + $0x58] sm:$0xff] %vm332_vm0, %v342_v1 }
  0x46   : > { %10994 = vst.msk [vmem:[%s11668_s14 + $0x68] sm:$0xff] %vm332_vm0, %v342_v1  ;;  %10995 = vst.msk [vmem:[%s11668_s14 + $0x78] sm:$0xff] %vm332_vm0, %v342_v1 }
  0x47 PF: > { %v11703_v2 = vld [vmem:[%s306_s23] sm:$0xf]  ;;  %p354_p12 = scmp.ge.s32.totalorder %s11416_s21, 0  ;;  %p355_p13 = scmp.lt.s32.totalorder %s11416_s21, 8 }
  0x48   : > { %17041 = vst [vmem:[#allocation13_spill] sm:$0xff] %v11703_v2 }
  0x49   : > { %p356_p0 = pnand %p355_p13, %p354_p12 }
  0x4b   : > { %359 = sbr.rel (%p356_p0) target bundleno = 714 (0x2ca), region = 44 }
  0x50   : > { %v389_v3 = vlaneseq  ;;  %v11435_v4 = vmov 1983009808   ;;  %v11436_v6 = vmov 0   ;;  %vm407_vm1 = vcmask 1041408   ;;  %v11301_v13 = vld [vmem:[%s17000_s1] sm:$0xff]   ;;  %v11302_v14 = vld [vmem:[%s17000_s1 + $0x10] sm:$0xff]  }
  0x51   : > { %v387_v5 = vunpack.c.l.s4 %v11435_v4  ;;  %446 = vmatprep.mubr.bf16.mxu0 %v11436_v6  ;;  %466 = vmatprep.mubr.bf16.mxu1 %v11436_v6  ;;  %vm394_vm2 = vcmask 31744   ;;  %v11303_v15 = vld [vmem:[%s17000_s1 + $0x8] sm:$0xff]   ;;  %v11304_v16 = vld [vmem:[%s17000_s1 + $0x18] ss:$0 sps:$4 sm:$0x11]   ;;  %s11437_s11 = smov 104  }
  0x52   : > { %v11707_v7 = vshrl.u32 %v389_v3, 7  ;;  %s11438_s12 = smov 116   ;;  %s11439_s10 = smov 80   ;;  %v11448_v43 = vmov 1934713408   ;;  %vm716_vm3 = vcmask 64512  }
  0x53   : > { %v388_v8 = vunpack.c.0.s8 %v387_v5  ;;  %s11440_s15 = smov 92   ;;  %s11441_s16 = smov 56   ;;  %v819_v44 = vunpack.c.l.s4 %v11448_v43  ;;  %vm2042_vm4 = vcmask 1046528   ;;  %vm2129_vm5 = vcmask 1045504  }
  0x54   : > { %s11442_s27 = smov 68   ;;  %s11443_s2 = smov 44   ;;  %vm2216_vm6 = vcmask 1044480   ;;  %vm2303_vm7 = vcmask 1043456  }
  0x55   : > { %v11710_v9 = vsub.s32 %v388_v8, %v11707_v7  ;;  %s11444_s23 = smov 8   ;;  %s11445_s24 = smov 20   ;;  %v820_v53 = vunpack.c.0.s8 %v819_v44 }
  0x56   : > { %s11446_s28 = smov 32   ;;  %s11447_s17 = smov 124  }
  0x57   : > { %v392_v10 = vrot.slane %v11703_v2, %v11710_v9  ;;  %v11913_v8 = vsub.s32 %v820_v53, %v11707_v7  ;;  %s11449_s26 = smov 127   ;;  %s11450_s30 = smov 126  }
  0x58   : > { %s11452_s8 = smov 125   ;;  %s11005_s9 = sshll.u32 %s11416_s21, 4 }
  0x59   : > { %v393_v11 = vcombine.high %v392_v10, %v392_v10  ;;  %v409_v12 = vsel %vm407_vm1, %v392_v10, 0 }
  0x5b   : > { %11000 = vmatprep.subr.msk.bf16.mxu0 %vm407_vm1, %v393_v11  ;;  %11108 = vmatprep.subr.msk.bf16.mxu1 %vm407_vm1, %v393_v11 }
  0x5c   : > { %429 = vmatpush1.bf16.msra.mxu0 %v409_v12  ;;  %11109 = vmatpush1.bf16.msra.mxu1 %v409_v12 }
  0x5f   : > { %11001 = vmatmul.mubr.msk.bf16.vlgmr.msra.gmra.mxu0 %vm394_vm2, %v11301_v13  ;;  %11003 = vmatmul.mubr.msk.bf16.vlgmr.msra.gmra.mxu1 %vm394_vm2, %v11302_v14 }
  0x60   : > { %456 = vmatprep.mubr.bf16.mxu0 %v11436_v6  ;;  %476 = vmatprep.mubr.bf16.mxu1 %v11436_v6 }
  0x67   : > { %11002 = vmatmul.mubr.msk.bf16.gmra.mxu0 %vm394_vm2, %v11303_v15  ;;  %11004 = vmatmul.mubr.msk.bf16.gmra.mxu1 %vm394_vm2, %v11304_v16 }
 0x11f   : > { %v11726_v17 = vpop.f32.mrf.mxu0  ;;  %v11728_v18 = vpop.f32.mrf.mxu1 }
 0x120   : > { %513 = vrot.lane.b32.xlu1 %v11726_v17, %s11437_s11  ;;  %492 = vrot.lane.b32.xlu0 %v11726_v17, %s11438_s12 }
 0x121   : > { %v470_v19 = vpop.f32.mrf.mxu1  ;;  %v450_v26 = vpop.f32.mrf.mxu0 }
 0x123   : > { %v11734_v20 = vpop.f32.mrf.mxu1  ;;  %v11782_v27 = vpop.f32.mrf.mxu0 }
 0x124   : > { %521 = vrot.lane.b32.xlu1 %v11728_v18, %s11437_s11  ;;  %500 = vrot.lane.b32.xlu0 %v11728_v18, %s11438_s12 }
 0x125   : > { %v11740_v21 = vpop.f32.mrf.mxu1  ;;  %v454_v28 = vpop.f32.mrf.mxu0 }
 0x127   : > { %v11742_v22 = vpop.f32.mrf.mxu1  ;;  %v11823_v29 = vpop.f32.mrf.mxu0 }
 0x128   : > { %555 = vrot.lane.b32.xlu1 %v11726_v17, %s11439_s10  ;;  %534 = vrot.lane.b32.xlu0 %v11726_v17, %s11440_s15 }
 0x129   : > { %v11748_v23 = vpop.f32.mrf.mxu1  ;;  %v11848_v30 = vpop.f32.mrf.mxu0 }
 0x12b   : > { %v482_v24 = vpop.f32.mrf.mxu1  ;;  %v11854_v33 = vpop.f32.mrf.mxu0 }
 0x12c   : > { %563 = vrot.lane.b32.xlu1 %v11728_v18, %s11439_s10  ;;  %542 = vrot.lane.b32.xlu0 %v11728_v18, %s11440_s15 }
 0x12d   : > { %v483_v25 = vpop.f32.mrf.mxu1  ;;  %v464_v54 = vpop.f32.mrf.mxu0 }
 0x130   : > { %597 = vrot.lane.b32.xlu1 %v11726_v17, %s11441_s16  ;;  %576 = vrot.lane.b32.xlu0 %v11726_v17, %s11442_s27 }
 0x134   : > { %618 = vrot.lane.b32.xlu1 %v11726_v17, %s11443_s2  ;;  %584 = vrot.lane.b32.xlu0 %v11728_v18, %s11442_s27 }
 0x138   : > { %626 = vrot.lane.b32.xlu1 %v11728_v18, %s11443_s2  ;;  %688 = vrot.lane.b32.xlu0 %v11726_v17, %s11444_s23 }
 0x13c   : > { %660 = vrot.lane.b32.xlu1 %v11726_v17, %s11445_s24  ;;  %605 = vrot.lane.b32.xlu0 %v11728_v18, %s11441_s16 }
 0x140   : > { %704 = vrot.lane.b32.xlu1 %v11728_v18, %s11444_s23  ;;  %639 = vrot.lane.b32.xlu0 %v11726_v17, %s11446_s28 }
 0x144   : > { %647 = vrot.lane.b32.xlu1 %v11728_v18, %s11446_s28  ;;  %668 = vrot.lane.b32.xlu0 %v11728_v18, %s11445_s24 }
 0x148   : > { %731 = vrot.lane.b32.xlu0 %v450_v26, %s11447_s17  ;;  %690 = vrot.lane.b32.xlu1 %v450_v26, %s11444_s23 }
 0x14c   : > { %706 = vrot.lane.b32.xlu0 %v470_v19, %s11444_s23  ;;  %739 = vrot.lane.b32.xlu1 %v470_v19, %s11447_s17 }
 0x150   : > { %502 = vrot.lane.b32.xlu1 %v11734_v20, %s11438_s12  ;;  %494 = vrot.lane.b32.xlu0 %v11782_v27, %s11438_s12 }
 0x154   : > { %536 = vrot.lane.b32.xlu1 %v11782_v27, %s11440_s15  ;;  %515 = vrot.lane.b32.xlu0 %v11782_v27, %s11437_s11 }
 0x158   : > { %544 = vrot.lane.b32.xlu1 %v11734_v20, %s11440_s15  ;;  %523 = vrot.lane.b32.xlu0 %v11734_v20, %s11437_s11 }
 0x15c   : > { %578 = vrot.lane.b32.xlu1 %v11782_v27, %s11442_s27  ;;  %557 = vrot.lane.b32.xlu0 %v11782_v27, %s11439_s10 }
 0x160   : > { %586 = vrot.lane.b32.xlu1 %v11734_v20, %s11442_s27  ;;  %565 = vrot.lane.b32.xlu0 %v11734_v20, %s11439_s10 }
 0x164   : > { %599 = vrot.lane.b32.xlu1 %v11782_v27, %s11441_s16  ;;  %620 = vrot.lane.b32.xlu0 %v11782_v27, %s11443_s2 }
 0x168   : > { %662 = vrot.lane.b32.xlu1 %v11782_v27, %s11445_s24  ;;  %692 = vrot.lane.b32.xlu0 %v11782_v27, %s11444_s23 }
 0x16c   : > { %708 = vrot.lane.b32.xlu1 %v11734_v20, %s11444_s23  ;;  %641 = vrot.lane.b32.xlu0 %v11782_v27, %s11446_s28 }
 0x170   : > { %649 = vrot.lane.b32.xlu1 %v11734_v20, %s11446_s28  ;;  %607 = vrot.lane.b32.xlu0 %v11734_v20, %s11441_s16 }
 0x174   : > { %628 = vrot.lane.b32.xlu0 %v11734_v20, %s11443_s2  ;;  %694 = vrot.lane.b32.xlu1 %v454_v28, %s11444_s23 }
 0x178   : > { %733 = vrot.lane.b32.xlu0 %v454_v28, %s11447_s17  ;;  %496 = vrot.lane.b32.xlu1 %v11823_v29, %s11438_s12 }
 0x17c   : > { %710 = vrot.lane.b32.xlu0 %v11740_v21, %s11444_s23  ;;  %517 = vrot.lane.b32.xlu1 %v11823_v29, %s11437_s11 }
 0x180   : > { %504 = vrot.lane.b32.xlu0 %v11742_v22, %s11438_s12  ;;  %525 = vrot.lane.b32.xlu1 %v11742_v22, %s11437_s11 }
 0x184   : > { %538 = vrot.lane.b32.xlu0 %v11823_v29, %s11440_s15  ;;  %559 = vrot.lane.b32.xlu1 %v11823_v29, %s11439_s10 }
 0x188   : > { %546 = vrot.lane.b32.xlu0 %v11742_v22, %s11440_s15  ;;  %567 = vrot.lane.b32.xlu1 %v11742_v22, %s11439_s10 }
 0x18c   : > { %580 = vrot.lane.b32.xlu0 %v11823_v29, %s11442_s27  ;;  %601 = vrot.lane.b32.xlu1 %v11823_v29, %s11441_s16 }
 0x190   : > { %588 = vrot.lane.b32.xlu0 %v11742_v22, %s11442_s27  ;;  %622 = vrot.lane.b32.xlu1 %v11823_v29, %s11443_s2 }
 0x192   : > { %v514_v31 = vpop.permute.xlu1 %513  ;;  %v493_v32 = vpop.permute.xlu0 %492 }
 0x193   : > { %v752_v46 = vcombine.low %v11726_v17, %v514_v31  ;;  %v753_v47 = vcombine.high %v11726_v17, %v514_v31 }
 0x194   : > { %519 = vrot.lane.b32.xlu0 %v11854_v33, %s11437_s11  ;;  %498 = vrot.lane.b32.xlu1 %v11854_v33, %s11438_s12  ;;  %s2389_s11 = scalar_lea.vmem %s11668_s14, %s11005_s9 [#allocation5] }
 0x195   : > { %v11889_v58 = vrot.slane %v752_v46, %v11710_v9  ;;  %v11892_v59 = vrot.slane %v753_v47, %v11710_v9 }
 0x196   : > { %v11860_v34 = vpop.permute.xlu1 %521  ;;  %v501_v35 = vpop.permute.xlu0 %500 }
 0x197   : > { %v1515_v1 = vcombine.low %v11728_v18, %v11860_v34  ;;  %v1516_v13 = vcombine.high %v11728_v18, %v11860_v34 }
 0x198   : > { %561 = vrot.lane.b32.xlu0 %v11854_v33, %s11439_s10  ;;  %540 = vrot.lane.b32.xlu1 %v11854_v33, %s11440_s15 }
 0x199   : > { %v11937_v19 = vrot.slane %v1515_v1, %v11710_v9 }
 0x19a   : > { %v556_v36 = vpop.permute.xlu1 %555  ;;  %v535_v37 = vpop.permute.xlu0 %534 }
 0x19b   : > { %v769_v40 = vcombine.high %v493_v32, %v535_v37  ;;  %v768_v45 = vcombine.low %v493_v32, %v535_v37  ;;  %v11951_v32 = vrot.slane %v1516_v13, %v11710_v9 }
 0x19c   : > { %603 = vrot.lane.b32.xlu0 %v11854_v33, %s11441_s16  ;;  %582 = vrot.lane.b32.xlu1 %v11854_v33, %s11442_s27 }
 0x19d   : > { %v11883_v50 = vrot.slane %v769_v40, %v11710_v9  ;;  %v11886_v55 = vrot.slane %v768_v45, %v11710_v9 }
 0x19e   : > { %v11870_v38 = vpop.permute.xlu1 %563  ;;  %v543_v39 = vpop.permute.xlu0 %542 }
 0x19f   : > { %v1531_v60 = vcombine.low %v501_v35, %v543_v39  ;;  %v832_v3 = vcombine.low %v11892_v59, %v11883_v50  ;;  %v1532_v4 = vcombine.high %v501_v35, %v543_v39  ;;  %v816_v10 = vcombine.low %v11889_v58, %v11886_v55 }
 0x1a0   : > { %624 = vrot.lane.b32.xlu0 %v11854_v33, %s11443_s2  ;;  %700 = vrot.lane.b32.xlu1 %v11854_v33, %s11444_s23 }
 0x1a1   : > { %v11924_v14 = vrot.slane %v1531_v60, %v11710_v9  ;;  %v11940_v18 = vrot.slane %v1532_v4, %v11710_v9  ;;  %v11943_v26 = vrot.slane %v832_v3, %v11913_v8  ;;  %v11948_v31 = vrot.slane %v816_v10, %v11913_v8 }
 0x1a2   : > { %v598_v41 = vpop.permute.xlu1 %597  ;;  %v577_v42 = vpop.permute.xlu0 %576 }
 0x1a3   : > { %v784_v48 = vcombine.low %v556_v36, %v598_v41  ;;  %v785_v49 = vcombine.high %v556_v36, %v598_v41  ;;  %v1580_v34 = vcombine.high %v11937_v19, %v11924_v14  ;;  %v1596_v41 = vcombine.high %v11951_v32, %v11940_v18 }
 0x1a4   : > { %666 = vrot.lane.b32.xlu0 %v11854_v33, %s11445_s24  ;;  %645 = vrot.lane.b32.xlu1 %v11854_v33, %s11446_s28 }
 0x1a5   : > { %v11896_v61 = vrot.slane %v784_v48, %v11710_v9  ;;  %v11899_v62 = vrot.slane %v785_v49, %v11710_v9  ;;  %v11974_v46 = vrot.slane %v1580_v34, %v11913_v8 }
 0x1a6   : > { %v619_v51 = vpop.permute.xlu1 %618  ;;  %v585_v52 = vpop.permute.xlu0 %584 }
 0x1a7   : > { %v800_v56 = vcombine.low %v577_v42, %v619_v51  ;;  %v801_v57 = vcombine.high %v577_v42, %v619_v51 }
 0x1a8   : > { %702 = vrot.lane.b32.xlu0 %v464_v54, %s11444_s23  ;;  %737 = vrot.lane.b32.xlu1 %v464_v54, %s11447_s17 }
 0x1a9   : > { %v11902_v63 = vrot.slane %v800_v56, %v11710_v9  ;;  %v11905_v0 = vrot.slane %v801_v57, %v11710_v9 }
 0x1aa   : > { %v627_v5 = vpop.permute.xlu1 %626  ;;  %v689_v6 = vpop.permute.xlu0 %688 }
 0x1ab   : > { %v848_v11 = vcombine.low %v11896_v61, %v11902_v63  ;;  %v864_v12 = vcombine.low %v11899_v62, %v11905_v0  ;;  %v1563_v15 = vcombine.low %v585_v52, %v627_v5  ;;  %v1564_v7 = vcombine.high %v585_v52, %v627_v5 }
 0x1ac   : > { %670 = vrot.lane.b32.xlu0 %v11734_v20, %s11445_s24  ;;  %741 = vrot.lane.b32.xlu1 %v11740_v21, %s11447_s17  ;;  %v11983_v52 = vrot.slane %v1596_v41, %v11913_v8  ;;  %v1579_v5 = vcombine.low %v11937_v19, %v11924_v14 }
 0x1ad   : > { %v11931_v16 = vrot.slane %v848_v11, %v11913_v8  ;;  %v11934_v17 = vrot.slane %v864_v12, %v11913_v8  ;;  %v1571_v35 = vrot.slane %v1563_v15, %v11710_v9  ;;  %v1578_v37 = vrot.slane %v1564_v7, %v11710_v9 }
 0x1ae   : > { %v661_v24 = vpop.permute.xlu1 %660  ;;  %v606_v25 = vpop.permute.xlu0 %605  ;;  %v849_v11 = vcombine.high %v11896_v61, %v11902_v63  ;;  %v865_v12 = vcombine.high %v11899_v62, %v11905_v0  ;;  %v1595_v62 = vcombine.low %v11951_v32, %v11940_v18 }
 0x1af   : > { %v1547_v28 = vcombine.low %v11870_v38, %v606_v25  ;;  %v1548_v21 = vcombine.high %v11870_v38, %v606_v25  ;;  %v885_v36 = vcombine.high %v11943_v26, %v11934_v17  ;;  %v12031_v25 = vrot.slane %v1579_v5, %v11913_v8 }
 0x1b0   : > { %696 = vrot.lane.b32.xlu0 %v11823_v29, %s11444_s23  ;;  %698 = vrot.lane.b32.xlu1 %v11848_v30, %s11444_s23  ;;  %v12038_v18 = vrot.slane %v849_v11, %v11913_v8  ;;  %v12041_v32 = vrot.slane %v865_v12, %v11913_v8  ;;  %v884_v12 = vcombine.low %v11943_v26, %v11934_v17 }
 0x1b1   : > { %v1555_v38 = vrot.slane %v1547_v28, %v11710_v9  ;;  %v1562_v39 = vrot.slane %v1548_v21, %v11710_v9 }
 0x1b2   : > { %v705_v42 = vpop.permute.xlu1 %704  ;;  %v640_v43 = vpop.permute.xlu0 %639 }
 0x1b3   : > { %v1612_v44 = vcombine.high %v1555_v38, %v1571_v35  ;;  %v1628_v45 = vcombine.high %v1562_v39, %v1578_v37  ;;  %v1611_v3 = vcombine.low %v1555_v38, %v1571_v35  ;;  %v1627_v14 = vcombine.low %v1562_v39, %v1578_v37 }
 0x1b4   : > { %643 = vrot.lane.b32.xlu0 %v11823_v29, %s11446_s28  ;;  %664 = vrot.lane.b32.xlu1 %v11823_v29, %s11445_s24 }
 0x1b5   : > { %v11977_v47 = vrot.slane %v1612_v44, %v11913_v8  ;;  %v11980_v48 = vrot.slane %v1628_v45, %v11913_v8  ;;  %v12020_v61 = vrot.slane %v1611_v3, %v11913_v8  ;;  %v12047_v38 = vrot.slane %v1627_v14, %v11913_v8 }
 0x1b6   : > { %v648_v49 = vpop.permute.xlu1 %647  ;;  %v669_v51 = vpop.permute.xlu0 %668  ;;  %v881_v45 = vcombine.high %v11948_v31, %v11931_v16 }
 0x1b7   : > { %v1646_v53 = vcombine.high %v11974_v46, %v11977_v47  ;;  %v1650_v54 = vcombine.high %v11983_v52, %v11980_v48 }
 0x1b8   : > { %735 = vrot.lane.b32.xlu0 %v11848_v30, %s11447_s17  ;;  %609 = vrot.lane.b32.xlu1 %v11742_v22, %s11441_s16  ;;  %v817_v30 = vcombine.high %v11889_v58, %v11886_v55 }
 0x1ba   : > { %v732_v56 = vpop.permute.xlu0 %731  ;;  %v691_v57 = vpop.permute.xlu1 %690  ;;  %v12044_v37 = vrot.slane %v817_v30, %v11913_v8 }
 0x1bb   : > { %v896_v60 = vcombine.high %v661_v24, %v732_v56  ;;  %v717_v1 = vsel %vm716_vm3, %v689_v6, %v691_v57  ;;  %v833_v6 = vcombine.high %v11892_v59, %v11883_v50 }
 0x1bc   : > { %v888_v4 = vcombine.high %v640_v43, %v717_v1  ;;  %630 = vrot.lane.b32.xlu0 %v11742_v22, %s11443_s2  ;;  %712 = vrot.lane.b32.xlu1 %v11742_v22, %s11444_s23  ;;  %v883_v30 = vcombine.high %v12044_v37, %v12038_v18 }
 0x1bd   : > { %v12001_v10 = vrot.slane %v896_v60, %v11710_v9  ;;  %v12054_v43 = vrot.slane %v833_v6, %v11913_v8  ;;  %v882_v60 = vcombine.low %v12044_v37, %v12038_v18 }
 0x1be   : > { %v12012_v55 = vrot.slane %v888_v4, %v11710_v9  ;;  %v707_v58 = vpop.permute.xlu0 %706  ;;  %v740_v13 = vpop.permute.xlu1 %739  ;;  %v1645_v4 = vcombine.low %v11974_v46, %v11977_v47 }
 0x1bf   : > { %v721_v15 = vsel %vm716_vm3, %v705_v42, %v707_v58  ;;  %v1667_v7 = vcombine.low %v669_v51, %v740_v13  ;;  %v1668_v19 = vcombine.high %v669_v51, %v740_v13  ;;  %v1643_v42 = vcombine.low %v12031_v25, %v12020_v61 }
 0x1c0   : > { %v904_v24 = vcombine.low %v12012_v55, %v12001_v10  ;;  %v1651_v50 = vcombine.low %v648_v49, %v721_v15  ;;  %v1652_v59 = vcombine.high %v648_v49, %v721_v15  ;;  %714 = vrot.lane.b32.xlu0 %v11748_v23, %s11444_s23  ;;  %651 = vrot.lane.b32.xlu1 %v11742_v22, %s11446_s28 }
 0x1c1   : > { %v1675_v63 = vrot.slane %v1667_v7, %v11710_v9  ;;  %v12026_v0 = vrot.slane %v1668_v19, %v11710_v9  ;;  %v12062_v49 = vrot.slane %v1595_v62, %v11913_v8  ;;  %v905_v3 = vcombine.high %v12012_v55, %v12001_v10 }
 0x1c2   : > { %v1659_v28 = vrot.slane %v1651_v50, %v11710_v9  ;;  %v1666_v21 = vrot.slane %v1652_v59, %v11710_v9  ;;  %v503_v34 = vpop.permute.xlu1 %502  ;;  %v12035_v35 = vpop.permute.xlu0 %494  ;;  %v2084_v6 = vrot.slane %v1643_v42, 1  ;;  %v887_v10 = vcombine.high %v12054_v43, %v12041_v32 }
 0x1c3   : > { %v1647_v5 = vcombine.low %v12062_v49, %v12047_v38  ;;  %v912_v55 = vrot.slane %v904_v24, %v11913_v8  ;;  %v1649_v50 = vcombine.low %v11983_v52, %v11980_v48  ;;  %v2043_v62 = vrot.slane %v885_v36, 1 }
 0x1c4   : > { %v1683_v39 = vcombine.low %v1659_v28, %v1675_v63  ;;  %v1684_v41 = vcombine.high %v1659_v28, %v1675_v63  ;;  %672 = vrot.lane.b32.xlu0 %v11742_v22, %s11445_s24  ;;  %v1699_v44 = vcombine.low %v1666_v21, %v12026_v0  ;;  %743 = vrot.lane.b32.xlu1 %v11748_v23, %s11447_s17  ;;  %v17009_v24 = vmov 0.0  }
 0x1c5   : > { %v886_v23 = vcombine.low %v12054_v43, %v12041_v32  ;;  %v1700_v58 = vcombine.high %v1666_v21, %v12026_v0  ;;  %v2120_v0 = vrot.slane %v1645_v4, 1  ;;  %v2153_v28 = vrot.slane %v1647_v5, 2 }
 0x1c6   : > { %v12064_v51 = vpop.permute.xlu1 %536  ;;  %v12066_v56 = vpop.permute.xlu0 %515  ;;  %v12069_v57 = vrot.slane %v1683_v39, %v11913_v8  ;;  %v1698_v1 = vrot.slane %v1684_v41, %v11913_v8  ;;  %v12093_v14 = vrot.slane %v1699_v44, %v11913_v8  ;;  %v919_v21 = vrot.slane %v905_v3, %v11913_v8 }
 0x1c7   : > { %v2057_v59 = vrot.slane %v886_v23, 1  ;;  %v1714_v44 = vrot.slane %v1700_v58, %v11913_v8  ;;  %v938_v4 = vcombine.low %v12035_v35, %v12064_v51  ;;  %v939_v5 = vcombine.high %v12035_v35, %v12064_v51 }
 0x1c8   : > { %2001 = vrot.lane.b32.xlu0 %v881_v45, %s11449_s26  ;;  %v2085_v11 = vrot.slane %v12069_v57, 1  ;;  %v2121_v13 = vrot.slane %v1698_v1, 1  ;;  %v1716_v63 = vcombine.high %v1698_v1, %v17009_v24  ;;  %v2154_v42 = vrot.slane %v12093_v14, 2 }
 0x1c9   : > { %v920_v45 = vcombine.high %v912_v55, %v17009_v24  ;;  %v923_v35 = vcombine.high %v11782_v27, %v12066_v56  ;;  %v2137_v51 = vrot.slane %v1646_v53, 2  ;;  %v2189_v46 = vrot.slane %v1649_v50, 2 }
 0x1ca   : > { %v545_v15 = vpop.permute.xlu1 %544  ;;  %v524_v7 = vpop.permute.xlu0 %523  ;;  %v2086_v19 = vsel %vm2042_vm4, %v2084_v6, %v2085_v11  ;;  %v2122_v36 = vsel %vm2042_vm4, %v2120_v0, %v2121_v13  ;;  %v922_v6 = vcombine.low %v11782_v27, %v12066_v56  ;;  %v2138_v11 = vrot.slane %v1716_v63, 2 }
 0x1cb   : > { %2087 = vrot.lane.b32.xlu1 %v2086_v19, %s11450_s30  ;;  %v1735_v18 = vcombine.low %v503_v34, %v545_v15  ;;  %v1736_v37 = vcombine.high %v503_v34, %v545_v15  ;;  %v1719_v39 = vcombine.low %v11734_v20, %v524_v7  ;;  %v1720_v41 = vcombine.high %v11734_v20, %v524_v7 }
 0x1cc   : > { %2011 = vrot.lane.b32.xlu0 %v882_v60, %s11450_s30  ;;  %v2058_v7 = vrot.slane %v919_v21, 1  ;;  %v1644_v19 = vcombine.high %v12031_v25, %v12020_v61  ;;  %v921_v27 = vcombine.high %v919_v21, %v17009_v24  ;;  %v1718_v47 = vcombine.high %v1714_v44, %v17009_v24 }
 0x1cd   : > { %v12112_v1 = vrot.slane %v1735_v18, %v11710_v9  ;;  %v12115_v23 = vrot.slane %v1736_v37, %v11710_v9  ;;  %v12118_v34 = vrot.slane %v1719_v39, %v11710_v9  ;;  %v12121_v20 = vrot.slane %v1720_v41, %v11710_v9 }
 0x1ce   : > { %v579_v60 = vpop.permute.xlu1 %578  ;;  %v558_v3 = vpop.permute.xlu0 %557  ;;  %v2155_v18 = vsel %vm2129_vm5, %v2153_v28, %v2154_v42  ;;  %v2190_v37 = vrot.slane %v1714_v44, 2  ;;  %v2207_v53 = vrot.slane %v1650_v54, 2  ;;  %v2044_v61 = vrot.slane %v920_v45, 1 }
 0x1cf   : > { %2123 = vrot.lane.b32.xlu1 %v2122_v36, %s11447_s17  ;;  %v1783_v55 = vcombine.low %v12118_v34, %v12112_v1  ;;  %v1784_v58 = vcombine.high %v12118_v34, %v12112_v1  ;;  %v1799_v13 = vcombine.low %v12121_v20, %v12115_v23  ;;  %v1800_v15 = vcombine.high %v12121_v20, %v12115_v23 }
 0x1d0   : > { %2021 = vrot.lane.b32.xlu0 %v883_v30, %s11452_s8  ;;  %v1715_v30 = vcombine.high %v12069_v57, %v17009_v24  ;;  %v12160_v25 = vrot.slane %v938_v4, %v11710_v9  ;;  %v12163_v56 = vrot.slane %v939_v5, %v11710_v9  ;;  %v12166_v57 = vrot.slane %v922_v6, %v11710_v9 }
 0x1d1   : > { %v12173_v50 = vsel %vm2129_vm5, %v2137_v51, %v2138_v11  ;;  %v12176_v48 = vrot.slane %v923_v35, %v11710_v9  ;;  %v2059_v52 = vsel %vm2042_vm4, %v2057_v59, %v2058_v7  ;;  %v2208_v54 = vrot.slane %v1718_v47, 2 }
 0x1d2   : > { %v12146_v63 = vpop.permute.xlu1 %586  ;;  %v12148_v0 = vpop.permute.xlu0 %565  ;;  %17042 = vst [vmem:[#allocation14_spill] sm:$0xff] %v12173_v50  ;;  %v12180_v28 = vsel %vm2042_vm4, %v2043_v62, %v2044_v61  ;;  %v2191_v41 = vsel %vm2129_vm5, %v2189_v46, %v2190_v37  ;;  %v2103_v36 = vrot.slane %v1715_v30, 1  ;;  %v2076_v42 = vrot.slane %v921_v27, 1 }
 0x1d3   : > { %2156 = vrot.lane.b32.xlu1 %v2155_v18, %s11449_s26  ;;  %v1717_v17 = vcombine.high %v12093_v14, %v17009_v24  ;;  %v2102_v59 = vrot.slane %v1644_v19, 1  ;;  %v2075_v62 = vrot.slane %v887_v10, 1  ;;  %v1648_v4 = vcombine.high %v12062_v49, %v12047_v38 }
 0x1d4   : > { %2031 = vrot.lane.b32.xlu0 %v884_v12, %s11447_s17  ;;  %v12193_v5 = vsel %vm2129_vm5, %v2207_v53, %v2208_v54  ;;  %v987_v11 = vcombine.high %v12166_v57, %v12160_v25  ;;  %v1003_v32 = vcombine.high %v12176_v48, %v12163_v56  ;;  %v12309_v1 = vrot.slane %v1799_v13, %v11913_v8 }
 0x1d5   : > { %v2104_v49 = vsel %vm2042_vm4, %v2102_v59, %v2103_v36  ;;  %v2172_v10 = vrot.slane %v1717_v17, 2  ;;  %v2077_v7 = vsel %vm2042_vm4, %v2075_v62, %v2076_v42  ;;  %v2171_v19 = vrot.slane %v1648_v4, 2 }
 0x1d6   : > { %v600_v21 = vpop.permute.xlu1 %599  ;;  %v621_v39 = vpop.permute.xlu0 %620  ;;  %v12217_v30 = vrot.slane %v987_v11, %v11913_v8  ;;  %v12220_v27 = vrot.slane %v1003_v32, %v11913_v8 }
 0x1d7   : > { %v954_v26 = vcombine.low %v558_v3, %v600_v21  ;;  %v955_v12 = vcombine.high %v558_v3, %v600_v21  ;;  %v970_v44 = vcombine.low %v579_v60, %v621_v39  ;;  %v971_v45 = vcombine.high %v579_v60, %v621_v39  ;;  %2192 = vrot.lane.b32.xlu1 %v2191_v41, %s11452_s8 }
 0x1d8   : > { %2060 = vrot.lane.b32.xlu0 %v2059_v52, %s11449_s26  ;;  %v2173_v53 = vsel %vm2129_vm5, %v2171_v19, %v2172_v10 }
 0x1d9   : > { %v962_v14 = vrot.slane %v954_v26, %v11710_v9  ;;  %v12197_v3 = vrot.slane %v955_v12, %v11710_v9  ;;  %v978_v60 = vrot.slane %v970_v44, %v11710_v9  ;;  %v985_v6 = vrot.slane %v971_v45, %v11710_v9 }
 0x1da   : > { %v663_v43 = vpop.permute.xlu1 %662  ;;  %v693_v38 = vpop.permute.xlu0 %692  ;;  %v986_v45 = vcombine.low %v12166_v57, %v12160_v25 }
 0x1db   : > { %v1019_v35 = vcombine.high %v962_v14, %v978_v60  ;;  %v1035_v51 = vcombine.high %v12197_v3, %v985_v6  ;;  %2105 = vrot.lane.b32.xlu1 %v2104_v49, %s11452_s8  ;;  %v1018_v36 = vcombine.low %v962_v14, %v978_v60  ;;  %v1034_v60 = vcombine.low %v12197_v3, %v985_v6 }
 0x1dc   : > { %2078 = vrot.lane.b32.xlu0 %v2077_v7, %s11450_s30  ;;  %v12250_v19 = vrot.slane %v986_v45, %v11913_v8  ;;  %v12256_v3 = vrot.slane %v1783_v55, %v11913_v8 }
 0x1dd   : > { %v12211_v18 = vrot.slane %v1019_v35, %v11913_v8  ;;  %v12214_v37 = vrot.slane %v1035_v51, %v11913_v8  ;;  %v12242_v14 = vrot.slane %v1018_v36, %v11913_v8  ;;  %v1002_v35 = vcombine.low %v12176_v48, %v12163_v56 }
 0x1de   : > { %v709_v46 = vpop.permute.xlu1 %708  ;;  %v642_v47 = vpop.permute.xlu0 %641 }
 0x1df   : > { %2174 = vrot.lane.b32.xlu1 %v2173_v53, %s11450_s30  ;;  %v1052_v61 = vcombine.low %v12217_v30, %v12211_v18  ;;  %v1057_v52 = vcombine.high %v12220_v27, %v12214_v37 }
 0x1e2   : > { %v12228_v54 = vpop.permute.xlu1 %649  ;;  %v608_v21 = vpop.permute.xlu0 %607 }
 0x1e3   : > { %v1751_v39 = vcombine.low %v12148_v0, %v608_v21  ;;  %v1752_v41 = vcombine.high %v12148_v0, %v608_v21 }
 0x1e5   : > { %v1759_v59 = vrot.slane %v1751_v39, %v11710_v9  ;;  %v1766_v62 = vrot.slane %v1752_v41, %v11710_v9  ;;  %v12268_v39 = vrot.slane %v1034_v60, %v11913_v8  ;;  %v1050_v41 = vcombine.low %v12250_v19, %v12242_v14 }
 0x1e6   : > { %v629_v42 = vpop.permute.xlu0 %628  ;;  %v695_v17 = vpop.permute.xlu1 %694  ;;  %v12293_v60 = vrot.slane %v1784_v58, %v11913_v8 }
 0x1e7   : > { %v1767_v26 = vcombine.low %v12146_v63, %v629_v42  ;;  %v1768_v12 = vcombine.high %v12146_v63, %v629_v42  ;;  %v718_v44 = vsel %vm716_vm3, %v693_v38, %v695_v17  ;;  %v12278_v42 = vrot.slane %v1002_v35, %v11913_v8 }
 0x1e8   : > { %v1058_v11 = vcombine.low %v642_v47, %v718_v44  ;;  %v1059_v63 = vcombine.high %v642_v47, %v718_v44 }
 0x1e9   : > { %v1775_v4 = vrot.slane %v1767_v26, %v11710_v9  ;;  %v1782_v0 = vrot.slane %v1768_v12, %v11710_v9 }
 0x1ea   : > { %v734_v32 = vpop.permute.xlu0 %733  ;;  %v12245_v38 = vpop.permute.xlu1 %496  ;;  %v1066_v47 = vrot.slane %v1058_v11, %v11710_v9  ;;  %v1073_v53 = vrot.slane %v1059_v63, %v11710_v9  ;;  %v2093_v11 = vrot.slane %v1050_v41, 1  ;;  %v1054_v63 = vcombine.low %v12278_v42, %v12268_v39 }
 0x1eb   : > { %v1815_v49 = vcombine.low %v1759_v59, %v1775_v4  ;;  %v1816_v25 = vcombine.high %v1759_v59, %v1775_v4  ;;  %v1831_v57 = vcombine.low %v1766_v62, %v1782_v0  ;;  %v1832_v10 = vcombine.high %v1766_v62, %v1782_v0 }
 0x1ec   : > { %v1074_v51 = vcombine.low %v663_v43, %v734_v32  ;;  %v1075_v7 = vcombine.high %v663_v43, %v734_v32 }
 0x1ed   : > { %v12259_v6 = vrot.slane %v1815_v49, %v11913_v8  ;;  %v12281_v12 = vrot.slane %v1816_v25, %v11913_v8  ;;  %v12298_v32 = vrot.slane %v1831_v57, %v11913_v8  ;;  %v12312_v34 = vrot.slane %v1832_v10, %v11913_v8 }
 0x1ee   : > { %v1082_v56 = vrot.slane %v1074_v51, %v11710_v9  ;;  %v1089_v48 = vrot.slane %v1075_v7, %v11710_v9  ;;  %v711_v43 = vpop.permute.xlu0 %710  ;;  %v12265_v21 = vpop.permute.xlu1 %517  ;;  %v2162_v10 = vrot.slane %v1054_v63, 2 }
 0x1ef   : > { %v12271_v55 = vsel %vm716_vm3, %v709_v46, %v711_v43  ;;  %v1848_v36 = vcombine.high %v12256_v3, %v12259_v6  ;;  %v1127_v25 = vcombine.high %v11823_v29, %v12265_v21  ;;  %v1849_v7 = vcombine.low %v12293_v60, %v12281_v12 }
 0x1f0   : > { %v1090_v17 = vcombine.low %v1066_v47, %v1082_v56  ;;  %v1106_v26 = vcombine.low %v1073_v53, %v1089_v48  ;;  %v1107_v44 = vcombine.high %v1073_v53, %v1089_v48  ;;  %v1855_v45 = vcombine.low %v12228_v54, %v12271_v55 }
 0x1f1   : > { %v1856_v46 = vcombine.high %v12228_v54, %v12271_v55  ;;  %v1091_v49 = vcombine.high %v1066_v47, %v1082_v56  ;;  %v12323_v56 = vrot.slane %v1800_v15, %v11913_v8  ;;  %v1056_v48 = vcombine.low %v12220_v27, %v12214_v37 }
 0x1f2   : > { %v1098_v59 = vrot.slane %v1090_v17, %v11913_v8  ;;  %v1114_v62 = vrot.slane %v1106_v26, %v11913_v8  ;;  %v505_v4 = vpop.permute.xlu0 %504  ;;  %v526_v0 = vpop.permute.xlu1 %525  ;;  %v1121_v51 = vrot.slane %v1107_v44, %v11913_v8  ;;  %v12332_v41 = vrot.slane %v1127_v25, %v11710_v9 }
 0x1f3   : > { %v1105_v43 = vrot.slane %v1091_v49, %v11913_v8  ;;  %v1850_v17 = vcombine.high %v12293_v60, %v12281_v12  ;;  %v1923_v20 = vcombine.low %v11742_v22, %v526_v0  ;;  %v1126_v23 = vcombine.low %v11823_v29, %v12265_v21 }
 0x1f4   : > { %v2094_v35 = vrot.slane %v1098_v59, 1  ;;  %v2163_v53 = vrot.slane %v1114_v62, 2  ;;  %v2199_v26 = vrot.slane %v1121_v51, 2  ;;  %v1122_v44 = vcombine.high %v1098_v59, %v17009_v24 }
 0x1f5   : > { %v2198_v59 = vrot.slane %v1056_v48, 2  ;;  %v12361_v40 = vrot.slane %v1923_v20, %v11710_v9  ;;  %v1123_v0 = vcombine.high %v1105_v43, %v17009_v24 }
 0x1f6   : > { %v12314_v58 = vpop.permute.xlu0 %538  ;;  %v12316_v57 = vpop.permute.xlu1 %559  ;;  %v2095_v47 = vsel %vm2042_vm4, %v2093_v11, %v2094_v35  ;;  %v2164_v49 = vsel %vm2129_vm5, %v2162_v10, %v2163_v53  ;;  %v2130_v53 = vrot.slane %v1052_v61, 2  ;;  %v2131_v10 = vrot.slane %v1105_v43, 2 }
 0x1f7   : > { %v1143_v13 = vcombine.high %v12245_v38, %v12314_v58  ;;  %2096 = vrot.lane.b32.xlu0 %v2095_v47, %s11452_s8  ;;  %v2200_v35 = vsel %vm2129_vm5, %v2198_v59, %v2199_v26  ;;  %v2112_v25 = vrot.slane %v1122_v44, 1  ;;  %v1053_v43 = vcombine.high %v12217_v30, %v12211_v18 }
 0x1f9   : > { %v12340_v15 = vrot.slane %v1143_v13, %v11710_v9  ;;  %v1051_v13 = vcombine.high %v12250_v19, %v12242_v14  ;;  %v12373_v14 = vsel %vm2129_vm5, %v2130_v53, %v2131_v10  ;;  %v1125_v19 = vcombine.high %v1121_v51, %v17009_v24 }
 0x1fa   : > { %v547_v11 = vpop.permute.xlu0 %546  ;;  %v12343_v63 = vpop.permute.xlu1 %567  ;;  %17043 = vst [vmem:[#allocation15_spill] sm:$0xff] %v12373_v14  ;;  %v1124_v51 = vcombine.high %v1114_v62, %v17009_v24  ;;  %v2145_v53 = vrot.slane %v1123_v0, 2  ;;  %v2144_v27 = vrot.slane %v1053_v43, 2 }
 0x1fb   : > { %v1206_v22 = vcombine.low %v12332_v41, %v12340_v15  ;;  %2165 = vrot.lane.b32.xlu0 %v2164_v49, %s11450_s30  ;;  %v1931_v47 = vcombine.low %v505_v4, %v547_v11  ;;  %v2111_v44 = vrot.slane %v1051_v13, 1  ;;  %v2217_v11 = vrot.slane %v1057_v52, 3 }
 0x1fc   : > { %v2218_v59 = vrot.slane %v1125_v19, 3  ;;  %v1055_v52 = vcombine.high %v12278_v42, %v12268_v39  ;;  %v2146_v19 = vsel %vm2129_vm5, %v2144_v27, %v2145_v53 }
 0x1fd   : > { %v12366_v49 = vrot.slane %v1931_v47, %v11710_v9  ;;  %v2113_v30 = vsel %vm2042_vm4, %v2111_v44, %v2112_v25  ;;  %v2181_v44 = vrot.slane %v1124_v51, 2 }
 0x1fe   : > { %v12368_v4 = vpop.permute.xlu0 %580  ;;  %v12370_v48 = vpop.permute.xlu1 %601  ;;  %v12397_v10 = vsel %vm2216_vm6, %v2217_v11, %v2218_v59  ;;  %v2180_v43 = vrot.slane %v1055_v52, 2 }
 0x1ff   : > { %2201 = vrot.lane.b32.xlu0 %v2200_v35, %s11447_s17  ;;  %v1159_v35 = vcombine.high %v12316_v57, %v12370_v48  ;;  %17044 = vst [vmem:[#allocation16_spill] sm:$0xff] %v12397_v10 }
 0x200   : > { %v2182_v39 = vsel %vm2129_vm5, %v2180_v43, %v2181_v44 }
 0x201   : > { %v12408_v13 = vrot.slane %v1159_v35, %v11710_v9 }
 0x202   : > { %v12391_v47 = vpop.permute.xlu0 %588  ;;  %v12393_v18 = vpop.permute.xlu1 %622 }
 0x203   : > { %v1175_v37 = vcombine.high %v12368_v4, %v12393_v18  ;;  %2114 = vrot.lane.b32.xlu0 %v2113_v30, %s11447_s17 }
 0x205   : > { %v12405_v62 = vrot.slane %v1175_v37, %v11710_v9  ;;  %v12420_v37 = vrot.slane %v1206_v22, %v11913_v8 }
 0x206   : > { %v520_v25 = vpop.permute.xlu0 %519  ;;  %v499_v0 = vpop.permute.xlu1 %498 }
 0x207   : > { %2147 = vrot.lane.b32.xlu0 %v2146_v19, %s11449_s26  ;;  %v1238_v11 = vcombine.low %v12408_v13, %v12405_v62  ;;  %v1330_v51 = vcombine.low %v11854_v33, %v520_v25  ;;  %v1331_v61 = vcombine.high %v11854_v33, %v520_v25  ;;  %v1174_v33 = vcombine.low %v12368_v4, %v12393_v18 }
 0x209   : > { %v12417_v42 = vrot.slane %v1238_v11, %v11913_v8  ;;  %v1345_v29 = vrot.slane %v1331_v61, %v11710_v9 }
 0x20a   : > { %v562_v59 = vpop.permute.xlu0 %561  ;;  %v541_v30 = vpop.permute.xlu1 %540 }
 0x20b   : > { %2183 = vrot.lane.b32.xlu0 %v2182_v39, %s11452_s8  ;;  %v1346_v35 = vcombine.low %v499_v0, %v541_v30  ;;  %v1347_v19 = vcombine.high %v499_v0, %v541_v30  ;;  %v1338_v39 = vrot.slane %v1330_v51, %v11710_v9 }
 0x20d   : > { %v1354_v52 = vrot.slane %v1346_v35, %v11710_v9  ;;  %v1361_v0 = vrot.slane %v1347_v19, %v11710_v9 }
 0x20e   : > { %v604_v53 = vpop.permute.xlu0 %603  ;;  %v583_v27 = vpop.permute.xlu1 %582 }
 0x20f   : > { %v1362_v44 = vcombine.low %v562_v59, %v604_v53  ;;  %v1363_v43 = vcombine.high %v562_v59, %v604_v53  ;;  %v1395_v30 = vcombine.high %v1338_v39, %v1354_v52  ;;  %v1142_v53 = vcombine.low %v12245_v38, %v12314_v58 }
 0x210   : > { %v1394_v25 = vcombine.low %v1338_v39, %v1354_v52  ;;  %v12451_v38 = vrot.slane %v1126_v23, %v11710_v9  ;;  %v1158_v58 = vcombine.low %v12316_v57, %v12370_v48  ;;  %v1411_v4 = vcombine.high %v1345_v29, %v1361_v0 }
 0x211   : > { %v1370_v35 = vrot.slane %v1362_v44, %v11710_v9  ;;  %v1377_v26 = vrot.slane %v1363_v43, %v11710_v9  ;;  %v1409_v18 = vrot.slane %v1395_v30, %v11913_v8  ;;  %v12465_v43 = vrot.slane %v1142_v53, %v11710_v9 }
 0x212   : > { %v625_v11 = vpop.permute.xlu0 %624  ;;  %v701_v20 = vpop.permute.xlu1 %700  ;;  %v12468_v23 = vrot.slane %v1174_v33, %v11710_v9  ;;  %v12471_v57 = vrot.slane %v1394_v25, %v11913_v8  ;;  %v1425_v53 = vrot.slane %v1411_v4, %v11913_v8 }
 0x213   : > { %v1378_v22 = vcombine.low %v583_v27, %v625_v11  ;;  %v1379_v24 = vcombine.high %v583_v27, %v625_v11 }
 0x214   : > { %17045 = vst [vmem:[#allocation17_spill] sm:$0xff] %v12471_v57 }
 0x215   : > { %v1386_v59 = vrot.slane %v1378_v22, %v11710_v9  ;;  %v1393_v51 = vrot.slane %v1379_v24, %v11710_v9  ;;  %v12448_v24 = vrot.slane %v1855_v45, %v11710_v9  ;;  %v1870_v45 = vrot.slane %v1856_v46, %v11710_v9 }
 0x216   : > { %v12439_v27 = vpop.permute.xlu0 %666  ;;  %v12442_v11 = vpop.permute.xlu1 %645 }
 0x217   : > { %v1426_v21 = vcombine.low %v1370_v35, %v1386_v59  ;;  %v1427_v19 = vcombine.high %v1370_v35, %v1386_v59  ;;  %v1443_v44 = vcombine.high %v1377_v26, %v1393_v51  ;;  %v1442_v39 = vcombine.low %v1377_v26, %v1393_v51 }
 0x218   : > { %v12488_v59 = vrot.slane %v1848_v36, 3  ;;  %v12493_v26 = vrot.slane %v1849_v7, 3  ;;  %v1410_v51 = vcombine.low %v1345_v29, %v1361_v0  ;;  %v1190_v36 = vcombine.low %v12451_v38, %v12465_v43 }
 0x219   : > { %v12456_v61 = vrot.slane %v1426_v21, %v11913_v8  ;;  %v1441_v52 = vrot.slane %v1427_v19, %v11913_v8  ;;  %v12474_v22 = vrot.slane %v1443_v44, %v11913_v8  ;;  %v12509_v19 = vrot.slane %v1850_v17, 3 }
 0x21a   : > { %v703_v48 = vpop.permute.xlu0 %702  ;;  %v12476_v30 = vpop.permute.xlu1 %737  ;;  %v1450_v29 = vrot.slane %v1442_v39, %v11913_v8  ;;  %v1418_v60 = vrot.slane %v1410_v51, %v11913_v8 }
 0x21b   : > { %v12479_v35 = vsel %vm716_vm3, %v701_v20, %v703_v48  ;;  %v1460_v54 = vcombine.low %v1409_v18, %v1441_v52  ;;  %v1483_v55 = vcombine.high %v12439_v27, %v12476_v30  ;;  %v12496_v20 = vrot.slane %v1158_v58, %v11710_v9 }
 0x21c   : > { %v1467_v46 = vcombine.high %v12442_v11, %v12479_v35  ;;  %v1461_v58 = vcombine.high %v1409_v18, %v1441_v52  ;;  %v1464_v4 = vcombine.low %v1425_v53, %v12474_v22  ;;  %v1465_v17 = vcombine.high %v1425_v53, %v12474_v22 }
 0x21d   : > { %2006 = vrot.lane.b32.xlu1 %v1460_v54, %s11449_s26  ;;  %v1497_v25 = vrot.slane %v1483_v55, %v11710_v9  ;;  %v1222_v0 = vcombine.low %v12496_v20, %v12468_v23  ;;  %v17047_v18 = vcombine.low %v12323_v56, %v12312_v34 }
 0x21e   : > { %v1481_v21 = vrot.slane %v1467_v46, %v11710_v9  ;;  %v671_v7 = vpop.permute.xlu0 %670  ;;  %v742_v44 = vpop.permute.xlu1 %741  ;;  %v17046_v46 = vcombine.low %v12309_v1, %v12298_v32  ;;  %v2066_v2 = vrot.slane %v1465_v17, 1 }
 0x21f   : > { %v1871_v54 = vcombine.low %v671_v7, %v742_v44  ;;  %v1872_v55 = vcombine.high %v671_v7, %v742_v44  ;;  %v2327_v52 = vrot.slane %v17047_v18, 4  ;;  %v17048_v44 = vcombine.high %v12323_v56, %v12312_v34 }
 0x220   : > { %v1499_v48 = vcombine.high %v1481_v21, %v1497_v25  ;;  %v2294_v33 = vrot.slane %v17046_v46, 3  ;;  %v12540_v53 = vrot.slane %v1222_v0, %v11913_v8  ;;  %v1463_v56 = vcombine.high %v1418_v60, %v1450_v29 }
 0x221   : > { %2016 = vrot.lane.b32.xlu1 %v1461_v58, %s11450_s30  ;;  %v1879_v25 = vrot.slane %v1871_v54, %v11710_v9  ;;  %v1886_v21 = vrot.slane %v1872_v55, %v11710_v9  ;;  %v12532_v51 = vrot.slane %v17048_v44, 4  ;;  %v12535_v58 = vrot.slane %v1190_v36, %v11913_v8 }
 0x222   : > { %v1506_v39 = vrot.slane %v1499_v48, %v11913_v8  ;;  %v697_v7 = vpop.permute.xlu0 %696  ;;  %v699_v48 = vpop.permute.xlu1 %698  ;;  %v1462_v54 = vcombine.low %v1418_v60, %v1450_v29  ;;  %v17049_v36 = vmov 0.0  }
 0x223   : > { %v1887_v55 = vcombine.low %v12448_v24, %v1879_v25  ;;  %v1888_v46 = vcombine.high %v12448_v24, %v1879_v25  ;;  %v1903_v18 = vcombine.low %v1870_v45, %v1886_v21  ;;  %v1904_v12 = vcombine.high %v1870_v45, %v1886_v21 }
 0x224   : > { %v719_v34 = vsel %vm716_vm3, %v697_v7, %v699_v48  ;;  %v1514_v44 = vcombine.high %v1506_v39, %v17049_v36  ;;  %v2051_v7 = vrot.slane %v1506_v39, 1 }
 0x225   : > { %2026 = vrot.lane.b32.xlu1 %v1462_v54, %s11452_s8  ;;  %v1895_v22 = vrot.slane %v1887_v55, %v11913_v8  ;;  %v1902_v0 = vrot.slane %v1888_v46, %v11913_v8  ;;  %v1911_v50 = vrot.slane %v1903_v18, %v11913_v8  ;;  %v1918_v10 = vrot.slane %v1904_v12, %v11913_v8 }
 0x226   : > { %v644_v14 = vpop.permute.xlu0 %643  ;;  %v665_v24 = vpop.permute.xlu1 %664  ;;  %v2067_v21 = vrot.slane %v1514_v44, 1  ;;  %v2050_v46 = vrot.slane %v1464_v4, 1 }
 0x227   : > { %v1262_v25 = vcombine.low %v644_v14, %v719_v34  ;;  %v1263_v45 = vcombine.high %v644_v14, %v719_v34  ;;  %v1919_v48 = vcombine.high %v1895_v22, %v17049_v36  ;;  %v2259_v29 = vrot.slane %v1902_v0, 3 }
 0x228   : > { %v1920_v60 = vcombine.high %v1902_v0, %v17049_v36  ;;  %v2295_v17 = vrot.slane %v1911_v50, 3  ;;  %v2328_v12 = vrot.slane %v1918_v10, 4  ;;  %v2068_v4 = vsel %vm2042_vm4, %v2066_v2, %v2067_v21 }
 0x229   : > { %v1270_v54 = vrot.slane %v1262_v25, %v11710_v9  ;;  %v12555_v55 = vrot.slane %v1263_v45, %v11710_v9  ;;  %2036 = vrot.lane.b32.xlu1 %v1463_v56, %s11447_s17  ;;  %v2241_v57 = vrot.slane %v1919_v48, 3  ;;  %v12560_v14 = vsel %vm2216_vm6, %v12493_v26, %v2259_v29 }
 0x22a   : > { %v736_v18 = vpop.permute.xlu0 %735  ;;  %v2277_v39 = vrot.slane %v1920_v60, 3  ;;  %v12563_v34 = vsel %vm2216_vm6, %v2294_v33, %v2295_v17  ;;  %v610_v44 = vpop.permute.xlu1 %609  ;;  %v12566_v45 = vsel %vm2303_vm7, %v2327_v52, %v2328_v12  ;;  %v1922_v56 = vcombine.high %v1918_v10, %v17049_v36 }
 0x22b   : > { %v1278_v0 = vcombine.low %v665_v24, %v736_v18  ;;  %v1279_v25 = vcombine.high %v665_v24, %v736_v18  ;;  %v2242_v48 = vsel %vm2216_vm6, %v12488_v59, %v2241_v57  ;;  %v12577_v33 = vsel %vm2042_vm4, %v2050_v46, %v2051_v7 }
 0x22c   : > { %v12574_v26 = vsel %vm2216_vm6, %v12509_v19, %v2277_v39  ;;  %v2346_v10 = vrot.slane %v1922_v56, 4  ;;  %v2225_v52 = vrot.slane %v1895_v22, 3  ;;  %v1939_v2 = vcombine.low %v12343_v63, %v610_v44 }
 0x22d   : > { %v1286_v29 = vrot.slane %v1278_v0, %v11710_v9  ;;  %v12581_v24 = vrot.slane %v1279_v25, %v11710_v9  ;;  %2069 = vrot.lane.b32.xlu1 %v2068_v4, %s11449_s26  ;;  %v17050_v57 = vcombine.low %v12256_v3, %v12259_v6  ;;  %v1921_v19 = vcombine.high %v1911_v50, %v17049_v36 }
 0x22e   : > { %v631_v21 = vpop.permute.xlu0 %630  ;;  %v17051_v7 = vcombine.high %v12309_v1, %v12298_v32  ;;  %v713_v18 = vpop.permute.xlu1 %712  ;;  %v1254_v63 = vcombine.low %v12535_v58, %v12540_v53  ;;  %v12599_v3 = vsel %vm2303_vm7, %v12532_v51, %v2346_v10  ;;  %v17052_v32 = vcombine.high %v12496_v20, %v12468_v23 }
 0x22f   : > { %v2224_v59 = vrot.slane %v17050_v57, 3  ;;  %v1294_v17 = vcombine.low %v1270_v54, %v1286_v29  ;;  %v1295_v12 = vcombine.high %v1270_v54, %v1286_v29  ;;  %v1310_v46 = vcombine.low %v12555_v55, %v12581_v24 }
 0x230   : > { %v2311_v60 = vrot.slane %v17051_v7, 4  ;;  %v1947_v22 = vcombine.low %v12391_v47, %v631_v21  ;;  %v2312_v6 = vrot.slane %v1921_v19, 4  ;;  %v1237_v1 = vrot.slane %v17052_v32, %v11913_v8 }
 0x231   : > { %v12602_v50 = vsel %vm2216_vm6, %v2224_v59, %v2225_v52  ;;  %v1302_v54 = vrot.slane %v1294_v17, %v11913_v8  ;;  %2210 = vrot.lane.b32.xlu1 %v12193_v5, %s11447_s17  ;;  %v1946_v47 = vrot.slane %v1939_v2, %v11710_v9  ;;  %v1255_v44 = vcombine.high %v12535_v58, %v12540_v53 }
 0x232   : > { %v1954_v39 = vrot.slane %v1947_v22, %v11710_v9  ;;  %v715_v51 = vpop.permute.xlu0 %714  ;;  %v12616_v0 = vsel %vm2303_vm7, %v2311_v60, %v2312_v6  ;;  %v1318_v25 = vrot.slane %v1310_v46, %v11913_v8  ;;  %v652_v23 = vpop.permute.xlu1 %651  ;;  %v2231_v20 = vrot.slane %v1254_v63, 3 }
 0x233   : > { %v2232_v56 = vrot.slane %v1302_v54, 3  ;;  %v1326_v4 = vcombine.high %v1302_v54, %v17049_v36  ;;  %v17053_v5 = vcombine.high %v12451_v38, %v12465_v43  ;;  %v1309_v10 = vrot.slane %v1295_v12, %v11913_v8 }
 0x234   : > { %v1963_v52 = vcombine.low %v1946_v47, %v1954_v39  ;;  %v17054_v2 = vcombine.low %v12361_v40, %v12366_v49  ;;  %v723_v59 = vsel %vm716_vm3, %v713_v18, %v715_v51  ;;  %v17055_v7 = vcombine.low %v12420_v37, %v12417_v42 }
 0x235   : > { %v1205_v29 = vrot.slane %v17053_v5, %v11913_v8  ;;  %2243 = vrot.lane.b32.xlu1 %v2242_v48, %s11449_s26  ;;  %v2233_v58 = vsel %vm2216_vm6, %v2231_v20, %v2232_v56  ;;  %v2250_v53 = vrot.slane %v1326_v4, 3  ;;  %v2249_v48 = vrot.slane %v1255_v44, 3 }
 0x236   : > { %v12631_v21 = vrot.slane %v17054_v2, %v11913_v8  ;;  %v12634_v57 = vrot.slane %v1963_v52, %v11913_v8  ;;  %2234 = vrot.lane.b32.xlu0 %v2233_v58, %s11449_s26  ;;  %v673_v38 = vpop.permute.xlu0 %672  ;;  %v744_v19 = vpop.permute.xlu1 %743  ;;  %v2304_v60 = vrot.slane %v17055_v7, 4  ;;  %v2305_v17 = vrot.slane %v1318_v25, 4 }
 0x237   : > { %v1256_v43 = vcombine.low %v1205_v29, %v1237_v1  ;;  %v1981_v12 = vcombine.low %v673_v38, %v744_v19  ;;  %v2268_v40 = vrot.slane %v1309_v10, 3  ;;  %v2251_v46 = vsel %vm2216_vm6, %v2249_v48, %v2250_v53 }
 0x238   : > { %v1971_v49 = vcombine.low %v12631_v21, %v12634_v57  ;;  %v1327_v63 = vcombine.high %v1309_v10, %v17049_v36  ;;  %v1972_v18 = vcombine.high %v12631_v21, %v12634_v57  ;;  %v12650_v22 = vsel %vm2303_vm7, %v2304_v60, %v2305_v17 }
 0x239   : > { %2261 = vrot.lane.b32.xlu1 %v12560_v14, %s11450_s30  ;;  %v1973_v6 = vcombine.low %v652_v23, %v723_v59  ;;  %v1239_v54 = vcombine.high %v12408_v13, %v12405_v62  ;;  %v2267_v47 = vrot.slane %v1256_v43, 3  ;;  %v1257_v39 = vcombine.high %v1205_v29, %v1237_v1 }
 0x23a   : > { %2252 = vrot.lane.b32.xlu0 %v2251_v46, %s11450_s30  ;;  %v2002_v32 = vpop.permute.xlu0 %2001  ;;  %v1482_v14 = vcombine.low %v12439_v27, %v12476_v30  ;;  %v1466_v51 = vcombine.low %v12442_v11, %v12479_v35  ;;  %v1988_v44 = vrot.slane %v1981_v12, %v11710_v9  ;;  %v1311_v20 = vcombine.high %v12555_v55, %v12581_v24  ;;  %v17058_v46 = vld [vmem:[#allocation17_spill] sm:$0xff] }
 0x23b   : > { %v2269_v23 = vsel %vm2216_vm6, %v2267_v47, %v2268_v40  ;;  %v2286_v56 = vrot.slane %v1327_v63, 3  ;;  %v1328_v62 = vcombine.high %v1318_v25, %v17049_v36  ;;  %v1980_v13 = vrot.slane %v1973_v6, %v11710_v9 }
 0x23c   : > { %v1253_v11 = vrot.slane %v1239_v54, %v11913_v8  ;;  %v2285_v30 = vrot.slane %v1257_v39, 3  ;;  %v1259_v35 = vcombine.high %v12420_v37, %v12417_v42  ;;  %v17056_v55 = vcombine.high %v12332_v41, %v12340_v15 }
 0x23d   : > { %2279 = vrot.lane.b32.xlu1 %v12574_v26, %s11452_s8  ;;  %v1490_v24 = vrot.slane %v1482_v14, %v11710_v9  ;;  %v1474_v1 = vrot.slane %v1466_v51, %v11710_v9  ;;  %v1989_v25 = vcombine.low %v1980_v13, %v1988_v44  ;;  %v1325_v4 = vrot.slane %v1311_v20, %v11913_v8  ;;  %v2088_v51 = vpop.permute.xlu1 %2087  ;;  %v17059_v13 = vld [vmem:[#allocation15_spill] sm:$0xff] }
 0x23e   : > { %2270 = vrot.lane.b32.xlu0 %v2269_v23, %s11452_s8  ;;  %v2012_v27 = vpop.permute.xlu0 %2011  ;;  %v1221_v26 = vrot.slane %v17056_v55, %v11913_v8  ;;  %v17057_v5 = vcombine.low %v11948_v31, %v11931_v16  ;;  %v2287_v42 = vsel %vm2216_vm6, %v2285_v30, %v2286_v56  ;;  %v2319_v37 = vrot.slane %v1328_v62, 4 }
 0x23f   : > { %v2318_v10 = vrot.slane %v1259_v35, 4  ;;  %v1498_v9 = vcombine.low %v1474_v1, %v1490_v24  ;;  %v1996_v58 = vrot.slane %v1989_v25, %v11913_v8  ;;  %v2337_v31 = vrot.slane %v1325_v4, 4 }
 0x240   : > { %v2004_v29 = vadd.f32 %v2002_v32, %v17057_v5  ;;  %v1260_v52 = vcombine.low %v1221_v26, %v1253_v11  ;;  %v1261_v59 = vcombine.high %v1221_v26, %v1253_v11  ;;  %v2363_v12 = vrot.slane %v1971_v49, 4 }
 0x241   : > { %2297 = vrot.lane.b32.xlu1 %v12563_v34, %s11447_s17  ;;  %v2320_v16 = vsel %vm2303_vm7, %v2318_v10, %v2319_v37  ;;  %v1329_v34 = vcombine.high %v1325_v4, %v17049_v36  ;;  %v2364_v19 = vrot.slane %v1996_v58, 4  ;;  %v1997_v48 = vcombine.high %v1996_v58, %v17049_v36  ;;  %v2124_v62 = vpop.permute.xlu1 %2123  ;;  %v17060_v4 = vld [vmem:[#allocation16_spill] sm:$0xff] }
 0x242   : > { %2288 = vrot.lane.b32.xlu0 %v2287_v42, %s11447_s17  ;;  %v2022_v41 = vpop.permute.xlu0 %2021  ;;  %v2014_v15 = vadd.f32 %v2012_v27, %v2004_v29  ;;  %v2336_v43 = vrot.slane %v1260_v52, 4  ;;  %v1513_v17 = vrot.slane %v1498_v9, %v11913_v8  ;;  %v2354_v40 = vrot.slane %v1261_v59, 4 }
 0x243   : > { %v2355_v60 = vrot.slane %v1329_v34, 4  ;;  %v1458_v63 = vcombine.low %v17058_v46, %v12456_v61  ;;  %v2365_v6 = vsel %vm2303_vm7, %v2363_v12, %v2364_v19  ;;  %v2382_v36 = vrot.slane %v1997_v48, 4 }
 0x244   : > { %v2024_v53 = vadd.f32 %v2022_v41, %v2014_v15  ;;  %v2338_v7 = vsel %vm2303_vm7, %v2336_v43, %v2337_v31  ;;  %v2373_v32 = vrot.slane %v1513_v17, 4  ;;  %v2381_v8 = vrot.slane %v1972_v18, 4 }
 0x245   : > { %2330 = vrot.lane.b32.xlu1 %v12566_v45, %s11449_s26  ;;  %v2157_v11 = vpop.permute.xlu1 %2156  ;;  %v17061_v15 = vcombine.high %v17058_v46, %v12456_v61 }
 0x246   : > { %2321 = vrot.lane.b32.xlu0 %v2320_v16, %s11449_s26  ;;  %v2032_v2 = vpop.permute.xlu0 %2031  ;;  %v2383_v49 = vsel %vm2303_vm7, %v2381_v8, %v2382_v36 }
 0x247   : > { %v2034_v38 = vadd.f32 %v2032_v2, %v2024_v53 }
 0x249   : > { %2348 = vrot.lane.b32.xlu1 %v12599_v3, %s11450_s30  ;;  %v2047_v45 = vadd.f32 %v12180_v28, %v2034_v38  ;;  %v2356_v3 = vsel %vm2303_vm7, %v2354_v40, %v2355_v60  ;;  %v2372_v28 = vrot.slane %v1458_v63, 4  ;;  %v2193_v1 = vpop.permute.xlu1 %2192 }
 0x24a   : > { %2339 = vrot.lane.b32.xlu0 %v2338_v7, %s11450_s30  ;;  %v2061_v47 = vpop.permute.xlu0 %2060  ;;  %v17062_v7 = vld [vmem:[#allocation14_spill] sm:$0xff] }
 0x24b   : > { %v2374_v54 = vsel %vm2303_vm7, %v2372_v28, %v2373_v32  ;;  %v2063_v20 = vadd.f32 %v2061_v47, %v2047_v45 }
 0x24d   : > { %2366 = vrot.lane.b32.xlu1 %v2365_v6, %s11452_s8  ;;  %v2106_v29 = vpop.permute.xlu1 %2105 }
 0x24e   : > { %2357 = vrot.lane.b32.xlu0 %v2356_v3, %s11452_s8  ;;  %v2079_v39 = vpop.permute.xlu0 %2078 }
 0x24f   : > { %v2081_v56 = vadd.f32 %v2079_v39, %v2063_v20 }
 0x251   : > { %2384 = vrot.lane.b32.xlu1 %v2383_v49, %s11447_s17  ;;  %v2175_v42 = vpop.permute.xlu1 %2174 }
 0x252   : > { %2375 = vrot.lane.b32.xlu0 %v2374_v54, %s11447_s17 }
 0x269   : > { %v2097_v14 = vpop.permute.xlu0 %2096 }
 0x26a   : > { %v2099_v21 = vadd.f32 %v2097_v14, %v2081_v56 }
 0x26d   : > { %v2166_v44 = vpop.permute.xlu0 %2165 }
 0x271   : > { %v2202_v23 = vpop.permute.xlu0 %2201 }
 0x275   : > { %v2115_v57 = vpop.permute.xlu0 %2114 }
 0x276   : > { %v2117_v18 = vadd.f32 %v2115_v57, %v2099_v21 }
 0x278   : > { %v2134_v27 = vadd.f32 %v17059_v13, %v2117_v18 }
 0x279   : > { %v2148_v30 = vpop.permute.xlu0 %2147 }
 0x27a   : > { %v2150_v35 = vadd.f32 %v2148_v30, %v2134_v27 }
 0x27c   : > { %v2168_v55 = vadd.f32 %v2166_v44, %v2150_v35 }
 0x27d   : > { %v2184_v26 = vpop.permute.xlu0 %2183 }
 0x27e   : > { %v2186_v24 = vadd.f32 %v2184_v26, %v2168_v55  ;;  %v11007_v55 = vld [vmem:[%s2389_s11 + $0x8] sm:$0xff] }
 0x280   : > { %v2204_v25 = vadd.f32 %v2202_v23, %v2186_v24  ;;  %v2390_v24 = vld [vmem:[%s2389_s11] sm:$0xff] }
 0x282   : > { %v2221_v5 = vadd.f32 %v17060_v4, %v2204_v25 }
 0x28f   : > { %v2007_v37 = vpop.permute.xlu1 %2006 }
 0x290   : > { %v2009_v10 = vadd.f32 %v2007_v37, %v17061_v15 }
 0x293   : > { %v2017_v41 = vpop.permute.xlu1 %2016 }
 0x294   : > { %v2019_v9 = vadd.f32 %v2017_v41, %v2009_v10 }
 0x297   : > { %v2027_v52 = vpop.permute.xlu1 %2026 }
 0x298   : > { %v2029_v58 = vadd.f32 %v2027_v52, %v2019_v9 }
 0x29b   : > { %v2037_v53 = vpop.permute.xlu1 %2036 }
 0x29c   : > { %v2039_v16 = vadd.f32 %v2037_v53, %v2029_v58 }
 0x29e   : > { %v2054_v31 = vadd.f32 %v12577_v33, %v2039_v16 }
 0x29f   : > { %v2070_v34 = vpop.permute.xlu1 %2069 }
 0x2a0   : > { %v2072_v2 = vadd.f32 %v2070_v34, %v2054_v31 }
 0x2a2   : > { %v2090_v38 = vadd.f32 %v2088_v51, %v2072_v2 }
 0x2a3   : > { %v2211_v43 = vpop.permute.xlu1 %2210 }
 0x2a4   : > { %v2108_v59 = vadd.f32 %v2106_v29, %v2090_v38 }
 0x2a6   : > { %v2126_v19 = vadd.f32 %v2124_v62, %v2108_v59 }
 0x2a7   : > { %v2244_v48 = vpop.permute.xlu1 %2243 }
 0x2a8   : > { %v2141_v45 = vadd.f32 %v17062_v7, %v2126_v19  ;;  %v2235_v60 = vpop.permute.xlu0 %2234 }
 0x2a9   : > { %v2237_v63 = vadd.f32 %v2235_v60, %v2221_v5 }
 0x2aa   : > { %v2159_v17 = vadd.f32 %v2157_v11, %v2141_v45 }
 0x2ab   : > { %v2262_v61 = vpop.permute.xlu1 %2261 }
 0x2ac   : > { %v2177_v12 = vadd.f32 %v2175_v42, %v2159_v17  ;;  %v2253_v40 = vpop.permute.xlu0 %2252 }
 0x2ad   : > { %v2255_v33 = vadd.f32 %v2253_v40, %v2237_v63 }
 0x2ae   : > { %v2195_v46 = vadd.f32 %v2193_v1, %v2177_v12 }
 0x2af   : > { %v2280_v6 = vpop.permute.xlu1 %2279 }
 0x2b0   : > { %v2213_v36 = vadd.f32 %v2211_v43, %v2195_v46  ;;  %v2271_v3 = vpop.permute.xlu0 %2270 }
 0x2b1   : > { %v2273_v8 = vadd.f32 %v2271_v3, %v2255_v33 }
 0x2b2   : > { %v2228_v32 = vadd.f32 %v12602_v50, %v2213_v36 }
 0x2b3   : > { %v2298_v28 = vpop.permute.xlu1 %2297 }
 0x2b4   : > { %v2246_v49 = vadd.f32 %v2244_v48, %v2228_v32  ;;  %v2289_v54 = vpop.permute.xlu0 %2288 }
 0x2b5   : > { %v2291_v47 = vadd.f32 %v2289_v54, %v2273_v8 }
 0x2b6   : > { %v2264_v39 = vadd.f32 %v2262_v61, %v2246_v49 }
 0x2b7   : > { %v2331_v14 = vpop.permute.xlu1 %2330  ;;  %v2308_v51 = vadd.f32 %v12650_v22, %v2291_v47 }
 0x2b8   : > { %v2282_v44 = vadd.f32 %v2280_v6, %v2264_v39  ;;  %v2322_v20 = vpop.permute.xlu0 %2321 }
 0x2b9   : > { %v2324_v50 = vadd.f32 %v2322_v20, %v2308_v51 }
 0x2ba   : > { %v2300_v23 = vadd.f32 %v2298_v28, %v2282_v44 }
 0x2bb   : > { %v2349_v56 = vpop.permute.xlu1 %2348 }
 0x2bc   : > { %v2315_v62 = vadd.f32 %v12616_v0, %v2300_v23  ;;  %v2340_v21 = vpop.permute.xlu0 %2339 }
 0x2bd   : > { %v2342_v11 = vadd.f32 %v2340_v21, %v2324_v50 }
 0x2be   : > { %v2333_v57 = vadd.f32 %v2331_v14, %v2315_v62 }
 0x2bf   : > { %v2367_v18 = vpop.permute.xlu1 %2366 }
 0x2c0   : > { %v2351_v13 = vadd.f32 %v2349_v56, %v2333_v57  ;;  %v2358_v27 = vpop.permute.xlu0 %2357 }
 0x2c1   : > { %v2360_v35 = vadd.f32 %v2358_v27, %v2342_v11 }
 0x2c2   : > { %v2369_v30 = vadd.f32 %v2367_v18, %v2351_v13 }
 0x2c3   : > { %v2385_v26 = vpop.permute.xlu1 %2384 }
 0x2c4   : > { %v2387_v22 = vadd.f32 %v2385_v26, %v2369_v30  ;;  %v2376_v1 = vpop.permute.xlu0 %2375 }
 0x2c5   : > { %v2378_v25 = vadd.f32 %v2376_v1, %v2360_v35 }
 0x2c6   : > { %v2396_v4 = vadd.f32 %v11007_v55, %v2387_v22 }
 0x2c7   : > { %v2391_v5 = vadd.f32 %v2390_v24, %v2378_v25 }
 0x2c8   : > { %11008 = vst.msk [vmem:[%s2389_s11 + $0x8] sm:$0xff] %vm716_vm3, %v2396_v4 }
 0x2c9   : > { %2392 = vst.msk [vmem:[%s2389_s11] sm:$0xff] %vm716_vm3, %v2391_v5 }
 0x2ca PF: > { %s12726_s12 = sadd.s32 4294967295, %s11416_s21 }
 0x2cb   : > { %p2399_p1 = scmp.ge.s32.totalorder %s12726_s12, 0  ;;  %p2400_p2 = scmp.lt.s32.totalorder %s12726_s12, 8 }
 0x2cd   : > { %p2401_p4 = pnand %p2400_p2, %p2399_p1 }
 0x2cf   : > { %2404 = sbr.rel (%p2401_p4) target bundleno = 1358 (0x54e), region = 48 }
 0x2d4   : > { %v2435_v0 = vlaneseq  ;;  %v11453_v29 = vmov 1983009808   ;;  %v11454_v37 = vmov 0   ;;  %vm2453_vm8 = vcmask 1041408   ;;  %v17063_v52 = vld [vmem:[#allocation13_spill] sm:$0xff]  ;;  %v11306_v31 = vld [vmem:[%s17000_s1 + $0x2c] sm:$0xff]  }
 0x2d5   : > { %v2433_v42 = vunpack.c.l.s4 %v11453_v29  ;;  %2492 = vmatprep.mubr.bf16.mxu0 %v11454_v37  ;;  %2512 = vmatprep.mubr.bf16.mxu1 %v11454_v37  ;;  %v11305_v16 = vld [vmem:[%s17000_s1 + $0x1c] sm:$0xff]   ;;  %vm2440_vm9 = vcmask 31744   ;;  %v11307_v34 = vld [vmem:[%s17000_s1 + $0x24] sm:$0xff]   ;;  %v11308_v2 = vld [vmem:[%s17000_s1 + $0x34] ss:$0 sps:$4 sm:$0x11]  }
 0x2d6   : > { %v12730_v41 = vshrl.u32 %v2435_v0, 7  ;;  %s11455_s17 = smov 104   ;;  %s11456_s26 = smov 116   ;;  %v11466_v51 = vmov 1934713408   ;;  %vm2762_vm10 = vcmask 64512  }
 0x2d7   : > { %v2434_v15 = vunpack.c.0.s8 %v2433_v42  ;;  %s11457_s30 = smov 80   ;;  %s11458_s8 = smov 92   ;;  %v2865_v44 = vunpack.c.l.s4 %v11466_v51  ;;  %vm4088_vm11 = vcmask 1046528   ;;  %vm4175_vm12 = vcmask 1045504  }
 0x2d8   : > { %s11459_s9 = smov 56   ;;  %s11460_s11 = smov 68   ;;  %vm4262_vm13 = vcmask 1044480   ;;  %vm4349_vm14 = vcmask 1043456  }
 0x2d9   : > { %v12733_v10 = vsub.s32 %v2434_v15, %v12730_v41  ;;  %s11461_s10 = smov 44   ;;  %s11462_s15 = smov 8   ;;  %v2866_v13 = vunpack.c.0.s8 %v2865_v44 }
 0x2da   : > { %s11463_s16 = smov 20   ;;  %s11464_s27 = smov 32  }
 0x2db   : > { %v2438_v9 = vrot.slane %v17063_v52, %v12733_v10  ;;  %s11465_s2 = smov 124   ;;  %v12936_v15 = vsub.s32 %v2866_v13, %v12730_v41  ;;  %s11467_s23 = smov 127  }
 0x2dc   : > { %s11468_s24 = smov 126   ;;  %s11470_s28 = smov 125  }
 0x2dd   : > { %v2439_v58 = vcombine.high %v2438_v9, %v2438_v9  ;;  %v2455_v53 = vsel %vm2453_vm8, %v2438_v9, 0 }
 0x2df   : > { %11021 = vmatprep.subr.msk.bf16.mxu0 %vm2453_vm8, %v2439_v58  ;;  %11110 = vmatprep.subr.msk.bf16.mxu1 %vm2453_vm8, %v2439_v58 }
 0x2e0   : > { %2475 = vmatpush1.bf16.msra.mxu0 %v2455_v53  ;;  %11111 = vmatpush1.bf16.msra.mxu1 %v2455_v53 }
 0x2e3   : > { %11022 = vmatmul.mubr.msk.bf16.vlgmr.msra.gmra.mxu0 %vm2440_vm9, %v11305_v16  ;;  %11024 = vmatmul.mubr.msk.bf16.vlgmr.msra.gmra.mxu1 %vm2440_vm9, %v11306_v31 }
 0x2e4   : > { %2502 = vmatprep.mubr.bf16.mxu0 %v11454_v37  ;;  %2522 = vmatprep.mubr.bf16.mxu1 %v11454_v37 }
 0x2eb   : > { %11023 = vmatmul.mubr.msk.bf16.gmra.mxu0 %vm2440_vm9, %v11307_v34  ;;  %11025 = vmatmul.mubr.msk.bf16.gmra.mxu1 %vm2440_vm9, %v11308_v2 }
 0x3a3   : > { %v12749_v38 = vpop.f32.mrf.mxu0  ;;  %v12751_v43 = vpop.f32.mrf.mxu1 }
 0x3a4   : > { %2559 = vrot.lane.b32.xlu1 %v12749_v38, %s11455_s17  ;;  %2538 = vrot.lane.b32.xlu0 %v12749_v38, %s11456_s26 }
 0x3a5   : > { %v2516_v59 = vpop.f32.mrf.mxu1  ;;  %v2496_v61 = vpop.f32.mrf.mxu0 }
 0x3a7   : > { %v12757_v19 = vpop.f32.mrf.mxu1  ;;  %v12805_v12 = vpop.f32.mrf.mxu0 }
 0x3a8   : > { %2567 = vrot.lane.b32.xlu1 %v12751_v43, %s11455_s17  ;;  %2546 = vrot.lane.b32.xlu0 %v12751_v43, %s11456_s26 }
 0x3a9   : > { %v12763_v48 = vpop.f32.mrf.mxu1  ;;  %v2500_v40 = vpop.f32.mrf.mxu0 }
 0x3ab   : > { %v12765_v7 = vpop.f32.mrf.mxu1  ;;  %v12846_v46 = vpop.f32.mrf.mxu0 }
 0x3ac   : > { %2601 = vrot.lane.b32.xlu1 %v12749_v38, %s11457_s30  ;;  %2580 = vrot.lane.b32.xlu0 %v12749_v38, %s11458_s8 }
 0x3ad   : > { %v12771_v45 = vpop.f32.mrf.mxu1  ;;  %v12871_v63 = vpop.f32.mrf.mxu0 }
 0x3af   : > { %v2528_v60 = vpop.f32.mrf.mxu1  ;;  %v12877_v3 = vpop.f32.mrf.mxu0 }
 0x3b0   : > { %2609 = vrot.lane.b32.xlu1 %v12751_v43, %s11457_s30  ;;  %2588 = vrot.lane.b32.xlu0 %v12751_v43, %s11458_s8 }
 0x3b1   : > { %v2529_v17 = vpop.f32.mrf.mxu1  ;;  %v2510_v27 = vpop.f32.mrf.mxu0 }
 0x3b4   : > { %2643 = vrot.lane.b32.xlu1 %v12749_v38, %s11459_s9  ;;  %2622 = vrot.lane.b32.xlu0 %v12749_v38, %s11460_s11 }
 0x3b8   : > { %2664 = vrot.lane.b32.xlu1 %v12749_v38, %s11461_s10  ;;  %2630 = vrot.lane.b32.xlu0 %v12751_v43, %s11460_s11 }
 0x3bc   : > { %2672 = vrot.lane.b32.xlu1 %v12751_v43, %s11461_s10  ;;  %2734 = vrot.lane.b32.xlu0 %v12749_v38, %s11462_s15 }
 0x3c0   : > { %2706 = vrot.lane.b32.xlu1 %v12749_v38, %s11463_s16  ;;  %2651 = vrot.lane.b32.xlu0 %v12751_v43, %s11459_s9 }
 0x3c4   : > { %2750 = vrot.lane.b32.xlu1 %v12751_v43, %s11462_s15  ;;  %2685 = vrot.lane.b32.xlu0 %v12749_v38, %s11464_s27 }
 0x3c8   : > { %2693 = vrot.lane.b32.xlu1 %v12751_v43, %s11464_s27  ;;  %2714 = vrot.lane.b32.xlu0 %v12751_v43, %s11463_s16 }
 0x3cc   : > { %2777 = vrot.lane.b32.xlu0 %v2496_v61, %s11465_s2  ;;  %2736 = vrot.lane.b32.xlu1 %v2496_v61, %s11462_s15 }
 0x3d0   : > { %2752 = vrot.lane.b32.xlu0 %v2516_v59, %s11462_s15  ;;  %2785 = vrot.lane.b32.xlu1 %v2516_v59, %s11465_s2 }
 0x3d4   : > { %2548 = vrot.lane.b32.xlu1 %v12757_v19, %s11456_s26  ;;  %2540 = vrot.lane.b32.xlu0 %v12805_v12, %s11456_s26 }
 0x3d8   : > { %2582 = vrot.lane.b32.xlu1 %v12805_v12, %s11458_s8  ;;  %2561 = vrot.lane.b32.xlu0 %v12805_v12, %s11455_s17 }
 0x3dc   : > { %2590 = vrot.lane.b32.xlu1 %v12757_v19, %s11458_s8  ;;  %2569 = vrot.lane.b32.xlu0 %v12757_v19, %s11455_s17 }
 0x3e0   : > { %2624 = vrot.lane.b32.xlu1 %v12805_v12, %s11460_s11  ;;  %2603 = vrot.lane.b32.xlu0 %v12805_v12, %s11457_s30 }
 0x3e4   : > { %2632 = vrot.lane.b32.xlu1 %v12757_v19, %s11460_s11  ;;  %2611 = vrot.lane.b32.xlu0 %v12757_v19, %s11457_s30 }
 0x3e8   : > { %2645 = vrot.lane.b32.xlu1 %v12805_v12, %s11459_s9  ;;  %2666 = vrot.lane.b32.xlu0 %v12805_v12, %s11461_s10 }
 0x3ec   : > { %2708 = vrot.lane.b32.xlu1 %v12805_v12, %s11463_s16  ;;  %2738 = vrot.lane.b32.xlu0 %v12805_v12, %s11462_s15 }
 0x3f0   : > { %2754 = vrot.lane.b32.xlu1 %v12757_v19, %s11462_s15  ;;  %2687 = vrot.lane.b32.xlu0 %v12805_v12, %s11464_s27 }
 0x3f4   : > { %2695 = vrot.lane.b32.xlu1 %v12757_v19, %s11464_s27  ;;  %2653 = vrot.lane.b32.xlu0 %v12757_v19, %s11459_s9 }
 0x3f8   : > { %2674 = vrot.lane.b32.xlu0 %v12757_v19, %s11461_s10  ;;  %2740 = vrot.lane.b32.xlu1 %v2500_v40, %s11462_s15 }
 0x3fc   : > { %2779 = vrot.lane.b32.xlu0 %v2500_v40, %s11465_s2  ;;  %2542 = vrot.lane.b32.xlu1 %v12846_v46, %s11456_s26 }
 0x400   : > { %2756 = vrot.lane.b32.xlu0 %v12763_v48, %s11462_s15  ;;  %2563 = vrot.lane.b32.xlu1 %v12846_v46, %s11455_s17 }
 0x404   : > { %2550 = vrot.lane.b32.xlu0 %v12765_v7, %s11456_s26  ;;  %2571 = vrot.lane.b32.xlu1 %v12765_v7, %s11455_s17 }
 0x408   : > { %2584 = vrot.lane.b32.xlu0 %v12846_v46, %s11458_s8  ;;  %2605 = vrot.lane.b32.xlu1 %v12846_v46, %s11457_s30 }
 0x40c   : > { %2592 = vrot.lane.b32.xlu0 %v12765_v7, %s11458_s8  ;;  %2613 = vrot.lane.b32.xlu1 %v12765_v7, %s11457_s30 }
 0x410   : > { %2626 = vrot.lane.b32.xlu0 %v12846_v46, %s11460_s11  ;;  %2647 = vrot.lane.b32.xlu1 %v12846_v46, %s11459_s9 }
 0x414   : > { %2634 = vrot.lane.b32.xlu0 %v12765_v7, %s11460_s11  ;;  %2668 = vrot.lane.b32.xlu1 %v12846_v46, %s11461_s10 }
 0x416   : > { %v2560_v6 = vpop.permute.xlu1 %2559  ;;  %v2539_v36 = vpop.permute.xlu0 %2538 }
 0x417   : > { %v2798_v23 = vcombine.low %v12749_v38, %v2560_v6  ;;  %v2799_v56 = vcombine.high %v12749_v38, %v2560_v6 }
 0x418   : > { %2565 = vrot.lane.b32.xlu0 %v12877_v3, %s11455_s17  ;;  %2544 = vrot.lane.b32.xlu1 %v12877_v3, %s11456_s26  ;;  %s11026_s17 = sshll.u32 %s12726_s12, 4 }
 0x419   : > { %v12912_v55 = vrot.slane %v2798_v23, %v12733_v10  ;;  %v12915_v26 = vrot.slane %v2799_v56, %v12733_v10  ;;  %s4435_s26 = scalar_lea.vmem %s11668_s14, %s11026_s17 [#allocation5] }
 0x41a   : > { %v12883_v33 = vpop.permute.xlu1 %2567  ;;  %v2547_v32 = vpop.permute.xlu0 %2546 }
 0x41b   : > { %v3561_v5 = vcombine.low %v12751_v43, %v12883_v33  ;;  %v3562_v53 = vcombine.high %v12751_v43, %v12883_v33 }
 0x41c   : > { %2607 = vrot.lane.b32.xlu0 %v12877_v3, %s11457_s30  ;;  %2586 = vrot.lane.b32.xlu1 %v12877_v3, %s11458_s8 }
 0x41d   : > { %v12960_v38 = vrot.slane %v3561_v5, %v12733_v10  ;;  %v12974_v6 = vrot.slane %v3562_v53, %v12733_v10 }
 0x41e   : > { %v2602_v8 = vpop.permute.xlu1 %2601  ;;  %v2581_v28 = vpop.permute.xlu0 %2580 }
 0x41f   : > { %v2815_v47 = vcombine.high %v2539_v36, %v2581_v28  ;;  %v2814_v20 = vcombine.low %v2539_v36, %v2581_v28 }
 0x420   : > { %2649 = vrot.lane.b32.xlu0 %v12877_v3, %s11459_s9  ;;  %2628 = vrot.lane.b32.xlu1 %v12877_v3, %s11460_s11 }
 0x421   : > { %v12906_v57 = vrot.slane %v2815_v47, %v12733_v10  ;;  %v12909_v11 = vrot.slane %v2814_v20, %v12733_v10 }
 0x422   : > { %v12893_v49 = vpop.permute.xlu1 %2609  ;;  %v2589_v54 = vpop.permute.xlu0 %2588 }
 0x423   : > { %v3577_v22 = vcombine.low %v2547_v32, %v2589_v54  ;;  %v2878_v0 = vcombine.low %v12915_v26, %v12906_v57  ;;  %v3578_v29 = vcombine.high %v2547_v32, %v2589_v54  ;;  %v2862_v52 = vcombine.low %v12912_v55, %v12909_v11 }
 0x424   : > { %2670 = vrot.lane.b32.xlu0 %v12877_v3, %s11461_s10  ;;  %2746 = vrot.lane.b32.xlu1 %v12877_v3, %s11462_s15 }
 0x425   : > { %v12947_v16 = vrot.slane %v3577_v22, %v12733_v10  ;;  %v12963_v43 = vrot.slane %v3578_v29, %v12733_v10  ;;  %v12966_v17 = vrot.slane %v2878_v0, %v12936_v15  ;;  %v12971_v40 = vrot.slane %v2862_v52, %v12936_v15 }
 0x426   : > { %v2644_v39 = vpop.permute.xlu1 %2643  ;;  %v2623_v14 = vpop.permute.xlu0 %2622 }
 0x427   : > { %v2830_v62 = vcombine.low %v2602_v8, %v2644_v39  ;;  %v2831_v21 = vcombine.high %v2602_v8, %v2644_v39  ;;  %v3626_v36 = vcombine.high %v12960_v38, %v12947_v16  ;;  %v3642_v47 = vcombine.high %v12974_v6, %v12963_v43 }
 0x428   : > { %2712 = vrot.lane.b32.xlu0 %v12877_v3, %s11463_s16  ;;  %2691 = vrot.lane.b32.xlu1 %v12877_v3, %s11464_s27  ;;  %v3625_v29 = vcombine.low %v12960_v38, %v12947_v16 }
 0x429   : > { %v12919_v24 = vrot.slane %v2830_v62, %v12733_v10  ;;  %v12922_v1 = vrot.slane %v2831_v21, %v12733_v10  ;;  %v12997_v20 = vrot.slane %v3626_v36, %v12936_v15 }
 0x42a   : > { %v2665_v50 = vpop.permute.xlu1 %2664  ;;  %v2631_v18 = vpop.permute.xlu0 %2630 }
 0x42b   : > { %v2846_v30 = vcombine.low %v2623_v14, %v2665_v50  ;;  %v2847_v35 = vcombine.high %v2623_v14, %v2665_v50  ;;  %v13006_v50 = vrot.slane %v3642_v47, %v12936_v15 }
 0x42c   : > { %2748 = vrot.lane.b32.xlu0 %v2510_v27, %s11462_s15  ;;  %2783 = vrot.lane.b32.xlu1 %v2510_v27, %s11465_s2 }
 0x42d   : > { %v12925_v25 = vrot.slane %v2846_v30, %v12733_v10  ;;  %v12928_v4 = vrot.slane %v2847_v35, %v12733_v10 }
 0x42e   : > { %v2673_v42 = vpop.permute.xlu1 %2672  ;;  %v2735_v37 = vpop.permute.xlu0 %2734 }
 0x42f   : > { %v2894_v9 = vcombine.low %v12919_v24, %v12925_v25  ;;  %v2910_v58 = vcombine.low %v12922_v1, %v12928_v4  ;;  %v3609_v31 = vcombine.low %v2631_v18, %v2673_v42  ;;  %v3610_v41 = vcombine.high %v2631_v18, %v2673_v42 }
 0x430   : > { %2716 = vrot.lane.b32.xlu0 %v12757_v19, %s11463_s16  ;;  %2787 = vrot.lane.b32.xlu1 %v12763_v48, %s11465_s2  ;;  %v2895_v52 = vcombine.high %v12919_v24, %v12925_v25 }
 0x431   : > { %v12954_v34 = vrot.slane %v2894_v9, %v12936_v15  ;;  %v12957_v2 = vrot.slane %v2910_v58, %v12936_v15  ;;  %v3617_v33 = vrot.slane %v3609_v31, %v12733_v10  ;;  %v3624_v8 = vrot.slane %v3610_v41, %v12733_v10 }
 0x432   : > { %v2707_v59 = vpop.permute.xlu1 %2706  ;;  %v2652_v60 = vpop.permute.xlu0 %2651  ;;  %v2911_v9 = vcombine.high %v12922_v1, %v12928_v4  ;;  %v3641_v1 = vcombine.low %v12974_v6, %v12963_v43  ;;  %v13061_v43 = vrot.slane %v2895_v52, %v12936_v15 }
 0x433   : > { %v3593_v61 = vcombine.low %v12893_v49, %v2652_v60  ;;  %v3594_v48 = vcombine.high %v12893_v49, %v2652_v60  ;;  %v2931_v32 = vcombine.high %v12966_v17, %v12957_v2  ;;  %v2930_v52 = vcombine.low %v12966_v17, %v12957_v2 }
 0x434   : > { %2742 = vrot.lane.b32.xlu0 %v12846_v46, %s11462_s15  ;;  %2744 = vrot.lane.b32.xlu1 %v12871_v63, %s11462_s15  ;;  %v13064_v6 = vrot.slane %v2911_v9, %v12936_v15 }
 0x435   : > { %v3601_v28 = vrot.slane %v3593_v61, %v12733_v10  ;;  %v3608_v49 = vrot.slane %v3594_v48, %v12733_v10 }
 0x436   : > { %v2751_v39 = vpop.permute.xlu1 %2750  ;;  %v2686_v14 = vpop.permute.xlu0 %2685 }
 0x437   : > { %v3658_v51 = vcombine.high %v3601_v28, %v3617_v33  ;;  %v3674_v44 = vcombine.high %v3608_v49, %v3624_v8  ;;  %v3657_v5 = vcombine.low %v3601_v28, %v3617_v33  ;;  %v3673_v53 = vcombine.low %v3608_v49, %v3624_v8 }
 0x438   : > { %2689 = vrot.lane.b32.xlu0 %v12846_v46, %s11464_s27  ;;  %2710 = vrot.lane.b32.xlu1 %v12846_v46, %s11463_s16 }
 0x439   : > { %v13000_v23 = vrot.slane %v3658_v51, %v12936_v15  ;;  %v13003_v56 = vrot.slane %v3674_v44, %v12936_v15  ;;  %v13043_v24 = vrot.slane %v3657_v5, %v12936_v15  ;;  %v13070_v8 = vrot.slane %v3673_v53, %v12936_v15 }
 0x43a   : > { %v2694_v62 = vpop.permute.xlu1 %2693  ;;  %v2715_v21 = vpop.permute.xlu0 %2714  ;;  %v2927_v51 = vcombine.high %v12971_v40, %v12954_v34  ;;  %v13085_v44 = vrot.slane %v3641_v1, %v12936_v15 }
 0x43b   : > { %v3692_v18 = vcombine.high %v12997_v20, %v13000_v23  ;;  %v3696_v13 = vcombine.high %v13006_v50, %v13003_v56  ;;  %v3691_v5 = vcombine.low %v12997_v20, %v13000_v23 }
 0x43c   : > { %2781 = vrot.lane.b32.xlu0 %v12871_v63, %s11465_s2  ;;  %2655 = vrot.lane.b32.xlu1 %v12765_v7, %s11459_s9  ;;  %v2863_v63 = vcombine.high %v12912_v55, %v12909_v11 }
 0x43e   : > { %v2778_v27 = vpop.permute.xlu0 %2777  ;;  %v2737_v30 = vpop.permute.xlu1 %2736  ;;  %v13067_v33 = vrot.slane %v2863_v63, %v12936_v15  ;;  %v3693_v63 = vcombine.low %v13085_v44, %v13070_v8 }
 0x43f   : > { %v2942_v35 = vcombine.high %v2707_v59, %v2778_v27  ;;  %v2763_v22 = vsel %vm2762_vm10, %v2735_v37, %v2737_v30  ;;  %v2879_v37 = vcombine.high %v12915_v26, %v12906_v57  ;;  %v13054_v59 = vrot.slane %v3625_v29, %v12936_v15 }
 0x440   : > { %v2934_v0 = vcombine.high %v2686_v14, %v2763_v22  ;;  %2676 = vrot.lane.b32.xlu0 %v12765_v7, %s11461_s10  ;;  %2758 = vrot.lane.b32.xlu1 %v12765_v7, %s11462_s15  ;;  %v2928_v30 = vcombine.low %v13067_v33, %v13061_v43 }
 0x441   : > { %v13024_v42 = vrot.slane %v2942_v35, %v12733_v10  ;;  %v3689_v47 = vcombine.low %v13054_v59, %v13043_v24 }
 0x442   : > { %v13035_v11 = vrot.slane %v2934_v0, %v12733_v10  ;;  %v2753_v55 = vpop.permute.xlu0 %2752  ;;  %v2786_v58 = vpop.permute.xlu1 %2785  ;;  %v2929_v0 = vcombine.high %v13067_v33, %v13061_v43 }
 0x443   : > { %v2767_v16 = vsel %vm2762_vm10, %v2751_v39, %v2753_v55  ;;  %v3713_v31 = vcombine.low %v2715_v21, %v2786_v58  ;;  %v3714_v41 = vcombine.high %v2715_v21, %v2786_v58  ;;  %v13077_v39 = vrot.slane %v2879_v37, %v12936_v15 }
 0x444   : > { %v2950_v38 = vcombine.low %v13035_v11, %v13024_v42  ;;  %v3697_v57 = vcombine.low %v2694_v62, %v2767_v16  ;;  %v3698_v26 = vcombine.high %v2694_v62, %v2767_v16  ;;  %2760 = vrot.lane.b32.xlu0 %v12771_v45, %s11462_s15  ;;  %2697 = vrot.lane.b32.xlu1 %v12765_v7, %s11464_s27  ;;  %v4130_v29 = vrot.slane %v3689_v47, 1 }
 0x445   : > { %v3721_v25 = vrot.slane %v3713_v31, %v12733_v10  ;;  %v13049_v4 = vrot.slane %v3714_v41, %v12733_v10  ;;  %v2951_v22 = vcombine.high %v13035_v11, %v13024_v42  ;;  %v2933_v42 = vcombine.high %v13077_v39, %v13064_v6 }
 0x446   : > { %v3705_v60 = vrot.slane %v3697_v57, %v12733_v10  ;;  %v3712_v61 = vrot.slane %v3698_v26, %v12733_v10  ;;  %v2549_v48 = vpop.permute.xlu1 %2548  ;;  %v13058_v36 = vpop.permute.xlu0 %2540  ;;  %v2958_v9 = vrot.slane %v2950_v38, %v12936_v15  ;;  %v3695_v41 = vcombine.low %v13006_v50, %v13003_v56 }
 0x447   : > { %v4089_v26 = vrot.slane %v2931_v32, 1  ;;  %v17014_v38 = vmov 0.0  }
 0x448   : > { %v3729_v28 = vcombine.low %v3705_v60, %v3721_v25  ;;  %v3730_v49 = vcombine.high %v3705_v60, %v3721_v25  ;;  %2718 = vrot.lane.b32.xlu0 %v12765_v7, %s11463_s16  ;;  %v3745_v14 = vcombine.low %v3712_v61, %v13049_v4  ;;  %2789 = vrot.lane.b32.xlu1 %v12771_v45, %s11465_s2  ;;  %v4166_v25 = vrot.slane %v3691_v5, 1 }
 0x449   : > { %v2932_v45 = vcombine.low %v13077_v39, %v13064_v6  ;;  %v3746_v11 = vcombine.high %v3712_v61, %v13049_v4  ;;  %v4199_v4 = vrot.slane %v3693_v63, 2  ;;  %v2965_v60 = vrot.slane %v2951_v22, %v12936_v15 }
 0x44a   : > { %v13087_v62 = vpop.permute.xlu1 %2582  ;;  %v13089_v21 = vpop.permute.xlu0 %2561  ;;  %v13092_v27 = vrot.slane %v3729_v28, %v12936_v15  ;;  %v3744_v35 = vrot.slane %v3730_v49, %v12936_v15  ;;  %v13116_v58 = vrot.slane %v3745_v14, %v12936_v15  ;;  %v2966_v14 = vcombine.high %v2958_v9, %v17014_v38 }
 0x44b   : > { %v4103_v57 = vrot.slane %v2932_v45, 1  ;;  %v3760_v47 = vrot.slane %v3746_v11, %v12936_v15  ;;  %v2984_v22 = vcombine.low %v13058_v36, %v13087_v62  ;;  %v2985_v5 = vcombine.high %v13058_v36, %v13087_v62 }
 0x44c   : > { %4047 = vrot.lane.b32.xlu0 %v2927_v51, %s11467_s23  ;;  %v4131_v37 = vrot.slane %v13092_v27, 1  ;;  %v4167_v55 = vrot.slane %v3744_v35, 1  ;;  %v3762_v1 = vcombine.high %v3744_v35, %v17014_v38  ;;  %v4200_v49 = vrot.slane %v13116_v58, 2 }
 0x44d   : > { %v2968_v63 = vcombine.low %v12805_v12, %v13089_v21  ;;  %v2969_v36 = vcombine.high %v12805_v12, %v13089_v21  ;;  %v4183_v62 = vrot.slane %v3692_v18, 2  ;;  %v2967_v12 = vcombine.high %v2965_v60, %v17014_v38 }
 0x44e   : > { %v2591_v53 = vpop.permute.xlu1 %2590  ;;  %v2570_v16 = vpop.permute.xlu0 %2569  ;;  %v4132_v31 = vsel %vm4088_vm11, %v4130_v29, %v4131_v37  ;;  %v4168_v32 = vsel %vm4088_vm11, %v4166_v25, %v4167_v55  ;;  %v4184_v29 = vrot.slane %v3762_v1, 2  ;;  %v4201_v25 = vsel %vm4175_vm12, %v4199_v4, %v4200_v49 }
 0x44f   : > { %4133 = vrot.lane.b32.xlu1 %v4132_v31, %s11468_s24  ;;  %v3781_v61 = vcombine.low %v2549_v48, %v2591_v53  ;;  %v3782_v43 = vcombine.high %v2549_v48, %v2591_v53  ;;  %v3765_v33 = vcombine.low %v12757_v19, %v2570_v16  ;;  %v3766_v28 = vcombine.high %v12757_v19, %v2570_v16 }
 0x450   : > { %4057 = vrot.lane.b32.xlu0 %v2928_v30, %s11468_s24  ;;  %v4104_v53 = vrot.slane %v2965_v60, 1  ;;  %v3690_v16 = vcombine.high %v13054_v59, %v13043_v24  ;;  %v4235_v20 = vrot.slane %v3695_v41, 2  ;;  %v3764_v23 = vcombine.high %v3760_v47, %v17014_v38 }
 0x451   : > { %v13135_v51 = vrot.slane %v3781_v61, %v12733_v10  ;;  %v13138_v35 = vrot.slane %v3782_v43, %v12733_v10  ;;  %v13141_v48 = vrot.slane %v3765_v33, %v12733_v10  ;;  %v13144_v19 = vrot.slane %v3766_v28, %v12733_v10 }
 0x452   : > { %v2625_v30 = vpop.permute.xlu1 %2624  ;;  %v2604_v45 = vpop.permute.xlu0 %2603  ;;  %v4236_v61 = vrot.slane %v3760_v47, 2  ;;  %v4253_v18 = vrot.slane %v3696_v13, 2  ;;  %v4090_v24 = vrot.slane %v2966_v14, 1  ;;  %v13183_v59 = vrot.slane %v2984_v22, %v12733_v10 }
 0x453   : > { %4169 = vrot.lane.b32.xlu1 %v4168_v32, %s11465_s2  ;;  %v3829_v37 = vcombine.low %v13141_v48, %v13135_v51  ;;  %v3830_v9 = vcombine.high %v13141_v48, %v13135_v51  ;;  %v3845_v11 = vcombine.low %v13144_v19, %v13138_v35  ;;  %v3846_v55 = vcombine.high %v13144_v19, %v13138_v35 }
 0x454   : > { %4067 = vrot.lane.b32.xlu0 %v2929_v0, %s11470_s28  ;;  %v3761_v0 = vcombine.high %v13092_v27, %v17014_v38  ;;  %v13186_v21 = vrot.slane %v2985_v5, %v12733_v10  ;;  %v13189_v27 = vrot.slane %v2968_v63, %v12733_v10  ;;  %v13196_v41 = vsel %vm4175_vm12, %v4183_v62, %v4184_v29 }
 0x455   : > { %17064 = vst [vmem:[#allocation18_spill] sm:$0xff] %v13196_v41  ;;  %v13199_v56 = vrot.slane %v2969_v36, %v12733_v10  ;;  %v4105_v50 = vsel %vm4088_vm11, %v4103_v57, %v4104_v53  ;;  %v4254_v13 = vrot.slane %v3764_v23, 2  ;;  %v13203_v4 = vsel %vm4088_vm11, %v4089_v26, %v4090_v24 }
 0x456   : > { %v13169_v31 = vpop.permute.xlu1 %2632  ;;  %v13171_v1 = vpop.permute.xlu0 %2611  ;;  %v4237_v33 = vsel %vm4175_vm12, %v4235_v20, %v4236_v61  ;;  %v4149_v28 = vrot.slane %v3761_v0, 1  ;;  %v4122_v32 = vrot.slane %v2967_v12, 1  ;;  %v3763_v2 = vcombine.high %v13116_v58, %v17014_v38 }
 0x457   : > { %4202 = vrot.lane.b32.xlu1 %v4201_v25, %s11467_s23  ;;  %v4148_v57 = vrot.slane %v3690_v16, 1  ;;  %v4121_v26 = vrot.slane %v2933_v42, 1  ;;  %v3694_v14 = vcombine.high %v13085_v44, %v13070_v8  ;;  %v13216_v22 = vsel %vm4175_vm12, %v4253_v18, %v4254_v13 }
 0x458   : > { %4077 = vrot.lane.b32.xlu0 %v2930_v52, %s11465_s2  ;;  %v3033_v63 = vcombine.high %v13189_v27, %v13183_v59  ;;  %v3049_v6 = vcombine.high %v13199_v56, %v13186_v21  ;;  %v4218_v42 = vrot.slane %v3763_v2, 2  ;;  %v13332_v51 = vrot.slane %v3845_v11, %v12936_v15 }
 0x459   : > { %v4150_v44 = vsel %vm4088_vm11, %v4148_v57, %v4149_v28  ;;  %v4123_v62 = vsel %vm4088_vm11, %v4121_v26, %v4122_v32  ;;  %v4217_v53 = vrot.slane %v3694_v14, 2 }
 0x45a   : > { %v2646_v60 = vpop.permute.xlu1 %2645  ;;  %v2667_v43 = vpop.permute.xlu0 %2666  ;;  %v13240_v61 = vrot.slane %v3033_v63, %v12936_v15  ;;  %v13243_v0 = vrot.slane %v3049_v6, %v12936_v15 }
 0x45b   : > { %v3000_v17 = vcombine.low %v2604_v45, %v2646_v60  ;;  %v3001_v52 = vcombine.high %v2604_v45, %v2646_v60  ;;  %v3016_v49 = vcombine.low %v2625_v30, %v2667_v43  ;;  %v3017_v47 = vcombine.high %v2625_v30, %v2667_v43  ;;  %4238 = vrot.lane.b32.xlu1 %v4237_v33, %s11470_s28 }
 0x45c   : > { %4106 = vrot.lane.b32.xlu0 %v4105_v50, %s11467_s23  ;;  %v4219_v23 = vsel %vm4175_vm12, %v4217_v53, %v4218_v42  ;;  %v3048_v42 = vcombine.low %v13199_v56, %v13186_v21 }
 0x45d   : > { %v3008_v58 = vrot.slane %v3000_v17, %v12733_v10  ;;  %v13220_v45 = vrot.slane %v3001_v52, %v12733_v10  ;;  %v3024_v30 = vrot.slane %v3016_v49, %v12733_v10  ;;  %v3031_v5 = vrot.slane %v3017_v47, %v12733_v10 }
 0x45e   : > { %v2709_v39 = vpop.permute.xlu1 %2708  ;;  %v2739_v8 = vpop.permute.xlu0 %2738  ;;  %v3032_v49 = vcombine.low %v13189_v27, %v13183_v59 }
 0x45f   : > { %v3065_v29 = vcombine.high %v3008_v58, %v3024_v30  ;;  %v3081_v36 = vcombine.high %v13220_v45, %v3031_v5  ;;  %4151 = vrot.lane.b32.xlu1 %v4150_v44, %s11470_s28  ;;  %v3064_v33 = vcombine.low %v3008_v58, %v3024_v30  ;;  %v3080_v58 = vcombine.low %v13220_v45, %v3031_v5 }
 0x460   : > { %4124 = vrot.lane.b32.xlu0 %v4123_v62, %s11468_s24  ;;  %v13273_v62 = vrot.slane %v3032_v49, %v12936_v15  ;;  %v13279_v45 = vrot.slane %v3829_v37, %v12936_v15 }
 0x461   : > { %v13234_v16 = vrot.slane %v3065_v29, %v12936_v15  ;;  %v13237_v25 = vrot.slane %v3081_v36, %v12936_v15  ;;  %v13265_v14 = vrot.slane %v3064_v33, %v12936_v15  ;;  %v13301_v33 = vrot.slane %v3048_v42, %v12936_v15 }
 0x462   : > { %v2755_v12 = vpop.permute.xlu1 %2754  ;;  %v2688_v20 = vpop.permute.xlu0 %2687 }
 0x463   : > { %4220 = vrot.lane.b32.xlu1 %v4219_v23, %s11468_s24  ;;  %v3098_v18 = vcombine.low %v13240_v61, %v13234_v16  ;;  %v3103_v24 = vcombine.high %v13243_v0, %v13237_v25 }
 0x466   : > { %v13251_v50 = vpop.permute.xlu1 %2695  ;;  %v2654_v13 = vpop.permute.xlu0 %2653 }
 0x467   : > { %v3797_v60 = vcombine.low %v13171_v1, %v2654_v13  ;;  %v3798_v43 = vcombine.high %v13171_v1, %v2654_v13  ;;  %v13291_v13 = vrot.slane %v3080_v58, %v12936_v15 }
 0x469   : > { %v3805_v47 = vrot.slane %v3797_v60, %v12733_v10  ;;  %v3812_v57 = vrot.slane %v3798_v43, %v12733_v10  ;;  %v3096_v60 = vcombine.low %v13273_v62, %v13265_v14 }
 0x46a   : > { %v2675_v28 = vpop.permute.xlu0 %2674  ;;  %v2741_v32 = vpop.permute.xlu1 %2740 }
 0x46b   : > { %v3813_v2 = vcombine.low %v13169_v31, %v2675_v28  ;;  %v3814_v17 = vcombine.high %v13169_v31, %v2675_v28  ;;  %v2764_v52 = vsel %vm2762_vm10, %v2739_v8, %v2741_v32  ;;  %v4139_v58 = vrot.slane %v3096_v60, 1 }
 0x46c   : > { %v3104_v30 = vcombine.low %v2688_v20, %v2764_v52  ;;  %v3105_v31 = vcombine.high %v2688_v20, %v2764_v52 }
 0x46d   : > { %v3821_v26 = vrot.slane %v3813_v2, %v12733_v10  ;;  %v3828_v1 = vrot.slane %v3814_v17, %v12733_v10 }
 0x46e   : > { %v2780_v63 = vpop.permute.xlu0 %2779  ;;  %v13268_v6 = vpop.permute.xlu1 %2542  ;;  %v3112_v53 = vrot.slane %v3104_v30, %v12733_v10  ;;  %v3119_v20 = vrot.slane %v3105_v31, %v12733_v10  ;;  %v3100_v30 = vcombine.low %v13301_v33, %v13291_v13 }
 0x46f   : > { %v3861_v8 = vcombine.low %v3805_v47, %v3821_v26  ;;  %v3862_v59 = vcombine.high %v3805_v47, %v3821_v26  ;;  %v3877_v27 = vcombine.low %v3812_v57, %v3828_v1  ;;  %v3878_v44 = vcombine.high %v3812_v57, %v3828_v1 }
 0x470   : > { %v3120_v29 = vcombine.low %v2709_v39, %v2780_v63  ;;  %v3121_v36 = vcombine.high %v2709_v39, %v2780_v63  ;;  %v13316_v1 = vrot.slane %v3830_v9, %v12936_v15 }
 0x471   : > { %v13282_v5 = vrot.slane %v3861_v8, %v12936_v15  ;;  %v13304_v2 = vrot.slane %v3862_v59, %v12936_v15  ;;  %v13321_v31 = vrot.slane %v3877_v27, %v12936_v15  ;;  %v13335_v48 = vrot.slane %v3878_v44, %v12936_v15 }
 0x472   : > { %v3128_v21 = vrot.slane %v3120_v29, %v12733_v10  ;;  %v3135_v56 = vrot.slane %v3121_v36, %v12733_v10  ;;  %v2757_v39 = vpop.permute.xlu0 %2756  ;;  %v13288_v23 = vpop.permute.xlu1 %2563  ;;  %v4208_v44 = vrot.slane %v3100_v30, 2 }
 0x473   : > { %v13294_v37 = vsel %vm2762_vm10, %v2755_v12, %v2757_v39  ;;  %v3894_v43 = vcombine.high %v13279_v45, %v13282_v5  ;;  %v3173_v8 = vcombine.high %v12846_v46, %v13288_v23  ;;  %v3895_v29 = vcombine.low %v13316_v1, %v13304_v2 }
 0x474   : > { %v3136_v28 = vcombine.low %v3112_v53, %v3128_v21  ;;  %v3152_v32 = vcombine.low %v3119_v20, %v3135_v56  ;;  %v3153_v17 = vcombine.high %v3119_v20, %v3135_v56  ;;  %v3901_v52 = vcombine.low %v13251_v50, %v13294_v37 }
 0x475   : > { %v3902_v12 = vcombine.high %v13251_v50, %v13294_v37  ;;  %v3137_v63 = vcombine.high %v3112_v53, %v3128_v21  ;;  %v13346_v20 = vrot.slane %v3846_v55, %v12936_v15  ;;  %v3102_v21 = vcombine.low %v13243_v0, %v13237_v25 }
 0x476   : > { %v3144_v49 = vrot.slane %v3136_v28, %v12936_v15  ;;  %v3160_v47 = vrot.slane %v3152_v32, %v12936_v15  ;;  %v2551_v57 = vpop.permute.xlu0 %2550  ;;  %v2572_v26 = vpop.permute.xlu1 %2571  ;;  %v3167_v42 = vrot.slane %v3153_v17, %v12936_v15  ;;  %v13355_v39 = vrot.slane %v3173_v8, %v12733_v10 }
 0x477   : > { %v3151_v56 = vrot.slane %v3137_v63, %v12936_v15  ;;  %v3896_v60 = vcombine.high %v13316_v1, %v13304_v2  ;;  %v3897_v35 = vcombine.low %v13332_v51, %v13321_v31  ;;  %v3969_v19 = vcombine.low %v12765_v7, %v2572_v26 }
 0x478   : > { %v4140_v59 = vrot.slane %v3144_v49, 1  ;;  %v4209_v53 = vrot.slane %v3160_v47, 2  ;;  %v4245_v28 = vrot.slane %v3167_v42, 2  ;;  %v3168_v32 = vcombine.high %v3144_v49, %v17014_v38 }
 0x479   : > { %v4244_v49 = vrot.slane %v3102_v21, 2  ;;  %v3169_v26 = vcombine.high %v3151_v56, %v17014_v38  ;;  %v3172_v63 = vcombine.low %v12846_v46, %v13288_v23 }
 0x47a   : > { %v13337_v9 = vpop.permute.xlu0 %2584  ;;  %v13339_v27 = vpop.permute.xlu1 %2605  ;;  %v4141_v36 = vsel %vm4088_vm11, %v4139_v58, %v4140_v59  ;;  %v4210_v30 = vsel %vm4175_vm12, %v4208_v44, %v4209_v53  ;;  %v4176_v53 = vrot.slane %v3098_v18, 2  ;;  %v13384_v44 = vrot.slane %v3969_v19, %v12733_v10 }
 0x47b   : > { %v3189_v11 = vcombine.high %v13268_v6, %v13337_v9  ;;  %4142 = vrot.lane.b32.xlu0 %v4141_v36, %s11470_s28  ;;  %v3097_v36 = vcombine.high %v13273_v62, %v13265_v14  ;;  %v4246_v54 = vsel %vm4175_vm12, %v4244_v49, %v4245_v28  ;;  %v4158_v8 = vrot.slane %v3168_v32, 1 }
 0x47c   : > { %v3171_v62 = vcombine.high %v3167_v42, %v17014_v38  ;;  %v3170_v42 = vcombine.high %v3160_v47, %v17014_v38 }
 0x47d   : > { %v13363_v55 = vrot.slane %v3189_v11, %v12733_v10  ;;  %v4177_v11 = vrot.slane %v3151_v56, 2  ;;  %v3099_v56 = vcombine.high %v13240_v61, %v13234_v16  ;;  %v4157_v32 = vrot.slane %v3097_v36, 1 }
 0x47e   : > { %v2593_v17 = vpop.permute.xlu0 %2592  ;;  %v13366_v58 = vpop.permute.xlu1 %2613  ;;  %v4264_v49 = vrot.slane %v3171_v62, 3 }
 0x47f   : > { %v3252_v7 = vcombine.low %v13355_v39, %v13363_v55  ;;  %4211 = vrot.lane.b32.xlu0 %v4210_v30, %s11468_s24  ;;  %v3977_v59 = vcombine.low %v2551_v57, %v2593_v17  ;;  %v13396_v14 = vsel %vm4175_vm12, %v4176_v53, %v4177_v11  ;;  %v4263_v17 = vrot.slane %v3103_v24, 3 }
 0x480   : > { %17065 = vst [vmem:[#allocation19_spill] sm:$0xff] %v13396_v14  ;;  %v4159_v61 = vsel %vm4088_vm11, %v4157_v32, %v4158_v8  ;;  %v4191_v53 = vrot.slane %v3169_v26, 2  ;;  %v4190_v0 = vrot.slane %v3099_v56, 2  ;;  %v3101_v24 = vcombine.high %v13301_v33, %v13291_v13 }
 0x481   : > { %v13389_v30 = vrot.slane %v3977_v59, %v12733_v10  ;;  %v13420_v11 = vsel %vm4262_vm13, %v4263_v17, %v4264_v49  ;;  %v4227_v32 = vrot.slane %v3170_v42, 2 }
 0x482   : > { %v13391_v57 = vpop.permute.xlu0 %2626  ;;  %v13393_v21 = vpop.permute.xlu1 %2647  ;;  %17066 = vst [vmem:[#allocation20_spill] sm:$0xff] %v13420_v11  ;;  %v4192_v62 = vsel %vm4175_vm12, %v4190_v0, %v4191_v53  ;;  %v4226_v56 = vrot.slane %v3101_v24, 2 }
 0x483   : > { %4247 = vrot.lane.b32.xlu0 %v4246_v54, %s11465_s2  ;;  %v3205_v54 = vcombine.high %v13339_v27, %v13393_v21 }
 0x484   : > { %v4228_v13 = vsel %vm4175_vm12, %v4226_v56, %v4227_v32 }
 0x485   : > { %v13431_v36 = vrot.slane %v3205_v54, %v12733_v10 }
 0x486   : > { %v13414_v59 = vpop.permute.xlu0 %2634  ;;  %v13416_v16 = vpop.permute.xlu1 %2668 }
 0x487   : > { %v3221_v25 = vcombine.high %v13391_v57, %v13416_v16  ;;  %4160 = vrot.lane.b32.xlu0 %v4159_v61, %s11465_s2 }
 0x489   : > { %v13428_v47 = vrot.slane %v3221_v25, %v12733_v10  ;;  %v13443_v25 = vrot.slane %v3252_v7, %v12936_v15 }
 0x48a   : > { %v2566_v8 = vpop.permute.xlu0 %2565  ;;  %v2545_v26 = vpop.permute.xlu1 %2544 }
 0x48b   : > { %4193 = vrot.lane.b32.xlu0 %v4192_v62, %s11467_s23  ;;  %v3284_v17 = vcombine.low %v13431_v36, %v13428_v47  ;;  %v3376_v42 = vcombine.low %v12877_v3, %v2566_v8  ;;  %v3377_v18 = vcombine.high %v12877_v3, %v2566_v8  ;;  %v3220_v3 = vcombine.low %v13391_v57, %v13416_v16 }
 0x48d   : > { %v13440_v33 = vrot.slane %v3284_v17, %v12936_v15  ;;  %v3391_v46 = vrot.slane %v3377_v18, %v12733_v10 }
 0x48e   : > { %v2608_v49 = vpop.permute.xlu0 %2607  ;;  %v2587_v61 = vpop.permute.xlu1 %2586 }
 0x48f   : > { %4229 = vrot.lane.b32.xlu0 %v4228_v13, %s11470_s28  ;;  %v3392_v54 = vcombine.low %v2545_v26, %v2587_v61  ;;  %v3393_v62 = vcombine.high %v2545_v26, %v2587_v61  ;;  %v3384_v13 = vrot.slane %v3376_v42, %v12733_v10 }
 0x491   : > { %v3400_v24 = vrot.slane %v3392_v54, %v12733_v10  ;;  %v3407_v26 = vrot.slane %v3393_v62, %v12733_v10 }
 0x492   : > { %v2650_v53 = vpop.permute.xlu0 %2649  ;;  %v2629_v0 = vpop.permute.xlu1 %2628 }
 0x493   : > { %v3408_v32 = vcombine.low %v2608_v49, %v2650_v53  ;;  %v3409_v56 = vcombine.high %v2608_v49, %v2650_v53  ;;  %v3441_v61 = vcombine.high %v3384_v13, %v3400_v24  ;;  %v3188_v53 = vcombine.low %v13268_v6, %v13337_v9 }
 0x494   : > { %v3440_v8 = vcombine.low %v3384_v13, %v3400_v24  ;;  %v13474_v6 = vrot.slane %v3172_v63, %v12733_v10  ;;  %v3204_v9 = vcombine.low %v13339_v27, %v13393_v21  ;;  %v3457_v57 = vcombine.high %v3391_v46, %v3407_v26 }
 0x495   : > { %v3416_v54 = vrot.slane %v3408_v32, %v12733_v10  ;;  %v3423_v28 = vrot.slane %v3409_v56, %v12733_v10  ;;  %v3455_v16 = vrot.slane %v3441_v61, %v12936_v15  ;;  %v13488_v56 = vrot.slane %v3188_v53, %v12733_v10 }
 0x496   : > { %v2671_v17 = vpop.permute.xlu0 %2670  ;;  %v2747_v19 = vpop.permute.xlu1 %2746  ;;  %v13491_v63 = vrot.slane %v3220_v3, %v12733_v10  ;;  %v13494_v27 = vrot.slane %v3440_v8, %v12936_v15  ;;  %v3471_v53 = vrot.slane %v3457_v57, %v12936_v15 }
 0x497   : > { %v3424_v7 = vcombine.low %v2629_v0, %v2671_v17  ;;  %v3425_v38 = vcombine.high %v2629_v0, %v2671_v17 }
 0x498   : > { %17067 = vst [vmem:[#allocation21_spill] sm:$0xff] %v13494_v27 }
 0x499   : > { %v3432_v49 = vrot.slane %v3424_v7, %v12733_v10  ;;  %v3439_v42 = vrot.slane %v3425_v38, %v12733_v10  ;;  %v13471_v38 = vrot.slane %v3901_v52, %v12733_v10  ;;  %v3916_v52 = vrot.slane %v3902_v12, %v12733_v10 }
 0x49a   : > { %v13462_v0 = vpop.permute.xlu0 %2712  ;;  %v13465_v17 = vpop.permute.xlu1 %2691 }
 0x49b   : > { %v3472_v23 = vcombine.low %v3416_v54, %v3432_v49  ;;  %v3473_v62 = vcombine.high %v3416_v54, %v3432_v49  ;;  %v3489_v32 = vcombine.high %v3423_v28, %v3439_v42  ;;  %v3488_v13 = vcombine.low %v3423_v28, %v3439_v42 }
 0x49c   : > { %v13511_v49 = vrot.slane %v3894_v43, 3  ;;  %v13516_v28 = vrot.slane %v3895_v29, 3  ;;  %v3456_v42 = vcombine.low %v3391_v46, %v3407_v26  ;;  %v3236_v43 = vcombine.low %v13474_v6, %v13488_v56 }
 0x49d   : > { %v13479_v18 = vrot.slane %v3472_v23, %v12936_v15  ;;  %v3487_v24 = vrot.slane %v3473_v62, %v12936_v15  ;;  %v13497_v7 = vrot.slane %v3489_v32, %v12936_v15  ;;  %v13532_v62 = vrot.slane %v3896_v60, 3 }
 0x49e   : > { %v2749_v21 = vpop.permute.xlu0 %2748  ;;  %v13499_v61 = vpop.permute.xlu1 %2783  ;;  %v3496_v46 = vrot.slane %v3488_v13, %v12936_v15  ;;  %v3464_v1 = vrot.slane %v3456_v42, %v12936_v15 }
 0x49f   : > { %v13502_v54 = vsel %vm2762_vm10, %v2747_v19, %v2749_v21  ;;  %v3506_v50 = vcombine.low %v3455_v16, %v3487_v24  ;;  %v3529_v37 = vcombine.high %v13462_v0, %v13499_v61  ;;  %v13519_v19 = vrot.slane %v3204_v9, %v12733_v10 }
 0x4a0   : > { %v3513_v12 = vcombine.high %v13465_v17, %v13502_v54  ;;  %v3507_v9 = vcombine.high %v3455_v16, %v3487_v24  ;;  %v3510_v57 = vcombine.low %v3471_v53, %v13497_v7  ;;  %v3511_v60 = vcombine.high %v3471_v53, %v13497_v7 }
 0x4a1   : > { %4052 = vrot.lane.b32.xlu1 %v3506_v50, %s11467_s23  ;;  %v3543_v8 = vrot.slane %v3529_v37, %v12733_v10  ;;  %v3268_v26 = vcombine.low %v13519_v19, %v13491_v63  ;;  %v17068_v16 = vcombine.low %v13346_v20, %v13335_v48 }
 0x4a2   : > { %v3527_v23 = vrot.slane %v3513_v12, %v12733_v10  ;;  %v2717_v29 = vpop.permute.xlu0 %2716  ;;  %v2788_v32 = vpop.permute.xlu1 %2787  ;;  %v4340_v12 = vrot.slane %v3897_v35, 3  ;;  %v4112_v2 = vrot.slane %v3511_v60, 1 }
 0x4a3   : > { %v3917_v50 = vcombine.low %v2717_v29, %v2788_v32  ;;  %v3918_v37 = vcombine.high %v2717_v29, %v2788_v32  ;;  %v4373_v24 = vrot.slane %v17068_v16, 4  ;;  %v17069_v29 = vcombine.high %v13346_v20, %v13335_v48 }
 0x4a4   : > { %v3545_v21 = vcombine.high %v3527_v23, %v3543_v8  ;;  %v13558_v32 = vrot.slane %v3236_v43, %v12936_v15  ;;  %v13563_v53 = vrot.slane %v3268_v26, %v12936_v15  ;;  %v3509_v20 = vcombine.high %v3464_v1, %v3496_v46 }
 0x4a5   : > { %4062 = vrot.lane.b32.xlu1 %v3507_v9, %s11468_s24  ;;  %v3925_v8 = vrot.slane %v3917_v50, %v12733_v10  ;;  %v3932_v23 = vrot.slane %v3918_v37, %v12733_v10  ;;  %v13555_v42 = vrot.slane %v17069_v29, 4  ;;  %v17070_v43 = vmov 0.0  }
 0x4a6   : > { %v3552_v13 = vrot.slane %v3545_v21, %v12936_v15  ;;  %v2743_v35 = vpop.permute.xlu0 %2742  ;;  %v2745_v9 = vpop.permute.xlu1 %2744  ;;  %v3508_v21 = vcombine.low %v3464_v1, %v3496_v46 }
 0x4a7   : > { %v3933_v50 = vcombine.low %v13471_v38, %v3925_v8  ;;  %v3934_v37 = vcombine.high %v13471_v38, %v3925_v8  ;;  %v3949_v16 = vcombine.low %v3916_v52, %v3932_v23  ;;  %v3950_v3 = vcombine.high %v3916_v52, %v3932_v23 }
 0x4a8   : > { %v2765_v48 = vsel %vm2762_vm10, %v2743_v35, %v2745_v9  ;;  %v3560_v29 = vcombine.high %v3552_v13, %v17070_v43  ;;  %v4097_v35 = vrot.slane %v3552_v13, 1 }
 0x4a9   : > { %4072 = vrot.lane.b32.xlu1 %v3508_v21, %s11470_s28  ;;  %v3941_v7 = vrot.slane %v3933_v50, %v12936_v15  ;;  %v3948_v26 = vrot.slane %v3934_v37, %v12936_v15  ;;  %v3957_v41 = vrot.slane %v3949_v16, %v12936_v15  ;;  %v3964_v11 = vrot.slane %v3950_v3, %v12936_v15 }
 0x4aa   : > { %v2690_v14 = vpop.permute.xlu0 %2689  ;;  %v2711_v38 = vpop.permute.xlu1 %2710  ;;  %v4113_v23 = vrot.slane %v3560_v29, 1  ;;  %v4096_v37 = vrot.slane %v3510_v57, 1 }
 0x4ab   : > { %v3308_v8 = vcombine.low %v2690_v14, %v2765_v48  ;;  %v3309_v52 = vcombine.high %v2690_v14, %v2765_v48  ;;  %v3965_v9 = vcombine.high %v3941_v7, %v17070_v43  ;;  %v4305_v46 = vrot.slane %v3948_v26, 3 }
 0x4ac   : > { %v3966_v1 = vcombine.high %v3948_v26, %v17070_v43  ;;  %v4341_v60 = vrot.slane %v3957_v41, 3  ;;  %v4374_v3 = vrot.slane %v3964_v11, 4  ;;  %v4114_v57 = vsel %vm4088_vm11, %v4112_v2, %v4113_v23 }
 0x4ad   : > { %v3316_v21 = vrot.slane %v3308_v8, %v12733_v10  ;;  %v13578_v50 = vrot.slane %v3309_v52, %v12733_v10  ;;  %4082 = vrot.lane.b32.xlu1 %v3509_v20, %s11465_s2  ;;  %v4287_v27 = vrot.slane %v3965_v9, 3  ;;  %v13583_v14 = vsel %vm4262_vm13, %v13516_v28, %v4305_v46 }
 0x4ae   : > { %v2782_v16 = vpop.permute.xlu0 %2781  ;;  %v4323_v13 = vrot.slane %v3966_v1, 3  ;;  %v13586_v48 = vsel %vm4262_vm13, %v4340_v12, %v4341_v60  ;;  %v2656_v29 = vpop.permute.xlu1 %2655  ;;  %v13589_v52 = vsel %vm4349_vm14, %v4373_v24, %v4374_v3  ;;  %v3968_v20 = vcombine.high %v3964_v11, %v17070_v43 }
 0x4af   : > { %v3324_v26 = vcombine.low %v2711_v38, %v2782_v16  ;;  %v3325_v8 = vcombine.high %v2711_v38, %v2782_v16  ;;  %v4288_v9 = vsel %vm4262_vm13, %v13511_v49, %v4287_v27  ;;  %v13600_v12 = vsel %vm4088_vm11, %v4096_v37, %v4097_v35 }
 0x4b0   : > { %v13597_v28 = vsel %vm4262_vm13, %v13532_v62, %v4323_v13  ;;  %v4392_v11 = vrot.slane %v3968_v20, 4  ;;  %v4271_v24 = vrot.slane %v3941_v7, 3  ;;  %v3985_v2 = vcombine.low %v13366_v58, %v2656_v29 }
 0x4b1   : > { %v3332_v46 = vrot.slane %v3324_v26, %v12733_v10  ;;  %v13604_v38 = vrot.slane %v3325_v8, %v12733_v10  ;;  %4115 = vrot.lane.b32.xlu1 %v4114_v57, %s11467_s23  ;;  %v17071_v27 = vcombine.low %v13279_v45, %v13282_v5  ;;  %v3967_v62 = vcombine.high %v3957_v41, %v17070_v43 }
 0x4b2   : > { %v2677_v23 = vpop.permute.xlu0 %2676  ;;  %v17072_v35 = vcombine.high %v13332_v51, %v13321_v31  ;;  %v2759_v16 = vpop.permute.xlu1 %2758  ;;  %v3300_v58 = vcombine.low %v13558_v32, %v13563_v53  ;;  %v13622_v45 = vsel %vm4349_vm14, %v13555_v42, %v4392_v11  ;;  %v17073_v31 = vcombine.high %v13519_v19, %v13491_v63 }
 0x4b3   : > { %v4270_v49 = vrot.slane %v17071_v27, 3  ;;  %v3340_v60 = vcombine.low %v3316_v21, %v3332_v46  ;;  %v3341_v3 = vcombine.high %v3316_v21, %v3332_v46  ;;  %v3356_v37 = vcombine.low %v13578_v50, %v13604_v38 }
 0x4b4   : > { %v4357_v1 = vrot.slane %v17072_v35, 4  ;;  %v3993_v7 = vcombine.low %v13414_v59, %v2677_v23  ;;  %v4358_v5 = vrot.slane %v3967_v62, 4  ;;  %v3283_v51 = vrot.slane %v17073_v31, %v12936_v15 }
 0x4b5   : > { %v13625_v41 = vsel %vm4262_vm13, %v4270_v49, %v4271_v24  ;;  %v3348_v21 = vrot.slane %v3340_v60, %v12936_v15  ;;  %4256 = vrot.lane.b32.xlu1 %v13216_v22, %s11465_s2  ;;  %v3992_v59 = vrot.slane %v3985_v2, %v12733_v10  ;;  %v3301_v29 = vcombine.high %v13558_v32, %v13563_v53 }
 0x4b6   : > { %v4000_v13 = vrot.slane %v3993_v7, %v12733_v10  ;;  %v2761_v42 = vpop.permute.xlu0 %2760  ;;  %v13639_v26 = vsel %vm4349_vm14, %v4357_v1, %v4358_v5  ;;  %v3364_v8 = vrot.slane %v3356_v37, %v12936_v15  ;;  %v2698_v63 = vpop.permute.xlu1 %2697  ;;  %v4277_v19 = vrot.slane %v3300_v58, 3 }
 0x4b7   : > { %v4278_v20 = vrot.slane %v3348_v21, 3  ;;  %v3372_v57 = vcombine.high %v3348_v21, %v17070_v43  ;;  %v17074_v22 = vcombine.high %v13474_v6, %v13488_v56  ;;  %v3355_v11 = vrot.slane %v3341_v3, %v12936_v15 }
 0x4b8   : > { %v4009_v24 = vcombine.low %v3992_v59, %v4000_v13  ;;  %v17075_v2 = vcombine.low %v13384_v44, %v13389_v30  ;;  %v2769_v49 = vsel %vm2762_vm10, %v2759_v16, %v2761_v42  ;;  %v17076_v35 = vcombine.low %v13443_v25, %v13440_v33 }
 0x4b9   : > { %v3251_v46 = vrot.slane %v17074_v22, %v12936_v15  ;;  %4289 = vrot.lane.b32.xlu1 %v4288_v9, %s11467_s23  ;;  %v4279_v32 = vsel %vm4262_vm13, %v4277_v19, %v4278_v20  ;;  %v4296_v53 = vrot.slane %v3372_v57, 3  ;;  %v4295_v9 = vrot.slane %v3301_v29, 3 }
 0x4ba   : > { %v13654_v23 = vrot.slane %v17075_v2, %v12936_v15  ;;  %v13657_v27 = vrot.slane %v4009_v24, %v12936_v15  ;;  %4280 = vrot.lane.b32.xlu0 %v4279_v32, %s11467_s23  ;;  %v2719_v6 = vpop.permute.xlu0 %2718  ;;  %v2790_v62 = vpop.permute.xlu1 %2789  ;;  %v4350_v1 = vrot.slane %v17076_v35, 4  ;;  %v4351_v60 = vrot.slane %v3364_v8, 4 }
 0x4bb   : > { %v3302_v56 = vcombine.low %v3251_v46, %v3283_v51  ;;  %v4027_v3 = vcombine.low %v2719_v6, %v2790_v62  ;;  %v4314_v44 = vrot.slane %v3355_v11, 3  ;;  %v4297_v37 = vsel %vm4262_vm13, %v4295_v9, %v4296_v53 }
 0x4bc   : > { %v4017_v30 = vcombine.low %v13654_v23, %v13657_v27  ;;  %v3373_v58 = vcombine.high %v3355_v11, %v17070_v43  ;;  %v4018_v16 = vcombine.high %v13654_v23, %v13657_v27  ;;  %v13673_v7 = vsel %vm4349_vm14, %v4350_v1, %v4351_v60 }
 0x4bd   : > { %4307 = vrot.lane.b32.xlu1 %v13583_v14, %s11468_s24  ;;  %v4019_v5 = vcombine.low %v2698_v63, %v2769_v49  ;;  %v3285_v21 = vcombine.high %v13431_v36, %v13428_v47  ;;  %v4313_v59 = vrot.slane %v3302_v56, 3  ;;  %v3303_v13 = vcombine.high %v3251_v46, %v3283_v51 }
 0x4be   : > { %4298 = vrot.lane.b32.xlu0 %v4297_v37, %s11468_s24  ;;  %v4048_v31 = vpop.permute.xlu0 %4047  ;;  %v3528_v14 = vcombine.low %v13462_v0, %v13499_v61  ;;  %v3512_v42 = vcombine.low %v13465_v17, %v13502_v54  ;;  %v4034_v29 = vrot.slane %v4027_v3, %v12733_v10  ;;  %v3357_v19 = vcombine.high %v13578_v50, %v13604_v38  ;;  %v17079_v37 = vld [vmem:[#allocation21_spill] sm:$0xff] }
 0x4bf   : > { %v4315_v63 = vsel %vm4262_vm13, %v4313_v59, %v4314_v44  ;;  %v4332_v20 = vrot.slane %v3373_v58, 3  ;;  %v3374_v47 = vcombine.high %v3364_v8, %v17070_v43  ;;  %v4026_v36 = vrot.slane %v4019_v5, %v12733_v10 }
 0x4c0   : > { %v3299_v17 = vrot.slane %v3285_v21, %v12936_v15  ;;  %v4331_v61 = vrot.slane %v3303_v13, 3  ;;  %v3305_v54 = vcombine.high %v13443_v25, %v13440_v33  ;;  %v17077_v50 = vcombine.high %v13355_v39, %v13363_v55 }
 0x4c1   : > { %4325 = vrot.lane.b32.xlu1 %v13597_v28, %s11470_s28  ;;  %v3536_v38 = vrot.slane %v3528_v14, %v12733_v10  ;;  %v3520_v51 = vrot.slane %v3512_v42, %v12733_v10  ;;  %v4035_v8 = vcombine.low %v4026_v36, %v4034_v29  ;;  %v3371_v57 = vrot.slane %v3357_v19, %v12936_v15  ;;  %v4134_v42 = vpop.permute.xlu1 %4133  ;;  %v17080_v36 = vld [vmem:[#allocation19_spill] sm:$0xff] }
 0x4c2   : > { %4316 = vrot.lane.b32.xlu0 %v4315_v63, %s11470_s28  ;;  %v4058_v0 = vpop.permute.xlu0 %4057  ;;  %v3267_v28 = vrot.slane %v17077_v50, %v12936_v15  ;;  %v17078_v22 = vcombine.low %v12971_v40, %v12954_v34  ;;  %v4333_v33 = vsel %vm4262_vm13, %v4331_v61, %v4332_v20  ;;  %v4365_v25 = vrot.slane %v3374_v47, 4 }
 0x4c3   : > { %v4364_v11 = vrot.slane %v3305_v54, 4  ;;  %v3544_v10 = vcombine.low %v3520_v51, %v3536_v38  ;;  %v4042_v32 = vrot.slane %v4035_v8, %v12936_v15  ;;  %v4383_v40 = vrot.slane %v3371_v57, 4 }
 0x4c4   : > { %v4050_v46 = vadd.f32 %v4048_v31, %v17078_v22  ;;  %v3306_v24 = vcombine.low %v3267_v28, %v3299_v17  ;;  %v3307_v49 = vcombine.high %v3267_v28, %v3299_v17  ;;  %v4409_v3 = vrot.slane %v4017_v30, 4 }
 0x4c5   : > { %4343 = vrot.lane.b32.xlu1 %v13586_v48, %s11465_s2  ;;  %v4366_v34 = vsel %vm4349_vm14, %v4364_v11, %v4365_v25  ;;  %v3375_v48 = vcombine.high %v3371_v57, %v17070_v43  ;;  %v4410_v62 = vrot.slane %v4042_v32, 4  ;;  %v4043_v9 = vcombine.high %v4042_v32, %v17070_v43  ;;  %v4170_v47 = vpop.permute.xlu1 %4169  ;;  %v17081_v57 = vld [vmem:[#allocation20_spill] sm:$0xff] }
 0x4c6   : > { %4334 = vrot.lane.b32.xlu0 %v4333_v33, %s11465_s2  ;;  %v4068_v39 = vpop.permute.xlu0 %4067  ;;  %v4060_v55 = vadd.f32 %v4058_v0, %v4050_v46  ;;  %v4382_v56 = vrot.slane %v3306_v24, 4  ;;  %v3559_v60 = vrot.slane %v3544_v10, %v12936_v15  ;;  %v4400_v44 = vrot.slane %v3307_v49, 4 }
 0x4c7   : > { %v4401_v1 = vrot.slane %v3375_v48, 4  ;;  %v3504_v58 = vcombine.low %v17079_v37, %v13479_v18  ;;  %v4411_v5 = vsel %vm4349_vm14, %v4409_v3, %v4410_v62  ;;  %v4428_v43 = vrot.slane %v4043_v9, 4 }
 0x4c8   : > { %v4070_v53 = vadd.f32 %v4068_v39, %v4060_v55  ;;  %v4384_v35 = vsel %vm4349_vm14, %v4382_v56, %v4383_v40  ;;  %v4419_v31 = vrot.slane %v3559_v60, 4  ;;  %v4427_v15 = vrot.slane %v4018_v16, 4 }
 0x4c9   : > { %4376 = vrot.lane.b32.xlu1 %v13589_v52, %s11467_s23  ;;  %v4203_v17 = vpop.permute.xlu1 %4202  ;;  %v17082_v55 = vcombine.high %v17079_v37, %v13479_v18 }
 0x4ca   : > { %4367 = vrot.lane.b32.xlu0 %v4366_v34, %s11467_s23  ;;  %v4078_v2 = vpop.permute.xlu0 %4077  ;;  %v4429_v30 = vsel %vm4349_vm14, %v4427_v15, %v4428_v43 }
 0x4cb   : > { %v4080_v6 = vadd.f32 %v4078_v2, %v4070_v53 }
 0x4cd   : > { %4394 = vrot.lane.b32.xlu1 %v13622_v45, %s11468_s24  ;;  %v4093_v52 = vadd.f32 %v13203_v4, %v4080_v6  ;;  %v4402_v45 = vsel %vm4349_vm14, %v4400_v44, %v4401_v1  ;;  %v4418_v4 = vrot.slane %v3504_v58, 4  ;;  %v4239_v51 = vpop.permute.xlu1 %4238 }
 0x4ce   : > { %4385 = vrot.lane.b32.xlu0 %v4384_v35, %s11468_s24  ;;  %v4107_v59 = vpop.permute.xlu0 %4106  ;;  %v17083_v35 = vld [vmem:[#allocation18_spill] sm:$0xff] }
 0x4cf   : > { %v4420_v21 = vsel %vm4349_vm14, %v4418_v4, %v4419_v31  ;;  %v4109_v19 = vadd.f32 %v4107_v59, %v4093_v52 }
 0x4d1   : > { %4412 = vrot.lane.b32.xlu1 %v4411_v5, %s11470_s28  ;;  %v4152_v46 = vpop.permute.xlu1 %4151 }
 0x4d2   : > { %4403 = vrot.lane.b32.xlu0 %v4402_v45, %s11470_s28  ;;  %v4125_v13 = vpop.permute.xlu0 %4124 }
 0x4d3   : > { %v4127_v20 = vadd.f32 %v4125_v13, %v4109_v19 }
 0x4d5   : > { %4430 = vrot.lane.b32.xlu1 %v4429_v30, %s11465_s2  ;;  %v4221_v33 = vpop.permute.xlu1 %4220 }
 0x4d6   : > { %4421 = vrot.lane.b32.xlu0 %v4420_v21, %s11465_s2 }
 0x4ed   : > { %v4143_v14 = vpop.permute.xlu0 %4142 }
 0x4ee   : > { %v4145_v23 = vadd.f32 %v4143_v14, %v4127_v20 }
 0x4f1   : > { %v4212_v29 = vpop.permute.xlu0 %4211 }
 0x4f5   : > { %v4248_v63 = vpop.permute.xlu0 %4247 }
 0x4f9   : > { %v4161_v27 = vpop.permute.xlu0 %4160 }
 0x4fa   : > { %v4163_v16 = vadd.f32 %v4161_v27, %v4145_v23 }
 0x4fc   : > { %v4180_v0 = vadd.f32 %v17080_v36, %v4163_v16 }
 0x4fd   : > { %v4194_v61 = vpop.permute.xlu0 %4193 }
 0x4fe   : > { %v4196_v54 = vadd.f32 %v4194_v61, %v4180_v0 }
 0x500   : > { %v4214_v50 = vadd.f32 %v4212_v29, %v4196_v54 }
 0x501   : > { %v4230_v28 = vpop.permute.xlu0 %4229 }
 0x502   : > { %v4232_v38 = vadd.f32 %v4230_v28, %v4214_v50  ;;  %v11028_v50 = vld [vmem:[%s4435_s26 + $0x8] sm:$0xff] }
 0x504   : > { %v4250_v8 = vadd.f32 %v4248_v63, %v4232_v38  ;;  %v4436_v38 = vld [vmem:[%s4435_s26] sm:$0xff] }
 0x506   : > { %v4267_v22 = vadd.f32 %v17081_v57, %v4250_v8 }
 0x513   : > { %v4053_v25 = vpop.permute.xlu1 %4052 }
 0x514   : > { %v4055_v11 = vadd.f32 %v4053_v25, %v17082_v55 }
 0x517   : > { %v4063_v39 = vpop.permute.xlu1 %4062 }
 0x518   : > { %v4065_v10 = vadd.f32 %v4063_v39, %v4055_v11 }
 0x51b   : > { %v4073_v24 = vpop.permute.xlu1 %4072 }
 0x51c   : > { %v4075_v32 = vadd.f32 %v4073_v24, %v4065_v10 }
 0x51f   : > { %v4083_v53 = vpop.permute.xlu1 %4082 }
 0x520   : > { %v4085_v34 = vadd.f32 %v4083_v53, %v4075_v32 }
 0x522   : > { %v4100_v40 = vadd.f32 %v13600_v12, %v4085_v34 }
 0x523   : > { %v4116_v48 = vpop.permute.xlu1 %4115 }
 0x524   : > { %v4118_v2 = vadd.f32 %v4116_v48, %v4100_v40 }
 0x526   : > { %v4136_v6 = vadd.f32 %v4134_v42, %v4118_v2 }
 0x527   : > { %v4257_v56 = vpop.permute.xlu1 %4256 }
 0x528   : > { %v4154_v49 = vadd.f32 %v4152_v46, %v4136_v6 }
 0x52a   : > { %v4172_v62 = vadd.f32 %v4170_v47, %v4154_v49 }
 0x52b   : > { %v4290_v9 = vpop.permute.xlu1 %4289 }
 0x52c   : > { %v4187_v52 = vadd.f32 %v17083_v35, %v4172_v62  ;;  %v4281_v1 = vpop.permute.xlu0 %4280 }
 0x52d   : > { %v4283_v58 = vadd.f32 %v4281_v1, %v4267_v22 }
 0x52e   : > { %v4205_v60 = vadd.f32 %v4203_v17, %v4187_v52 }
 0x52f   : > { %v4308_v18 = vpop.permute.xlu1 %4307 }
 0x530   : > { %v4223_v3 = vadd.f32 %v4221_v33, %v4205_v60  ;;  %v4299_v44 = vpop.permute.xlu0 %4298 }
 0x531   : > { %v4301_v12 = vadd.f32 %v4299_v44, %v4283_v58 }
 0x532   : > { %v4241_v37 = vadd.f32 %v4239_v51, %v4223_v3 }
 0x533   : > { %v4326_v5 = vpop.permute.xlu1 %4325 }
 0x534   : > { %v4259_v43 = vadd.f32 %v4257_v56, %v4241_v37  ;;  %v4317_v45 = vpop.permute.xlu0 %4316 }
 0x535   : > { %v4319_v15 = vadd.f32 %v4317_v45, %v4301_v12 }
 0x536   : > { %v4274_v31 = vadd.f32 %v13625_v41, %v4259_v43 }
 0x537   : > { %v4344_v4 = vpop.permute.xlu1 %4343 }
 0x538   : > { %v4292_v30 = vadd.f32 %v4290_v9, %v4274_v31  ;;  %v4335_v21 = vpop.permute.xlu0 %4334 }
 0x539   : > { %v4337_v59 = vadd.f32 %v4335_v21, %v4319_v15 }
 0x53a   : > { %v4310_v13 = vadd.f32 %v4308_v18, %v4292_v30 }
 0x53b   : > { %v4377_v14 = vpop.permute.xlu1 %4376  ;;  %v4354_v42 = vadd.f32 %v13673_v7, %v4337_v59 }
 0x53c   : > { %v4328_v29 = vadd.f32 %v4326_v5, %v4310_v13  ;;  %v4368_v19 = vpop.permute.xlu0 %4367 }
 0x53d   : > { %v4370_v41 = vadd.f32 %v4368_v19, %v4354_v42 }
 0x53e   : > { %v4346_v63 = vadd.f32 %v4344_v4, %v4328_v29 }
 0x53f   : > { %v4395_v20 = vpop.permute.xlu1 %4394 }
 0x540   : > { %v4361_v47 = vadd.f32 %v13639_v26, %v4346_v63  ;;  %v4386_v23 = vpop.permute.xlu0 %4385 }
 0x541   : > { %v4388_v17 = vadd.f32 %v4386_v23, %v4370_v41 }
 0x542   : > { %v4379_v27 = vadd.f32 %v4377_v14, %v4361_v47 }
 0x543   : > { %v4413_v16 = vpop.permute.xlu1 %4412 }
 0x544   : > { %v4397_v36 = vadd.f32 %v4395_v20, %v4379_v27  ;;  %v4404_v0 = vpop.permute.xlu0 %4403 }
 0x545   : > { %v4406_v54 = vadd.f32 %v4404_v0, %v4388_v17 }
 0x546   : > { %v4415_v61 = vadd.f32 %v4413_v16, %v4397_v36 }
 0x547   : > { %v4431_v28 = vpop.permute.xlu1 %4430 }
 0x548   : > { %v4433_v7 = vadd.f32 %v4431_v28, %v4415_v61  ;;  %v4422_v51 = vpop.permute.xlu0 %4421 }
 0x549   : > { %v4424_v8 = vadd.f32 %v4422_v51, %v4406_v54 }
 0x54a   : > { %v4442_v57 = vadd.f32 %v11028_v50, %v4433_v7 }
 0x54b   : > { %v4437_v22 = vadd.f32 %v4436_v38, %v4424_v8 }
 0x54c   : > { %11029 = vst.msk [vmem:[%s4435_s26 + $0x8] sm:$0xff] %vm2762_vm10, %v4442_v57 }
 0x54d   : > { %4438 = vst.msk [vmem:[%s4435_s26] sm:$0xff] %vm2762_vm10, %v4437_v22 }
 0x54e PF: > { %s13749_s12 = sadd.s32 4294967294, %s11416_s21 }
 0x54f   : > { %p4445_p5 = scmp.ge.s32.totalorder %s13749_s12, 0  ;;  %p4446_p6 = scmp.lt.s32.totalorder %s13749_s12, 8 }
 0x551   : > { %p4447_p7 = pnand %p4446_p6, %p4445_p5 }
 0x553   : > { %4450 = sbr.rel (%p4447_p7) target bundleno = 2002 (0x7d2), region = 52 }
 0x558   : > { %v4481_v26 = vlaneseq  ;;  %v11471_v46 = vmov 1983009808   ;;  %v11472_v25 = vmov 0   ;;  %vm4499_vm15 = vcmask 1041408   ;;  %v17084_v24 = vld [vmem:[#allocation13_spill] sm:$0xff]  ;;  %v11309_v34 = vld [vmem:[%s17000_s1 + $0x38] sm:$0xff]  }
 0x559   : > { %v4479_v33 = vunpack.c.l.s4 %v11471_v46  ;;  %4538 = vmatprep.mubr.bf16.mxu0 %v11472_v25  ;;  %4558 = vmatprep.mubr.bf16.mxu1 %v11472_v25  ;;  %v11310_v40 = vld [vmem:[%s17000_s1 + $0x48] sm:$0xff]   ;;  %vm4486_vm0 = vcmask 31744   ;;  %v11311_v48 = vld [vmem:[%s17000_s1 + $0x40] sm:$0xff]   ;;  %v11312_v2 = vld [vmem:[%s17000_s1 + $0x50] ss:$0 sps:$4 sm:$0x11]  }
 0x55a   : > { %v13753_v39 = vshrl.u32 %v4481_v26, 7  ;;  %s11473_s2 = smov 104   ;;  %s11474_s23 = smov 116   ;;  %v11484_v42 = vmov 1934713408   ;;  %vm4808_vm1 = vcmask 64512  }
 0x55b   : > { %v4480_v55 = vunpack.c.0.s8 %v4479_v33  ;;  %s11475_s24 = smov 80   ;;  %s11476_s28 = smov 92   ;;  %v4911_v29 = vunpack.c.l.s4 %v11484_v42  ;;  %vm6134_vm2 = vcmask 1046528   ;;  %vm6221_vm3 = vcmask 1045504  }
 0x55c   : > { %s11477_s17 = smov 56   ;;  %s11478_s26 = smov 68   ;;  %vm6308_vm4 = vcmask 1044480   ;;  %vm6395_vm5 = vcmask 1043456  }
 0x55d   : > { %v13756_v11 = vsub.s32 %v4480_v55, %v13753_v39  ;;  %s11479_s30 = smov 44   ;;  %s11480_s8 = smov 8   ;;  %v4912_v36 = vunpack.c.0.s8 %v4911_v29 }
 0x55e   : > { %s11481_s9 = smov 20   ;;  %s11482_s11 = smov 32  }
 0x55f   : > { %v4484_v10 = vrot.slane %v17084_v24, %v13756_v11  ;;  %s11483_s10 = smov 124   ;;  %v13959_v55 = vsub.s32 %v4912_v36, %v13753_v39  ;;  %s11485_s15 = smov 127  }
 0x560   : > { %s11486_s16 = smov 126   ;;  %s11488_s27 = smov 125  }
 0x561   : > { %v4485_v32 = vcombine.high %v4484_v10, %v4484_v10  ;;  %v4501_v53 = vsel %vm4499_vm15, %v4484_v10, 0 }
 0x563   : > { %11042 = vmatprep.subr.msk.bf16.mxu0 %vm4499_vm15, %v4485_v32  ;;  %11112 = vmatprep.subr.msk.bf16.mxu1 %vm4499_vm15, %v4485_v32 }
 0x564   : > { %4521 = vmatpush1.bf16.msra.mxu0 %v4501_v53  ;;  %11113 = vmatpush1.bf16.msra.mxu1 %v4501_v53 }
 0x567   : > { %11043 = vmatmul.mubr.msk.bf16.vlgmr.msra.gmra.mxu0 %vm4486_vm0, %v11309_v34  ;;  %11045 = vmatmul.mubr.msk.bf16.vlgmr.msra.gmra.mxu1 %vm4486_vm0, %v11310_v40 }
 0x568   : > { %4548 = vmatprep.mubr.bf16.mxu0 %v11472_v25  ;;  %4568 = vmatprep.mubr.bf16.mxu1 %v11472_v25 }
 0x56f   : > { %11044 = vmatmul.mubr.msk.bf16.gmra.mxu0 %vm4486_vm0, %v11311_v48  ;;  %11046 = vmatmul.mubr.msk.bf16.gmra.mxu1 %vm4486_vm0, %v11312_v2 }
 0x627   : > { %v13772_v6 = vpop.f32.mrf.mxu0  ;;  %v13774_v56 = vpop.f32.mrf.mxu1 }
 0x628   : > { %4605 = vrot.lane.b32.xlu1 %v13772_v6, %s11473_s2  ;;  %4584 = vrot.lane.b32.xlu0 %v13772_v6, %s11474_s23 }
 0x629   : > { %v4562_v49 = vpop.f32.mrf.mxu1  ;;  %v4542_v18 = vpop.f32.mrf.mxu0 }
 0x62b   : > { %v13780_v62 = vpop.f32.mrf.mxu1  ;;  %v13828_v3 = vpop.f32.mrf.mxu0 }
 0x62c   : > { %4613 = vrot.lane.b32.xlu1 %v13774_v56, %s11473_s2  ;;  %4592 = vrot.lane.b32.xlu0 %v13774_v56, %s11474_s23 }
 0x62d   : > { %v13786_v9 = vpop.f32.mrf.mxu1  ;;  %v4546_v44 = vpop.f32.mrf.mxu0 }
 0x62f   : > { %v13788_v35 = vpop.f32.mrf.mxu1  ;;  %v13869_v37 = vpop.f32.mrf.mxu0 }
 0x630   : > { %4647 = vrot.lane.b32.xlu1 %v13772_v6, %s11475_s24  ;;  %4626 = vrot.lane.b32.xlu0 %v13772_v6, %s11476_s28 }
 0x631   : > { %v13794_v52 = vpop.f32.mrf.mxu1  ;;  %v13894_v58 = vpop.f32.mrf.mxu0 }
 0x633   : > { %v4574_v1 = vpop.f32.mrf.mxu1  ;;  %v13900_v45 = vpop.f32.mrf.mxu0 }
 0x634   : > { %4655 = vrot.lane.b32.xlu1 %v13774_v56, %s11475_s24  ;;  %4634 = vrot.lane.b32.xlu0 %v13774_v56, %s11476_s28 }
 0x635   : > { %v4575_v60 = vpop.f32.mrf.mxu1  ;;  %v4556_v0 = vpop.f32.mrf.mxu0 }
 0x638   : > { %4689 = vrot.lane.b32.xlu1 %v13772_v6, %s11477_s17  ;;  %4668 = vrot.lane.b32.xlu0 %v13772_v6, %s11478_s26 }
 0x63c   : > { %4710 = vrot.lane.b32.xlu1 %v13772_v6, %s11479_s30  ;;  %4676 = vrot.lane.b32.xlu0 %v13774_v56, %s11478_s26 }
 0x640   : > { %4718 = vrot.lane.b32.xlu1 %v13774_v56, %s11479_s30  ;;  %4780 = vrot.lane.b32.xlu0 %v13772_v6, %s11480_s8 }
 0x644   : > { %4752 = vrot.lane.b32.xlu1 %v13772_v6, %s11481_s9  ;;  %4697 = vrot.lane.b32.xlu0 %v13774_v56, %s11477_s17 }
 0x648   : > { %4796 = vrot.lane.b32.xlu1 %v13774_v56, %s11480_s8  ;;  %4731 = vrot.lane.b32.xlu0 %v13772_v6, %s11482_s11 }
 0x64c   : > { %4739 = vrot.lane.b32.xlu1 %v13774_v56, %s11482_s11  ;;  %4760 = vrot.lane.b32.xlu0 %v13774_v56, %s11481_s9 }
 0x650   : > { %4823 = vrot.lane.b32.xlu0 %v4542_v18, %s11483_s10  ;;  %4782 = vrot.lane.b32.xlu1 %v4542_v18, %s11480_s8 }
 0x654   : > { %4798 = vrot.lane.b32.xlu0 %v4562_v49, %s11480_s8  ;;  %4831 = vrot.lane.b32.xlu1 %v4562_v49, %s11483_s10 }
 0x658   : > { %4594 = vrot.lane.b32.xlu1 %v13780_v62, %s11474_s23  ;;  %4586 = vrot.lane.b32.xlu0 %v13828_v3, %s11474_s23 }
 0x65c   : > { %4628 = vrot.lane.b32.xlu1 %v13828_v3, %s11476_s28  ;;  %4607 = vrot.lane.b32.xlu0 %v13828_v3, %s11473_s2 }
 0x660   : > { %4636 = vrot.lane.b32.xlu1 %v13780_v62, %s11476_s28  ;;  %4615 = vrot.lane.b32.xlu0 %v13780_v62, %s11473_s2 }
 0x664   : > { %4670 = vrot.lane.b32.xlu1 %v13828_v3, %s11478_s26  ;;  %4649 = vrot.lane.b32.xlu0 %v13828_v3, %s11475_s24 }
 0x668   : > { %4678 = vrot.lane.b32.xlu1 %v13780_v62, %s11478_s26  ;;  %4657 = vrot.lane.b32.xlu0 %v13780_v62, %s11475_s24 }
 0x66c   : > { %4691 = vrot.lane.b32.xlu1 %v13828_v3, %s11477_s17  ;;  %4712 = vrot.lane.b32.xlu0 %v13828_v3, %s11479_s30 }
 0x670   : > { %4754 = vrot.lane.b32.xlu1 %v13828_v3, %s11481_s9  ;;  %4784 = vrot.lane.b32.xlu0 %v13828_v3, %s11480_s8 }
 0x674   : > { %4800 = vrot.lane.b32.xlu1 %v13780_v62, %s11480_s8  ;;  %4733 = vrot.lane.b32.xlu0 %v13828_v3, %s11482_s11 }
 0x678   : > { %4741 = vrot.lane.b32.xlu1 %v13780_v62, %s11482_s11  ;;  %4699 = vrot.lane.b32.xlu0 %v13780_v62, %s11477_s17 }
 0x67c   : > { %4720 = vrot.lane.b32.xlu0 %v13780_v62, %s11479_s30  ;;  %4786 = vrot.lane.b32.xlu1 %v4546_v44, %s11480_s8 }
 0x680   : > { %4825 = vrot.lane.b32.xlu0 %v4546_v44, %s11483_s10  ;;  %4588 = vrot.lane.b32.xlu1 %v13869_v37, %s11474_s23 }
 0x684   : > { %4802 = vrot.lane.b32.xlu0 %v13786_v9, %s11480_s8  ;;  %4609 = vrot.lane.b32.xlu1 %v13869_v37, %s11473_s2 }
 0x688   : > { %4596 = vrot.lane.b32.xlu0 %v13788_v35, %s11474_s23  ;;  %4617 = vrot.lane.b32.xlu1 %v13788_v35, %s11473_s2 }
 0x68c   : > { %4630 = vrot.lane.b32.xlu0 %v13869_v37, %s11476_s28  ;;  %4651 = vrot.lane.b32.xlu1 %v13869_v37, %s11475_s24 }
 0x690   : > { %4638 = vrot.lane.b32.xlu0 %v13788_v35, %s11476_s28  ;;  %4659 = vrot.lane.b32.xlu1 %v13788_v35, %s11475_s24 }
 0x694   : > { %4672 = vrot.lane.b32.xlu0 %v13869_v37, %s11478_s26  ;;  %4693 = vrot.lane.b32.xlu1 %v13869_v37, %s11477_s17 }
 0x698   : > { %4680 = vrot.lane.b32.xlu0 %v13788_v35, %s11478_s26  ;;  %4714 = vrot.lane.b32.xlu1 %v13869_v37, %s11479_s30 }
 0x69a   : > { %v4606_v5 = vpop.permute.xlu1 %4605  ;;  %v4585_v43 = vpop.permute.xlu0 %4584 }
 0x69b   : > { %v4844_v63 = vcombine.low %v13772_v6, %v4606_v5  ;;  %v4845_v20 = vcombine.high %v13772_v6, %v4606_v5 }
 0x69c   : > { %4611 = vrot.lane.b32.xlu0 %v13900_v45, %s11473_s2  ;;  %4590 = vrot.lane.b32.xlu1 %v13900_v45, %s11474_s23  ;;  %s11047_s2 = sshll.u32 %s13749_s12, 4 }
 0x69d   : > { %v13935_v50 = vrot.slane %v4844_v63, %v13756_v11  ;;  %v13938_v28 = vrot.slane %v4845_v20, %v13756_v11  ;;  %s6481_s23 = scalar_lea.vmem %s11668_s14, %s11047_s2 [#allocation5] }
 0x69e   : > { %v13906_v12 = vpop.permute.xlu1 %4613  ;;  %v4593_v31 = vpop.permute.xlu0 %4592 }
 0x69f   : > { %v5607_v22 = vcombine.low %v13774_v56, %v13906_v12  ;;  %v5608_v53 = vcombine.high %v13774_v56, %v13906_v12 }
 0x6a0   : > { %4653 = vrot.lane.b32.xlu0 %v13900_v45, %s11475_s24  ;;  %4632 = vrot.lane.b32.xlu1 %v13900_v45, %s11476_s28 }
 0x6a1   : > { %v13983_v6 = vrot.slane %v5607_v22, %v13756_v11  ;;  %v13997_v5 = vrot.slane %v5608_v53, %v13756_v11 }
 0x6a2   : > { %v4648_v15 = vpop.permute.xlu1 %4647  ;;  %v4627_v4 = vpop.permute.xlu0 %4626 }
 0x6a3   : > { %v4861_v59 = vcombine.high %v4585_v43, %v4627_v4  ;;  %v4860_v19 = vcombine.low %v4585_v43, %v4627_v4 }
 0x6a4   : > { %4695 = vrot.lane.b32.xlu0 %v13900_v45, %s11477_s17  ;;  %4674 = vrot.lane.b32.xlu1 %v13900_v45, %s11478_s26 }
 0x6a5   : > { %v13929_v27 = vrot.slane %v4861_v59, %v13756_v11  ;;  %v13932_v17 = vrot.slane %v4860_v19, %v13756_v11 }
 0x6a6   : > { %v13916_v30 = vpop.permute.xlu1 %4655  ;;  %v4635_v21 = vpop.permute.xlu0 %4634 }
 0x6a7   : > { %v5623_v7 = vcombine.low %v4593_v31, %v4635_v21  ;;  %v4924_v26 = vcombine.low %v13938_v28, %v13929_v27  ;;  %v5624_v46 = vcombine.high %v4593_v31, %v4635_v21  ;;  %v4908_v24 = vcombine.low %v13935_v50, %v13932_v17 }
 0x6a8   : > { %4716 = vrot.lane.b32.xlu0 %v13900_v45, %s11479_s30  ;;  %4792 = vrot.lane.b32.xlu1 %v13900_v45, %s11480_s8 }
 0x6a9   : > { %v13970_v34 = vrot.slane %v5623_v7, %v13756_v11  ;;  %v13986_v56 = vrot.slane %v5624_v46, %v13756_v11  ;;  %v13989_v60 = vrot.slane %v4924_v26, %v13959_v55  ;;  %v13994_v44 = vrot.slane %v4908_v24, %v13959_v55 }
 0x6aa   : > { %v4690_v13 = vpop.permute.xlu1 %4689  ;;  %v4669_v14 = vpop.permute.xlu0 %4668 }
 0x6ab   : > { %v4876_v47 = vcombine.low %v4648_v15, %v4690_v13  ;;  %v4877_v23 = vcombine.high %v4648_v15, %v4690_v13  ;;  %v5672_v43 = vcombine.high %v13983_v6, %v13970_v34  ;;  %v5688_v59 = vcombine.high %v13997_v5, %v13986_v56 }
 0x6ac   : > { %4758 = vrot.lane.b32.xlu0 %v13900_v45, %s11481_s9  ;;  %4737 = vrot.lane.b32.xlu1 %v13900_v45, %s11482_s11  ;;  %v5671_v46 = vcombine.low %v13983_v6, %v13970_v34 }
 0x6ad   : > { %v13942_v38 = vrot.slane %v4876_v47, %v13756_v11  ;;  %v13945_v51 = vrot.slane %v4877_v23, %v13756_v11  ;;  %v14020_v19 = vrot.slane %v5672_v43, %v13959_v55 }
 0x6ae   : > { %v4711_v41 = vpop.permute.xlu1 %4710  ;;  %v4677_v16 = vpop.permute.xlu0 %4676 }
 0x6af   : > { %v4892_v61 = vcombine.low %v4669_v14, %v4711_v41  ;;  %v4893_v54 = vcombine.high %v4669_v14, %v4711_v41  ;;  %v14029_v41 = vrot.slane %v5688_v59, %v13959_v55 }
 0x6b0   : > { %4794 = vrot.lane.b32.xlu0 %v4556_v0, %s11480_s8  ;;  %4829 = vrot.lane.b32.xlu1 %v4556_v0, %s11483_s10 }
 0x6b1   : > { %v13948_v8 = vrot.slane %v4892_v61, %v13756_v11  ;;  %v13951_v57 = vrot.slane %v4893_v54, %v13756_v11 }
 0x6b2   : > { %v4719_v33 = vpop.permute.xlu1 %4718  ;;  %v4781_v25 = vpop.permute.xlu0 %4780 }
 0x6b3   : > { %v4940_v10 = vcombine.low %v13942_v38, %v13948_v8  ;;  %v4956_v32 = vcombine.low %v13945_v51, %v13951_v57  ;;  %v5655_v40 = vcombine.low %v4677_v16, %v4719_v33  ;;  %v5656_v39 = vcombine.high %v4677_v16, %v4719_v33 }
 0x6b4   : > { %4762 = vrot.lane.b32.xlu0 %v13780_v62, %s11481_s9  ;;  %4833 = vrot.lane.b32.xlu1 %v13786_v9, %s11483_s10  ;;  %v4941_v24 = vcombine.high %v13942_v38, %v13948_v8 }
 0x6b5   : > { %v13977_v48 = vrot.slane %v4940_v10, %v13959_v55  ;;  %v13980_v2 = vrot.slane %v4956_v32, %v13959_v55  ;;  %v5663_v12 = vrot.slane %v5655_v40, %v13756_v11  ;;  %v5670_v15 = vrot.slane %v5656_v39, %v13756_v11 }
 0x6b6   : > { %v4753_v49 = vpop.permute.xlu1 %4752  ;;  %v4698_v1 = vpop.permute.xlu0 %4697  ;;  %v4957_v10 = vcombine.high %v13945_v51, %v13951_v57  ;;  %v5687_v51 = vcombine.low %v13997_v5, %v13986_v56  ;;  %v14084_v56 = vrot.slane %v4941_v24, %v13959_v55 }
 0x6b7   : > { %v5639_v18 = vcombine.low %v13916_v30, %v4698_v1  ;;  %v5640_v9 = vcombine.high %v13916_v30, %v4698_v1  ;;  %v4977_v31 = vcombine.high %v13989_v60, %v13980_v2  ;;  %v4976_v24 = vcombine.low %v13989_v60, %v13980_v2 }
 0x6b8   : > { %4788 = vrot.lane.b32.xlu0 %v13869_v37, %s11480_s8  ;;  %4790 = vrot.lane.b32.xlu1 %v13894_v58, %s11480_s8  ;;  %v14087_v5 = vrot.slane %v4957_v10, %v13959_v55 }
 0x6b9   : > { %v5647_v4 = vrot.slane %v5639_v18, %v13756_v11  ;;  %v5654_v30 = vrot.slane %v5640_v9, %v13756_v11 }
 0x6ba   : > { %v4797_v13 = vpop.permute.xlu1 %4796  ;;  %v4732_v14 = vpop.permute.xlu0 %4731 }
 0x6bb   : > { %v5704_v42 = vcombine.high %v5647_v4, %v5663_v12  ;;  %v5720_v29 = vcombine.high %v5654_v30, %v5670_v15  ;;  %v5703_v22 = vcombine.low %v5647_v4, %v5663_v12  ;;  %v5719_v53 = vcombine.low %v5654_v30, %v5670_v15 }
 0x6bc   : > { %4735 = vrot.lane.b32.xlu0 %v13869_v37, %s11482_s11  ;;  %4756 = vrot.lane.b32.xlu1 %v13869_v37, %s11481_s9 }
 0x6bd   : > { %v14023_v63 = vrot.slane %v5704_v42, %v13959_v55  ;;  %v14026_v20 = vrot.slane %v5720_v29, %v13959_v55  ;;  %v14066_v38 = vrot.slane %v5703_v22, %v13959_v55  ;;  %v14093_v15 = vrot.slane %v5719_v53, %v13959_v55 }
 0x6be   : > { %v4740_v47 = vpop.permute.xlu1 %4739  ;;  %v4761_v23 = vpop.permute.xlu0 %4760  ;;  %v4973_v42 = vcombine.high %v13994_v44, %v13977_v48  ;;  %v14108_v29 = vrot.slane %v5687_v51, %v13959_v55 }
 0x6bf   : > { %v5738_v16 = vcombine.high %v14020_v19, %v14023_v63  ;;  %v5742_v36 = vcombine.high %v14029_v41, %v14026_v20  ;;  %v5737_v22 = vcombine.low %v14020_v19, %v14023_v63 }
 0x6c0   : > { %4827 = vrot.lane.b32.xlu0 %v13894_v58, %s11483_s10  ;;  %4701 = vrot.lane.b32.xlu1 %v13788_v35, %s11477_s17  ;;  %v4909_v58 = vcombine.high %v13935_v50, %v13932_v17 }
 0x6c2   : > { %v4824_v0 = vpop.permute.xlu0 %4823  ;;  %v4783_v61 = vpop.permute.xlu1 %4782  ;;  %v14090_v12 = vrot.slane %v4909_v58, %v13959_v55  ;;  %v5739_v58 = vcombine.low %v14108_v29, %v14093_v15 }
 0x6c3   : > { %v4988_v54 = vcombine.high %v4753_v49, %v4824_v0  ;;  %v4809_v7 = vsel %vm4808_vm1, %v4781_v25, %v4783_v61  ;;  %v4925_v25 = vcombine.high %v13938_v28, %v13929_v27  ;;  %v14077_v49 = vrot.slane %v5671_v46, %v13959_v55 }
 0x6c4   : > { %v4980_v26 = vcombine.high %v4732_v14, %v4809_v7  ;;  %4722 = vrot.lane.b32.xlu0 %v13788_v35, %s11479_s30  ;;  %4804 = vrot.lane.b32.xlu1 %v13788_v35, %s11480_s8  ;;  %v4974_v61 = vcombine.low %v14090_v12, %v14084_v56 }
 0x6c5   : > { %v14047_v33 = vrot.slane %v4988_v54, %v13756_v11  ;;  %v5735_v59 = vcombine.low %v14077_v49, %v14066_v38 }
 0x6c6   : > { %v14058_v17 = vrot.slane %v4980_v26, %v13756_v11  ;;  %v4799_v50 = vpop.permute.xlu0 %4798  ;;  %v4832_v32 = vpop.permute.xlu1 %4831  ;;  %v4975_v26 = vcombine.high %v14090_v12, %v14084_v56 }
 0x6c7   : > { %v4813_v34 = vsel %vm4808_vm1, %v4797_v13, %v4799_v50  ;;  %v5759_v40 = vcombine.low %v4761_v23, %v4832_v32  ;;  %v5760_v39 = vcombine.high %v4761_v23, %v4832_v32  ;;  %v14100_v13 = vrot.slane %v4925_v25, %v13959_v55 }
 0x6c8   : > { %v4996_v6 = vcombine.low %v14058_v17, %v14047_v33  ;;  %v5743_v27 = vcombine.low %v4740_v47, %v4813_v34  ;;  %v5744_v28 = vcombine.high %v4740_v47, %v4813_v34  ;;  %4806 = vrot.lane.b32.xlu0 %v13794_v52, %s11480_s8  ;;  %4743 = vrot.lane.b32.xlu1 %v13788_v35, %s11482_s11  ;;  %v6176_v46 = vrot.slane %v5735_v59, 1 }
 0x6c9   : > { %v5767_v8 = vrot.slane %v5759_v40, %v13756_v11  ;;  %v14072_v57 = vrot.slane %v5760_v39, %v13756_v11  ;;  %v4997_v7 = vcombine.high %v14058_v17, %v14047_v33  ;;  %v4979_v33 = vcombine.high %v14100_v13, %v14087_v5 }
 0x6ca   : > { %v5751_v1 = vrot.slane %v5743_v27, %v13756_v11  ;;  %v5758_v18 = vrot.slane %v5744_v28, %v13756_v11  ;;  %v4595_v9 = vpop.permute.xlu1 %4594  ;;  %v14081_v43 = vpop.permute.xlu0 %4586  ;;  %v5004_v10 = vrot.slane %v4996_v6, %v13959_v55  ;;  %v5741_v39 = vcombine.low %v14029_v41, %v14026_v20 }
 0x6cb   : > { %v6135_v28 = vrot.slane %v4977_v31, 1  ;;  %v17018_v6 = vmov 0.0  }
 0x6cc   : > { %v5775_v4 = vcombine.low %v5751_v1, %v5767_v8  ;;  %v5776_v30 = vcombine.high %v5751_v1, %v5767_v8  ;;  %4764 = vrot.lane.b32.xlu0 %v13788_v35, %s11481_s9  ;;  %v5791_v14 = vcombine.low %v5758_v18, %v14072_v57  ;;  %4835 = vrot.lane.b32.xlu1 %v13794_v52, %s11483_s10  ;;  %v6212_v8 = vrot.slane %v5737_v22, 1 }
 0x6cd   : > { %v4978_v52 = vcombine.low %v14100_v13, %v14087_v5  ;;  %v5792_v17 = vcombine.high %v5758_v18, %v14072_v57  ;;  %v6245_v57 = vrot.slane %v5739_v58, 2  ;;  %v5011_v1 = vrot.slane %v4997_v7, %v13959_v55 }
 0x6ce   : > { %v14110_v47 = vpop.permute.xlu1 %4628  ;;  %v14112_v23 = vpop.permute.xlu0 %4607  ;;  %v14115_v0 = vrot.slane %v5775_v4, %v13959_v55  ;;  %v5790_v54 = vrot.slane %v5776_v30, %v13959_v55  ;;  %v14139_v32 = vrot.slane %v5791_v14, %v13959_v55  ;;  %v5012_v14 = vcombine.high %v5004_v10, %v17018_v6 }
 0x6cf   : > { %v6149_v27 = vrot.slane %v4978_v52, 1  ;;  %v5806_v59 = vrot.slane %v5792_v17, %v13959_v55  ;;  %v5030_v7 = vcombine.low %v14081_v43, %v14110_v47  ;;  %v5031_v22 = vcombine.high %v14081_v43, %v14110_v47 }
 0x6d0   : > { %6093 = vrot.lane.b32.xlu0 %v4973_v42, %s11485_s15  ;;  %v6177_v25 = vrot.slane %v14115_v0, 1  ;;  %v6213_v50 = vrot.slane %v5790_v54, 1  ;;  %v5808_v51 = vcombine.high %v5790_v54, %v17018_v6  ;;  %v6246_v30 = vrot.slane %v14139_v32, 2 }
 0x6d1   : > { %v5014_v58 = vcombine.low %v13828_v3, %v14112_v23  ;;  %v5015_v43 = vcombine.high %v13828_v3, %v14112_v23  ;;  %v6229_v47 = vrot.slane %v5738_v16, 2  ;;  %v5013_v3 = vcombine.high %v5011_v1, %v17018_v6 }
 0x6d2   : > { %v4637_v53 = vpop.permute.xlu1 %4636  ;;  %v4616_v34 = vpop.permute.xlu0 %4615  ;;  %v6178_v40 = vsel %vm6134_vm2, %v6176_v46, %v6177_v25  ;;  %v6214_v31 = vsel %vm6134_vm2, %v6212_v8, %v6213_v50  ;;  %v6230_v46 = vrot.slane %v5808_v51, 2  ;;  %v6247_v8 = vsel %vm6221_vm3, %v6245_v57, %v6246_v30 }
 0x6d3   : > { %6179 = vrot.lane.b32.xlu1 %v6178_v40, %s11486_s16  ;;  %v5827_v18 = vcombine.low %v4595_v9, %v4637_v53  ;;  %v5828_v56 = vcombine.high %v4595_v9, %v4637_v53  ;;  %v5811_v12 = vcombine.low %v13780_v62, %v4616_v34  ;;  %v5812_v4 = vcombine.high %v13780_v62, %v4616_v34 }
 0x6d4   : > { %6103 = vrot.lane.b32.xlu0 %v4974_v61, %s11486_s16  ;;  %v6150_v53 = vrot.slane %v5011_v1, 1  ;;  %v5736_v34 = vcombine.high %v14077_v49, %v14066_v38  ;;  %v6281_v19 = vrot.slane %v5741_v39, 2  ;;  %v5810_v63 = vcombine.high %v5806_v59, %v17018_v6 }
 0x6d5   : > { %v14158_v42 = vrot.slane %v5827_v18, %v13756_v11  ;;  %v14161_v54 = vrot.slane %v5828_v56, %v13756_v11  ;;  %v14164_v9 = vrot.slane %v5811_v12, %v13756_v11  ;;  %v14167_v62 = vrot.slane %v5812_v4, %v13756_v11 }
 0x6d6   : > { %v4671_v61 = vpop.permute.xlu1 %4670  ;;  %v4650_v52 = vpop.permute.xlu0 %4649  ;;  %v6282_v18 = vrot.slane %v5806_v59, 2  ;;  %v6299_v16 = vrot.slane %v5742_v36, 2  ;;  %v6136_v38 = vrot.slane %v5012_v14, 1  ;;  %v14206_v49 = vrot.slane %v5030_v7, %v13756_v11 }
 0x6d7   : > { %6215 = vrot.lane.b32.xlu1 %v6214_v31, %s11483_s10  ;;  %v5875_v25 = vcombine.low %v14164_v9, %v14158_v42  ;;  %v5876_v10 = vcombine.high %v14164_v9, %v14158_v42  ;;  %v5891_v17 = vcombine.low %v14167_v62, %v14161_v54  ;;  %v5892_v50 = vcombine.high %v14167_v62, %v14161_v54 }
 0x6d8   : > { %6113 = vrot.lane.b32.xlu0 %v4975_v26, %s11488_s27  ;;  %v5807_v26 = vcombine.high %v14115_v0, %v17018_v6  ;;  %v14209_v23 = vrot.slane %v5031_v22, %v13756_v11  ;;  %v14212_v0 = vrot.slane %v5014_v58, %v13756_v11  ;;  %v14219_v39 = vsel %vm6221_vm3, %v6229_v47, %v6230_v46 }
 0x6d9   : > { %17085 = vst [vmem:[#allocation22_spill] sm:$0xff] %v14219_v39  ;;  %v14222_v20 = vrot.slane %v5015_v43, %v13756_v11  ;;  %v6151_v41 = vsel %vm6134_vm2, %v6149_v27, %v6150_v53  ;;  %v6300_v36 = vrot.slane %v5810_v63, 2  ;;  %v14226_v57 = vsel %vm6134_vm2, %v6135_v28, %v6136_v38 }
 0x6da   : > { %v14192_v40 = vpop.permute.xlu1 %4678  ;;  %v14194_v51 = vpop.permute.xlu0 %4657  ;;  %v6283_v12 = vsel %vm6221_vm3, %v6281_v19, %v6282_v18  ;;  %v6195_v4 = vrot.slane %v5807_v26, 1  ;;  %v6168_v31 = vrot.slane %v5013_v3, 1  ;;  %v5809_v2 = vcombine.high %v14139_v32, %v17018_v6 }
 0x6db   : > { %6248 = vrot.lane.b32.xlu1 %v6247_v8, %s11485_s15  ;;  %v6194_v27 = vrot.slane %v5736_v34, 1  ;;  %v6167_v28 = vrot.slane %v4979_v33, 1  ;;  %v5740_v14 = vcombine.high %v14108_v29, %v14093_v15  ;;  %v14239_v7 = vsel %vm6221_vm3, %v6299_v16, %v6300_v36 }
 0x6dc   : > { %6123 = vrot.lane.b32.xlu0 %v4976_v24, %s11483_s10  ;;  %v5079_v58 = vcombine.high %v14212_v0, %v14206_v49  ;;  %v5095_v5 = vcombine.high %v14222_v20, %v14209_v23  ;;  %v6264_v33 = vrot.slane %v5809_v2, 2  ;;  %v14355_v42 = vrot.slane %v5891_v17, %v13959_v55 }
 0x6dd   : > { %v6196_v29 = vsel %vm6134_vm2, %v6194_v27, %v6195_v4  ;;  %v6169_v47 = vsel %vm6134_vm2, %v6167_v28, %v6168_v31  ;;  %v6263_v53 = vrot.slane %v5740_v14, 2 }
 0x6de   : > { %v4692_v1 = vpop.permute.xlu1 %4691  ;;  %v4713_v56 = vpop.permute.xlu0 %4712  ;;  %v14263_v18 = vrot.slane %v5079_v58, %v13959_v55  ;;  %v14266_v26 = vrot.slane %v5095_v5, %v13959_v55 }
 0x6df   : > { %v5046_v60 = vcombine.low %v4650_v52, %v4692_v1  ;;  %v5047_v24 = vcombine.high %v4650_v52, %v4692_v1  ;;  %v5062_v30 = vcombine.low %v4671_v61, %v4713_v56  ;;  %v5063_v59 = vcombine.high %v4671_v61, %v4713_v56  ;;  %6284 = vrot.lane.b32.xlu1 %v6283_v12, %s11488_s27 }
 0x6e0   : > { %6152 = vrot.lane.b32.xlu0 %v6151_v41, %s11485_s15  ;;  %v6265_v63 = vsel %vm6221_vm3, %v6263_v53, %v6264_v33  ;;  %v5094_v33 = vcombine.low %v14222_v20, %v14209_v23 }
 0x6e1   : > { %v5054_v32 = vrot.slane %v5046_v60, %v13756_v11  ;;  %v14243_v52 = vrot.slane %v5047_v24, %v13756_v11  ;;  %v5070_v61 = vrot.slane %v5062_v30, %v13756_v11  ;;  %v5077_v22 = vrot.slane %v5063_v59, %v13756_v11 }
 0x6e2   : > { %v4755_v13 = vpop.permute.xlu1 %4754  ;;  %v4785_v15 = vpop.permute.xlu0 %4784  ;;  %v5078_v30 = vcombine.low %v14212_v0, %v14206_v49 }
 0x6e3   : > { %v5111_v46 = vcombine.high %v5054_v32, %v5070_v61  ;;  %v5127_v43 = vcombine.high %v14243_v52, %v5077_v22  ;;  %6197 = vrot.lane.b32.xlu1 %v6196_v29, %s11488_s27  ;;  %v5110_v12 = vcombine.low %v5054_v32, %v5070_v61  ;;  %v5126_v32 = vcombine.low %v14243_v52, %v5077_v22 }
 0x6e4   : > { %6170 = vrot.lane.b32.xlu0 %v6169_v47, %s11486_s16  ;;  %v14296_v47 = vrot.slane %v5078_v30, %v13959_v55  ;;  %v14302_v52 = vrot.slane %v5875_v25, %v13959_v55 }
 0x6e5   : > { %v14257_v34 = vrot.slane %v5111_v46, %v13959_v55  ;;  %v14260_v8 = vrot.slane %v5127_v43, %v13959_v55  ;;  %v14288_v14 = vrot.slane %v5110_v12, %v13959_v55  ;;  %v14324_v12 = vrot.slane %v5094_v33, %v13959_v55 }
 0x6e6   : > { %v4801_v3 = vpop.permute.xlu1 %4800  ;;  %v4734_v19 = vpop.permute.xlu0 %4733 }
 0x6e7   : > { %6266 = vrot.lane.b32.xlu1 %v6265_v63, %s11486_s16  ;;  %v5144_v16 = vcombine.low %v14263_v18, %v14257_v34  ;;  %v5149_v38 = vcombine.high %v14266_v26, %v14260_v8 }
 0x6ea   : > { %v14274_v41 = vpop.permute.xlu1 %4741  ;;  %v4700_v36 = vpop.permute.xlu0 %4699 }
 0x6eb   : > { %v5843_v1 = vcombine.low %v14194_v51, %v4700_v36  ;;  %v5844_v56 = vcombine.high %v14194_v51, %v4700_v36  ;;  %v14314_v36 = vrot.slane %v5126_v32, %v13959_v55 }
 0x6ed   : > { %v5851_v59 = vrot.slane %v5843_v1, %v13756_v11  ;;  %v5858_v27 = vrot.slane %v5844_v56, %v13756_v11  ;;  %v5142_v1 = vcombine.low %v14296_v47, %v14288_v14 }
 0x6ee   : > { %v4721_v4 = vpop.permute.xlu0 %4720  ;;  %v4787_v31 = vpop.permute.xlu1 %4786 }
 0x6ef   : > { %v5859_v2 = vcombine.low %v14192_v40, %v4721_v4  ;;  %v5860_v60 = vcombine.high %v14192_v40, %v4721_v4  ;;  %v4810_v24 = vsel %vm4808_vm1, %v4785_v15, %v4787_v31  ;;  %v6185_v32 = vrot.slane %v5142_v1, 1 }
 0x6f0   : > { %v5150_v61 = vcombine.low %v4734_v19, %v4810_v24  ;;  %v5151_v40 = vcombine.high %v4734_v19, %v4810_v24 }
 0x6f1   : > { %v5867_v28 = vrot.slane %v5859_v2, %v13756_v11  ;;  %v5874_v51 = vrot.slane %v5860_v60, %v13756_v11 }
 0x6f2   : > { %v4826_v58 = vpop.permute.xlu0 %4825  ;;  %v14291_v5 = vpop.permute.xlu1 %4588  ;;  %v5158_v53 = vrot.slane %v5150_v61, %v13756_v11  ;;  %v5165_v19 = vrot.slane %v5151_v40, %v13756_v11  ;;  %v5146_v61 = vcombine.low %v14324_v12, %v14314_v36 }
 0x6f3   : > { %v5907_v15 = vcombine.low %v5851_v59, %v5867_v28  ;;  %v5908_v49 = vcombine.high %v5851_v59, %v5867_v28  ;;  %v5923_v0 = vcombine.low %v5858_v27, %v5874_v51  ;;  %v5924_v29 = vcombine.high %v5858_v27, %v5874_v51 }
 0x6f4   : > { %v5166_v46 = vcombine.low %v4755_v13, %v4826_v58  ;;  %v5167_v43 = vcombine.high %v4755_v13, %v4826_v58  ;;  %v14339_v51 = vrot.slane %v5876_v10, %v13959_v55 }
 0x6f5   : > { %v14305_v22 = vrot.slane %v5907_v15, %v13959_v55  ;;  %v14327_v2 = vrot.slane %v5908_v49, %v13959_v55  ;;  %v14344_v40 = vrot.slane %v5923_v0, %v13959_v55  ;;  %v14358_v9 = vrot.slane %v5924_v29, %v13959_v55 }
 0x6f6   : > { %v5174_v23 = vrot.slane %v5166_v46, %v13756_v11  ;;  %v5181_v20 = vrot.slane %v5167_v43, %v13756_v11  ;;  %v4803_v13 = vpop.permute.xlu0 %4802  ;;  %v14311_v63 = vpop.permute.xlu1 %4609  ;;  %v6254_v29 = vrot.slane %v5146_v61, 2 }
 0x6f7   : > { %v14317_v25 = vsel %vm4808_vm1, %v4801_v3, %v4803_v13  ;;  %v5940_v56 = vcombine.high %v14302_v52, %v14305_v22  ;;  %v5219_v15 = vcombine.high %v13869_v37, %v14311_v63  ;;  %v5941_v46 = vcombine.low %v14339_v51, %v14327_v2 }
 0x6f8   : > { %v5182_v4 = vcombine.low %v5158_v53, %v5174_v23  ;;  %v5198_v31 = vcombine.low %v5165_v19, %v5181_v20  ;;  %v5199_v60 = vcombine.high %v5165_v19, %v5181_v20  ;;  %v5947_v24 = vcombine.low %v14274_v41, %v14317_v25 }
 0x6f9   : > { %v5948_v3 = vcombine.high %v14274_v41, %v14317_v25  ;;  %v5183_v58 = vcombine.high %v5158_v53, %v5174_v23  ;;  %v14369_v19 = vrot.slane %v5892_v50, %v13959_v55  ;;  %v5148_v23 = vcombine.low %v14266_v26, %v14260_v8 }
 0x6fa   : > { %v5190_v30 = vrot.slane %v5182_v4, %v13959_v55  ;;  %v5206_v59 = vrot.slane %v5198_v31, %v13959_v55  ;;  %v4597_v27 = vpop.permute.xlu0 %4596  ;;  %v4618_v28 = vpop.permute.xlu1 %4617  ;;  %v5213_v33 = vrot.slane %v5199_v60, %v13959_v55  ;;  %v14378_v13 = vrot.slane %v5219_v15, %v13756_v11 }
 0x6fb   : > { %v5197_v20 = vrot.slane %v5183_v58, %v13959_v55  ;;  %v5942_v1 = vcombine.high %v14339_v51, %v14327_v2  ;;  %v5943_v54 = vcombine.low %v14355_v42, %v14344_v40  ;;  %v6015_v62 = vcombine.low %v13788_v35, %v4618_v28 }
 0x6fc   : > { %v6186_v49 = vrot.slane %v5190_v30, 1  ;;  %v6255_v53 = vrot.slane %v5206_v59, 2  ;;  %v6291_v4 = vrot.slane %v5213_v33, 2  ;;  %v5214_v31 = vcombine.high %v5190_v30, %v17018_v6 }
 0x6fd   : > { %v6290_v30 = vrot.slane %v5148_v23, 2  ;;  %v5215_v28 = vcombine.high %v5197_v20, %v17018_v6  ;;  %v5218_v58 = vcombine.low %v13869_v37, %v14311_v63 }
 0x6fe   : > { %v14360_v10 = vpop.permute.xlu0 %4630  ;;  %v14362_v0 = vpop.permute.xlu1 %4651  ;;  %v6187_v43 = vsel %vm6134_vm2, %v6185_v32, %v6186_v49  ;;  %v6256_v61 = vsel %vm6221_vm3, %v6254_v29, %v6255_v53  ;;  %v6222_v53 = vrot.slane %v5144_v16, 2  ;;  %v14407_v29 = vrot.slane %v6015_v62, %v13756_v11 }
 0x6ff   : > { %v5235_v17 = vcombine.high %v14291_v5, %v14360_v10  ;;  %6188 = vrot.lane.b32.xlu0 %v6187_v43, %s11488_s27  ;;  %v5143_v43 = vcombine.high %v14296_v47, %v14288_v14  ;;  %v6292_v21 = vsel %vm6221_vm3, %v6290_v30, %v6291_v4  ;;  %v6204_v15 = vrot.slane %v5214_v31, 1 }
 0x700   : > { %v5217_v47 = vcombine.high %v5213_v33, %v17018_v6  ;;  %v5216_v33 = vcombine.high %v5206_v59, %v17018_v6 }
 0x701   : > { %v14386_v50 = vrot.slane %v5235_v17, %v13756_v11  ;;  %v6223_v17 = vrot.slane %v5197_v20, 2  ;;  %v5145_v20 = vcombine.high %v14263_v18, %v14257_v34  ;;  %v6203_v31 = vrot.slane %v5143_v43, 1 }
 0x702   : > { %v4639_v60 = vpop.permute.xlu0 %4638  ;;  %v14389_v32 = vpop.permute.xlu1 %4659  ;;  %v6310_v30 = vrot.slane %v5217_v47, 3 }
 0x703   : > { %v5298_v35 = vcombine.low %v14378_v13, %v14386_v50  ;;  %6257 = vrot.lane.b32.xlu0 %v6256_v61, %s11486_s16  ;;  %v6023_v49 = vcombine.low %v4597_v27, %v4639_v60  ;;  %v14419_v14 = vsel %vm6221_vm3, %v6222_v53, %v6223_v17  ;;  %v6309_v60 = vrot.slane %v5149_v38, 3 }
 0x704   : > { %17086 = vst [vmem:[#allocation23_spill] sm:$0xff] %v14419_v14  ;;  %v6205_v18 = vsel %vm6134_vm2, %v6203_v31, %v6204_v15  ;;  %v6237_v53 = vrot.slane %v5215_v28, 2  ;;  %v6236_v26 = vrot.slane %v5145_v20, 2  ;;  %v5147_v38 = vcombine.high %v14324_v12, %v14314_v36 }
 0x705   : > { %v14412_v61 = vrot.slane %v6023_v49, %v13756_v11  ;;  %v14443_v17 = vsel %vm6308_vm4, %v6309_v60, %v6310_v30  ;;  %v6273_v31 = vrot.slane %v5216_v33, 2 }
 0x706   : > { %v14414_v27 = vpop.permute.xlu0 %4672  ;;  %v14416_v23 = vpop.permute.xlu1 %4693  ;;  %17087 = vst [vmem:[#allocation24_spill] sm:$0xff] %v14443_v17  ;;  %v6238_v47 = vsel %vm6221_vm3, %v6236_v26, %v6237_v53  ;;  %v6272_v20 = vrot.slane %v5147_v38, 2 }
 0x707   : > { %6293 = vrot.lane.b32.xlu0 %v6292_v21, %s11483_s10  ;;  %v5251_v21 = vcombine.high %v14362_v0, %v14416_v23 }
 0x708   : > { %v6274_v36 = vsel %vm6221_vm3, %v6272_v20, %v6273_v31 }
 0x709   : > { %v14454_v43 = vrot.slane %v5251_v21, %v13756_v11 }
 0x70a   : > { %v14437_v49 = vpop.permute.xlu0 %4680  ;;  %v14439_v34 = vpop.permute.xlu1 %4714 }
 0x70b   : > { %v5267_v8 = vcombine.high %v14414_v27, %v14439_v34  ;;  %6206 = vrot.lane.b32.xlu0 %v6205_v18, %s11483_s10 }
 0x70d   : > { %v14451_v59 = vrot.slane %v5267_v8, %v13756_v11  ;;  %v14466_v8 = vrot.slane %v5298_v35, %v13959_v55 }
 0x70e   : > { %v4612_v15 = vpop.permute.xlu0 %4611  ;;  %v4591_v28 = vpop.permute.xlu1 %4590 }
 0x70f   : > { %6239 = vrot.lane.b32.xlu0 %v6238_v47, %s11485_s15  ;;  %v5330_v60 = vcombine.low %v14454_v43, %v14451_v59  ;;  %v5422_v33 = vcombine.low %v13900_v45, %v4612_v15  ;;  %v5423_v16 = vcombine.high %v13900_v45, %v4612_v15  ;;  %v5266_v45 = vcombine.low %v14414_v27, %v14439_v34 }
 0x711   : > { %v14463_v12 = vrot.slane %v5330_v60, %v13959_v55  ;;  %v5437_v37 = vrot.slane %v5423_v16, %v13756_v11 }
 0x712   : > { %v4654_v30 = vpop.permute.xlu0 %4653  ;;  %v4633_v18 = vpop.permute.xlu1 %4632 }
 0x713   : > { %6275 = vrot.lane.b32.xlu0 %v6274_v36, %s11488_s27  ;;  %v5438_v21 = vcombine.low %v4591_v28, %v4633_v18  ;;  %v5439_v47 = vcombine.high %v4591_v28, %v4633_v18  ;;  %v5430_v36 = vrot.slane %v5422_v33, %v13756_v11 }
 0x715   : > { %v5446_v38 = vrot.slane %v5438_v21, %v13756_v11  ;;  %v5453_v28 = vrot.slane %v5439_v47, %v13756_v11 }
 0x716   : > { %v4696_v53 = vpop.permute.xlu0 %4695  ;;  %v4675_v26 = vpop.permute.xlu1 %4674 }
 0x717   : > { %v5454_v31 = vcombine.low %v4654_v30, %v4696_v53  ;;  %v5455_v20 = vcombine.high %v4654_v30, %v4696_v53  ;;  %v5487_v18 = vcombine.high %v5430_v36, %v5446_v38  ;;  %v5234_v53 = vcombine.low %v14291_v5, %v14360_v10 }
 0x718   : > { %v5486_v15 = vcombine.low %v5430_v36, %v5446_v38  ;;  %v14497_v5 = vrot.slane %v5218_v58, %v13756_v11  ;;  %v5250_v10 = vcombine.low %v14362_v0, %v14416_v23  ;;  %v5503_v27 = vcombine.high %v5437_v37, %v5453_v28 }
 0x719   : > { %v5462_v21 = vrot.slane %v5454_v31, %v13756_v11  ;;  %v5469_v4 = vrot.slane %v5455_v20, %v13756_v11  ;;  %v5501_v34 = vrot.slane %v5487_v18, %v13959_v55  ;;  %v14511_v20 = vrot.slane %v5234_v53, %v13756_v11 }
 0x71a   : > { %v4717_v60 = vpop.permute.xlu0 %4716  ;;  %v4793_v62 = vpop.permute.xlu1 %4792  ;;  %v14514_v58 = vrot.slane %v5266_v45, %v13756_v11  ;;  %v14517_v0 = vrot.slane %v5486_v15, %v13959_v55  ;;  %v5517_v53 = vrot.slane %v5503_v27, %v13959_v55 }
 0x71b   : > { %v5470_v35 = vcombine.low %v4675_v26, %v4717_v60  ;;  %v5471_v6 = vcombine.high %v4675_v26, %v4717_v60 }
 0x71c   : > { %17088 = vst [vmem:[#allocation25_spill] sm:$0xff] %v14517_v0 }
 0x71d   : > { %v5478_v30 = vrot.slane %v5470_v35, %v13756_v11  ;;  %v5485_v33 = vrot.slane %v5471_v6, %v13756_v11  ;;  %v14494_v6 = vrot.slane %v5947_v24, %v13756_v11  ;;  %v5962_v24 = vrot.slane %v5948_v3, %v13756_v11 }
 0x71e   : > { %v14485_v26 = vpop.permute.xlu0 %4758  ;;  %v14488_v60 = vpop.permute.xlu1 %4737 }
 0x71f   : > { %v5518_v63 = vcombine.low %v5462_v21, %v5478_v30  ;;  %v5519_v47 = vcombine.high %v5462_v21, %v5478_v30  ;;  %v5535_v31 = vcombine.high %v5469_v4, %v5485_v33  ;;  %v5534_v36 = vcombine.low %v5469_v4, %v5485_v33 }
 0x720   : > { %v14534_v30 = vrot.slane %v5940_v56, 3  ;;  %v14539_v4 = vrot.slane %v5941_v46, 3  ;;  %v5502_v33 = vcombine.low %v5437_v37, %v5453_v28  ;;  %v5282_v56 = vcombine.low %v14497_v5, %v14511_v20 }
 0x721   : > { %v14502_v16 = vrot.slane %v5518_v63, %v13959_v55  ;;  %v5533_v38 = vrot.slane %v5519_v47, %v13959_v55  ;;  %v14520_v35 = vrot.slane %v5535_v31, %v13959_v55  ;;  %v14555_v47 = vrot.slane %v5942_v1, 3 }
 0x722   : > { %v4795_v23 = vpop.permute.xlu0 %4794  ;;  %v14522_v18 = vpop.permute.xlu1 %4829  ;;  %v5542_v37 = vrot.slane %v5534_v36, %v13959_v55  ;;  %v5510_v51 = vrot.slane %v5502_v33, %v13959_v55 }
 0x723   : > { %v14525_v21 = vsel %vm4808_vm1, %v4793_v62, %v4795_v23  ;;  %v5552_v41 = vcombine.low %v5501_v34, %v5533_v38  ;;  %v5575_v25 = vcombine.high %v14485_v26, %v14522_v18  ;;  %v14542_v62 = vrot.slane %v5250_v10, %v13756_v11 }
 0x724   : > { %v5559_v3 = vcombine.high %v14488_v60, %v14525_v21  ;;  %v5553_v10 = vcombine.high %v5501_v34, %v5533_v38  ;;  %v5556_v27 = vcombine.low %v5517_v53, %v14520_v35  ;;  %v5557_v1 = vcombine.high %v5517_v53, %v14520_v35 }
 0x725   : > { %6098 = vrot.lane.b32.xlu1 %v5552_v41, %s11485_s15  ;;  %v5589_v15 = vrot.slane %v5575_v25, %v13756_v11  ;;  %v5314_v28 = vcombine.low %v14542_v62, %v14514_v58  ;;  %v17089_v34 = vcombine.low %v14369_v19, %v14358_v9 }
 0x726   : > { %v5573_v63 = vrot.slane %v5559_v3, %v13756_v11  ;;  %v4763_v46 = vpop.permute.xlu0 %4762  ;;  %v4834_v31 = vpop.permute.xlu1 %4833  ;;  %v6386_v3 = vrot.slane %v5943_v54, 3  ;;  %v6158_v2 = vrot.slane %v5557_v1, 1 }
 0x727   : > { %v5963_v41 = vcombine.low %v4763_v46, %v4834_v31  ;;  %v5964_v25 = vcombine.high %v4763_v46, %v4834_v31  ;;  %v6419_v38 = vrot.slane %v17089_v34, 4  ;;  %v17090_v46 = vcombine.high %v14369_v19, %v14358_v9 }
 0x728   : > { %v5591_v23 = vcombine.high %v5573_v63, %v5589_v15  ;;  %v14581_v31 = vrot.slane %v5282_v56, %v13959_v55  ;;  %v14586_v53 = vrot.slane %v5314_v28, %v13959_v55  ;;  %v5555_v19 = vcombine.high %v5510_v51, %v5542_v37 }
 0x729   : > { %6108 = vrot.lane.b32.xlu1 %v5553_v10, %s11486_s16  ;;  %v5971_v15 = vrot.slane %v5963_v41, %v13756_v11  ;;  %v5978_v63 = vrot.slane %v5964_v25, %v13756_v11  ;;  %v14578_v33 = vrot.slane %v17090_v46, 4  ;;  %v17091_v56 = vmov 0.0  }
 0x72a   : > { %v5598_v36 = vrot.slane %v5591_v23, %v13959_v55  ;;  %v4789_v54 = vpop.permute.xlu0 %4788  ;;  %v4791_v10 = vpop.permute.xlu1 %4790  ;;  %v5554_v23 = vcombine.low %v5510_v51, %v5542_v37 }
 0x72b   : > { %v5979_v41 = vcombine.low %v14494_v6, %v5971_v15  ;;  %v5980_v25 = vcombine.high %v14494_v6, %v5971_v15  ;;  %v5995_v34 = vcombine.low %v5962_v24, %v5978_v63  ;;  %v5996_v45 = vcombine.high %v5962_v24, %v5978_v63 }
 0x72c   : > { %v4811_v9 = vsel %vm4808_vm1, %v4789_v54, %v4791_v10  ;;  %v5606_v46 = vcombine.high %v5598_v36, %v17091_v56  ;;  %v6143_v54 = vrot.slane %v5598_v36, 1 }
 0x72d   : > { %6118 = vrot.lane.b32.xlu1 %v5554_v23, %s11488_s27  ;;  %v5987_v35 = vrot.slane %v5979_v41, %v13959_v55  ;;  %v5994_v28 = vrot.slane %v5980_v25, %v13959_v55  ;;  %v6003_v39 = vrot.slane %v5995_v34, %v13959_v55  ;;  %v6010_v17 = vrot.slane %v5996_v45, %v13959_v55 }
 0x72e   : > { %v4736_v14 = vpop.permute.xlu0 %4735  ;;  %v4757_v6 = vpop.permute.xlu1 %4756  ;;  %v6159_v63 = vrot.slane %v5606_v46, 1  ;;  %v6142_v25 = vrot.slane %v5556_v27, 1 }
 0x72f   : > { %v5354_v15 = vcombine.low %v4736_v14, %v4811_v9  ;;  %v5355_v24 = vcombine.high %v4736_v14, %v4811_v9  ;;  %v6011_v10 = vcombine.high %v5987_v35, %v17091_v56  ;;  %v6351_v37 = vrot.slane %v5994_v28, 3 }
 0x730   : > { %v6012_v51 = vcombine.high %v5994_v28, %v17091_v56  ;;  %v6387_v1 = vrot.slane %v6003_v39, 3  ;;  %v6420_v45 = vrot.slane %v6010_v17, 4  ;;  %v6160_v27 = vsel %vm6134_vm2, %v6158_v2, %v6159_v63 }
 0x731   : > { %v5362_v23 = vrot.slane %v5354_v15, %v13756_v11  ;;  %v14601_v41 = vrot.slane %v5355_v24, %v13756_v11  ;;  %6128 = vrot.lane.b32.xlu1 %v5555_v19, %s11483_s10  ;;  %v6333_v0 = vrot.slane %v6011_v10, 3  ;;  %v14606_v14 = vsel %vm6308_vm4, %v14539_v4, %v6351_v37 }
 0x732   : > { %v4828_v34 = vpop.permute.xlu0 %4827  ;;  %v6369_v36 = vrot.slane %v6012_v51, 3  ;;  %v14609_v9 = vsel %vm6308_vm4, %v6386_v3, %v6387_v1  ;;  %v4702_v46 = vpop.permute.xlu1 %4701  ;;  %v14612_v24 = vsel %vm6395_vm5, %v6419_v38, %v6420_v45  ;;  %v6014_v19 = vcombine.high %v6010_v17, %v17091_v56 }
 0x733   : > { %v5370_v28 = vcombine.low %v4757_v6, %v4828_v34  ;;  %v5371_v15 = vcombine.high %v4757_v6, %v4828_v34  ;;  %v6334_v10 = vsel %vm6308_vm4, %v14534_v30, %v6333_v0  ;;  %v14623_v3 = vsel %vm6134_vm2, %v6142_v25, %v6143_v54 }
 0x734   : > { %v14620_v4 = vsel %vm6308_vm4, %v14555_v47, %v6369_v36  ;;  %v6438_v17 = vrot.slane %v6014_v19, 4  ;;  %v6317_v38 = vrot.slane %v5987_v35, 3  ;;  %v6031_v2 = vcombine.low %v14389_v32, %v4702_v46 }
 0x735   : > { %v5378_v37 = vrot.slane %v5370_v28, %v13756_v11  ;;  %v14627_v6 = vrot.slane %v5371_v15, %v13756_v11  ;;  %6161 = vrot.lane.b32.xlu1 %v6160_v27, %s11485_s15  ;;  %v17092_v0 = vcombine.low %v14302_v52, %v14305_v22  ;;  %v6013_v47 = vcombine.high %v6003_v39, %v17091_v56 }
 0x736   : > { %v4723_v63 = vpop.permute.xlu0 %4722  ;;  %v17093_v54 = vcombine.high %v14355_v42, %v14344_v40  ;;  %v4805_v34 = vpop.permute.xlu1 %4804  ;;  %v5346_v32 = vcombine.low %v14581_v31, %v14586_v53  ;;  %v14645_v52 = vsel %vm6395_vm5, %v14578_v33, %v6438_v17  ;;  %v17094_v40 = vcombine.high %v14542_v62, %v14514_v58 }
 0x737   : > { %v6316_v30 = vrot.slane %v17092_v0, 3  ;;  %v5386_v1 = vcombine.low %v5362_v23, %v5378_v37  ;;  %v5387_v45 = vcombine.high %v5362_v23, %v5378_v37  ;;  %v5402_v25 = vcombine.low %v14601_v41, %v14627_v6 }
 0x738   : > { %v6403_v51 = vrot.slane %v17093_v54, 4  ;;  %v6039_v35 = vcombine.low %v14437_v49, %v4723_v63  ;;  %v6404_v22 = vrot.slane %v6013_v47, 4  ;;  %v5329_v42 = vrot.slane %v17094_v40, %v13959_v55 }
 0x739   : > { %v14648_v39 = vsel %vm6308_vm4, %v6316_v30, %v6317_v38  ;;  %v5394_v23 = vrot.slane %v5386_v1, %v13959_v55  ;;  %6302 = vrot.lane.b32.xlu1 %v14239_v7, %s11483_s10  ;;  %v6038_v49 = vrot.slane %v6031_v2, %v13756_v11  ;;  %v5347_v46 = vcombine.high %v14581_v31, %v14586_v53 }
 0x73a   : > { %v6046_v36 = vrot.slane %v6039_v35, %v13756_v11  ;;  %v4807_v33 = vpop.permute.xlu0 %4806  ;;  %v14662_v28 = vsel %vm6395_vm5, %v6403_v51, %v6404_v22  ;;  %v5410_v15 = vrot.slane %v5402_v25, %v13959_v55  ;;  %v4744_v58 = vpop.permute.xlu1 %4743  ;;  %v6323_v62 = vrot.slane %v5346_v32, 3 }
 0x73b   : > { %v6324_v19 = vrot.slane %v5394_v23, 3  ;;  %v5418_v27 = vcombine.high %v5394_v23, %v17091_v56  ;;  %v17095_v7 = vcombine.high %v14497_v5, %v14511_v20  ;;  %v5401_v17 = vrot.slane %v5387_v45, %v13959_v55 }
 0x73c   : > { %v6055_v38 = vcombine.low %v6038_v49, %v6046_v36  ;;  %v17096_v2 = vcombine.low %v14407_v29, %v14412_v61  ;;  %v4815_v30 = vsel %vm4808_vm1, %v4805_v34, %v4807_v33  ;;  %v17097_v54 = vcombine.low %v14466_v8, %v14463_v12 }
 0x73d   : > { %v5297_v37 = vrot.slane %v17095_v7, %v13959_v55  ;;  %6335 = vrot.lane.b32.xlu1 %v6334_v10, %s11485_s15  ;;  %v6325_v31 = vsel %vm6308_vm4, %v6323_v62, %v6324_v19  ;;  %v6342_v53 = vrot.slane %v5418_v27, 3  ;;  %v6341_v10 = vrot.slane %v5347_v46, 3 }
 0x73e   : > { %v14677_v63 = vrot.slane %v17096_v2, %v13959_v55  ;;  %v14680_v0 = vrot.slane %v6055_v38, %v13959_v55  ;;  %6326 = vrot.lane.b32.xlu0 %v6325_v31, %s11485_s15  ;;  %v4765_v5 = vpop.permute.xlu0 %4764  ;;  %v4836_v47 = vpop.permute.xlu1 %4835  ;;  %v6396_v51 = vrot.slane %v17097_v54, 4  ;;  %v6397_v1 = vrot.slane %v5410_v15, 4 }
 0x73f   : > { %v5348_v20 = vcombine.low %v5297_v37, %v5329_v42  ;;  %v6073_v45 = vcombine.low %v4765_v5, %v4836_v47  ;;  %v6360_v29 = vrot.slane %v5401_v17, 3  ;;  %v6343_v25 = vsel %vm6308_vm4, %v6341_v10, %v6342_v53 }
 0x740   : > { %v6063_v61 = vcombine.low %v14677_v63, %v14680_v0  ;;  %v5419_v32 = vcombine.high %v5401_v17, %v17091_v56  ;;  %v6064_v34 = vcombine.high %v14677_v63, %v14680_v0  ;;  %v14696_v35 = vsel %vm6395_vm5, %v6396_v51, %v6397_v1 }
 0x741   : > { %6353 = vrot.lane.b32.xlu1 %v14606_v14, %s11486_s16  ;;  %v6065_v22 = vcombine.low %v4744_v58, %v4815_v30  ;;  %v5331_v23 = vcombine.high %v14454_v43, %v14451_v59  ;;  %v6359_v49 = vrot.slane %v5348_v20, 3  ;;  %v5349_v36 = vcombine.high %v5297_v37, %v5329_v42 }
 0x742   : > { %6344 = vrot.lane.b32.xlu0 %v6343_v25, %s11486_s16  ;;  %v6094_v40 = vpop.permute.xlu0 %6093  ;;  %v5574_v14 = vcombine.low %v14485_v26, %v14522_v18  ;;  %v5558_v33 = vcombine.low %v14488_v60, %v14525_v21  ;;  %v6080_v46 = vrot.slane %v6073_v45, %v13756_v11  ;;  %v5403_v62 = vcombine.high %v14601_v41, %v14627_v6  ;;  %v17100_v25 = vld [vmem:[#allocation25_spill] sm:$0xff] }
 0x743   : > { %v6361_v58 = vsel %vm6308_vm4, %v6359_v49, %v6360_v29  ;;  %v6378_v19 = vrot.slane %v5419_v32, 3  ;;  %v5420_v59 = vcombine.high %v5410_v15, %v17091_v56  ;;  %v6072_v43 = vrot.slane %v6065_v22, %v13756_v11 }
 0x744   : > { %v5345_v60 = vrot.slane %v5331_v23, %v13959_v55  ;;  %v6377_v18 = vrot.slane %v5349_v36, 3  ;;  %v5351_v21 = vcombine.high %v14466_v8, %v14463_v12  ;;  %v17098_v41 = vcombine.high %v14378_v13, %v14386_v50 }
 0x745   : > { %6371 = vrot.lane.b32.xlu1 %v14620_v4, %s11488_s27  ;;  %v5582_v6 = vrot.slane %v5574_v14, %v13756_v11  ;;  %v5566_v42 = vrot.slane %v5558_v33, %v13756_v11  ;;  %v6081_v15 = vcombine.low %v6072_v43, %v6080_v46  ;;  %v5417_v27 = vrot.slane %v5403_v62, %v13959_v55  ;;  %v6180_v33 = vpop.permute.xlu1 %6179  ;;  %v17101_v43 = vld [vmem:[#allocation23_spill] sm:$0xff] }
 0x746   : > { %6362 = vrot.lane.b32.xlu0 %v6361_v58, %s11488_s27  ;;  %v6104_v26 = vpop.permute.xlu0 %6103  ;;  %v5313_v4 = vrot.slane %v17098_v41, %v13959_v55  ;;  %v17099_v7 = vcombine.low %v13994_v44, %v13977_v48  ;;  %v6379_v12 = vsel %vm6308_vm4, %v6377_v18, %v6378_v19  ;;  %v6411_v8 = vrot.slane %v5420_v59, 4 }
 0x747   : > { %v6410_v17 = vrot.slane %v5351_v21, 4  ;;  %v5590_v11 = vcombine.low %v5566_v42, %v5582_v6  ;;  %v6088_v31 = vrot.slane %v6081_v15, %v13959_v55  ;;  %v6429_v44 = vrot.slane %v5417_v27, 4 }
 0x748   : > { %v6096_v37 = vadd.f32 %v6094_v40, %v17099_v7  ;;  %v5352_v38 = vcombine.low %v5313_v4, %v5345_v60  ;;  %v5353_v30 = vcombine.high %v5313_v4, %v5345_v60  ;;  %v6455_v45 = vrot.slane %v6063_v61, 4 }
 0x749   : > { %6389 = vrot.lane.b32.xlu1 %v14609_v9, %s11483_s10  ;;  %v6412_v48 = vsel %vm6395_vm5, %v6410_v17, %v6411_v8  ;;  %v5421_v9 = vcombine.high %v5417_v27, %v17091_v56  ;;  %v6456_v47 = vrot.slane %v6088_v31, 4  ;;  %v6089_v10 = vcombine.high %v6088_v31, %v17091_v56  ;;  %v6216_v59 = vpop.permute.xlu1 %6215  ;;  %v17102_v27 = vld [vmem:[#allocation24_spill] sm:$0xff] }
 0x74a   : > { %6380 = vrot.lane.b32.xlu0 %v6379_v12, %s11483_s10  ;;  %v6114_v13 = vpop.permute.xlu0 %6113  ;;  %v6106_v50 = vadd.f32 %v6104_v26, %v6096_v37  ;;  %v6428_v20 = vrot.slane %v5352_v38, 4  ;;  %v5605_v1 = vrot.slane %v5590_v11, %v13959_v55  ;;  %v6446_v29 = vrot.slane %v5353_v30, 4 }
 0x74b   : > { %v6447_v51 = vrot.slane %v5421_v9, 4  ;;  %v5550_v32 = vcombine.low %v17100_v25, %v14502_v16  ;;  %v6457_v22 = vsel %vm6395_vm5, %v6455_v45, %v6456_v47  ;;  %v6474_v56 = vrot.slane %v6089_v10, 4 }
 0x74c   : > { %v6116_v53 = vadd.f32 %v6114_v13, %v6106_v50  ;;  %v6430_v54 = vsel %vm6395_vm5, %v6428_v20, %v6429_v44  ;;  %v6465_v40 = vrot.slane %v5605_v1, 4  ;;  %v6473_v55 = vrot.slane %v6064_v34, 4 }
 0x74d   : > { %6422 = vrot.lane.b32.xlu1 %v14612_v24, %s11485_s15  ;;  %v6249_v60 = vpop.permute.xlu1 %6248  ;;  %v17103_v50 = vcombine.high %v17100_v25, %v14502_v16 }
 0x74e   : > { %6413 = vrot.lane.b32.xlu0 %v6412_v48, %s11485_s15  ;;  %v6124_v2 = vpop.permute.xlu0 %6123  ;;  %v6475_v61 = vsel %vm6395_vm5, %v6473_v55, %v6474_v56 }
 0x74f   : > { %v6126_v5 = vadd.f32 %v6124_v2, %v6116_v53 }
 0x751   : > { %6440 = vrot.lane.b32.xlu1 %v14645_v52, %s11486_s16  ;;  %v6139_v24 = vadd.f32 %v14226_v57, %v6126_v5  ;;  %v6448_v52 = vsel %vm6395_vm5, %v6446_v29, %v6447_v51  ;;  %v6464_v57 = vrot.slane %v5550_v32, 4  ;;  %v6285_v42 = vpop.permute.xlu1 %6284 }
 0x752   : > { %6431 = vrot.lane.b32.xlu0 %v6430_v54, %s11486_s16  ;;  %v6153_v49 = vpop.permute.xlu0 %6152  ;;  %v17104_v54 = vld [vmem:[#allocation22_spill] sm:$0xff] }
 0x753   : > { %v6466_v23 = vsel %vm6395_vm5, %v6464_v57, %v6465_v40  ;;  %v6155_v62 = vadd.f32 %v6153_v49, %v6139_v24 }
 0x755   : > { %6458 = vrot.lane.b32.xlu1 %v6457_v22, %s11488_s27  ;;  %v6198_v37 = vpop.permute.xlu1 %6197 }
 0x756   : > { %6449 = vrot.lane.b32.xlu0 %v6448_v52, %s11488_s27  ;;  %v6171_v36 = vpop.permute.xlu0 %6170 }
 0x757   : > { %v6173_v19 = vadd.f32 %v6171_v36, %v6155_v62 }
 0x759   : > { %6476 = vrot.lane.b32.xlu1 %v6475_v61, %s11483_s10  ;;  %v6267_v12 = vpop.permute.xlu1 %6266 }
 0x75a   : > { %6467 = vrot.lane.b32.xlu0 %v6466_v23, %s11483_s10 }
 0x771   : > { %v6189_v14 = vpop.permute.xlu0 %6188 }
 0x772   : > { %v6191_v63 = vadd.f32 %v6189_v14, %v6173_v19 }
 0x775   : > { %v6258_v46 = vpop.permute.xlu0 %6257 }
 0x779   : > { %v6294_v58 = vpop.permute.xlu0 %6293 }
 0x77d   : > { %v6207_v0 = vpop.permute.xlu0 %6206 }
 0x77e   : > { %v6209_v34 = vadd.f32 %v6207_v0, %v6191_v63 }
 0x780   : > { %v6226_v26 = vadd.f32 %v17101_v43, %v6209_v34 }
 0x781   : > { %v6240_v18 = vpop.permute.xlu0 %6239 }
 0x782   : > { %v6242_v21 = vadd.f32 %v6240_v18, %v6226_v26 }
 0x784   : > { %v6260_v41 = vadd.f32 %v6258_v46, %v6242_v21 }
 0x785   : > { %v6276_v4 = vpop.permute.xlu0 %6275 }
 0x786   : > { %v6278_v6 = vadd.f32 %v6276_v4, %v6260_v41  ;;  %v11049_v41 = vld [vmem:[%s6481_s23 + $0x8] sm:$0xff] }
 0x788   : > { %v6296_v15 = vadd.f32 %v6294_v58, %v6278_v6  ;;  %v6482_v6 = vld [vmem:[%s6481_s23] sm:$0xff] }
 0x78a   : > { %v6313_v7 = vadd.f32 %v17102_v27, %v6296_v15 }
 0x797   : > { %v6099_v8 = vpop.permute.xlu1 %6098 }
 0x798   : > { %v6101_v17 = vadd.f32 %v6099_v8, %v17103_v50 }
 0x79b   : > { %v6109_v13 = vpop.permute.xlu1 %6108 }
 0x79c   : > { %v6111_v11 = vadd.f32 %v6109_v13, %v6101_v17 }
 0x79f   : > { %v6119_v38 = vpop.permute.xlu1 %6118 }
 0x7a0   : > { %v6121_v31 = vadd.f32 %v6119_v38, %v6111_v11 }
 0x7a3   : > { %v6129_v53 = vpop.permute.xlu1 %6128 }
 0x7a4   : > { %v6131_v48 = vadd.f32 %v6129_v53, %v6121_v31 }
 0x7a6   : > { %v6146_v44 = vadd.f32 %v14623_v3, %v6131_v48 }
 0x7a7   : > { %v6162_v9 = vpop.permute.xlu1 %6161 }
 0x7a8   : > { %v6164_v2 = vadd.f32 %v6162_v9, %v6146_v44 }
 0x7aa   : > { %v6182_v5 = vadd.f32 %v6180_v33, %v6164_v2 }
 0x7ab   : > { %v6303_v20 = vpop.permute.xlu1 %6302 }
 0x7ac   : > { %v6200_v30 = vadd.f32 %v6198_v37, %v6182_v5 }
 0x7ae   : > { %v6218_v47 = vadd.f32 %v6216_v59, %v6200_v30 }
 0x7af   : > { %v6336_v10 = vpop.permute.xlu1 %6335 }
 0x7b0   : > { %v6233_v24 = vadd.f32 %v17104_v54, %v6218_v47  ;;  %v6327_v51 = vpop.permute.xlu0 %6326 }
 0x7b1   : > { %v6329_v32 = vadd.f32 %v6327_v51, %v6313_v7 }
 0x7b2   : > { %v6251_v1 = vadd.f32 %v6249_v60, %v6233_v24 }
 0x7b3   : > { %v6354_v16 = vpop.permute.xlu1 %6353 }
 0x7b4   : > { %v6269_v45 = vadd.f32 %v6267_v12, %v6251_v1  ;;  %v6345_v29 = vpop.permute.xlu0 %6344 }
 0x7b5   : > { %v6347_v3 = vadd.f32 %v6345_v29, %v6329_v32 }
 0x7b6   : > { %v6287_v25 = vadd.f32 %v6285_v42, %v6269_v45 }
 0x7b7   : > { %v6372_v22 = vpop.permute.xlu1 %6371 }
 0x7b8   : > { %v6305_v56 = vadd.f32 %v6303_v20, %v6287_v25  ;;  %v6363_v52 = vpop.permute.xlu0 %6362 }
 0x7b9   : > { %v6365_v55 = vadd.f32 %v6363_v52, %v6347_v3 }
 0x7ba   : > { %v6320_v40 = vadd.f32 %v14648_v39, %v6305_v56 }
 0x7bb   : > { %v6390_v57 = vpop.permute.xlu1 %6389 }
 0x7bc   : > { %v6338_v61 = vadd.f32 %v6336_v10, %v6320_v40  ;;  %v6381_v23 = vpop.permute.xlu0 %6380 }
 0x7bd   : > { %v6383_v49 = vadd.f32 %v6381_v23, %v6365_v55 }
 0x7be   : > { %v6356_v36 = vadd.f32 %v6354_v16, %v6338_v61 }
 0x7bf   : > { %v6423_v14 = vpop.permute.xlu1 %6422  ;;  %v6400_v33 = vadd.f32 %v14696_v35, %v6383_v49 }
 0x7c0   : > { %v6374_v46 = vadd.f32 %v6372_v22, %v6356_v36  ;;  %v6414_v62 = vpop.permute.xlu0 %6413 }
 0x7c1   : > { %v6416_v39 = vadd.f32 %v6414_v62, %v6400_v33 }
 0x7c2   : > { %v6392_v58 = vadd.f32 %v6390_v57, %v6374_v46 }
 0x7c3   : > { %v6441_v19 = vpop.permute.xlu1 %6440 }
 0x7c4   : > { %v6407_v59 = vadd.f32 %v14662_v28, %v6392_v58  ;;  %v6432_v63 = vpop.permute.xlu0 %6431 }
 0x7c5   : > { %v6434_v60 = vadd.f32 %v6432_v63, %v6416_v39 }
 0x7c6   : > { %v6425_v0 = vadd.f32 %v6423_v14, %v6407_v59 }
 0x7c7   : > { %v6459_v34 = vpop.permute.xlu1 %6458 }
 0x7c8   : > { %v6443_v43 = vadd.f32 %v6441_v19, %v6425_v0  ;;  %v6450_v26 = vpop.permute.xlu0 %6449 }
 0x7c9   : > { %v6452_v21 = vadd.f32 %v6450_v26, %v6434_v60 }
 0x7ca   : > { %v6461_v18 = vadd.f32 %v6459_v34, %v6443_v43 }
 0x7cb   : > { %v6477_v4 = vpop.permute.xlu1 %6476 }
 0x7cc   : > { %v6479_v35 = vadd.f32 %v6477_v4, %v6461_v18  ;;  %v6468_v42 = vpop.permute.xlu0 %6467 }
 0x7cd   : > { %v6470_v15 = vadd.f32 %v6468_v42, %v6452_v21 }
 0x7ce   : > { %v6488_v27 = vadd.f32 %v11049_v41, %v6479_v35 }
 0x7cf   : > { %v6483_v7 = vadd.f32 %v6482_v6, %v6470_v15 }
 0x7d0   : > { %11050 = vst.msk [vmem:[%s6481_s23 + $0x8] sm:$0xff] %vm4808_vm1, %v6488_v27 }
 0x7d1   : > { %6484 = vst.msk [vmem:[%s6481_s23] sm:$0xff] %vm4808_vm1, %v6483_v7 }
 0x7d2 PF: > { %s14772_s12 = sadd.s32 4294967293, %s11416_s21 }
 0x7d3   : > { %p6491_p8 = scmp.ge.s32.totalorder %s14772_s12, 0  ;;  %p6492_p9 = scmp.lt.s32.totalorder %s14772_s12, 8 }
 0x7d5   : > { %p6493_p11 = pnand %p6492_p9, %p6491_p8 }
 0x7d7   : > { %6496 = sbr.rel (%p6493_p11) target bundleno = 2646 (0xa56), region = 56 }
 0x7dc   : > { %v6527_v28 = vlaneseq  ;;  %v11489_v37 = vmov 1983009808   ;;  %v11490_v8 = vmov 0   ;;  %vm6545_vm6 = vcmask 1041408   ;;  %v17105_v38 = vld [vmem:[#allocation13_spill] sm:$0xff]  ;;  %v11313_v48 = vld [vmem:[%s17000_s1 + $0x54] sm:$0xff]  }
 0x7dd   : > { %v6525_v12 = vunpack.c.l.s4 %v11489_v37  ;;  %6584 = vmatprep.mubr.bf16.mxu0 %v11490_v8  ;;  %6604 = vmatprep.mubr.bf16.mxu1 %v11490_v8  ;;  %v11314_v44 = vld [vmem:[%s17000_s1 + $0x64] sm:$0xff]   ;;  %vm6532_vm7 = vcmask 31744   ;;  %v11315_v9 = vld [vmem:[%s17000_s1 + $0x5c] sm:$0xff]   ;;  %v11316_v2 = vld [vmem:[%s17000_s1 + $0x6c] ss:$0 sps:$4 sm:$0x11]  }
 0x7de   : > { %v14776_v13 = vshrl.u32 %v6527_v28, 7  ;;  %s11491_s10 = smov 104   ;;  %s11492_s15 = smov 116   ;;  %v11502_v33 = vmov 1934713408   ;;  %vm6854_vm8 = vcmask 64512  }
 0x7df   : > { %v6526_v50 = vunpack.c.0.s8 %v6525_v12  ;;  %s11493_s16 = smov 80   ;;  %s11494_s27 = smov 92   ;;  %v6957_v46 = vunpack.c.l.s4 %v11502_v33  ;;  %vm8180_vm9 = vcmask 1046528   ;;  %vm8267_vm10 = vcmask 1045504  }
 0x7e0   : > { %s11495_s2 = smov 56   ;;  %s11496_s23 = smov 68   ;;  %vm8354_vm11 = vcmask 1044480   ;;  %vm8441_vm12 = vcmask 1043456  }
 0x7e1   : > { %v14779_v17 = vsub.s32 %v6526_v50, %v14776_v13  ;;  %s11497_s24 = smov 44   ;;  %s11498_s28 = smov 8   ;;  %v6958_v43 = vunpack.c.0.s8 %v6957_v46 }
 0x7e2   : > { %s11499_s17 = smov 20   ;;  %s11500_s26 = smov 32  }
 0x7e3   : > { %v6530_v11 = vrot.slane %v17105_v38, %v14779_v17  ;;  %s11501_s30 = smov 124   ;;  %v14982_v50 = vsub.s32 %v6958_v43, %v14776_v13  ;;  %s11503_s8 = smov 127  }
 0x7e4   : > { %s11504_s9 = smov 126   ;;  %s11506_s11 = smov 125  }
 0x7e5   : > { %v6531_v31 = vcombine.high %v6530_v11, %v6530_v11  ;;  %v6547_v53 = vsel %vm6545_vm6, %v6530_v11, 0 }
 0x7e7   : > { %11063 = vmatprep.subr.msk.bf16.mxu0 %vm6545_vm6, %v6531_v31  ;;  %11114 = vmatprep.subr.msk.bf16.mxu1 %vm6545_vm6, %v6531_v31 }
 0x7e8   : > { %6567 = vmatpush1.bf16.msra.mxu0 %v6547_v53  ;;  %11115 = vmatpush1.bf16.msra.mxu1 %v6547_v53 }
 0x7eb   : > { %11064 = vmatmul.mubr.msk.bf16.vlgmr.msra.gmra.mxu0 %vm6532_vm7, %v11313_v48  ;;  %11066 = vmatmul.mubr.msk.bf16.vlgmr.msra.gmra.mxu1 %vm6532_vm7, %v11314_v44 }
 0x7ec   : > { %6594 = vmatprep.mubr.bf16.mxu0 %v11490_v8  ;;  %6614 = vmatprep.mubr.bf16.mxu1 %v11490_v8 }
 0x7f3   : > { %11065 = vmatmul.mubr.msk.bf16.gmra.mxu0 %vm6532_vm7, %v11315_v9  ;;  %11067 = vmatmul.mubr.msk.bf16.gmra.mxu1 %vm6532_vm7, %v11316_v2 }
 0x8ab   : > { %v14795_v5 = vpop.f32.mrf.mxu0  ;;  %v14797_v20 = vpop.f32.mrf.mxu1 }
 0x8ac   : > { %6651 = vrot.lane.b32.xlu1 %v14795_v5, %s11491_s10  ;;  %6630 = vrot.lane.b32.xlu0 %v14795_v5, %s11492_s15 }
 0x8ad   : > { %v6608_v30 = vpop.f32.mrf.mxu1  ;;  %v6588_v16 = vpop.f32.mrf.mxu0 }
 0x8af   : > { %v14803_v47 = vpop.f32.mrf.mxu1  ;;  %v14851_v45 = vpop.f32.mrf.mxu0 }
 0x8b0   : > { %6659 = vrot.lane.b32.xlu1 %v14797_v20, %s11491_s10  ;;  %6638 = vrot.lane.b32.xlu0 %v14797_v20, %s11492_s15 }
 0x8b1   : > { %v14809_v10 = vpop.f32.mrf.mxu1  ;;  %v6592_v29 = vpop.f32.mrf.mxu0 }
 0x8b3   : > { %v14811_v54 = vpop.f32.mrf.mxu1  ;;  %v14892_v25 = vpop.f32.mrf.mxu0 }
 0x8b4   : > { %6693 = vrot.lane.b32.xlu1 %v14795_v5, %s11493_s16  ;;  %6672 = vrot.lane.b32.xlu0 %v14795_v5, %s11494_s27 }
 0x8b5   : > { %v14817_v24 = vpop.f32.mrf.mxu1  ;;  %v14917_v32 = vpop.f32.mrf.mxu0 }
 0x8b7   : > { %v6620_v51 = vpop.f32.mrf.mxu1  ;;  %v14923_v52 = vpop.f32.mrf.mxu0 }
 0x8b8   : > { %6701 = vrot.lane.b32.xlu1 %v14797_v20, %s11493_s16  ;;  %6680 = vrot.lane.b32.xlu0 %v14797_v20, %s11494_s27 }
 0x8b9   : > { %v6621_v1 = vpop.f32.mrf.mxu1  ;;  %v6602_v26 = vpop.f32.mrf.mxu0 }
 0x8bc   : > { %6735 = vrot.lane.b32.xlu1 %v14795_v5, %s11495_s2  ;;  %6714 = vrot.lane.b32.xlu0 %v14795_v5, %s11496_s23 }
 0x8c0   : > { %6756 = vrot.lane.b32.xlu1 %v14795_v5, %s11497_s24  ;;  %6722 = vrot.lane.b32.xlu0 %v14797_v20, %s11496_s23 }
 0x8c4   : > { %6764 = vrot.lane.b32.xlu1 %v14797_v20, %s11497_s24  ;;  %6826 = vrot.lane.b32.xlu0 %v14795_v5, %s11498_s28 }
 0x8c8   : > { %6798 = vrot.lane.b32.xlu1 %v14795_v5, %s11499_s17  ;;  %6743 = vrot.lane.b32.xlu0 %v14797_v20, %s11495_s2 }
 0x8cc   : > { %6842 = vrot.lane.b32.xlu1 %v14797_v20, %s11498_s28  ;;  %6777 = vrot.lane.b32.xlu0 %v14795_v5, %s11500_s26 }
 0x8d0   : > { %6785 = vrot.lane.b32.xlu1 %v14797_v20, %s11500_s26  ;;  %6806 = vrot.lane.b32.xlu0 %v14797_v20, %s11499_s17 }
 0x8d4   : > { %6869 = vrot.lane.b32.xlu0 %v6588_v16, %s11501_s30  ;;  %6828 = vrot.lane.b32.xlu1 %v6588_v16, %s11498_s28 }
 0x8d8   : > { %6844 = vrot.lane.b32.xlu0 %v6608_v30, %s11498_s28  ;;  %6877 = vrot.lane.b32.xlu1 %v6608_v30, %s11501_s30 }
 0x8dc   : > { %6640 = vrot.lane.b32.xlu1 %v14803_v47, %s11492_s15  ;;  %6632 = vrot.lane.b32.xlu0 %v14851_v45, %s11492_s15 }
 0x8e0   : > { %6674 = vrot.lane.b32.xlu1 %v14851_v45, %s11494_s27  ;;  %6653 = vrot.lane.b32.xlu0 %v14851_v45, %s11491_s10 }
 0x8e4   : > { %6682 = vrot.lane.b32.xlu1 %v14803_v47, %s11494_s27  ;;  %6661 = vrot.lane.b32.xlu0 %v14803_v47, %s11491_s10 }
 0x8e8   : > { %6716 = vrot.lane.b32.xlu1 %v14851_v45, %s11496_s23  ;;  %6695 = vrot.lane.b32.xlu0 %v14851_v45, %s11493_s16 }
 0x8ec   : > { %6724 = vrot.lane.b32.xlu1 %v14803_v47, %s11496_s23  ;;  %6703 = vrot.lane.b32.xlu0 %v14803_v47, %s11493_s16 }
 0x8f0   : > { %6737 = vrot.lane.b32.xlu1 %v14851_v45, %s11495_s2  ;;  %6758 = vrot.lane.b32.xlu0 %v14851_v45, %s11497_s24 }
 0x8f4   : > { %6800 = vrot.lane.b32.xlu1 %v14851_v45, %s11499_s17  ;;  %6830 = vrot.lane.b32.xlu0 %v14851_v45, %s11498_s28 }
 0x8f8   : > { %6846 = vrot.lane.b32.xlu1 %v14803_v47, %s11498_s28  ;;  %6779 = vrot.lane.b32.xlu0 %v14851_v45, %s11500_s26 }
 0x8fc   : > { %6787 = vrot.lane.b32.xlu1 %v14803_v47, %s11500_s26  ;;  %6745 = vrot.lane.b32.xlu0 %v14803_v47, %s11495_s2 }
 0x900   : > { %6766 = vrot.lane.b32.xlu0 %v14803_v47, %s11497_s24  ;;  %6832 = vrot.lane.b32.xlu1 %v6592_v29, %s11498_s28 }
 0x904   : > { %6871 = vrot.lane.b32.xlu0 %v6592_v29, %s11501_s30  ;;  %6634 = vrot.lane.b32.xlu1 %v14892_v25, %s11492_s15 }
 0x908   : > { %6848 = vrot.lane.b32.xlu0 %v14809_v10, %s11498_s28  ;;  %6655 = vrot.lane.b32.xlu1 %v14892_v25, %s11491_s10 }
 0x90c   : > { %6642 = vrot.lane.b32.xlu0 %v14811_v54, %s11492_s15  ;;  %6663 = vrot.lane.b32.xlu1 %v14811_v54, %s11491_s10 }
 0x910   : > { %6676 = vrot.lane.b32.xlu0 %v14892_v25, %s11494_s27  ;;  %6697 = vrot.lane.b32.xlu1 %v14892_v25, %s11493_s16 }
 0x914   : > { %6684 = vrot.lane.b32.xlu0 %v14811_v54, %s11494_s27  ;;  %6705 = vrot.lane.b32.xlu1 %v14811_v54, %s11493_s16 }
 0x918   : > { %6718 = vrot.lane.b32.xlu0 %v14892_v25, %s11496_s23  ;;  %6739 = vrot.lane.b32.xlu1 %v14892_v25, %s11495_s2 }
 0x91c   : > { %6726 = vrot.lane.b32.xlu0 %v14811_v54, %s11496_s23  ;;  %6760 = vrot.lane.b32.xlu1 %v14892_v25, %s11497_s24 }
 0x91e   : > { %v6652_v22 = vpop.permute.xlu1 %6651  ;;  %v6631_v56 = vpop.permute.xlu0 %6630 }
 0x91f   : > { %v6890_v58 = vcombine.low %v14795_v5, %v6652_v22  ;;  %v6891_v19 = vcombine.high %v14795_v5, %v6652_v22 }
 0x920   : > { %6657 = vrot.lane.b32.xlu0 %v14923_v52, %s11491_s10  ;;  %6636 = vrot.lane.b32.xlu1 %v14923_v52, %s11492_s15  ;;  %s11068_s10 = sshll.u32 %s14772_s12, 4 }
 0x921   : > { %v14958_v41 = vrot.slane %v6890_v58, %v14779_v17  ;;  %v14961_v4 = vrot.slane %v6891_v19, %v14779_v17  ;;  %s8527_s15 = scalar_lea.vmem %s11668_s14, %s11068_s10 [#allocation5] }
 0x922   : > { %v14929_v3 = vpop.permute.xlu1 %6659  ;;  %v6639_v40 = vpop.permute.xlu0 %6638 }
 0x923   : > { %v7653_v7 = vcombine.low %v14797_v20, %v14929_v3  ;;  %v7654_v53 = vcombine.high %v14797_v20, %v14929_v3 }
 0x924   : > { %6699 = vrot.lane.b32.xlu0 %v14923_v52, %s11493_s16  ;;  %6678 = vrot.lane.b32.xlu1 %v14923_v52, %s11494_s27 }
 0x925   : > { %v15006_v5 = vrot.slane %v7653_v7, %v14779_v17  ;;  %v15020_v22 = vrot.slane %v7654_v53, %v14779_v17 }
 0x926   : > { %v6694_v55 = vpop.permute.xlu1 %6693  ;;  %v6673_v57 = vpop.permute.xlu0 %6672 }
 0x927   : > { %v6907_v49 = vcombine.high %v6631_v56, %v6673_v57  ;;  %v6906_v62 = vcombine.low %v6631_v56, %v6673_v57 }
 0x928   : > { %6741 = vrot.lane.b32.xlu0 %v14923_v52, %s11495_s2  ;;  %6720 = vrot.lane.b32.xlu1 %v14923_v52, %s11496_s23 }
 0x929   : > { %v14952_v0 = vrot.slane %v6907_v49, %v14779_v17  ;;  %v14955_v60 = vrot.slane %v6906_v62, %v14779_v17 }
 0x92a   : > { %v14939_v61 = vpop.permute.xlu1 %6701  ;;  %v6681_v23 = vpop.permute.xlu0 %6680 }
 0x92b   : > { %v7669_v35 = vcombine.low %v6639_v40, %v6681_v23  ;;  %v6970_v28 = vcombine.low %v14961_v4, %v14952_v0  ;;  %v7670_v37 = vcombine.high %v6639_v40, %v6681_v23  ;;  %v6954_v38 = vcombine.low %v14958_v41, %v14955_v60 }
 0x92c   : > { %6762 = vrot.lane.b32.xlu0 %v14923_v52, %s11497_s24  ;;  %6838 = vrot.lane.b32.xlu1 %v14923_v52, %s11498_s28 }
 0x92d   : > { %v14993_v48 = vrot.slane %v7669_v35, %v14779_v17  ;;  %v15009_v20 = vrot.slane %v7670_v37, %v14779_v17  ;;  %v15012_v1 = vrot.slane %v6970_v28, %v14982_v50  ;;  %v15017_v29 = vrot.slane %v6954_v38, %v14982_v50 }
 0x92e   : > { %v6736_v36 = vpop.permute.xlu1 %6735  ;;  %v6715_v14 = vpop.permute.xlu0 %6714 }
 0x92f   : > { %v6922_v59 = vcombine.low %v6694_v55, %v6736_v36  ;;  %v6923_v63 = vcombine.high %v6694_v55, %v6736_v36  ;;  %v7718_v56 = vcombine.high %v15006_v5, %v14993_v48  ;;  %v7734_v49 = vcombine.high %v15020_v22, %v15009_v20 }
 0x930   : > { %6804 = vrot.lane.b32.xlu0 %v14923_v52, %s11499_s17  ;;  %6783 = vrot.lane.b32.xlu1 %v14923_v52, %s11500_s26  ;;  %v7717_v37 = vcombine.low %v15006_v5, %v14993_v48 }
 0x931   : > { %v14965_v6 = vrot.slane %v6922_v59, %v14779_v17  ;;  %v14968_v42 = vrot.slane %v6923_v63, %v14779_v17  ;;  %v15043_v62 = vrot.slane %v7718_v56, %v14982_v50 }
 0x932   : > { %v6757_v39 = vpop.permute.xlu1 %6756  ;;  %v6723_v34 = vpop.permute.xlu0 %6722 }
 0x933   : > { %v6938_v18 = vcombine.low %v6715_v14, %v6757_v39  ;;  %v6939_v21 = vcombine.high %v6715_v14, %v6757_v39  ;;  %v15052_v39 = vrot.slane %v7734_v49, %v14982_v50 }
 0x934   : > { %6840 = vrot.lane.b32.xlu0 %v6602_v26, %s11498_s28  ;;  %6875 = vrot.lane.b32.xlu1 %v6602_v26, %s11501_s30 }
 0x935   : > { %v14971_v15 = vrot.slane %v6938_v18, %v14779_v17  ;;  %v14974_v27 = vrot.slane %v6939_v21, %v14779_v17 }
 0x936   : > { %v6765_v12 = vpop.permute.xlu1 %6764  ;;  %v6827_v8 = vpop.permute.xlu0 %6826 }
 0x937   : > { %v6986_v11 = vcombine.low %v14965_v6, %v14971_v15  ;;  %v7002_v31 = vcombine.low %v14968_v42, %v14974_v27  ;;  %v7701_v44 = vcombine.low %v6723_v34, %v6765_v12  ;;  %v7702_v13 = vcombine.high %v6723_v34, %v6765_v12 }
 0x938   : > { %6808 = vrot.lane.b32.xlu0 %v14803_v47, %s11499_s17  ;;  %6879 = vrot.lane.b32.xlu1 %v14809_v10, %s11501_s30  ;;  %v6987_v38 = vcombine.high %v14965_v6, %v14971_v15 }
 0x939   : > { %v15000_v9 = vrot.slane %v6986_v11, %v14982_v50  ;;  %v15003_v2 = vrot.slane %v7002_v31, %v14982_v50  ;;  %v7709_v3 = vrot.slane %v7701_v44, %v14779_v17  ;;  %v7716_v55 = vrot.slane %v7702_v13, %v14779_v17 }
 0x93a   : > { %v6799_v30 = vpop.permute.xlu1 %6798  ;;  %v6744_v51 = vpop.permute.xlu0 %6743  ;;  %v7003_v11 = vcombine.high %v14968_v42, %v14974_v27  ;;  %v7733_v42 = vcombine.low %v15020_v22, %v15009_v20  ;;  %v15107_v20 = vrot.slane %v6987_v38, %v14982_v50 }
 0x93b   : > { %v7685_v16 = vcombine.low %v14939_v61, %v6744_v51  ;;  %v7686_v10 = vcombine.high %v14939_v61, %v6744_v51  ;;  %v7023_v40 = vcombine.high %v15012_v1, %v15003_v2  ;;  %v7022_v38 = vcombine.low %v15012_v1, %v15003_v2 }
 0x93c   : > { %6834 = vrot.lane.b32.xlu0 %v14892_v25, %s11498_s28  ;;  %6836 = vrot.lane.b32.xlu1 %v14917_v32, %s11498_s28  ;;  %v15110_v22 = vrot.slane %v7003_v11, %v14982_v50 }
 0x93d   : > { %v7693_v57 = vrot.slane %v7685_v16, %v14779_v17  ;;  %v7700_v61 = vrot.slane %v7686_v10, %v14779_v17 }
 0x93e   : > { %v6843_v36 = vpop.permute.xlu1 %6842  ;;  %v6778_v14 = vpop.permute.xlu0 %6777 }
 0x93f   : > { %v7750_v33 = vcombine.high %v7693_v57, %v7709_v3  ;;  %v7766_v46 = vcombine.high %v7700_v61, %v7716_v55  ;;  %v7749_v7 = vcombine.low %v7693_v57, %v7709_v3  ;;  %v7765_v53 = vcombine.low %v7700_v61, %v7716_v55 }
 0x940   : > { %6781 = vrot.lane.b32.xlu0 %v14892_v25, %s11500_s26  ;;  %6802 = vrot.lane.b32.xlu1 %v14892_v25, %s11499_s17 }
 0x941   : > { %v15046_v58 = vrot.slane %v7750_v33, %v14982_v50  ;;  %v15049_v19 = vrot.slane %v7766_v46, %v14982_v50  ;;  %v15089_v6 = vrot.slane %v7749_v7, %v14982_v50  ;;  %v15116_v55 = vrot.slane %v7765_v53, %v14982_v50 }
 0x942   : > { %v6786_v59 = vpop.permute.xlu1 %6785  ;;  %v6807_v63 = vpop.permute.xlu0 %6806  ;;  %v7019_v33 = vcombine.high %v15017_v29, %v15000_v9  ;;  %v15131_v46 = vrot.slane %v7733_v42, %v14982_v50 }
 0x943   : > { %v7784_v34 = vcombine.high %v15043_v62, %v15046_v58  ;;  %v7788_v43 = vcombine.high %v15052_v39, %v15049_v19  ;;  %v7783_v7 = vcombine.low %v15043_v62, %v15046_v58 }
 0x944   : > { %6873 = vrot.lane.b32.xlu0 %v14917_v32, %s11501_s30  ;;  %6747 = vrot.lane.b32.xlu1 %v14811_v54, %s11495_s2  ;;  %v6955_v32 = vcombine.high %v14958_v41, %v14955_v60 }
 0x946   : > { %v6870_v26 = vpop.permute.xlu0 %6869  ;;  %v6829_v18 = vpop.permute.xlu1 %6828  ;;  %v15113_v3 = vrot.slane %v6955_v32, %v14982_v50  ;;  %v7785_v32 = vcombine.low %v15131_v46, %v15116_v55 }
 0x947   : > { %v7034_v21 = vcombine.high %v6799_v30, %v6870_v26  ;;  %v6855_v35 = vsel %vm6854_vm8, %v6827_v8, %v6829_v18  ;;  %v6971_v8 = vcombine.high %v14961_v4, %v14952_v0  ;;  %v15100_v30 = vrot.slane %v7717_v37, %v14982_v50 }
 0x948   : > { %v7026_v28 = vcombine.high %v6778_v14, %v6855_v35  ;;  %6768 = vrot.lane.b32.xlu0 %v14811_v54, %s11497_s24  ;;  %6850 = vrot.lane.b32.xlu1 %v14811_v54, %s11498_s28  ;;  %v7020_v18 = vcombine.low %v15113_v3, %v15107_v20 }
 0x949   : > { %v15070_v12 = vrot.slane %v7034_v21, %v14779_v17  ;;  %v7781_v49 = vcombine.low %v15100_v30, %v15089_v6 }
 0x94a   : > { %v15081_v60 = vrot.slane %v7026_v28, %v14779_v17  ;;  %v6845_v41 = vpop.permute.xlu0 %6844  ;;  %v6878_v31 = vpop.permute.xlu1 %6877  ;;  %v7021_v28 = vcombine.high %v15113_v3, %v15107_v20 }
 0x94b   : > { %v6859_v48 = vsel %vm6854_vm8, %v6843_v36, %v6845_v41  ;;  %v7805_v44 = vcombine.low %v6807_v63, %v6878_v31  ;;  %v7806_v13 = vcombine.high %v6807_v63, %v6878_v31  ;;  %v15123_v36 = vrot.slane %v6971_v8, %v14982_v50 }
 0x94c   : > { %v7042_v5 = vcombine.low %v15081_v60, %v15070_v12  ;;  %v7789_v0 = vcombine.low %v6786_v59, %v6859_v48  ;;  %v7790_v4 = vcombine.high %v6786_v59, %v6859_v48  ;;  %6852 = vrot.lane.b32.xlu0 %v14817_v24, %s11498_s28  ;;  %6789 = vrot.lane.b32.xlu1 %v14811_v54, %s11500_s26  ;;  %v8222_v37 = vrot.slane %v7781_v49, 1 }
 0x94d   : > { %v7813_v15 = vrot.slane %v7805_v44, %v14779_v17  ;;  %v15095_v27 = vrot.slane %v7806_v13, %v14779_v17  ;;  %v7043_v35 = vcombine.high %v15081_v60, %v15070_v12  ;;  %v7025_v12 = vcombine.high %v15123_v36, %v15110_v22 }
 0x94e   : > { %v7797_v51 = vrot.slane %v7789_v0, %v14779_v17  ;;  %v7804_v16 = vrot.slane %v7790_v4, %v14779_v17  ;;  %v6641_v10 = vpop.permute.xlu1 %6640  ;;  %v15104_v56 = vpop.permute.xlu0 %6632  ;;  %v7050_v11 = vrot.slane %v7042_v5, %v14982_v50  ;;  %v7787_v13 = vcombine.low %v15052_v39, %v15049_v19 }
 0x94f   : > { %v8181_v4 = vrot.slane %v7023_v40, 1  ;;  %v17022_v5 = vmov 0.0  }
 0x950   : > { %v7821_v57 = vcombine.low %v7797_v51, %v7813_v15  ;;  %v7822_v61 = vcombine.high %v7797_v51, %v7813_v15  ;;  %6810 = vrot.lane.b32.xlu0 %v14811_v54, %s11499_s17  ;;  %v7837_v14 = vcombine.low %v7804_v16, %v15095_v27  ;;  %6881 = vrot.lane.b32.xlu1 %v14817_v24, %s11501_s30  ;;  %v8258_v15 = vrot.slane %v7783_v7, 1 }
 0x951   : > { %v7024_v24 = vcombine.low %v15123_v36, %v15110_v22  ;;  %v7838_v60 = vcombine.high %v7804_v16, %v15095_v27  ;;  %v8291_v27 = vrot.slane %v7785_v32, 2  ;;  %v7057_v51 = vrot.slane %v7043_v35, %v14982_v50 }
 0x952   : > { %v15133_v59 = vpop.permute.xlu1 %6674  ;;  %v15135_v63 = vpop.permute.xlu0 %6653  ;;  %v15138_v26 = vrot.slane %v7821_v57, %v14982_v50  ;;  %v7836_v21 = vrot.slane %v7822_v61, %v14982_v50  ;;  %v15162_v31 = vrot.slane %v7837_v14, %v14982_v50  ;;  %v7058_v14 = vcombine.high %v7050_v11, %v17022_v5 }
 0x953   : > { %v8195_v0 = vrot.slane %v7024_v24, 1  ;;  %v7852_v49 = vrot.slane %v7838_v60, %v14982_v50  ;;  %v7076_v35 = vcombine.low %v15104_v56, %v15133_v59  ;;  %v7077_v7 = vcombine.high %v15104_v56, %v15133_v59 }
 0x954   : > { %8139 = vrot.lane.b32.xlu0 %v7019_v33, %s11503_s8  ;;  %v8223_v8 = vrot.slane %v15138_v26, 1  ;;  %v8259_v41 = vrot.slane %v7836_v21, 1  ;;  %v7854_v42 = vcombine.high %v7836_v21, %v17022_v5  ;;  %v8292_v61 = vrot.slane %v15162_v31, 2 }
 0x955   : > { %v7060_v32 = vcombine.low %v14851_v45, %v15135_v63  ;;  %v7061_v56 = vcombine.high %v14851_v45, %v15135_v63  ;;  %v8275_v59 = vrot.slane %v7784_v34, 2  ;;  %v7059_v45 = vcombine.high %v7057_v51, %v17022_v5 }
 0x956   : > { %v6683_v53 = vpop.permute.xlu1 %6682  ;;  %v6662_v48 = vpop.permute.xlu0 %6661  ;;  %v8224_v44 = vsel %vm8180_vm9, %v8222_v37, %v8223_v8  ;;  %v8260_v40 = vsel %vm8180_vm9, %v8258_v15, %v8259_v41  ;;  %v8276_v37 = vrot.slane %v7854_v42, 2  ;;  %v8293_v15 = vsel %vm8267_vm10, %v8291_v27, %v8292_v61 }
 0x957   : > { %8225 = vrot.lane.b32.xlu1 %v8224_v44, %s11504_s9  ;;  %v7873_v16 = vcombine.low %v6641_v10, %v6683_v53  ;;  %v7874_v20 = vcombine.high %v6641_v10, %v6683_v53  ;;  %v7857_v3 = vcombine.low %v14803_v47, %v6662_v48  ;;  %v7858_v57 = vcombine.high %v14803_v47, %v6662_v48 }
 0x958   : > { %8149 = vrot.lane.b32.xlu0 %v7020_v18, %s11504_s9  ;;  %v8196_v53 = vrot.slane %v7057_v51, 1  ;;  %v7782_v48 = vcombine.high %v15100_v30, %v15089_v6  ;;  %v8327_v62 = vrot.slane %v7787_v13, 2  ;;  %v7856_v58 = vcombine.high %v7852_v49, %v17022_v5 }
 0x959   : > { %v15181_v33 = vrot.slane %v7873_v16, %v14779_v17  ;;  %v15184_v21 = vrot.slane %v7874_v20, %v14779_v17  ;;  %v15187_v10 = vrot.slane %v7857_v3, %v14779_v17  ;;  %v15190_v47 = vrot.slane %v7858_v57, %v14779_v17 }
 0x95a   : > { %v6717_v18 = vpop.permute.xlu1 %6716  ;;  %v6696_v24 = vpop.permute.xlu0 %6695  ;;  %v8328_v16 = vrot.slane %v7852_v49, 2  ;;  %v8345_v34 = vrot.slane %v7788_v43, 2  ;;  %v8182_v6 = vrot.slane %v7058_v14, 1  ;;  %v15229_v30 = vrot.slane %v7076_v35, %v14779_v17 }
 0x95b   : > { %8261 = vrot.lane.b32.xlu1 %v8260_v40, %s11501_s30  ;;  %v7921_v8 = vcombine.low %v15187_v10, %v15181_v33  ;;  %v7922_v11 = vcombine.high %v15187_v10, %v15181_v33  ;;  %v7937_v60 = vcombine.low %v15190_v47, %v15184_v21  ;;  %v7938_v41 = vcombine.high %v15190_v47, %v15184_v21 }
 0x95c   : > { %8159 = vrot.lane.b32.xlu0 %v7021_v28, %s11506_s11  ;;  %v7853_v28 = vcombine.high %v15138_v26, %v17022_v5  ;;  %v15232_v63 = vrot.slane %v7077_v7, %v14779_v17  ;;  %v15235_v26 = vrot.slane %v7060_v32, %v14779_v17  ;;  %v15242_v13 = vsel %vm8267_vm10, %v8275_v59, %v8276_v37 }
 0x95d   : > { %17106 = vst [vmem:[#allocation26_spill] sm:$0xff] %v15242_v13  ;;  %v15245_v19 = vrot.slane %v7061_v56, %v14779_v17  ;;  %v8197_v39 = vsel %vm8180_vm9, %v8195_v0, %v8196_v53  ;;  %v8346_v43 = vrot.slane %v7856_v58, 2  ;;  %v15249_v27 = vsel %vm8180_vm9, %v8181_v4, %v8182_v6 }
 0x95e   : > { %v15215_v44 = vpop.permute.xlu1 %6724  ;;  %v15217_v42 = vpop.permute.xlu0 %6703  ;;  %v8329_v3 = vsel %vm8267_vm10, %v8327_v62, %v8328_v16  ;;  %v8241_v57 = vrot.slane %v7853_v28, 1  ;;  %v8214_v40 = vrot.slane %v7059_v45, 1  ;;  %v7855_v2 = vcombine.high %v15162_v31, %v17022_v5 }
 0x95f   : > { %8294 = vrot.lane.b32.xlu1 %v8293_v15, %s11503_s8  ;;  %v8240_v0 = vrot.slane %v7782_v48, 1  ;;  %v8213_v4 = vrot.slane %v7025_v12, 1  ;;  %v7786_v14 = vcombine.high %v15131_v46, %v15116_v55  ;;  %v15262_v35 = vsel %vm8267_vm10, %v8345_v34, %v8346_v43 }
 0x960   : > { %8169 = vrot.lane.b32.xlu0 %v7022_v38, %s11501_s30  ;;  %v7125_v32 = vcombine.high %v15235_v26, %v15229_v30  ;;  %v7141_v22 = vcombine.high %v15245_v19, %v15232_v63  ;;  %v8310_v12 = vrot.slane %v7855_v2, 2  ;;  %v15378_v33 = vrot.slane %v7937_v60, %v14982_v50 }
 0x961   : > { %v8242_v46 = vsel %vm8180_vm9, %v8240_v0, %v8241_v57  ;;  %v8215_v59 = vsel %vm8180_vm9, %v8213_v4, %v8214_v40  ;;  %v8309_v53 = vrot.slane %v7786_v14, 2 }
 0x962   : > { %v6738_v51 = vpop.permute.xlu1 %6737  ;;  %v6759_v20 = vpop.permute.xlu0 %6758  ;;  %v15286_v16 = vrot.slane %v7125_v32, %v14982_v50  ;;  %v15289_v28 = vrot.slane %v7141_v22, %v14982_v50 }
 0x963   : > { %v7092_v1 = vcombine.low %v6696_v24, %v6738_v51  ;;  %v7093_v38 = vcombine.high %v6696_v24, %v6738_v51  ;;  %v7108_v61 = vcombine.low %v6717_v18, %v6759_v20  ;;  %v7109_v49 = vcombine.high %v6717_v18, %v6759_v20  ;;  %8330 = vrot.lane.b32.xlu1 %v8329_v3, %s11506_s11 }
 0x964   : > { %8198 = vrot.lane.b32.xlu0 %v8197_v39, %s11503_s8  ;;  %v8311_v58 = vsel %vm8267_vm10, %v8309_v53, %v8310_v12  ;;  %v7140_v12 = vcombine.low %v15245_v19, %v15232_v63 }
 0x965   : > { %v7100_v31 = vrot.slane %v7092_v1, %v14779_v17  ;;  %v15266_v24 = vrot.slane %v7093_v38, %v14779_v17  ;;  %v7116_v18 = vrot.slane %v7108_v61, %v14779_v17  ;;  %v7123_v7 = vrot.slane %v7109_v49, %v14779_v17 }
 0x966   : > { %v6801_v36 = vpop.permute.xlu1 %6800  ;;  %v6831_v55 = vpop.permute.xlu0 %6830  ;;  %v7124_v61 = vcombine.low %v15235_v26, %v15229_v30 }
 0x967   : > { %v7157_v37 = vcombine.high %v7100_v31, %v7116_v18  ;;  %v7173_v56 = vcombine.high %v15266_v24, %v7123_v7  ;;  %8243 = vrot.lane.b32.xlu1 %v8242_v46, %s11506_s11  ;;  %v7156_v3 = vcombine.low %v7100_v31, %v7116_v18  ;;  %v7172_v31 = vcombine.low %v15266_v24, %v7123_v7 }
 0x968   : > { %8216 = vrot.lane.b32.xlu0 %v8215_v59, %s11504_s9  ;;  %v15319_v59 = vrot.slane %v7124_v61, %v14982_v50  ;;  %v15325_v24 = vrot.slane %v7921_v8, %v14982_v50 }
 0x969   : > { %v15280_v48 = vrot.slane %v7157_v37, %v14982_v50  ;;  %v15283_v15 = vrot.slane %v7173_v56, %v14982_v50  ;;  %v15311_v14 = vrot.slane %v7156_v3, %v14982_v50  ;;  %v15347_v3 = vrot.slane %v7140_v12, %v14982_v50 }
 0x96a   : > { %v6847_v45 = vpop.permute.xlu1 %6846  ;;  %v6780_v62 = vpop.permute.xlu0 %6779 }
 0x96b   : > { %8312 = vrot.lane.b32.xlu1 %v8311_v58, %s11504_s9  ;;  %v7190_v34 = vcombine.low %v15286_v16, %v15280_v48  ;;  %v7195_v6 = vcombine.high %v15289_v28, %v15283_v15 }
 0x96e   : > { %v15297_v39 = vpop.permute.xlu1 %6787  ;;  %v6746_v43 = vpop.permute.xlu0 %6745 }
 0x96f   : > { %v7889_v51 = vcombine.low %v15217_v42, %v6746_v43  ;;  %v7890_v20 = vcombine.high %v15217_v42, %v6746_v43  ;;  %v15337_v43 = vrot.slane %v7172_v31, %v14982_v50 }
 0x971   : > { %v7897_v49 = vrot.slane %v7889_v51, %v14779_v17  ;;  %v7904_v0 = vrot.slane %v7890_v20, %v14779_v17  ;;  %v7188_v51 = vcombine.low %v15319_v59, %v15311_v14 }
 0x972   : > { %v6767_v57 = vpop.permute.xlu0 %6766  ;;  %v6833_v40 = vpop.permute.xlu1 %6832 }
 0x973   : > { %v7905_v2 = vcombine.low %v15215_v44, %v6767_v57  ;;  %v7906_v1 = vcombine.high %v15215_v44, %v6767_v57  ;;  %v6856_v38 = vsel %vm6854_vm8, %v6831_v55, %v6833_v40  ;;  %v8231_v31 = vrot.slane %v7188_v51, 1 }
 0x974   : > { %v7196_v18 = vcombine.low %v6780_v62, %v6856_v38  ;;  %v7197_v44 = vcombine.high %v6780_v62, %v6856_v38 }
 0x975   : > { %v7913_v4 = vrot.slane %v7905_v2, %v14779_v17  ;;  %v7920_v42 = vrot.slane %v7906_v1, %v14779_v17 }
 0x976   : > { %v6872_v32 = vpop.permute.xlu0 %6871  ;;  %v15314_v22 = vpop.permute.xlu1 %6634  ;;  %v7204_v53 = vrot.slane %v7196_v18, %v14779_v17  ;;  %v7211_v62 = vrot.slane %v7197_v44, %v14779_v17  ;;  %v7192_v18 = vcombine.low %v15347_v3, %v15337_v43 }
 0x977   : > { %v7953_v55 = vcombine.low %v7897_v49, %v7913_v4  ;;  %v7954_v30 = vcombine.high %v7897_v49, %v7913_v4  ;;  %v7969_v26 = vcombine.low %v7904_v0, %v7920_v42  ;;  %v7970_v46 = vcombine.high %v7904_v0, %v7920_v42 }
 0x978   : > { %v7212_v37 = vcombine.low %v6801_v36, %v6872_v32  ;;  %v7213_v56 = vcombine.high %v6801_v36, %v6872_v32  ;;  %v15362_v42 = vrot.slane %v7922_v11, %v14982_v50 }
 0x979   : > { %v15328_v7 = vrot.slane %v7953_v55, %v14982_v50  ;;  %v15350_v2 = vrot.slane %v7954_v30, %v14982_v50  ;;  %v15367_v44 = vrot.slane %v7969_v26, %v14982_v50  ;;  %v15381_v10 = vrot.slane %v7970_v46, %v14982_v50 }
 0x97a   : > { %v7220_v63 = vrot.slane %v7212_v37, %v14779_v17  ;;  %v7227_v19 = vrot.slane %v7213_v56, %v14779_v17  ;;  %v6849_v36 = vpop.permute.xlu0 %6848  ;;  %v15334_v58 = vpop.permute.xlu1 %6655  ;;  %v8300_v46 = vrot.slane %v7192_v18, 2 }
 0x97b   : > { %v15340_v8 = vsel %vm6854_vm8, %v6847_v45, %v6849_v36  ;;  %v7986_v20 = vcombine.high %v15325_v24, %v15328_v7  ;;  %v7265_v55 = vcombine.high %v14892_v25, %v15334_v58  ;;  %v7987_v37 = vcombine.low %v15362_v42, %v15350_v2 }
 0x97c   : > { %v7228_v57 = vcombine.low %v7204_v53, %v7220_v63  ;;  %v7244_v40 = vcombine.low %v7211_v62, %v7227_v19  ;;  %v7245_v1 = vcombine.high %v7211_v62, %v7227_v19  ;;  %v7993_v38 = vcombine.low %v15297_v39, %v15340_v8 }
 0x97d   : > { %v7994_v45 = vcombine.high %v15297_v39, %v15340_v8  ;;  %v7229_v32 = vcombine.high %v7204_v53, %v7220_v63  ;;  %v15392_v62 = vrot.slane %v7938_v41, %v14982_v50  ;;  %v7194_v63 = vcombine.low %v15289_v28, %v15283_v15 }
 0x97e   : > { %v7236_v61 = vrot.slane %v7228_v57, %v14982_v50  ;;  %v7252_v49 = vrot.slane %v7244_v40, %v14982_v50  ;;  %v6643_v0 = vpop.permute.xlu0 %6642  ;;  %v6664_v4 = vpop.permute.xlu1 %6663  ;;  %v7259_v12 = vrot.slane %v7245_v1, %v14982_v50  ;;  %v15401_v36 = vrot.slane %v7265_v55, %v14779_v17 }
 0x97f   : > { %v7243_v19 = vrot.slane %v7229_v32, %v14982_v50  ;;  %v7988_v51 = vcombine.high %v15362_v42, %v15350_v2  ;;  %v7989_v21 = vcombine.low %v15378_v33, %v15367_v44  ;;  %v8061_v47 = vcombine.low %v14811_v54, %v6664_v4 }
 0x980   : > { %v8232_v30 = vrot.slane %v7236_v61, 1  ;;  %v8301_v53 = vrot.slane %v7252_v49, 2  ;;  %v8337_v57 = vrot.slane %v7259_v12, 2  ;;  %v7260_v40 = vcombine.high %v7236_v61, %v17022_v5 }
 0x981   : > { %v8336_v61 = vrot.slane %v7194_v63, 2  ;;  %v7261_v4 = vcombine.high %v7243_v19, %v17022_v5  ;;  %v7264_v32 = vcombine.low %v14892_v25, %v15334_v58 }
 0x982   : > { %v15383_v11 = vpop.permute.xlu0 %6676  ;;  %v15385_v26 = vpop.permute.xlu1 %6697  ;;  %v8233_v56 = vsel %vm8180_vm9, %v8231_v31, %v8232_v30  ;;  %v8302_v18 = vsel %vm8267_vm10, %v8300_v46, %v8301_v53  ;;  %v8268_v53 = vrot.slane %v7190_v34, 2  ;;  %v15430_v46 = vrot.slane %v8061_v47, %v14779_v17 }
 0x983   : > { %v7281_v60 = vcombine.high %v15314_v22, %v15383_v11  ;;  %8234 = vrot.lane.b32.xlu0 %v8233_v56, %s11506_s11  ;;  %v7189_v56 = vcombine.high %v15319_v59, %v15311_v14  ;;  %v8338_v23 = vsel %vm8267_vm10, %v8336_v61, %v8337_v57  ;;  %v8250_v55 = vrot.slane %v7260_v40, 1 }
 0x984   : > { %v7263_v59 = vcombine.high %v7259_v12, %v17022_v5  ;;  %v7262_v12 = vcombine.high %v7252_v49, %v17022_v5 }
 0x985   : > { %v15409_v41 = vrot.slane %v7281_v60, %v14779_v17  ;;  %v8269_v60 = vrot.slane %v7243_v19, 2  ;;  %v7191_v19 = vcombine.high %v15286_v16, %v15280_v48  ;;  %v8249_v40 = vrot.slane %v7189_v56, 1 }
 0x986   : > { %v6685_v1 = vpop.permute.xlu0 %6684  ;;  %v15412_v31 = vpop.permute.xlu1 %6705  ;;  %v8356_v61 = vrot.slane %v7263_v59, 3 }
 0x987   : > { %v7344_v54 = vcombine.low %v15401_v36, %v15409_v41  ;;  %8303 = vrot.lane.b32.xlu0 %v8302_v18, %s11504_s9  ;;  %v8069_v30 = vcombine.low %v6643_v0, %v6685_v1  ;;  %v15442_v14 = vsel %vm8267_vm10, %v8268_v53, %v8269_v60  ;;  %v8355_v1 = vrot.slane %v7195_v6, 3 }
 0x988   : > { %17107 = vst [vmem:[#allocation27_spill] sm:$0xff] %v15442_v14  ;;  %v8251_v16 = vsel %vm8180_vm9, %v8249_v40, %v8250_v55  ;;  %v8283_v53 = vrot.slane %v7261_v4, 2  ;;  %v8282_v28 = vrot.slane %v7191_v19, 2  ;;  %v7193_v6 = vcombine.high %v15347_v3, %v15337_v43 }
 0x989   : > { %v15435_v18 = vrot.slane %v8069_v30, %v14779_v17  ;;  %v15466_v60 = vsel %vm8354_vm11, %v8355_v1, %v8356_v61  ;;  %v8319_v40 = vrot.slane %v7262_v12, 2 }
 0x98a   : > { %v15437_v0 = vpop.permute.xlu0 %6718  ;;  %v15439_v63 = vpop.permute.xlu1 %6739  ;;  %17108 = vst [vmem:[#allocation28_spill] sm:$0xff] %v15466_v60  ;;  %v8284_v59 = vsel %vm8267_vm10, %v8282_v28, %v8283_v53  ;;  %v8318_v19 = vrot.slane %v7193_v6, 2 }
 0x98b   : > { %8339 = vrot.lane.b32.xlu0 %v8338_v23, %s11501_s30  ;;  %v7297_v23 = vcombine.high %v15385_v26, %v15439_v63 }
 0x98c   : > { %v8320_v43 = vsel %vm8267_vm10, %v8318_v19, %v8319_v40 }
 0x98d   : > { %v15477_v56 = vrot.slane %v7297_v23, %v14779_v17 }
 0x98e   : > { %v15460_v30 = vpop.permute.xlu0 %6726  ;;  %v15462_v48 = vpop.permute.xlu1 %6760 }
 0x98f   : > { %v7313_v15 = vcombine.high %v15437_v0, %v15462_v48  ;;  %8252 = vrot.lane.b32.xlu0 %v8251_v16, %s11501_s30 }
 0x991   : > { %v15474_v49 = vrot.slane %v7313_v15, %v14779_v17  ;;  %v15489_v15 = vrot.slane %v7344_v54, %v14982_v50 }
 0x992   : > { %v6658_v55 = vpop.permute.xlu0 %6657  ;;  %v6637_v4 = vpop.permute.xlu1 %6636 }
 0x993   : > { %8285 = vrot.lane.b32.xlu0 %v8284_v59, %s11503_s8  ;;  %v7376_v1 = vcombine.low %v15477_v56, %v15474_v49  ;;  %v7468_v12 = vcombine.low %v14923_v52, %v6658_v55  ;;  %v7469_v34 = vcombine.high %v14923_v52, %v6658_v55  ;;  %v7312_v52 = vcombine.low %v15437_v0, %v15462_v48 }
 0x995   : > { %v15486_v3 = vrot.slane %v7376_v1, %v14982_v50  ;;  %v7483_v25 = vrot.slane %v7469_v34, %v14779_v17 }
 0x996   : > { %v6700_v61 = vpop.permute.xlu0 %6699  ;;  %v6679_v16 = vpop.permute.xlu1 %6678 }
 0x997   : > { %8321 = vrot.lane.b32.xlu0 %v8320_v43, %s11506_s11  ;;  %v7484_v23 = vcombine.low %v6637_v4, %v6679_v16  ;;  %v7485_v59 = vcombine.high %v6637_v4, %v6679_v16  ;;  %v7476_v43 = vrot.slane %v7468_v12, %v14779_v17 }
 0x999   : > { %v7492_v6 = vrot.slane %v7484_v23, %v14779_v17  ;;  %v7499_v4 = vrot.slane %v7485_v59, %v14779_v17 }
 0x99a   : > { %v6742_v53 = vpop.permute.xlu0 %6741  ;;  %v6721_v28 = vpop.permute.xlu1 %6720 }
 0x99b   : > { %v7500_v40 = vcombine.low %v6700_v61, %v6742_v53  ;;  %v7501_v19 = vcombine.high %v6700_v61, %v6742_v53  ;;  %v7533_v16 = vcombine.high %v7476_v43, %v7492_v6  ;;  %v7280_v53 = vcombine.low %v15314_v22, %v15383_v11 }
 0x99c   : > { %v7532_v55 = vcombine.low %v7476_v43, %v7492_v6  ;;  %v15520_v22 = vrot.slane %v7264_v32, %v14779_v17  ;;  %v7296_v11 = vcombine.low %v15385_v26, %v15439_v63  ;;  %v7549_v0 = vcombine.high %v7483_v25, %v7499_v4 }
 0x99d   : > { %v7508_v23 = vrot.slane %v7500_v40, %v14779_v17  ;;  %v7515_v57 = vrot.slane %v7501_v19, %v14779_v17  ;;  %v7547_v48 = vrot.slane %v7533_v16, %v14982_v50  ;;  %v15534_v19 = vrot.slane %v7280_v53, %v14779_v17 }
 0x99e   : > { %v6763_v1 = vpop.permute.xlu0 %6762  ;;  %v6839_v47 = vpop.permute.xlu1 %6838  ;;  %v15537_v32 = vrot.slane %v7312_v52, %v14779_v17  ;;  %v15540_v26 = vrot.slane %v7532_v55, %v14982_v50  ;;  %v7563_v53 = vrot.slane %v7549_v0, %v14982_v50 }
 0x99f   : > { %v7516_v54 = vcombine.low %v6721_v28, %v6763_v1  ;;  %v7517_v5 = vcombine.high %v6721_v28, %v6763_v1 }
 0x9a0   : > { %17109 = vst [vmem:[#allocation29_spill] sm:$0xff] %v15540_v26 }
 0x9a1   : > { %v7524_v61 = vrot.slane %v7516_v54, %v14779_v17  ;;  %v7531_v12 = vrot.slane %v7517_v5, %v14779_v17  ;;  %v15517_v5 = vrot.slane %v7993_v38, %v14779_v17  ;;  %v8008_v38 = vrot.slane %v7994_v45, %v14779_v17 }
 0x9a2   : > { %v15508_v28 = vpop.permute.xlu0 %6804  ;;  %v15511_v1 = vpop.permute.xlu1 %6783 }
 0x9a3   : > { %v7564_v58 = vcombine.low %v7508_v23, %v7524_v61  ;;  %v7565_v59 = vcombine.high %v7508_v23, %v7524_v61  ;;  %v7581_v40 = vcombine.high %v7515_v57, %v7531_v12  ;;  %v7580_v43 = vcombine.low %v7515_v57, %v7531_v12 }
 0x9a4   : > { %v15557_v61 = vrot.slane %v7986_v20, 3  ;;  %v15562_v57 = vrot.slane %v7987_v37, 3  ;;  %v7548_v12 = vcombine.low %v7483_v25, %v7499_v4  ;;  %v7328_v20 = vcombine.low %v15520_v22, %v15534_v19 }
 0x9a5   : > { %v15525_v34 = vrot.slane %v7564_v58, %v14982_v50  ;;  %v7579_v6 = vrot.slane %v7565_v59, %v14982_v50  ;;  %v15543_v54 = vrot.slane %v7581_v40, %v14982_v50  ;;  %v15578_v59 = vrot.slane %v7988_v51, 3 }
 0x9a6   : > { %v6841_v63 = vpop.permute.xlu0 %6840  ;;  %v15545_v16 = vpop.permute.xlu1 %6875  ;;  %v7588_v25 = vrot.slane %v7580_v43, %v14982_v50  ;;  %v7556_v42 = vrot.slane %v7548_v12, %v14982_v50 }
 0x9a7   : > { %v15548_v23 = vsel %vm6854_vm8, %v6839_v47, %v6841_v63  ;;  %v7598_v39 = vcombine.low %v7547_v48, %v7579_v6  ;;  %v7621_v8 = vcombine.high %v15508_v28, %v15545_v16  ;;  %v15565_v47 = vrot.slane %v7296_v11, %v14779_v17 }
 0x9a8   : > { %v7605_v45 = vcombine.high %v15511_v1, %v15548_v23  ;;  %v7599_v11 = vcombine.high %v7547_v48, %v7579_v6  ;;  %v7602_v0 = vcombine.low %v7563_v53, %v15543_v54  ;;  %v7603_v51 = vcombine.high %v7563_v53, %v15543_v54 }
 0x9a9   : > { %8144 = vrot.lane.b32.xlu1 %v7598_v39, %s11503_s8  ;;  %v7635_v55 = vrot.slane %v7621_v8, %v14779_v17  ;;  %v7360_v4 = vcombine.low %v15565_v47, %v15537_v32  ;;  %v17110_v48 = vcombine.low %v15392_v62, %v15381_v10 }
 0x9aa   : > { %v7619_v58 = vrot.slane %v7605_v45, %v14779_v17  ;;  %v6809_v37 = vpop.permute.xlu0 %6808  ;;  %v6880_v40 = vpop.permute.xlu1 %6879  ;;  %v8432_v45 = vrot.slane %v7989_v21, 3  ;;  %v8204_v2 = vrot.slane %v7603_v51, 1 }
 0x9ab   : > { %v8009_v39 = vcombine.low %v6809_v37, %v6880_v40  ;;  %v8010_v8 = vcombine.high %v6809_v37, %v6880_v40  ;;  %v8465_v6 = vrot.slane %v17110_v48, 4  ;;  %v17111_v37 = vcombine.high %v15392_v62, %v15381_v10 }
 0x9ac   : > { %v7637_v63 = vcombine.high %v7619_v58, %v7635_v55  ;;  %v15604_v40 = vrot.slane %v7328_v20, %v14982_v50  ;;  %v15609_v53 = vrot.slane %v7360_v4, %v14982_v50  ;;  %v7601_v62 = vcombine.high %v7556_v42, %v7588_v25 }
 0x9ad   : > { %8154 = vrot.lane.b32.xlu1 %v7599_v11, %s11504_s9  ;;  %v8017_v55 = vrot.slane %v8009_v39, %v14779_v17  ;;  %v8024_v58 = vrot.slane %v8010_v8, %v14779_v17  ;;  %v15601_v12 = vrot.slane %v17111_v37, 4  ;;  %v17112_v20 = vmov 0.0  }
 0x9ae   : > { %v7644_v43 = vrot.slane %v7637_v63, %v14982_v50  ;;  %v6835_v21 = vpop.permute.xlu0 %6834  ;;  %v6837_v11 = vpop.permute.xlu1 %6836  ;;  %v7600_v63 = vcombine.low %v7556_v42, %v7588_v25 }
 0x9af   : > { %v8025_v39 = vcombine.low %v15517_v5, %v8017_v55  ;;  %v8026_v8 = vcombine.high %v15517_v5, %v8017_v55  ;;  %v8041_v48 = vcombine.low %v8008_v38, %v8024_v58  ;;  %v8042_v52 = vcombine.high %v8008_v38, %v8024_v58 }
 0x9b0   : > { %v6857_v10 = vsel %vm6854_vm8, %v6835_v21, %v6837_v11  ;;  %v7652_v37 = vcombine.high %v7644_v43, %v17112_v20  ;;  %v8189_v21 = vrot.slane %v7644_v43, 1 }
 0x9b1   : > { %8164 = vrot.lane.b32.xlu1 %v7600_v63, %s11506_s11  ;;  %v8033_v54 = vrot.slane %v8025_v39, %v14982_v50  ;;  %v8040_v4 = vrot.slane %v8026_v8, %v14982_v50  ;;  %v8049_v13 = vrot.slane %v8041_v48, %v14982_v50  ;;  %v8056_v60 = vrot.slane %v8042_v52, %v14982_v50 }
 0x9b2   : > { %v6782_v14 = vpop.permute.xlu0 %6781  ;;  %v6803_v5 = vpop.permute.xlu1 %6802  ;;  %v8205_v58 = vrot.slane %v7652_v37, 1  ;;  %v8188_v8 = vrot.slane %v7602_v0, 1 }
 0x9b3   : > { %v7400_v55 = vcombine.low %v6782_v14, %v6857_v10  ;;  %v7401_v38 = vcombine.high %v6782_v14, %v6857_v10  ;;  %v8057_v11 = vcombine.high %v8033_v54, %v17112_v20  ;;  %v8397_v25 = vrot.slane %v8040_v4, 3 }
 0x9b4   : > { %v8058_v42 = vcombine.high %v8040_v4, %v17112_v20  ;;  %v8433_v51 = vrot.slane %v8049_v13, 3  ;;  %v8466_v52 = vrot.slane %v8056_v60, 4  ;;  %v8206_v0 = vsel %vm8180_vm9, %v8204_v2, %v8205_v58 }
 0x9b5   : > { %v7408_v63 = vrot.slane %v7400_v55, %v14779_v17  ;;  %v15624_v39 = vrot.slane %v7401_v38, %v14779_v17  ;;  %8174 = vrot.lane.b32.xlu1 %v7601_v62, %s11501_s30  ;;  %v8379_v26 = vrot.slane %v8057_v11, 3  ;;  %v15629_v14 = vsel %vm8354_vm11, %v15562_v57, %v8397_v25 }
 0x9b6   : > { %v6874_v48 = vpop.permute.xlu0 %6873  ;;  %v8415_v43 = vrot.slane %v8058_v42, 3  ;;  %v15632_v10 = vsel %vm8354_vm11, %v8432_v45, %v8433_v51  ;;  %v6748_v37 = vpop.permute.xlu1 %6747  ;;  %v15635_v38 = vsel %vm8441_vm12, %v8465_v6, %v8466_v52  ;;  %v8060_v62 = vcombine.high %v8056_v60, %v17112_v20 }
 0x9b7   : > { %v7416_v4 = vcombine.low %v6803_v5, %v6874_v48  ;;  %v7417_v55 = vcombine.high %v6803_v5, %v6874_v48  ;;  %v8380_v11 = vsel %vm8354_vm11, %v15557_v61, %v8379_v26  ;;  %v15646_v45 = vsel %vm8180_vm9, %v8188_v8, %v8189_v21 }
 0x9b8   : > { %v15643_v57 = vsel %vm8354_vm11, %v15578_v59, %v8415_v43  ;;  %v8484_v60 = vrot.slane %v8060_v62, 4  ;;  %v8363_v6 = vrot.slane %v8033_v54, 3  ;;  %v8077_v2 = vcombine.low %v15412_v31, %v6748_v37 }
 0x9b9   : > { %v7424_v25 = vrot.slane %v7416_v4, %v14779_v17  ;;  %v15650_v5 = vrot.slane %v7417_v55, %v14779_v17  ;;  %8207 = vrot.lane.b32.xlu1 %v8206_v0, %s11503_s8  ;;  %v17113_v26 = vcombine.low %v15325_v24, %v15328_v7  ;;  %v8059_v59 = vcombine.high %v8049_v13, %v17112_v20 }
 0x9ba   : > { %v6769_v58 = vpop.permute.xlu0 %6768  ;;  %v17114_v21 = vcombine.high %v15378_v33, %v15367_v44  ;;  %v6851_v48 = vpop.permute.xlu1 %6850  ;;  %v7392_v31 = vcombine.low %v15604_v40, %v15609_v53  ;;  %v15668_v24 = vsel %vm8441_vm12, %v15601_v12, %v8484_v60  ;;  %v17115_v44 = vcombine.high %v15565_v47, %v15537_v32 }
 0x9bb   : > { %v8362_v61 = vrot.slane %v17113_v26, 3  ;;  %v7432_v51 = vcombine.low %v7408_v63, %v7424_v25  ;;  %v7433_v52 = vcombine.high %v7408_v63, %v7424_v25  ;;  %v7448_v8 = vcombine.low %v15624_v39, %v15650_v5 }
 0x9bc   : > { %v8449_v42 = vrot.slane %v17114_v21, 4  ;;  %v8085_v54 = vcombine.low %v15460_v30, %v6769_v58  ;;  %v8450_v7 = vrot.slane %v8059_v59, 4  ;;  %v7375_v33 = vrot.slane %v17115_v44, %v14982_v50 }
 0x9bd   : > { %v15671_v13 = vsel %vm8354_vm11, %v8362_v61, %v8363_v6  ;;  %v7440_v63 = vrot.slane %v7432_v51, %v14982_v50  ;;  %8348 = vrot.lane.b32.xlu1 %v15262_v35, %s11501_s30  ;;  %v8084_v30 = vrot.slane %v8077_v2, %v14779_v17  ;;  %v7393_v37 = vcombine.high %v15604_v40, %v15609_v53 }
 0x9be   : > { %v8092_v43 = vrot.slane %v8085_v54, %v14779_v17  ;;  %v6853_v12 = vpop.permute.xlu0 %6852  ;;  %v15685_v4 = vsel %vm8441_vm12, %v8449_v42, %v8450_v7  ;;  %v7456_v55 = vrot.slane %v7448_v8, %v14982_v50  ;;  %v6790_v32 = vpop.permute.xlu1 %6789  ;;  %v8369_v47 = vrot.slane %v7392_v31, 3 }
 0x9bf   : > { %v8370_v62 = vrot.slane %v7440_v63, 3  ;;  %v7464_v0 = vcombine.high %v7440_v63, %v17112_v20  ;;  %v17116_v35 = vcombine.high %v15520_v22, %v15534_v19  ;;  %v7447_v60 = vrot.slane %v7433_v52, %v14982_v50 }
 0x9c0   : > { %v8101_v6 = vcombine.low %v8084_v30, %v8092_v43  ;;  %v17117_v2 = vcombine.low %v15430_v46, %v15435_v18  ;;  %v6861_v61 = vsel %vm6854_vm8, %v6851_v48, %v6853_v12  ;;  %v17118_v21 = vcombine.low %v15489_v15, %v15486_v3 }
 0x9c1   : > { %v7343_v25 = vrot.slane %v17116_v35, %v14982_v50  ;;  %8381 = vrot.lane.b32.xlu1 %v8380_v11, %s11503_s8  ;;  %v8371_v40 = vsel %vm8354_vm11, %v8369_v47, %v8370_v62  ;;  %v8388_v53 = vrot.slane %v7464_v0, 3  ;;  %v8387_v11 = vrot.slane %v7393_v37, 3 }
 0x9c2   : > { %v15700_v58 = vrot.slane %v17117_v2, %v14982_v50  ;;  %v15703_v26 = vrot.slane %v8101_v6, %v14982_v50  ;;  %8372 = vrot.lane.b32.xlu0 %v8371_v40, %s11503_s8  ;;  %v6811_v22 = vpop.permute.xlu0 %6810  ;;  %v6882_v59 = vpop.permute.xlu1 %6881  ;;  %v8442_v42 = vrot.slane %v17118_v21, 4  ;;  %v8443_v51 = vrot.slane %v7456_v55, 4 }
 0x9c3   : > { %v7394_v19 = vcombine.low %v7343_v25, %v7375_v33  ;;  %v8119_v52 = vcombine.low %v6811_v22, %v6882_v59  ;;  %v8406_v46 = vrot.slane %v7447_v60, 3  ;;  %v8389_v8 = vsel %vm8354_vm11, %v8387_v11, %v8388_v53 }
 0x9c4   : > { %v8109_v18 = vcombine.low %v15700_v58, %v15703_v26  ;;  %v7465_v31 = vcombine.high %v7447_v60, %v17112_v20  ;;  %v8110_v48 = vcombine.high %v15700_v58, %v15703_v26  ;;  %v15719_v54 = vsel %vm8441_vm12, %v8442_v42, %v8443_v51 }
 0x9c5   : > { %8399 = vrot.lane.b32.xlu1 %v15629_v14, %s11504_s9  ;;  %v8111_v7 = vcombine.low %v6790_v32, %v6861_v61  ;;  %v7377_v63 = vcombine.high %v15477_v56, %v15474_v49  ;;  %v8405_v30 = vrot.slane %v7394_v19, 3  ;;  %v7395_v43 = vcombine.high %v7343_v25, %v7375_v33 }
 0x9c6   : > { %8390 = vrot.lane.b32.xlu0 %v8389_v8, %s11504_s9  ;;  %v8140_v44 = vpop.permute.xlu0 %8139  ;;  %v7620_v14 = vcombine.low %v15508_v28, %v15545_v16  ;;  %v7604_v12 = vcombine.low %v15511_v1, %v15548_v23  ;;  %v8126_v37 = vrot.slane %v8119_v52, %v14779_v17  ;;  %v7449_v47 = vcombine.high %v15624_v39, %v15650_v5  ;;  %v17121_v8 = vld [vmem:[#allocation29_spill] sm:$0xff] }
 0x9c7   : > { %v8407_v32 = vsel %vm8354_vm11, %v8405_v30, %v8406_v46  ;;  %v8424_v62 = vrot.slane %v7465_v31, 3  ;;  %v7466_v49 = vcombine.high %v7456_v55, %v17112_v20  ;;  %v8118_v56 = vrot.slane %v8111_v7, %v14779_v17 }
 0x9c8   : > { %v7391_v1 = vrot.slane %v7377_v63, %v14982_v50  ;;  %v8423_v16 = vrot.slane %v7395_v43, 3  ;;  %v7397_v23 = vcombine.high %v15489_v15, %v15486_v3  ;;  %v17119_v39 = vcombine.high %v15401_v36, %v15409_v41 }
 0x9c9   : > { %8417 = vrot.lane.b32.xlu1 %v15643_v57, %s11506_s11  ;;  %v7628_v5 = vrot.slane %v7620_v14, %v14779_v17  ;;  %v7612_v33 = vrot.slane %v7604_v12, %v14779_v17  ;;  %v8127_v55 = vcombine.low %v8118_v56, %v8126_v37  ;;  %v7463_v0 = vrot.slane %v7449_v47, %v14982_v50  ;;  %v8226_v12 = vpop.permute.xlu1 %8225  ;;  %v17122_v56 = vld [vmem:[#allocation27_spill] sm:$0xff] }
 0x9ca   : > { %8408 = vrot.lane.b32.xlu0 %v8407_v32, %s11506_s11  ;;  %v8150_v28 = vpop.permute.xlu0 %8149  ;;  %v7359_v57 = vrot.slane %v17119_v39, %v14982_v50  ;;  %v17120_v35 = vcombine.low %v15017_v29, %v15000_v9  ;;  %v8425_v3 = vsel %vm8354_vm11, %v8423_v16, %v8424_v62  ;;  %v8457_v15 = vrot.slane %v7466_v49, 4 }
 0x9cb   : > { %v8456_v60 = vrot.slane %v7397_v23, 4  ;;  %v7636_v17 = vcombine.low %v7612_v33, %v7628_v5  ;;  %v8134_v40 = vrot.slane %v8127_v55, %v14982_v50  ;;  %v8475_v29 = vrot.slane %v7463_v0, 4 }
 0x9cc   : > { %v8142_v25 = vadd.f32 %v8140_v44, %v17120_v35  ;;  %v7398_v6 = vcombine.low %v7359_v57, %v7391_v1  ;;  %v7399_v61 = vcombine.high %v7359_v57, %v7391_v1  ;;  %v8501_v52 = vrot.slane %v8109_v18, 4 }
 0x9cd   : > { %8435 = vrot.lane.b32.xlu1 %v15632_v10, %s11501_s30  ;;  %v8458_v9 = vsel %vm8441_vm12, %v8456_v60, %v8457_v15  ;;  %v7467_v10 = vcombine.high %v7463_v0, %v17112_v20  ;;  %v8502_v59 = vrot.slane %v8134_v40, 4  ;;  %v8135_v11 = vcombine.high %v8134_v40, %v17112_v20  ;;  %v8262_v49 = vpop.permute.xlu1 %8261  ;;  %v17123_v0 = vld [vmem:[#allocation28_spill] sm:$0xff] }
 0x9ce   : > { %8426 = vrot.lane.b32.xlu0 %v8425_v3, %s11501_s30  ;;  %v8160_v36 = vpop.permute.xlu0 %8159  ;;  %v8152_v41 = vadd.f32 %v8150_v28, %v8142_v25  ;;  %v8474_v19 = vrot.slane %v7398_v6, 4  ;;  %v7651_v51 = vrot.slane %v7636_v17, %v14982_v50  ;;  %v8492_v46 = vrot.slane %v7399_v61, 4 }
 0x9cf   : > { %v8493_v42 = vrot.slane %v7467_v10, 4  ;;  %v7596_v31 = vcombine.low %v17121_v8, %v15525_v34  ;;  %v8503_v7 = vsel %vm8441_vm12, %v8501_v52, %v8502_v59  ;;  %v8520_v20 = vrot.slane %v8135_v11, 4 }
 0x9d0   : > { %v8162_v53 = vadd.f32 %v8160_v36, %v8152_v41  ;;  %v8476_v21 = vsel %vm8441_vm12, %v8474_v19, %v8475_v29  ;;  %v8511_v44 = vrot.slane %v7651_v51, 4  ;;  %v8519_v50 = vrot.slane %v8110_v48, 4 }
 0x9d1   : > { %8468 = vrot.lane.b32.xlu1 %v15635_v38, %s11503_s8  ;;  %v8295_v1 = vpop.permute.xlu1 %8294  ;;  %v17124_v41 = vcombine.high %v17121_v8, %v15525_v34 }
 0x9d2   : > { %8459 = vrot.lane.b32.xlu0 %v8458_v9, %s11503_s8  ;;  %v8170_v2 = vpop.permute.xlu0 %8169  ;;  %v8521_v18 = vsel %vm8441_vm12, %v8519_v50, %v8520_v20 }
 0x9d3   : > { %v8172_v22 = vadd.f32 %v8170_v2, %v8162_v53 }
 0x9d5   : > { %8486 = vrot.lane.b32.xlu1 %v15668_v24, %s11504_s9  ;;  %v8185_v38 = vadd.f32 %v15249_v27, %v8172_v22  ;;  %v8494_v24 = vsel %vm8441_vm12, %v8492_v46, %v8493_v42  ;;  %v8510_v27 = vrot.slane %v7596_v31, 4  ;;  %v8331_v33 = vpop.permute.xlu1 %8330 }
 0x9d6   : > { %8477 = vrot.lane.b32.xlu0 %v8476_v21, %s11504_s9  ;;  %v8199_v30 = vpop.permute.xlu0 %8198  ;;  %v17125_v21 = vld [vmem:[#allocation26_spill] sm:$0xff] }
 0x9d7   : > { %v8512_v63 = vsel %vm8441_vm12, %v8510_v27, %v8511_v44  ;;  %v8201_v47 = vadd.f32 %v8199_v30, %v8185_v38 }
 0x9d9   : > { %8504 = vrot.lane.b32.xlu1 %v8503_v7, %s11506_s11  ;;  %v8244_v25 = vpop.permute.xlu1 %8243 }
 0x9da   : > { %8495 = vrot.lane.b32.xlu0 %v8494_v24, %s11506_s11  ;;  %v8217_v43 = vpop.permute.xlu0 %8216 }
 0x9db   : > { %v8219_v62 = vadd.f32 %v8217_v43, %v8201_v47 }
 0x9dd   : > { %8522 = vrot.lane.b32.xlu1 %v8521_v18, %s11501_s30  ;;  %v8313_v3 = vpop.permute.xlu1 %8312 }
 0x9de   : > { %8513 = vrot.lane.b32.xlu0 %v8512_v63, %s11501_s30 }
 0x9f5   : > { %v8235_v14 = vpop.permute.xlu0 %8234 }
 0x9f6   : > { %v8237_v58 = vadd.f32 %v8235_v14, %v8219_v62 }
 0x9f9   : > { %v8304_v37 = vpop.permute.xlu0 %8303 }
 0x9fd   : > { %v8340_v32 = vpop.permute.xlu0 %8339 }
 0xa01   : > { %v8253_v26 = vpop.permute.xlu0 %8252 }
 0xa02   : > { %v8255_v48 = vadd.f32 %v8253_v26, %v8237_v58 }
 0xa04   : > { %v8272_v28 = vadd.f32 %v17122_v56, %v8255_v48 }
 0xa05   : > { %v8286_v16 = vpop.permute.xlu0 %8285 }
 0xa06   : > { %v8288_v23 = vadd.f32 %v8286_v16, %v8272_v28 }
 0xa08   : > { %v8306_v39 = vadd.f32 %v8304_v37, %v8288_v23 }
 0xa09   : > { %v8322_v57 = vpop.permute.xlu0 %8321 }
 0xa0a   : > { %v8324_v5 = vadd.f32 %v8322_v57, %v8306_v39  ;;  %v11070_v39 = vld [vmem:[%s8527_s15 + $0x8] sm:$0xff] }
 0xa0c   : > { %v8342_v55 = vadd.f32 %v8340_v32, %v8324_v5  ;;  %v8528_v5 = vld [vmem:[%s8527_s15] sm:$0xff] }
 0xa0e   : > { %v8359_v35 = vadd.f32 %v17123_v0, %v8342_v55 }
 0xa1b   : > { %v8145_v15 = vpop.permute.xlu1 %8144 }
 0xa1c   : > { %v8147_v60 = vadd.f32 %v8145_v15, %v17124_v41 }
 0xa1f   : > { %v8155_v36 = vpop.permute.xlu1 %8154 }
 0xa20   : > { %v8157_v17 = vadd.f32 %v8155_v36, %v8147_v60 }
 0xa23   : > { %v8165_v6 = vpop.permute.xlu1 %8164 }
 0xa24   : > { %v8167_v40 = vadd.f32 %v8165_v6, %v8157_v17 }
 0xa27   : > { %v8175_v53 = vpop.permute.xlu1 %8174 }
 0xa28   : > { %v8177_v9 = vadd.f32 %v8175_v53, %v8167_v40 }
 0xa2a   : > { %v8192_v29 = vadd.f32 %v15646_v45, %v8177_v9 }
 0xa2b   : > { %v8208_v10 = vpop.permute.xlu1 %8207 }
 0xa2c   : > { %v8210_v2 = vadd.f32 %v8208_v10, %v8192_v29 }
 0xa2e   : > { %v8228_v22 = vadd.f32 %v8226_v12, %v8210_v2 }
 0xa2f   : > { %v8349_v19 = vpop.permute.xlu1 %8348 }
 0xa30   : > { %v8246_v61 = vadd.f32 %v8244_v25, %v8228_v22 }
 0xa32   : > { %v8264_v59 = vadd.f32 %v8262_v49, %v8246_v61 }
 0xa33   : > { %v8382_v11 = vpop.permute.xlu1 %8381 }
 0xa34   : > { %v8279_v38 = vadd.f32 %v17125_v21, %v8264_v59  ;;  %v8373_v42 = vpop.permute.xlu0 %8372 }
 0xa35   : > { %v8375_v31 = vadd.f32 %v8373_v42, %v8359_v35 }
 0xa36   : > { %v8297_v51 = vadd.f32 %v8295_v1, %v8279_v38 }
 0xa37   : > { %v8400_v34 = vpop.permute.xlu1 %8399 }
 0xa38   : > { %v8315_v52 = vadd.f32 %v8313_v3, %v8297_v51  ;;  %v8391_v46 = vpop.permute.xlu0 %8390 }
 0xa39   : > { %v8393_v45 = vadd.f32 %v8391_v46, %v8375_v31 }
 0xa3a   : > { %v8333_v8 = vadd.f32 %v8331_v33, %v8315_v52 }
 0xa3b   : > { %v8418_v7 = vpop.permute.xlu1 %8417 }
 0xa3c   : > { %v8351_v20 = vadd.f32 %v8349_v19, %v8333_v8  ;;  %v8409_v24 = vpop.permute.xlu0 %8408 }
 0xa3d   : > { %v8411_v50 = vadd.f32 %v8409_v24, %v8393_v45 }
 0xa3e   : > { %v8366_v44 = vadd.f32 %v15671_v13, %v8351_v20 }
 0xa3f   : > { %v8436_v27 = vpop.permute.xlu1 %8435 }
 0xa40   : > { %v8384_v18 = vadd.f32 %v8382_v11, %v8366_v44  ;;  %v8427_v63 = vpop.permute.xlu0 %8426 }
 0xa41   : > { %v8429_v30 = vadd.f32 %v8427_v63, %v8411_v50 }
 0xa42   : > { %v8402_v43 = vadd.f32 %v8400_v34, %v8384_v18 }
 0xa43   : > { %v8469_v14 = vpop.permute.xlu1 %8468  ;;  %v8446_v12 = vadd.f32 %v15719_v54, %v8429_v30 }
 0xa44   : > { %v8420_v37 = vadd.f32 %v8418_v7, %v8402_v43  ;;  %v8460_v47 = vpop.permute.xlu0 %8459 }
 0xa45   : > { %v8462_v13 = vadd.f32 %v8460_v47, %v8446_v12 }
 0xa46   : > { %v8438_v32 = vadd.f32 %v8436_v27, %v8420_v37 }
 0xa47   : > { %v8487_v62 = vpop.permute.xlu1 %8486 }
 0xa48   : > { %v8453_v49 = vadd.f32 %v15685_v4, %v8438_v32  ;;  %v8478_v58 = vpop.permute.xlu0 %8477 }
 0xa49   : > { %v8480_v1 = vadd.f32 %v8478_v58, %v8462_v13 }
 0xa4a   : > { %v8471_v26 = vadd.f32 %v8469_v14, %v8453_v49 }
 0xa4b   : > { %v8505_v48 = vpop.permute.xlu1 %8504 }
 0xa4c   : > { %v8489_v56 = vadd.f32 %v8487_v62, %v8471_v26  ;;  %v8496_v28 = vpop.permute.xlu0 %8495 }
 0xa4d   : > { %v8498_v23 = vadd.f32 %v8496_v28, %v8480_v1 }
 0xa4e   : > { %v8507_v16 = vadd.f32 %v8505_v48, %v8489_v56 }
 0xa4f   : > { %v8523_v57 = vpop.permute.xlu1 %8522 }
 0xa50   : > { %v8525_v54 = vadd.f32 %v8523_v57, %v8507_v16  ;;  %v8514_v33 = vpop.permute.xlu0 %8513 }
 0xa51   : > { %v8516_v55 = vadd.f32 %v8514_v33, %v8498_v23 }
 0xa52   : > { %v8534_v0 = vadd.f32 %v11070_v39, %v8525_v54 }
 0xa53   : > { %v8529_v35 = vadd.f32 %v8528_v5, %v8516_v55 }
 0xa54   : > { %11071 = vst.msk [vmem:[%s8527_s15 + $0x8] sm:$0xff] %vm6854_vm8, %v8534_v0 }
 0xa55   : > { %8530 = vst.msk [vmem:[%s8527_s15] sm:$0xff] %vm6854_vm8, %v8529_v35 }
 0xa56 PF: > { %s15795_s12 = sadd.s32 4294967292, %s11416_s21 }
 0xa57   : > { %p8537_p10 = scmp.ge.s32.totalorder %s15795_s12, 0  ;;  %p8538_p12 = scmp.lt.s32.totalorder %s15795_s12, 8 }
 0xa59   : > { %p8539_p13 = pnand %p8538_p12, %p8537_p10 }
 0xa5b   : > { %8542 = sbr.rel (%p8539_p13) target bundleno = 3290 (0xcda), region = 60 }
 0xa60   : > { %v8573_v4 = vlaneseq  ;;  %v11507_v25 = vmov 1983009808   ;;  %v11508_v15 = vmov 0   ;;  %vm8591_vm13 = vcmask 1041408   ;;  %v17126_v6 = vld [vmem:[#allocation13_spill] sm:$0xff]  ;;  %v11317_v9 = vld [vmem:[%s17000_s1 + $0x70] sm:$0xff]  }
 0xa61   : > { %v8571_v3 = vunpack.c.l.s4 %v11507_v25  ;;  %8630 = vmatprep.mubr.bf16.mxu0 %v11508_v15  ;;  %8650 = vmatprep.mubr.bf16.mxu1 %v11508_v15  ;;  %v11318_v29 = vld [vmem:[%s17000_s1 + $0x80] sm:$0xff]   ;;  %vm8578_vm14 = vcmask 31744   ;;  %v11319_v10 = vld [vmem:[%s17000_s1 + $0x78] sm:$0xff]   ;;  %v11320_v2 = vld [vmem:[%s17000_s1 + $0x88] ss:$0 sps:$4 sm:$0x11]  }
 0xa62   : > { %v15799_v36 = vshrl.u32 %v8573_v4, 7  ;;  %s11509_s30 = smov 104   ;;  %s11510_s8 = smov 116   ;;  %v11520_v12 = vmov 1934713408   ;;  %vm8900_vm15 = vcmask 64512  }
 0xa63   : > { %v8572_v41 = vunpack.c.0.s8 %v8571_v3  ;;  %s11511_s9 = smov 80   ;;  %s11512_s11 = smov 92   ;;  %v9003_v37 = vunpack.c.l.s4 %v11520_v12  ;;  %vm10226_vm0 = vcmask 1046528   ;;  %vm10313_vm1 = vcmask 1045504  }
 0xa64   : > { %s11513_s10 = smov 56   ;;  %s11514_s15 = smov 68   ;;  %vm10400_vm2 = vcmask 1044480   ;;  %vm10487_vm3 = vcmask 1043456  }
 0xa65   : > { %v15802_v60 = vsub.s32 %v8572_v41, %v15799_v36  ;;  %s11515_s16 = smov 44   ;;  %s11516_s27 = smov 8   ;;  %v9004_v56 = vunpack.c.0.s8 %v9003_v37 }
 0xa66   : > { %s11517_s2 = smov 20   ;;  %s11518_s23 = smov 32  }
 0xa67   : > { %v8576_v17 = vrot.slane %v17126_v6, %v15802_v60  ;;  %s11519_s24 = smov 124   ;;  %v16005_v41 = vsub.s32 %v9004_v56, %v15799_v36  ;;  %s11521_s28 = smov 127  }
 0xa68   : > { %s11522_s17 = smov 126   ;;  %s11524_s26 = smov 125  }
 0xa69   : > { %v8577_v40 = vcombine.high %v8576_v17, %v8576_v17  ;;  %v8593_v53 = vsel %vm8591_vm13, %v8576_v17, 0 }
 0xa6b   : > { %11084 = vmatprep.subr.msk.bf16.mxu0 %vm8591_vm13, %v8577_v40  ;;  %11116 = vmatprep.subr.msk.bf16.mxu1 %vm8591_vm13, %v8577_v40 }
 0xa6c   : > { %8613 = vmatpush1.bf16.msra.mxu0 %v8593_v53  ;;  %11117 = vmatpush1.bf16.msra.mxu1 %v8593_v53 }
 0xa6f   : > { %11085 = vmatmul.mubr.msk.bf16.vlgmr.msra.gmra.mxu0 %vm8578_vm14, %v11317_v9  ;;  %11087 = vmatmul.mubr.msk.bf16.vlgmr.msra.gmra.mxu1 %vm8578_vm14, %v11318_v29 }
 0xa70   : > { %8640 = vmatprep.mubr.bf16.mxu0 %v11508_v15  ;;  %8660 = vmatprep.mubr.bf16.mxu1 %v11508_v15 }
 0xa77   : > { %11086 = vmatmul.mubr.msk.bf16.gmra.mxu0 %vm8578_vm14, %v11319_v10  ;;  %11088 = vmatmul.mubr.msk.bf16.gmra.mxu1 %vm8578_vm14, %v11320_v2 }
 0xb2f   : > { %v15818_v22 = vpop.f32.mrf.mxu0  ;;  %v15820_v19 = vpop.f32.mrf.mxu1 }
 0xb30   : > { %8697 = vrot.lane.b32.xlu1 %v15818_v22, %s11509_s30  ;;  %8676 = vrot.lane.b32.xlu0 %v15818_v22, %s11510_s8 }
 0xb31   : > { %v8654_v61 = vpop.f32.mrf.mxu1  ;;  %v8634_v34 = vpop.f32.mrf.mxu0 }
 0xb33   : > { %v15826_v59 = vpop.f32.mrf.mxu1  ;;  %v15874_v52 = vpop.f32.mrf.mxu0 }
 0xb34   : > { %8705 = vrot.lane.b32.xlu1 %v15820_v19, %s11509_s30  ;;  %8684 = vrot.lane.b32.xlu0 %v15820_v19, %s11510_s8 }
 0xb35   : > { %v15832_v11 = vpop.f32.mrf.mxu1  ;;  %v8638_v46 = vpop.f32.mrf.mxu0 }
 0xb37   : > { %v15834_v21 = vpop.f32.mrf.mxu1  ;;  %v15915_v8 = vpop.f32.mrf.mxu0 }
 0xb38   : > { %8739 = vrot.lane.b32.xlu1 %v15818_v22, %s11511_s9  ;;  %8718 = vrot.lane.b32.xlu0 %v15818_v22, %s11512_s11 }
 0xb39   : > { %v15840_v38 = vpop.f32.mrf.mxu1  ;;  %v15940_v31 = vpop.f32.mrf.mxu0 }
 0xb3b   : > { %v8666_v42 = vpop.f32.mrf.mxu1  ;;  %v15946_v24 = vpop.f32.mrf.mxu0 }
 0xb3c   : > { %8747 = vrot.lane.b32.xlu1 %v15820_v19, %s11511_s9  ;;  %8726 = vrot.lane.b32.xlu0 %v15820_v19, %s11512_s11 }
 0xb3d   : > { %v8667_v51 = vpop.f32.mrf.mxu1  ;;  %v8648_v28 = vpop.f32.mrf.mxu0 }
 0xb40   : > { %8781 = vrot.lane.b32.xlu1 %v15818_v22, %s11513_s10  ;;  %8760 = vrot.lane.b32.xlu0 %v15818_v22, %s11514_s15 }
 0xb44   : > { %8802 = vrot.lane.b32.xlu1 %v15818_v22, %s11515_s16  ;;  %8768 = vrot.lane.b32.xlu0 %v15820_v19, %s11514_s15 }
 0xb48   : > { %8810 = vrot.lane.b32.xlu1 %v15820_v19, %s11515_s16  ;;  %8872 = vrot.lane.b32.xlu0 %v15818_v22, %s11516_s27 }
 0xb4c   : > { %8844 = vrot.lane.b32.xlu1 %v15818_v22, %s11517_s2  ;;  %8789 = vrot.lane.b32.xlu0 %v15820_v19, %s11513_s10 }
 0xb50   : > { %8888 = vrot.lane.b32.xlu1 %v15820_v19, %s11516_s27  ;;  %8823 = vrot.lane.b32.xlu0 %v15818_v22, %s11518_s23 }
 0xb54   : > { %8831 = vrot.lane.b32.xlu1 %v15820_v19, %s11518_s23  ;;  %8852 = vrot.lane.b32.xlu0 %v15820_v19, %s11517_s2 }
 0xb58   : > { %8915 = vrot.lane.b32.xlu0 %v8634_v34, %s11519_s24  ;;  %8874 = vrot.lane.b32.xlu1 %v8634_v34, %s11516_s27 }
 0xb5c   : > { %8890 = vrot.lane.b32.xlu0 %v8654_v61, %s11516_s27  ;;  %8923 = vrot.lane.b32.xlu1 %v8654_v61, %s11519_s24 }
 0xb60   : > { %8686 = vrot.lane.b32.xlu1 %v15826_v59, %s11510_s8  ;;  %8678 = vrot.lane.b32.xlu0 %v15874_v52, %s11510_s8 }
 0xb64   : > { %8720 = vrot.lane.b32.xlu1 %v15874_v52, %s11512_s11  ;;  %8699 = vrot.lane.b32.xlu0 %v15874_v52, %s11509_s30 }
 0xb68   : > { %8728 = vrot.lane.b32.xlu1 %v15826_v59, %s11512_s11  ;;  %8707 = vrot.lane.b32.xlu0 %v15826_v59, %s11509_s30 }
 0xb6c   : > { %8762 = vrot.lane.b32.xlu1 %v15874_v52, %s11514_s15  ;;  %8741 = vrot.lane.b32.xlu0 %v15874_v52, %s11511_s9 }
 0xb70   : > { %8770 = vrot.lane.b32.xlu1 %v15826_v59, %s11514_s15  ;;  %8749 = vrot.lane.b32.xlu0 %v15826_v59, %s11511_s9 }
 0xb74   : > { %8783 = vrot.lane.b32.xlu1 %v15874_v52, %s11513_s10  ;;  %8804 = vrot.lane.b32.xlu0 %v15874_v52, %s11515_s16 }
 0xb78   : > { %8846 = vrot.lane.b32.xlu1 %v15874_v52, %s11517_s2  ;;  %8876 = vrot.lane.b32.xlu0 %v15874_v52, %s11516_s27 }
 0xb7c   : > { %8892 = vrot.lane.b32.xlu1 %v15826_v59, %s11516_s27  ;;  %8825 = vrot.lane.b32.xlu0 %v15874_v52, %s11518_s23 }
 0xb80   : > { %8833 = vrot.lane.b32.xlu1 %v15826_v59, %s11518_s23  ;;  %8791 = vrot.lane.b32.xlu0 %v15826_v59, %s11513_s10 }
 0xb84   : > { %8812 = vrot.lane.b32.xlu0 %v15826_v59, %s11515_s16  ;;  %8878 = vrot.lane.b32.xlu1 %v8638_v46, %s11516_s27 }
 0xb88   : > { %8917 = vrot.lane.b32.xlu0 %v8638_v46, %s11519_s24  ;;  %8680 = vrot.lane.b32.xlu1 %v15915_v8, %s11510_s8 }
 0xb8c   : > { %8894 = vrot.lane.b32.xlu0 %v15832_v11, %s11516_s27  ;;  %8701 = vrot.lane.b32.xlu1 %v15915_v8, %s11509_s30 }
 0xb90   : > { %8688 = vrot.lane.b32.xlu0 %v15834_v21, %s11510_s8  ;;  %8709 = vrot.lane.b32.xlu1 %v15834_v21, %s11509_s30 }
 0xb94   : > { %8722 = vrot.lane.b32.xlu0 %v15915_v8, %s11512_s11  ;;  %8743 = vrot.lane.b32.xlu1 %v15915_v8, %s11511_s9 }
 0xb98   : > { %8730 = vrot.lane.b32.xlu0 %v15834_v21, %s11512_s11  ;;  %8751 = vrot.lane.b32.xlu1 %v15834_v21, %s11511_s9 }
 0xb9c   : > { %8764 = vrot.lane.b32.xlu0 %v15915_v8, %s11514_s15  ;;  %8785 = vrot.lane.b32.xlu1 %v15915_v8, %s11513_s10 }
 0xba0   : > { %8772 = vrot.lane.b32.xlu0 %v15834_v21, %s11514_s15  ;;  %8806 = vrot.lane.b32.xlu1 %v15915_v8, %s11515_s16 }
 0xba2   : > { %v8698_v7 = vpop.permute.xlu1 %8697  ;;  %v8677_v20 = vpop.permute.xlu0 %8676 }
 0xba3   : > { %v8936_v32 = vcombine.low %v15818_v22, %v8698_v7  ;;  %v8937_v62 = vcombine.high %v15818_v22, %v8698_v7 }
 0xba4   : > { %8703 = vrot.lane.b32.xlu0 %v15946_v24, %s11509_s30  ;;  %8682 = vrot.lane.b32.xlu1 %v15946_v24, %s11510_s8  ;;  %s11089_s30 = sshll.u32 %s15795_s12, 4 }
 0xba5   : > { %v15981_v39 = vrot.slane %v8936_v32, %v15802_v60  ;;  %v15984_v57 = vrot.slane %v8937_v62, %v15802_v60  ;;  %s10573_s8 = scalar_lea.vmem %s11668_s14, %s11089_s30 [#allocation5] }
 0xba6   : > { %v15952_v45 = vpop.permute.xlu1 %8705  ;;  %v8685_v44 = vpop.permute.xlu0 %8684 }
 0xba7   : > { %v9699_v35 = vcombine.low %v15820_v19, %v15952_v45  ;;  %v9700_v53 = vcombine.high %v15820_v19, %v15952_v45 }
 0xba8   : > { %8745 = vrot.lane.b32.xlu0 %v15946_v24, %s11511_s9  ;;  %8724 = vrot.lane.b32.xlu1 %v15946_v24, %s11512_s11 }
 0xba9   : > { %v16029_v22 = vrot.slane %v9699_v35, %v15802_v60  ;;  %v16043_v7 = vrot.slane %v9700_v53, %v15802_v60 }
 0xbaa   : > { %v8740_v50 = vpop.permute.xlu1 %8739  ;;  %v8719_v27 = vpop.permute.xlu0 %8718 }
 0xbab   : > { %v8953_v30 = vcombine.high %v8677_v20, %v8719_v27  ;;  %v8952_v47 = vcombine.low %v8677_v20, %v8719_v27 }
 0xbac   : > { %8787 = vrot.lane.b32.xlu0 %v15946_v24, %s11513_s10  ;;  %8766 = vrot.lane.b32.xlu1 %v15946_v24, %s11514_s15 }
 0xbad   : > { %v15975_v26 = vrot.slane %v8953_v30, %v15802_v60  ;;  %v15978_v1 = vrot.slane %v8952_v47, %v15802_v60 }
 0xbae   : > { %v15962_v18 = vpop.permute.xlu1 %8747  ;;  %v8727_v63 = vpop.permute.xlu0 %8726 }
 0xbaf   : > { %v9715_v54 = vcombine.low %v8685_v44, %v8727_v63  ;;  %v9016_v4 = vcombine.low %v15984_v57, %v15975_v26  ;;  %v9716_v25 = vcombine.high %v8685_v44, %v8727_v63  ;;  %v9000_v6 = vcombine.low %v15981_v39, %v15978_v1 }
 0xbb0   : > { %8808 = vrot.lane.b32.xlu0 %v15946_v24, %s11515_s16  ;;  %8884 = vrot.lane.b32.xlu1 %v15946_v24, %s11516_s27 }
 0xbb1   : > { %v16016_v9 = vrot.slane %v9715_v54, %v15802_v60  ;;  %v16032_v19 = vrot.slane %v9716_v25, %v15802_v60  ;;  %v16035_v51 = vrot.slane %v9016_v4, %v16005_v41  ;;  %v16040_v46 = vrot.slane %v9000_v6, %v16005_v41 }
 0xbb2   : > { %v8782_v43 = vpop.permute.xlu1 %8781  ;;  %v8761_v14 = vpop.permute.xlu0 %8760 }
 0xbb3   : > { %v8968_v49 = vcombine.low %v8740_v50, %v8782_v43  ;;  %v8969_v58 = vcombine.high %v8740_v50, %v8782_v43  ;;  %v9764_v20 = vcombine.high %v16029_v22, %v16016_v9  ;;  %v9780_v30 = vcombine.high %v16043_v7, %v16032_v19 }
 0xbb4   : > { %8850 = vrot.lane.b32.xlu0 %v15946_v24, %s11517_s2  ;;  %8829 = vrot.lane.b32.xlu1 %v15946_v24, %s11518_s23  ;;  %v9763_v25 = vcombine.low %v16029_v22, %v16016_v9 }
 0xbb5   : > { %v15988_v5 = vrot.slane %v8968_v49, %v15802_v60  ;;  %v15991_v33 = vrot.slane %v8969_v58, %v15802_v60  ;;  %v16066_v47 = vrot.slane %v9764_v20, %v16005_v41 }
 0xbb6   : > { %v8803_v13 = vpop.permute.xlu1 %8802  ;;  %v8769_v48 = vpop.permute.xlu0 %8768 }
 0xbb7   : > { %v8984_v16 = vcombine.low %v8761_v14, %v8803_v13  ;;  %v8985_v23 = vcombine.high %v8761_v14, %v8803_v13  ;;  %v16075_v13 = vrot.slane %v9780_v30, %v16005_v41 }
 0xbb8   : > { %8886 = vrot.lane.b32.xlu0 %v8648_v28, %s11516_s27  ;;  %8921 = vrot.lane.b32.xlu1 %v8648_v28, %s11519_s24 }
 0xbb9   : > { %v15994_v55 = vrot.slane %v8984_v16, %v15802_v60  ;;  %v15997_v0 = vrot.slane %v8985_v23, %v15802_v60 }
 0xbba   : > { %v8811_v3 = vpop.permute.xlu1 %8810  ;;  %v8873_v15 = vpop.permute.xlu0 %8872 }
 0xbbb   : > { %v9032_v17 = vcombine.low %v15988_v5, %v15994_v55  ;;  %v9048_v40 = vcombine.low %v15991_v33, %v15997_v0  ;;  %v9747_v29 = vcombine.low %v8769_v48, %v8811_v3  ;;  %v9748_v36 = vcombine.high %v8769_v48, %v8811_v3 }
 0xbbc   : > { %8854 = vrot.lane.b32.xlu0 %v15826_v59, %s11517_s2  ;;  %8925 = vrot.lane.b32.xlu1 %v15832_v11, %s11519_s24  ;;  %v9033_v6 = vcombine.high %v15988_v5, %v15994_v55 }
 0xbbd   : > { %v16023_v10 = vrot.slane %v9032_v17, %v16005_v41  ;;  %v16026_v2 = vrot.slane %v9048_v40, %v16005_v41  ;;  %v9755_v45 = vrot.slane %v9747_v29, %v15802_v60  ;;  %v9762_v50 = vrot.slane %v9748_v36, %v15802_v60 }
 0xbbe   : > { %v8845_v61 = vpop.permute.xlu1 %8844  ;;  %v8790_v42 = vpop.permute.xlu0 %8789  ;;  %v9049_v17 = vcombine.high %v15991_v33, %v15997_v0  ;;  %v9779_v33 = vcombine.low %v16043_v7, %v16032_v19  ;;  %v16130_v19 = vrot.slane %v9033_v6, %v16005_v41 }
 0xbbf   : > { %v9731_v34 = vcombine.low %v15962_v18, %v8790_v42  ;;  %v9732_v11 = vcombine.high %v15962_v18, %v8790_v42  ;;  %v9069_v44 = vcombine.high %v16035_v51, %v16026_v2  ;;  %v9068_v6 = vcombine.low %v16035_v51, %v16026_v2 }
 0xbc0   : > { %8880 = vrot.lane.b32.xlu0 %v15915_v8, %s11516_s27  ;;  %8882 = vrot.lane.b32.xlu1 %v15940_v31, %s11516_s27  ;;  %v16133_v7 = vrot.slane %v9049_v17, %v16005_v41 }
 0xbc1   : > { %v9739_v27 = vrot.slane %v9731_v34, %v15802_v60  ;;  %v9746_v18 = vrot.slane %v9732_v11, %v15802_v60 }
 0xbc2   : > { %v8889_v43 = vpop.permute.xlu1 %8888  ;;  %v8824_v14 = vpop.permute.xlu0 %8823 }
 0xbc3   : > { %v9796_v12 = vcombine.high %v9739_v27, %v9755_v45  ;;  %v9812_v37 = vcombine.high %v9746_v18, %v9762_v50  ;;  %v9795_v35 = vcombine.low %v9739_v27, %v9755_v45  ;;  %v9811_v53 = vcombine.low %v9746_v18, %v9762_v50 }
 0xbc4   : > { %8827 = vrot.lane.b32.xlu0 %v15915_v8, %s11518_s23  ;;  %8848 = vrot.lane.b32.xlu1 %v15915_v8, %s11517_s2 }
 0xbc5   : > { %v16069_v32 = vrot.slane %v9796_v12, %v16005_v41  ;;  %v16072_v62 = vrot.slane %v9812_v37, %v16005_v41  ;;  %v16112_v5 = vrot.slane %v9795_v35, %v16005_v41  ;;  %v16139_v50 = vrot.slane %v9811_v53, %v16005_v41 }
 0xbc6   : > { %v8832_v49 = vpop.permute.xlu1 %8831  ;;  %v8853_v58 = vpop.permute.xlu0 %8852  ;;  %v9065_v12 = vcombine.high %v16040_v46, %v16023_v10  ;;  %v16154_v37 = vrot.slane %v9779_v33, %v16005_v41 }
 0xbc7   : > { %v9830_v48 = vcombine.high %v16066_v47, %v16069_v32  ;;  %v9834_v56 = vcombine.high %v16075_v13, %v16072_v62  ;;  %v9829_v35 = vcombine.low %v16066_v47, %v16069_v32 }
 0xbc8   : > { %8919 = vrot.lane.b32.xlu0 %v15940_v31, %s11519_s24  ;;  %8793 = vrot.lane.b32.xlu1 %v15834_v21, %s11513_s10  ;;  %v9001_v31 = vcombine.high %v15981_v39, %v15978_v1 }
 0xbca   : > { %v8916_v28 = vpop.permute.xlu0 %8915  ;;  %v8875_v16 = vpop.permute.xlu1 %8874  ;;  %v16136_v45 = vrot.slane %v9001_v31, %v16005_v41  ;;  %v9831_v31 = vcombine.low %v16154_v37, %v16139_v50 }
 0xbcb   : > { %v9080_v23 = vcombine.high %v8845_v61, %v8916_v28  ;;  %v8901_v54 = vsel %vm8900_vm15, %v8873_v15, %v8875_v16  ;;  %v9017_v15 = vcombine.high %v15984_v57, %v15975_v26  ;;  %v16123_v61 = vrot.slane %v9763_v25, %v16005_v41 }
 0xbcc   : > { %v9072_v4 = vcombine.high %v8824_v14, %v8901_v54  ;;  %8814 = vrot.lane.b32.xlu0 %v15834_v21, %s11515_s16  ;;  %8896 = vrot.lane.b32.xlu1 %v15834_v21, %s11516_s27  ;;  %v9066_v16 = vcombine.low %v16136_v45, %v16130_v19 }
 0xbcd   : > { %v16093_v3 = vrot.slane %v9080_v23, %v15802_v60  ;;  %v9827_v30 = vcombine.low %v16123_v61, %v16112_v5 }
 0xbce   : > { %v16104_v1 = vrot.slane %v9072_v4, %v15802_v60  ;;  %v8891_v39 = vpop.permute.xlu0 %8890  ;;  %v8924_v40 = vpop.permute.xlu1 %8923  ;;  %v9067_v4 = vcombine.high %v16136_v45, %v16130_v19 }
 0xbcf   : > { %v8905_v9 = vsel %vm8900_vm15, %v8889_v43, %v8891_v39  ;;  %v9851_v29 = vcombine.low %v8853_v58, %v8924_v40  ;;  %v9852_v36 = vcombine.high %v8853_v58, %v8924_v40  ;;  %v16146_v43 = vrot.slane %v9017_v15, %v16005_v41 }
 0xbd0   : > { %v9088_v22 = vcombine.low %v16104_v1, %v16093_v3  ;;  %v9835_v26 = vcombine.low %v8832_v49, %v8905_v9  ;;  %v9836_v57 = vcombine.high %v8832_v49, %v8905_v9  ;;  %8898 = vrot.lane.b32.xlu0 %v15840_v38, %s11516_s27  ;;  %8835 = vrot.lane.b32.xlu1 %v15834_v21, %s11518_s23  ;;  %v10268_v25 = vrot.slane %v9827_v30, 1 }
 0xbd1   : > { %v9859_v55 = vrot.slane %v9851_v29, %v15802_v60  ;;  %v16118_v0 = vrot.slane %v9852_v36, %v15802_v60  ;;  %v9089_v54 = vcombine.high %v16104_v1, %v16093_v3  ;;  %v9071_v3 = vcombine.high %v16146_v43, %v16133_v7 }
 0xbd2   : > { %v9843_v42 = vrot.slane %v9835_v26, %v15802_v60  ;;  %v9850_v34 = vrot.slane %v9836_v57, %v15802_v60  ;;  %v8687_v11 = vpop.permute.xlu1 %8686  ;;  %v16127_v20 = vpop.permute.xlu0 %8678  ;;  %v9096_v17 = vrot.slane %v9088_v22, %v16005_v41  ;;  %v9833_v36 = vcombine.low %v16075_v13, %v16072_v62 }
 0xbd3   : > { %v10227_v57 = vrot.slane %v9069_v44, 1  ;;  %v17026_v22 = vmov 0.0  }
 0xbd4   : > { %v9867_v27 = vcombine.low %v9843_v42, %v9859_v55  ;;  %v9868_v18 = vcombine.high %v9843_v42, %v9859_v55  ;;  %8856 = vrot.lane.b32.xlu0 %v15834_v21, %s11517_s2  ;;  %v9883_v14 = vcombine.low %v9850_v34, %v16118_v0  ;;  %8927 = vrot.lane.b32.xlu1 %v15840_v38, %s11519_s24  ;;  %v10304_v55 = vrot.slane %v9829_v35, 1 }
 0xbd5   : > { %v9070_v38 = vcombine.low %v16146_v43, %v16133_v7  ;;  %v9884_v1 = vcombine.high %v9850_v34, %v16118_v0  ;;  %v10337_v0 = vrot.slane %v9831_v31, 2  ;;  %v9103_v42 = vrot.slane %v9089_v54, %v16005_v41 }
 0xbd6   : > { %v16156_v49 = vpop.permute.xlu1 %8720  ;;  %v16158_v58 = vpop.permute.xlu0 %8699  ;;  %v16161_v28 = vrot.slane %v9867_v27, %v16005_v41  ;;  %v9882_v23 = vrot.slane %v9868_v18, %v16005_v41  ;;  %v16185_v40 = vrot.slane %v9883_v14, %v16005_v41  ;;  %v9104_v14 = vcombine.high %v9096_v17, %v17026_v22 }
 0xbd7   : > { %v10241_v26 = vrot.slane %v9070_v38, 1  ;;  %v9898_v30 = vrot.slane %v9884_v1, %v16005_v41  ;;  %v9122_v54 = vcombine.low %v16127_v20, %v16156_v49  ;;  %v9123_v35 = vcombine.high %v16127_v20, %v16156_v49 }
 0xbd8   : > { %10185 = vrot.lane.b32.xlu0 %v9065_v12, %s11521_s28  ;;  %v10269_v15 = vrot.slane %v16161_v28, 1  ;;  %v10305_v39 = vrot.slane %v9882_v23, 1  ;;  %v9900_v33 = vcombine.high %v9882_v23, %v17026_v22  ;;  %v10338_v18 = vrot.slane %v16185_v40, 2 }
 0xbd9   : > { %v9106_v31 = vcombine.low %v15874_v52, %v16158_v58  ;;  %v9107_v20 = vcombine.high %v15874_v52, %v16158_v58  ;;  %v10321_v49 = vrot.slane %v9830_v48, 2  ;;  %v9105_v52 = vcombine.high %v9103_v42, %v17026_v22 }
 0xbda   : > { %v8729_v53 = vpop.permute.xlu1 %8728  ;;  %v8708_v9 = vpop.permute.xlu0 %8707  ;;  %v10270_v29 = vsel %vm10226_vm0, %v10268_v25, %v10269_v15  ;;  %v10306_v44 = vsel %vm10226_vm0, %v10304_v55, %v10305_v39  ;;  %v10322_v25 = vrot.slane %v9900_v33, 2  ;;  %v10339_v55 = vsel %vm10313_vm1, %v10337_v0, %v10338_v18 }
 0xbdb   : > { %10271 = vrot.lane.b32.xlu1 %v10270_v29, %s11522_s17  ;;  %v9919_v34 = vcombine.low %v8687_v11, %v8729_v53  ;;  %v9920_v19 = vcombine.high %v8687_v11, %v8729_v53  ;;  %v9903_v45 = vcombine.low %v15826_v59, %v8708_v9  ;;  %v9904_v27 = vcombine.high %v15826_v59, %v8708_v9 }
 0xbdc   : > { %10195 = vrot.lane.b32.xlu0 %v9066_v16, %s11522_s17  ;;  %v10242_v53 = vrot.slane %v9103_v42, 1  ;;  %v9828_v9 = vcombine.high %v16123_v61, %v16112_v5  ;;  %v10373_v47 = vrot.slane %v9833_v36, 2  ;;  %v9902_v32 = vcombine.high %v9898_v30, %v17026_v22 }
 0xbdd   : > { %v16204_v12 = vrot.slane %v9919_v34, %v15802_v60  ;;  %v16207_v23 = vrot.slane %v9920_v19, %v15802_v60  ;;  %v16210_v11 = vrot.slane %v9903_v45, %v15802_v60  ;;  %v16213_v59 = vrot.slane %v9904_v27, %v15802_v60 }
 0xbde   : > { %v8763_v16 = vpop.permute.xlu1 %8762  ;;  %v8742_v38 = vpop.permute.xlu0 %8741  ;;  %v10374_v34 = vrot.slane %v9898_v30, 2  ;;  %v10391_v48 = vrot.slane %v9834_v56, 2  ;;  %v10228_v5 = vrot.slane %v9104_v14, 1  ;;  %v16252_v61 = vrot.slane %v9122_v54, %v15802_v60 }
 0xbdf   : > { %10307 = vrot.lane.b32.xlu1 %v10306_v44, %s11519_s24  ;;  %v9967_v15 = vcombine.low %v16210_v11, %v16204_v12  ;;  %v9968_v17 = vcombine.high %v16210_v11, %v16204_v12  ;;  %v9983_v1 = vcombine.low %v16213_v59, %v16207_v23  ;;  %v9984_v39 = vcombine.high %v16213_v59, %v16207_v23 }
 0xbe0   : > { %10205 = vrot.lane.b32.xlu0 %v9067_v4, %s11524_s26  ;;  %v9899_v4 = vcombine.high %v16161_v28, %v17026_v22  ;;  %v16255_v58 = vrot.slane %v9123_v35, %v15802_v60  ;;  %v16258_v28 = vrot.slane %v9106_v31, %v15802_v60  ;;  %v16265_v36 = vsel %vm10313_vm1, %v10321_v49, %v10322_v25 }
 0xbe1   : > { %17127 = vst [vmem:[#allocation30_spill] sm:$0xff] %v16265_v36  ;;  %v16268_v62 = vrot.slane %v9107_v20, %v15802_v60  ;;  %v10243_v13 = vsel %vm10226_vm0, %v10241_v26, %v10242_v53  ;;  %v10392_v56 = vrot.slane %v9902_v32, 2  ;;  %v16272_v0 = vsel %vm10226_vm0, %v10227_v57, %v10228_v5 }
 0xbe2   : > { %v16238_v29 = vpop.permute.xlu1 %8770  ;;  %v16240_v33 = vpop.permute.xlu0 %8749  ;;  %v10375_v45 = vsel %vm10313_vm1, %v10373_v47, %v10374_v34  ;;  %v10287_v27 = vrot.slane %v9899_v4, 1  ;;  %v10260_v44 = vrot.slane %v9105_v52, 1  ;;  %v9901_v2 = vcombine.high %v16185_v40, %v17026_v22 }
 0xbe3   : > { %10340 = vrot.lane.b32.xlu1 %v10339_v55, %s11521_s28  ;;  %v10286_v26 = vrot.slane %v9828_v9, 1  ;;  %v10259_v57 = vrot.slane %v9071_v3, 1  ;;  %v9832_v14 = vcombine.high %v16154_v37, %v16139_v50  ;;  %v16285_v54 = vsel %vm10313_vm1, %v10391_v48, %v10392_v56 }
 0xbe4   : > { %10215 = vrot.lane.b32.xlu0 %v9068_v6, %s11519_s24  ;;  %v9171_v31 = vcombine.high %v16258_v28, %v16252_v61  ;;  %v9187_v7 = vcombine.high %v16268_v62, %v16255_v58  ;;  %v10356_v3 = vrot.slane %v9901_v2, 2  ;;  %v16401_v12 = vrot.slane %v9983_v1, %v16005_v41 }
 0xbe5   : > { %v10288_v37 = vsel %vm10226_vm0, %v10286_v26, %v10287_v27  ;;  %v10261_v49 = vsel %vm10226_vm0, %v10259_v57, %v10260_v44  ;;  %v10355_v53 = vrot.slane %v9832_v14, 2 }
 0xbe6   : > { %v8784_v42 = vpop.permute.xlu1 %8783  ;;  %v8805_v19 = vpop.permute.xlu0 %8804  ;;  %v16309_v34 = vrot.slane %v9171_v31, %v16005_v41  ;;  %v16312_v4 = vrot.slane %v9187_v7, %v16005_v41 }
 0xbe7   : > { %v9138_v51 = vcombine.low %v8742_v38, %v8784_v42  ;;  %v9139_v6 = vcombine.high %v8742_v38, %v8784_v42  ;;  %v9154_v18 = vcombine.low %v8763_v16, %v8805_v19  ;;  %v9155_v30 = vcombine.high %v8763_v16, %v8805_v19  ;;  %10376 = vrot.lane.b32.xlu1 %v10375_v45, %s11524_s26 }
 0xbe8   : > { %10244 = vrot.lane.b32.xlu0 %v10243_v13, %s11521_s28  ;;  %v10357_v32 = vsel %vm10313_vm1, %v10355_v53, %v10356_v3  ;;  %v9186_v3 = vcombine.low %v16268_v62, %v16255_v58 }
 0xbe9   : > { %v9146_v40 = vrot.slane %v9138_v51, %v15802_v60  ;;  %v16289_v38 = vrot.slane %v9139_v6, %v15802_v60  ;;  %v9162_v16 = vrot.slane %v9154_v18, %v15802_v60  ;;  %v9169_v35 = vrot.slane %v9155_v30, %v15802_v60 }
 0xbea   : > { %v8847_v43 = vpop.permute.xlu1 %8846  ;;  %v8877_v50 = vpop.permute.xlu0 %8876  ;;  %v9170_v18 = vcombine.low %v16258_v28, %v16252_v61 }
 0xbeb   : > { %v9203_v25 = vcombine.high %v9146_v40, %v9162_v16  ;;  %v9219_v20 = vcombine.high %v16289_v38, %v9169_v35  ;;  %10289 = vrot.lane.b32.xlu1 %v10288_v37, %s11524_s26  ;;  %v9202_v45 = vcombine.low %v9146_v40, %v9162_v16  ;;  %v9218_v40 = vcombine.low %v16289_v38, %v9169_v35 }
 0xbec   : > { %10262 = vrot.lane.b32.xlu0 %v10261_v49, %s11522_s17  ;;  %v16342_v49 = vrot.slane %v9170_v18, %v16005_v41  ;;  %v16348_v38 = vrot.slane %v9967_v15, %v16005_v41 }
 0xbed   : > { %v16303_v9 = vrot.slane %v9203_v25, %v16005_v41  ;;  %v16306_v55 = vrot.slane %v9219_v20, %v16005_v41  ;;  %v16334_v14 = vrot.slane %v9202_v45, %v16005_v41  ;;  %v16370_v45 = vrot.slane %v9186_v3, %v16005_v41 }
 0xbee   : > { %v8893_v52 = vpop.permute.xlu1 %8892  ;;  %v8826_v47 = vpop.permute.xlu0 %8825 }
 0xbef   : > { %10358 = vrot.lane.b32.xlu1 %v10357_v32, %s11522_s17  ;;  %v9236_v48 = vcombine.low %v16309_v34, %v16303_v9  ;;  %v9241_v5 = vcombine.high %v16312_v4, %v16306_v55 }
 0xbf2   : > { %v16320_v13 = vpop.permute.xlu1 %8833  ;;  %v8792_v56 = vpop.permute.xlu0 %8791 }
 0xbf3   : > { %v9935_v42 = vcombine.low %v16240_v33, %v8792_v56  ;;  %v9936_v19 = vcombine.high %v16240_v33, %v8792_v56  ;;  %v16360_v56 = vrot.slane %v9218_v40, %v16005_v41 }
 0xbf5   : > { %v9943_v30 = vrot.slane %v9935_v42, %v15802_v60  ;;  %v9950_v26 = vrot.slane %v9936_v19, %v15802_v60  ;;  %v9234_v42 = vcombine.low %v16342_v49, %v16334_v14 }
 0xbf6   : > { %v8813_v27 = vpop.permute.xlu0 %8812  ;;  %v8879_v44 = vpop.permute.xlu1 %8878 }
 0xbf7   : > { %v9951_v2 = vcombine.low %v16238_v29, %v8813_v27  ;;  %v9952_v51 = vcombine.high %v16238_v29, %v8813_v27  ;;  %v8902_v6 = vsel %vm8900_vm15, %v8877_v50, %v8879_v44  ;;  %v10277_v40 = vrot.slane %v9234_v42, 1 }
 0xbf8   : > { %v9242_v16 = vcombine.low %v8826_v47, %v8902_v6  ;;  %v9243_v29 = vcombine.high %v8826_v47, %v8902_v6 }
 0xbf9   : > { %v9959_v57 = vrot.slane %v9951_v2, %v15802_v60  ;;  %v9966_v33 = vrot.slane %v9952_v51, %v15802_v60 }
 0xbfa   : > { %v8918_v31 = vpop.permute.xlu0 %8917  ;;  %v16337_v7 = vpop.permute.xlu1 %8680  ;;  %v9250_v53 = vrot.slane %v9242_v16, %v15802_v60  ;;  %v9257_v47 = vrot.slane %v9243_v29, %v15802_v60  ;;  %v9238_v16 = vcombine.low %v16370_v45, %v16360_v56 }
 0xbfb   : > { %v9999_v50 = vcombine.low %v9943_v30, %v9959_v57  ;;  %v10000_v61 = vcombine.high %v9943_v30, %v9959_v57  ;;  %v10015_v28 = vcombine.low %v9950_v26, %v9966_v33  ;;  %v10016_v37 = vcombine.high %v9950_v26, %v9966_v33 }
 0xbfc   : > { %v9258_v25 = vcombine.low %v8847_v43, %v8918_v31  ;;  %v9259_v20 = vcombine.high %v8847_v43, %v8918_v31  ;;  %v16385_v33 = vrot.slane %v9968_v17, %v16005_v41 }
 0xbfd   : > { %v16351_v35 = vrot.slane %v9999_v50, %v16005_v41  ;;  %v16373_v2 = vrot.slane %v10000_v61, %v16005_v41  ;;  %v16390_v29 = vrot.slane %v10015_v28, %v16005_v41  ;;  %v16404_v11 = vrot.slane %v10016_v37, %v16005_v41 }
 0xbfe   : > { %v9266_v58 = vrot.slane %v9258_v25, %v15802_v60  ;;  %v9273_v62 = vrot.slane %v9259_v20, %v15802_v60  ;;  %v8895_v43 = vpop.permute.xlu0 %8894  ;;  %v16357_v32 = vpop.permute.xlu1 %8701  ;;  %v10346_v37 = vrot.slane %v9238_v16, 2 }
 0xbff   : > { %v16363_v15 = vsel %vm8900_vm15, %v8893_v52, %v8895_v43  ;;  %v10032_v19 = vcombine.high %v16348_v38, %v16351_v35  ;;  %v9311_v50 = vcombine.high %v15915_v8, %v16357_v32  ;;  %v10033_v25 = vcombine.low %v16385_v33, %v16373_v2 }
 0xc00   : > { %v9274_v27 = vcombine.low %v9250_v53, %v9266_v58  ;;  %v9290_v44 = vcombine.low %v9257_v47, %v9273_v62  ;;  %v9291_v51 = vcombine.high %v9257_v47, %v9273_v62  ;;  %v10039_v6 = vcombine.low %v16320_v13, %v16363_v15 }
 0xc01   : > { %v10040_v52 = vcombine.high %v16320_v13, %v16363_v15  ;;  %v9275_v31 = vcombine.high %v9250_v53, %v9266_v58  ;;  %v16415_v47 = vrot.slane %v9984_v39, %v16005_v41  ;;  %v9240_v58 = vcombine.low %v16312_v4, %v16306_v55 }
 0xc02   : > { %v9282_v18 = vrot.slane %v9274_v27, %v16005_v41  ;;  %v9298_v30 = vrot.slane %v9290_v44, %v16005_v41  ;;  %v8689_v26 = vpop.permute.xlu0 %8688  ;;  %v8710_v57 = vpop.permute.xlu1 %8709  ;;  %v9305_v3 = vrot.slane %v9291_v51, %v16005_v41  ;;  %v16424_v43 = vrot.slane %v9311_v50, %v15802_v60 }
 0xc03   : > { %v9289_v62 = vrot.slane %v9275_v31, %v16005_v41  ;;  %v10034_v42 = vcombine.high %v16385_v33, %v16373_v2  ;;  %v10035_v23 = vcombine.low %v16401_v12, %v16390_v29  ;;  %v10107_v59 = vcombine.low %v15834_v21, %v8710_v57 }
 0xc04   : > { %v10278_v61 = vrot.slane %v9282_v18, 1  ;;  %v10347_v53 = vrot.slane %v9298_v30, 2  ;;  %v10383_v27 = vrot.slane %v9305_v3, 2  ;;  %v9306_v44 = vcombine.high %v9282_v18, %v17026_v22 }
 0xc05   : > { %v10382_v18 = vrot.slane %v9240_v58, 2  ;;  %v9307_v57 = vcombine.high %v9289_v62, %v17026_v22  ;;  %v9310_v31 = vcombine.low %v15915_v8, %v16357_v32 }
 0xc06   : > { %v16406_v17 = vpop.permute.xlu0 %8722  ;;  %v16408_v28 = vpop.permute.xlu1 %8743  ;;  %v10279_v20 = vsel %vm10226_vm0, %v10277_v40, %v10278_v61  ;;  %v10348_v16 = vsel %vm10313_vm1, %v10346_v37, %v10347_v53  ;;  %v10314_v53 = vrot.slane %v9236_v48, 2  ;;  %v16453_v37 = vrot.slane %v10107_v59, %v15802_v60 }
 0xc07   : > { %v9327_v1 = vcombine.high %v16337_v7, %v16406_v17  ;;  %10280 = vrot.lane.b32.xlu0 %v10279_v20, %s11524_s26  ;;  %v9235_v20 = vcombine.high %v16342_v49, %v16334_v14  ;;  %v10384_v63 = vsel %vm10313_vm1, %v10382_v18, %v10383_v27  ;;  %v10296_v50 = vrot.slane %v9306_v44, 1 }
 0xc08   : > { %v9309_v49 = vcombine.high %v9305_v3, %v17026_v22  ;;  %v9308_v3 = vcombine.high %v9298_v30, %v17026_v22 }
 0xc09   : > { %v16432_v39 = vrot.slane %v9327_v1, %v15802_v60  ;;  %v10315_v1 = vrot.slane %v9289_v62, 2  ;;  %v9237_v62 = vcombine.high %v16309_v34, %v16303_v9  ;;  %v10295_v44 = vrot.slane %v9235_v20, 1 }
 0xc0a   : > { %v8731_v51 = vpop.permute.xlu0 %8730  ;;  %v16435_v40 = vpop.permute.xlu1 %8751  ;;  %v10402_v18 = vrot.slane %v9309_v49, 3 }
 0xc0b   : > { %v9390_v21 = vcombine.low %v16424_v43, %v16432_v39  ;;  %10349 = vrot.lane.b32.xlu0 %v10348_v16, %s11522_s17  ;;  %v10115_v61 = vcombine.low %v8689_v26, %v8731_v51  ;;  %v16465_v14 = vsel %vm10313_vm1, %v10314_v53, %v10315_v1  ;;  %v10401_v51 = vrot.slane %v9241_v5, 3 }
 0xc0c   : > { %17128 = vst [vmem:[#allocation31_spill] sm:$0xff] %v16465_v14  ;;  %v10297_v34 = vsel %vm10226_vm0, %v10295_v44, %v10296_v50  ;;  %v10329_v53 = vrot.slane %v9307_v57, 2  ;;  %v10328_v4 = vrot.slane %v9237_v62, 2  ;;  %v9239_v5 = vcombine.high %v16370_v45, %v16360_v56 }
 0xc0d   : > { %v16458_v16 = vrot.slane %v10115_v61, %v15802_v60  ;;  %v16489_v1 = vsel %vm10400_vm2, %v10401_v51, %v10402_v18  ;;  %v10365_v44 = vrot.slane %v9308_v3, 2 }
 0xc0e   : > { %v16460_v26 = vpop.permute.xlu0 %8764  ;;  %v16462_v58 = vpop.permute.xlu1 %8785  ;;  %17129 = vst [vmem:[#allocation32_spill] sm:$0xff] %v16489_v1  ;;  %v10330_v49 = vsel %vm10313_vm1, %v10328_v4, %v10329_v53  ;;  %v10364_v62 = vrot.slane %v9239_v5, 2 }
 0xc0f   : > { %10385 = vrot.lane.b32.xlu0 %v10384_v63, %s11519_s24  ;;  %v9343_v63 = vcombine.high %v16408_v28, %v16462_v58 }
 0xc10   : > { %v10366_v56 = vsel %vm10313_vm1, %v10364_v62, %v10365_v44 }
 0xc11   : > { %v16500_v20 = vrot.slane %v9343_v63, %v15802_v60 }
 0xc12   : > { %v16483_v61 = vpop.permute.xlu0 %8772  ;;  %v16485_v9 = vpop.permute.xlu1 %8806 }
 0xc13   : > { %v9359_v55 = vcombine.high %v16460_v26, %v16485_v9  ;;  %10298 = vrot.lane.b32.xlu0 %v10297_v34, %s11519_s24 }
 0xc15   : > { %v16497_v30 = vrot.slane %v9359_v55, %v15802_v60  ;;  %v16512_v55 = vrot.slane %v9390_v21, %v16005_v41 }
 0xc16   : > { %v8704_v50 = vpop.permute.xlu0 %8703  ;;  %v8683_v57 = vpop.permute.xlu1 %8682 }
 0xc17   : > { %10331 = vrot.lane.b32.xlu0 %v10330_v49, %s11521_s28  ;;  %v9422_v51 = vcombine.low %v16500_v20, %v16497_v30  ;;  %v9514_v3 = vcombine.low %v15946_v24, %v8704_v50  ;;  %v9515_v48 = vcombine.high %v15946_v24, %v8704_v50  ;;  %v9358_v24 = vcombine.low %v16460_v26, %v16485_v9 }
 0xc19   : > { %v16509_v45 = vrot.slane %v9422_v51, %v16005_v41  ;;  %v9529_v8 = vrot.slane %v9515_v48, %v15802_v60 }
 0xc1a   : > { %v8746_v18 = vpop.permute.xlu0 %8745  ;;  %v8725_v34 = vpop.permute.xlu1 %8724 }
 0xc1b   : > { %10367 = vrot.lane.b32.xlu0 %v10366_v56, %s11524_s26  ;;  %v9530_v63 = vcombine.low %v8683_v57, %v8725_v34  ;;  %v9531_v49 = vcombine.high %v8683_v57, %v8725_v34  ;;  %v9522_v56 = vrot.slane %v9514_v3, %v15802_v60 }
 0xc1d   : > { %v9538_v5 = vrot.slane %v9530_v63, %v15802_v60  ;;  %v9545_v57 = vrot.slane %v9531_v49, %v15802_v60 }
 0xc1e   : > { %v8788_v53 = vpop.permute.xlu0 %8787  ;;  %v8767_v4 = vpop.permute.xlu1 %8766 }
 0xc1f   : > { %v9546_v44 = vcombine.low %v8746_v18, %v8788_v53  ;;  %v9547_v62 = vcombine.high %v8746_v18, %v8788_v53  ;;  %v9579_v34 = vcombine.high %v9522_v56, %v9538_v5  ;;  %v9326_v53 = vcombine.low %v16337_v7, %v16406_v17 }
 0xc20   : > { %v9578_v50 = vcombine.low %v9522_v56, %v9538_v5  ;;  %v16543_v7 = vrot.slane %v9310_v31, %v15802_v60  ;;  %v9342_v17 = vcombine.low %v16408_v28, %v16462_v58  ;;  %v9595_v26 = vcombine.high %v9529_v8, %v9545_v57 }
 0xc21   : > { %v9554_v63 = vrot.slane %v9546_v44, %v15802_v60  ;;  %v9561_v27 = vrot.slane %v9547_v62, %v15802_v60  ;;  %v9593_v9 = vrot.slane %v9579_v34, %v16005_v41  ;;  %v16557_v62 = vrot.slane %v9326_v53, %v15802_v60 }
 0xc22   : > { %v8809_v51 = vpop.permute.xlu0 %8808  ;;  %v8885_v59 = vpop.permute.xlu1 %8884  ;;  %v16560_v31 = vrot.slane %v9358_v24, %v15802_v60  ;;  %v16563_v28 = vrot.slane %v9578_v50, %v16005_v41  ;;  %v9609_v53 = vrot.slane %v9595_v26, %v16005_v41 }
 0xc23   : > { %v9562_v21 = vcombine.low %v8767_v4, %v8809_v51  ;;  %v9563_v22 = vcombine.high %v8767_v4, %v8809_v51 }
 0xc24   : > { %17130 = vst [vmem:[#allocation33_spill] sm:$0xff] %v16563_v28 }
 0xc25   : > { %v9570_v18 = vrot.slane %v9562_v21, %v15802_v60  ;;  %v9577_v3 = vrot.slane %v9563_v22, %v15802_v60  ;;  %v16540_v22 = vrot.slane %v10039_v6, %v15802_v60  ;;  %v10054_v6 = vrot.slane %v10040_v52, %v15802_v60 }
 0xc26   : > { %v16531_v4 = vpop.permute.xlu0 %8850  ;;  %v16534_v51 = vpop.permute.xlu1 %8829 }
 0xc27   : > { %v9610_v32 = vcombine.low %v9554_v63, %v9570_v18  ;;  %v9611_v49 = vcombine.high %v9554_v63, %v9570_v18  ;;  %v9627_v44 = vcombine.high %v9561_v27, %v9577_v3  ;;  %v9626_v56 = vcombine.low %v9561_v27, %v9577_v3 }
 0xc28   : > { %v16580_v18 = vrot.slane %v10032_v19, 3  ;;  %v16585_v27 = vrot.slane %v10033_v25, 3  ;;  %v9594_v3 = vcombine.low %v9529_v8, %v9545_v57  ;;  %v9374_v19 = vcombine.low %v16543_v7, %v16557_v62 }
 0xc29   : > { %v16548_v48 = vrot.slane %v9610_v32, %v16005_v41  ;;  %v9625_v5 = vrot.slane %v9611_v49, %v16005_v41  ;;  %v16566_v21 = vrot.slane %v9627_v44, %v16005_v41  ;;  %v16601_v49 = vrot.slane %v10034_v42, 3 }
 0xc2a   : > { %v8887_v58 = vpop.permute.xlu0 %8886  ;;  %v16568_v34 = vpop.permute.xlu1 %8921  ;;  %v9634_v8 = vrot.slane %v9626_v56, %v16005_v41  ;;  %v9602_v33 = vrot.slane %v9594_v3, %v16005_v41 }
 0xc2b   : > { %v16571_v63 = vsel %vm8900_vm15, %v8885_v59, %v8887_v58  ;;  %v9644_v13 = vcombine.low %v9593_v9, %v9625_v5  ;;  %v9667_v15 = vcombine.high %v16531_v4, %v16568_v34  ;;  %v16588_v59 = vrot.slane %v9342_v17, %v15802_v60 }
 0xc2c   : > { %v9651_v52 = vcombine.high %v16534_v51, %v16571_v63  ;;  %v9645_v17 = vcombine.high %v9593_v9, %v9625_v5  ;;  %v9648_v26 = vcombine.low %v9609_v53, %v16566_v21  ;;  %v9649_v42 = vcombine.high %v9609_v53, %v16566_v21 }
 0xc2d   : > { %10190 = vrot.lane.b32.xlu1 %v9644_v13, %s11521_s28  ;;  %v9681_v50 = vrot.slane %v9667_v15, %v15802_v60  ;;  %v9406_v57 = vcombine.low %v16588_v59, %v16560_v31  ;;  %v17131_v9 = vcombine.low %v16415_v47, %v16404_v11 }
 0xc2e   : > { %v9665_v32 = vrot.slane %v9651_v52, %v15802_v60  ;;  %v8855_v25 = vpop.permute.xlu0 %8854  ;;  %v8926_v44 = vpop.permute.xlu1 %8925  ;;  %v10478_v52 = vrot.slane %v10035_v23, 3  ;;  %v10250_v2 = vrot.slane %v9649_v42, 1 }
 0xc2f   : > { %v10055_v13 = vcombine.low %v8855_v25, %v8926_v44  ;;  %v10056_v15 = vcombine.high %v8855_v25, %v8926_v44  ;;  %v10511_v5 = vrot.slane %v17131_v9, 4  ;;  %v17132_v25 = vcombine.high %v16415_v47, %v16404_v11 }
 0xc30   : > { %v9683_v58 = vcombine.high %v9665_v32, %v9681_v50  ;;  %v16627_v44 = vrot.slane %v9374_v19, %v16005_v41  ;;  %v16632_v53 = vrot.slane %v9406_v57, %v16005_v41  ;;  %v9647_v47 = vcombine.high %v9602_v33, %v9634_v8 }
 0xc31   : > { %10200 = vrot.lane.b32.xlu1 %v9645_v17, %s11522_s17  ;;  %v10063_v50 = vrot.slane %v10055_v13, %v15802_v60  ;;  %v10070_v32 = vrot.slane %v10056_v15, %v15802_v60  ;;  %v16624_v3 = vrot.slane %v17132_v25, 4  ;;  %v17133_v19 = vmov 0.0  }
 0xc32   : > { %v9690_v56 = vrot.slane %v9683_v58, %v16005_v41  ;;  %v8881_v23 = vpop.permute.xlu0 %8880  ;;  %v8883_v17 = vpop.permute.xlu1 %8882  ;;  %v9646_v58 = vcombine.low %v9602_v33, %v9634_v8 }
 0xc33   : > { %v10071_v13 = vcombine.low %v16540_v22, %v10063_v50  ;;  %v10072_v15 = vcombine.high %v16540_v22, %v10063_v50  ;;  %v10087_v9 = vcombine.low %v10054_v6, %v10070_v32  ;;  %v10088_v24 = vcombine.high %v10054_v6, %v10070_v32 }
 0xc34   : > { %v8903_v11 = vsel %vm8900_vm15, %v8881_v23, %v8883_v17  ;;  %v9698_v25 = vcombine.high %v9690_v56, %v17133_v19  ;;  %v10235_v23 = vrot.slane %v9690_v56, 1 }
 0xc35   : > { %10210 = vrot.lane.b32.xlu1 %v9646_v58, %s11524_s26  ;;  %v10079_v21 = vrot.slane %v10071_v13, %v16005_v41  ;;  %v10086_v57 = vrot.slane %v10072_v15, %v16005_v41  ;;  %v10095_v36 = vrot.slane %v10087_v9, %v16005_v41  ;;  %v10102_v1 = vrot.slane %v10088_v24, %v16005_v41 }
 0xc36   : > { %v8828_v14 = vpop.permute.xlu0 %8827  ;;  %v8849_v22 = vpop.permute.xlu1 %8848  ;;  %v10251_v32 = vrot.slane %v9698_v25, 1  ;;  %v10234_v15 = vrot.slane %v9648_v26, 1 }
 0xc37   : > { %v9446_v50 = vcombine.low %v8828_v14, %v8903_v11  ;;  %v9447_v6 = vcombine.high %v8828_v14, %v8903_v11  ;;  %v10103_v17 = vcombine.high %v10079_v21, %v17133_v19  ;;  %v10443_v8 = vrot.slane %v10086_v57, 3 }
 0xc38   : > { %v10104_v33 = vcombine.high %v10086_v57, %v17133_v19  ;;  %v10479_v42 = vrot.slane %v10095_v36, 3  ;;  %v10512_v24 = vrot.slane %v10102_v1, 4  ;;  %v10252_v26 = vsel %vm10226_vm0, %v10250_v2, %v10251_v32 }
 0xc39   : > { %v9454_v58 = vrot.slane %v9446_v50, %v15802_v60  ;;  %v16647_v13 = vrot.slane %v9447_v6, %v15802_v60  ;;  %10220 = vrot.lane.b32.xlu1 %v9647_v47, %s11519_s24  ;;  %v10425_v28 = vrot.slane %v10103_v17, 3  ;;  %v16652_v14 = vsel %vm10400_vm2, %v16585_v27, %v10443_v8 }
 0xc3a   : > { %v8920_v9 = vpop.permute.xlu0 %8919  ;;  %v10461_v56 = vrot.slane %v10104_v33, 3  ;;  %v16655_v11 = vsel %vm10400_vm2, %v10478_v52, %v10479_v42  ;;  %v8794_v25 = vpop.permute.xlu1 %8793  ;;  %v16658_v6 = vsel %vm10487_vm3, %v10511_v5, %v10512_v24  ;;  %v10106_v47 = vcombine.high %v10102_v1, %v17133_v19 }
 0xc3b   : > { %v9462_v57 = vcombine.low %v8849_v22, %v8920_v9  ;;  %v9463_v50 = vcombine.high %v8849_v22, %v8920_v9  ;;  %v10426_v17 = vsel %vm10400_vm2, %v16580_v18, %v10425_v28  ;;  %v16669_v52 = vsel %vm10226_vm0, %v10234_v15, %v10235_v23 }
 0xc3c   : > { %v16666_v27 = vsel %vm10400_vm2, %v16601_v49, %v10461_v56  ;;  %v10530_v1 = vrot.slane %v10106_v47, 4  ;;  %v10409_v5 = vrot.slane %v10079_v21, 3  ;;  %v10123_v2 = vcombine.low %v16435_v40, %v8794_v25 }
 0xc3d   : > { %v9470_v8 = vrot.slane %v9462_v57, %v15802_v60  ;;  %v16673_v22 = vrot.slane %v9463_v50, %v15802_v60  ;;  %10253 = vrot.lane.b32.xlu1 %v10252_v26, %s11521_s28  ;;  %v17134_v28 = vcombine.low %v16348_v38, %v16351_v35  ;;  %v10105_v49 = vcombine.high %v10095_v36, %v17133_v19 }
 0xc3e   : > { %v8815_v32 = vpop.permute.xlu0 %8814  ;;  %v17135_v23 = vcombine.high %v16401_v12, %v16390_v29  ;;  %v8897_v9 = vpop.permute.xlu1 %8896  ;;  %v9438_v40 = vcombine.low %v16627_v44, %v16632_v53  ;;  %v16691_v38 = vsel %vm10487_vm3, %v16624_v3, %v10530_v1  ;;  %v17136_v29 = vcombine.high %v16588_v59, %v16560_v31 }
 0xc3f   : > { %v10408_v18 = vrot.slane %v17134_v28, 3  ;;  %v9478_v42 = vcombine.low %v9454_v58, %v9470_v8  ;;  %v9479_v24 = vcombine.high %v9454_v58, %v9470_v8  ;;  %v9494_v15 = vcombine.low %v16647_v13, %v16673_v22 }
 0xc40   : > { %v10495_v33 = vrot.slane %v17135_v23, 4  ;;  %v10131_v21 = vcombine.low %v16483_v61, %v8815_v32  ;;  %v10496_v35 = vrot.slane %v10105_v49, 4  ;;  %v9421_v12 = vrot.slane %v17136_v29, %v16005_v41 }
 0xc41   : > { %v16694_v36 = vsel %vm10400_vm2, %v10408_v18, %v10409_v5  ;;  %v9486_v58 = vrot.slane %v9478_v42, %v16005_v41  ;;  %10394 = vrot.lane.b32.xlu1 %v16285_v54, %s11519_s24  ;;  %v10130_v61 = vrot.slane %v10123_v2, %v15802_v60  ;;  %v9439_v25 = vcombine.high %v16627_v44, %v16632_v53 }
 0xc42   : > { %v10138_v56 = vrot.slane %v10131_v21, %v15802_v60  ;;  %v8899_v3 = vpop.permute.xlu0 %8898  ;;  %v16708_v57 = vsel %vm10487_vm3, %v10495_v33, %v10496_v35  ;;  %v9502_v50 = vrot.slane %v9494_v15, %v16005_v41  ;;  %v8836_v31 = vpop.permute.xlu1 %8835  ;;  %v10415_v59 = vrot.slane %v9438_v40, 3 }
 0xc43   : > { %v10416_v47 = vrot.slane %v9486_v58, 3  ;;  %v9510_v26 = vcombine.high %v9486_v58, %v17133_v19  ;;  %v17137_v54 = vcombine.high %v16543_v7, %v16557_v62  ;;  %v9493_v1 = vrot.slane %v9479_v24, %v16005_v41 }
 0xc44   : > { %v10147_v5 = vcombine.low %v10130_v61, %v10138_v56  ;;  %v17138_v2 = vcombine.low %v16453_v37, %v16458_v16  ;;  %v8907_v18 = vsel %vm8900_vm15, %v8897_v9, %v8899_v3  ;;  %v17139_v23 = vcombine.low %v16512_v55, %v16509_v45 }
 0xc45   : > { %v9389_v8 = vrot.slane %v17137_v54, %v16005_v41  ;;  %10427 = vrot.lane.b32.xlu1 %v10426_v17, %s11521_s28  ;;  %v10417_v44 = vsel %vm10400_vm2, %v10415_v59, %v10416_v47  ;;  %v10434_v53 = vrot.slane %v9510_v26, 3  ;;  %v10433_v17 = vrot.slane %v9439_v25, 3 }
 0xc46   : > { %v16723_v32 = vrot.slane %v17138_v2, %v16005_v41  ;;  %v16726_v28 = vrot.slane %v10147_v5, %v16005_v41  ;;  %10418 = vrot.lane.b32.xlu0 %v10417_v44, %s11521_s28  ;;  %v8857_v7 = vpop.permute.xlu0 %8856  ;;  %v8928_v49 = vpop.permute.xlu1 %8927  ;;  %v10488_v33 = vrot.slane %v17139_v23, 4  ;;  %v10489_v42 = vrot.slane %v9502_v50, 4 }
 0xc47   : > { %v9440_v62 = vcombine.low %v9389_v8, %v9421_v12  ;;  %v10165_v24 = vcombine.low %v8857_v7, %v8928_v49  ;;  %v10452_v37 = vrot.slane %v9493_v1, 3  ;;  %v10435_v15 = vsel %vm10400_vm2, %v10433_v17, %v10434_v53 }
 0xc48   : > { %v10155_v16 = vcombine.low %v16723_v32, %v16726_v28  ;;  %v9511_v40 = vcombine.high %v9493_v1, %v17133_v19  ;;  %v10156_v9 = vcombine.high %v16723_v32, %v16726_v28  ;;  %v16742_v21 = vsel %vm10487_vm3, %v10488_v33, %v10489_v42 }
 0xc49   : > { %10445 = vrot.lane.b32.xlu1 %v16652_v14, %s11522_s17  ;;  %v10157_v35 = vcombine.low %v8836_v31, %v8907_v18  ;;  %v9423_v58 = vcombine.high %v16500_v20, %v16497_v30  ;;  %v10451_v61 = vrot.slane %v9440_v62, 3  ;;  %v9441_v56 = vcombine.high %v9389_v8, %v9421_v12 }
 0xc4a   : > { %10436 = vrot.lane.b32.xlu0 %v10435_v15, %s11522_s17  ;;  %v10186_v29 = vpop.permute.xlu0 %10185  ;;  %v9666_v14 = vcombine.low %v16531_v4, %v16568_v34  ;;  %v9650_v3 = vcombine.low %v16534_v51, %v16571_v63  ;;  %v10172_v25 = vrot.slane %v10165_v24, %v15802_v60  ;;  %v9495_v59 = vcombine.high %v16647_v13, %v16673_v22  ;;  %v17142_v15 = vld [vmem:[#allocation33_spill] sm:$0xff] }
 0xc4b   : > { %v10453_v31 = vsel %vm10400_vm2, %v10451_v61, %v10452_v37  ;;  %v10470_v47 = vrot.slane %v9511_v40, 3  ;;  %v9512_v30 = vcombine.high %v9502_v50, %v17133_v19  ;;  %v10164_v20 = vrot.slane %v10157_v35, %v15802_v60 }
 0xc4c   : > { %v9437_v51 = vrot.slane %v9423_v58, %v16005_v41  ;;  %v10469_v34 = vrot.slane %v9441_v56, 3  ;;  %v9443_v63 = vcombine.high %v16512_v55, %v16509_v45  ;;  %v17140_v13 = vcombine.high %v16424_v43, %v16432_v39 }
 0xc4d   : > { %10463 = vrot.lane.b32.xlu1 %v16666_v27, %s11524_s26  ;;  %v9674_v22 = vrot.slane %v9666_v14, %v15802_v60  ;;  %v9658_v12 = vrot.slane %v9650_v3, %v15802_v60  ;;  %v10173_v50 = vcombine.low %v10164_v20, %v10172_v25  ;;  %v9509_v26 = vrot.slane %v9495_v59, %v16005_v41  ;;  %v10272_v3 = vpop.permute.xlu1 %10271  ;;  %v17143_v20 = vld [vmem:[#allocation31_spill] sm:$0xff] }
 0xc4e   : > { %10454 = vrot.lane.b32.xlu0 %v10453_v31, %s11524_s26  ;;  %v10196_v4 = vpop.permute.xlu0 %10195  ;;  %v9405_v27 = vrot.slane %v17140_v13, %v16005_v41  ;;  %v17141_v54 = vcombine.low %v16040_v46, %v16023_v10  ;;  %v10471_v45 = vsel %vm10400_vm2, %v10469_v34, %v10470_v47  ;;  %v10503_v55 = vrot.slane %v9512_v30, 4 }
 0xc4f   : > { %v10502_v1 = vrot.slane %v9443_v63, 4  ;;  %v9682_v60 = vcombine.low %v9658_v12, %v9674_v22  ;;  %v10180_v44 = vrot.slane %v10173_v50, %v16005_v41  ;;  %v10521_v46 = vrot.slane %v9509_v26, 4 }
 0xc50   : > { %v10188_v8 = vadd.f32 %v10186_v29, %v17141_v54  ;;  %v9444_v5 = vcombine.low %v9405_v27, %v9437_v51  ;;  %v9445_v18 = vcombine.high %v9405_v27, %v9437_v51  ;;  %v10547_v24 = vrot.slane %v10155_v16, 4 }
 0xc51   : > { %10481 = vrot.lane.b32.xlu1 %v16655_v11, %s11519_s24  ;;  %v10504_v10 = vsel %vm10487_vm3, %v10502_v1, %v10503_v55  ;;  %v9513_v11 = vcombine.high %v9509_v26, %v17133_v19  ;;  %v10548_v49 = vrot.slane %v10180_v44, 4  ;;  %v10181_v17 = vcombine.high %v10180_v44, %v17133_v19  ;;  %v10308_v30 = vpop.permute.xlu1 %10307  ;;  %v17144_v26 = vld [vmem:[#allocation32_spill] sm:$0xff] }
 0xc52   : > { %10472 = vrot.lane.b32.xlu0 %v10471_v45, %s11519_s24  ;;  %v10206_v43 = vpop.permute.xlu0 %10205  ;;  %v10198_v39 = vadd.f32 %v10196_v4, %v10188_v8  ;;  %v10520_v62 = vrot.slane %v9444_v5, 4  ;;  %v9697_v42 = vrot.slane %v9682_v60, %v16005_v41  ;;  %v10538_v37 = vrot.slane %v9445_v18, 4 }
 0xc53   : > { %v10539_v33 = vrot.slane %v9513_v11, 4  ;;  %v9642_v40 = vcombine.low %v17142_v15, %v16548_v48  ;;  %v10549_v35 = vsel %vm10487_vm3, %v10547_v24, %v10548_v49  ;;  %v10566_v19 = vrot.slane %v10181_v17, 4 }
 0xc54   : > { %v10208_v53 = vadd.f32 %v10206_v43, %v10198_v39  ;;  %v10522_v23 = vsel %vm10487_vm3, %v10520_v62, %v10521_v46  ;;  %v10557_v29 = vrot.slane %v9697_v42, 4  ;;  %v10565_v41 = vrot.slane %v10156_v9, 4 }
 0xc55   : > { %10514 = vrot.lane.b32.xlu1 %v16658_v6, %s11521_s28  ;;  %v10341_v51 = vpop.permute.xlu1 %10340  ;;  %v17145_v39 = vcombine.high %v17142_v15, %v16548_v48 }
 0xc56   : > { %10505 = vrot.lane.b32.xlu0 %v10504_v10, %s11521_s28  ;;  %v10216_v2 = vpop.permute.xlu0 %10215  ;;  %v10567_v16 = vsel %vm10487_vm3, %v10565_v41, %v10566_v19 }
 0xc57   : > { %v10218_v7 = vadd.f32 %v10216_v2, %v10208_v53 }
 0xc59   : > { %10532 = vrot.lane.b32.xlu1 %v16691_v38, %s11522_s17  ;;  %v10231_v6 = vadd.f32 %v16272_v0, %v10218_v7  ;;  %v10540_v38 = vsel %vm10487_vm3, %v10538_v37, %v10539_v33  ;;  %v10556_v0 = vrot.slane %v9642_v40, 4  ;;  %v10377_v12 = vpop.permute.xlu1 %10376 }
 0xc5a   : > { %10523 = vrot.lane.b32.xlu0 %v10522_v23, %s11522_s17  ;;  %v10245_v61 = vpop.permute.xlu0 %10244  ;;  %v17146_v23 = vld [vmem:[#allocation30_spill] sm:$0xff] }
 0xc5b   : > { %v10558_v58 = vsel %vm10487_vm3, %v10556_v0, %v10557_v29  ;;  %v10247_v59 = vadd.f32 %v10245_v61, %v10231_v6 }
 0xc5d   : > { %10550 = vrot.lane.b32.xlu1 %v10549_v35, %s11524_s26  ;;  %v10290_v8 = vpop.permute.xlu1 %10289 }
 0xc5e   : > { %10541 = vrot.lane.b32.xlu0 %v10540_v38, %s11524_s26  ;;  %v10263_v56 = vpop.permute.xlu0 %10262 }
 0xc5f   : > { %v10265_v47 = vadd.f32 %v10263_v56, %v10247_v59 }
 0xc61   : > { %10568 = vrot.lane.b32.xlu1 %v10567_v16, %s11519_s24  ;;  %v10359_v45 = vpop.permute.xlu1 %10358 }
 0xc62   : > { %10559 = vrot.lane.b32.xlu0 %v10558_v58, %s11519_s24 }
 0xc79   : > { %v10281_v14 = vpop.permute.xlu0 %10280 }
 0xc7a   : > { %v10283_v32 = vadd.f32 %v10281_v14, %v10265_v47 }
 0xc7d   : > { %v10350_v25 = vpop.permute.xlu0 %10349 }
 0xc81   : > { %v10386_v31 = vpop.permute.xlu0 %10385 }
 0xc85   : > { %v10299_v28 = vpop.permute.xlu0 %10298 }
 0xc86   : > { %v10301_v9 = vadd.f32 %v10299_v28, %v10283_v32 }
 0xc88   : > { %v10318_v4 = vadd.f32 %v17143_v20, %v10301_v9 }
 0xc89   : > { %v10332_v34 = vpop.permute.xlu0 %10331 }
 0xc8a   : > { %v10334_v63 = vadd.f32 %v10332_v34, %v10318_v4 }
 0xc8c   : > { %v10352_v13 = vadd.f32 %v10350_v25, %v10334_v63 }
 0xc8d   : > { %v10368_v27 = vpop.permute.xlu0 %10367 }
 0xc8e   : > { %v10370_v22 = vadd.f32 %v10368_v27, %v10352_v13  ;;  %v11091_v13 = vld [vmem:[%s10573_s8 + $0x8] sm:$0xff] }
 0xc90   : > { %v10388_v50 = vadd.f32 %v10386_v31, %v10370_v22  ;;  %v10574_v22 = vld [vmem:[%s10573_s8] sm:$0xff] }
 0xc92   : > { %v10405_v54 = vadd.f32 %v17144_v26, %v10388_v50 }
 0xc9f   : > { %v10191_v55 = vpop.permute.xlu1 %10190 }
 0xca0   : > { %v10193_v1 = vadd.f32 %v10191_v55, %v17145_v39 }
 0xca3   : > { %v10201_v43 = vpop.permute.xlu1 %10200 }
 0xca4   : > { %v10203_v60 = vadd.f32 %v10201_v43, %v10193_v1 }
 0xca7   : > { %v10211_v5 = vpop.permute.xlu1 %10210 }
 0xca8   : > { %v10213_v44 = vadd.f32 %v10211_v5, %v10203_v60 }
 0xcab   : > { %v10221_v53 = vpop.permute.xlu1 %10220 }
 0xcac   : > { %v10223_v10 = vadd.f32 %v10221_v53, %v10213_v44 }
 0xcae   : > { %v10238_v46 = vadd.f32 %v16669_v52, %v10223_v10 }
 0xcaf   : > { %v10254_v11 = vpop.permute.xlu1 %10253 }
 0xcb0   : > { %v10256_v2 = vadd.f32 %v10254_v11, %v10238_v46 }
 0xcb2   : > { %v10274_v7 = vadd.f32 %v10272_v3, %v10256_v2 }
 0xcb3   : > { %v10395_v62 = vpop.permute.xlu1 %10394 }
 0xcb4   : > { %v10292_v18 = vadd.f32 %v10290_v8, %v10274_v7 }
 0xcb6   : > { %v10310_v49 = vadd.f32 %v10308_v30, %v10292_v18 }
 0xcb7   : > { %v10428_v17 = vpop.permute.xlu1 %10427 }
 0xcb8   : > { %v10325_v6 = vadd.f32 %v17146_v23, %v10310_v49  ;;  %v10419_v33 = vpop.permute.xlu0 %10418 }
 0xcb9   : > { %v10421_v40 = vadd.f32 %v10419_v33, %v10405_v54 }
 0xcba   : > { %v10343_v42 = vadd.f32 %v10341_v51, %v10325_v6 }
 0xcbb   : > { %v10446_v48 = vpop.permute.xlu1 %10445 }
 0xcbc   : > { %v10361_v24 = vadd.f32 %v10359_v45, %v10343_v42  ;;  %v10437_v37 = vpop.permute.xlu0 %10436 }
 0xcbd   : > { %v10439_v52 = vadd.f32 %v10437_v37, %v10421_v40 }
 0xcbe   : > { %v10379_v15 = vadd.f32 %v10377_v12, %v10361_v24 }
 0xcbf   : > { %v10464_v35 = vpop.permute.xlu1 %10463 }
 0xcc0   : > { %v10397_v19 = vadd.f32 %v10395_v62, %v10379_v15  ;;  %v10455_v38 = vpop.permute.xlu0 %10454 }
 0xcc1   : > { %v10457_v41 = vadd.f32 %v10455_v38, %v10439_v52 }
 0xcc2   : > { %v10412_v29 = vadd.f32 %v16694_v36, %v10397_v19 }
 0xcc3   : > { %v10482_v0 = vpop.permute.xlu1 %10481 }
 0xcc4   : > { %v10430_v16 = vadd.f32 %v10428_v17, %v10412_v29  ;;  %v10473_v58 = vpop.permute.xlu0 %10472 }
 0xcc5   : > { %v10475_v61 = vadd.f32 %v10473_v58, %v10457_v41 }
 0xcc6   : > { %v10448_v56 = vadd.f32 %v10446_v48, %v10430_v16 }
 0xcc7   : > { %v10515_v14 = vpop.permute.xlu1 %10514  ;;  %v10492_v3 = vadd.f32 %v16742_v21, %v10475_v61 }
 0xcc8   : > { %v10466_v25 = vadd.f32 %v10464_v35, %v10448_v56  ;;  %v10506_v59 = vpop.permute.xlu0 %10505 }
 0xcc9   : > { %v10508_v36 = vadd.f32 %v10506_v59, %v10492_v3 }
 0xcca   : > { %v10484_v31 = vadd.f32 %v10482_v0, %v10466_v25 }
 0xccb   : > { %v10533_v47 = vpop.permute.xlu1 %10532 }
 0xccc   : > { %v10499_v30 = vadd.f32 %v16708_v57, %v10484_v31  ;;  %v10524_v32 = vpop.permute.xlu0 %10523 }
 0xccd   : > { %v10526_v51 = vadd.f32 %v10524_v32, %v10508_v36 }
 0xcce   : > { %v10517_v28 = vadd.f32 %v10515_v14, %v10499_v30 }
 0xccf   : > { %v10551_v9 = vpop.permute.xlu1 %10550 }
 0xcd0   : > { %v10535_v20 = vadd.f32 %v10533_v47, %v10517_v28  ;;  %v10542_v4 = vpop.permute.xlu0 %10541 }
 0xcd1   : > { %v10544_v63 = vadd.f32 %v10542_v4, %v10526_v51 }
 0xcd2   : > { %v10553_v34 = vadd.f32 %v10551_v9, %v10535_v20 }
 0xcd3   : > { %v10569_v27 = vpop.permute.xlu1 %10568 }
 0xcd4   : > { %v10571_v21 = vadd.f32 %v10569_v27, %v10553_v34  ;;  %v10560_v12 = vpop.permute.xlu0 %10559 }
 0xcd5   : > { %v10562_v50 = vadd.f32 %v10560_v12, %v10544_v63 }
 0xcd6   : > { %v10580_v26 = vadd.f32 %v11091_v13, %v10571_v21 }
 0xcd7   : > { %v10575_v54 = vadd.f32 %v10574_v22, %v10562_v50 }
 0xcd8   : > { %11092 = vst.msk [vmem:[%s10573_s8 + $0x8] sm:$0xff] %vm8900_vm15, %v10580_v26 }
 0xcd9   : > { %10576 = vst.msk [vmem:[%s10573_s8] sm:$0xff] %vm8900_vm15, %v10575_v54 }
 0xcda PF: > { %p11093_p0 = scmp.ne.s32.totalorder %s11416_s21, 11 }
 0xcdc   : > { %10585 = sbr.rel (%p11093_p0) target bundleno = 3743 (0xe9f), region = 64 }
 0xce1   : > { %v16819_v57 = vld [vmem:[%s11668_s14] sm:$0xff]  ;;  %v16822_v8 = vld [vmem:[%s11668_s14 + $0x10] sm:$0xff]  ;;  %vm10603_vm4 = vcmask 64512   ;;  %v16840_v44 = vld [vmem:[%s11668_s14 + $0x8] sm:$0xff]  ;;  %v10740_v50 = vlaneseq  ;;  %vm10744_vm6 = vcmask 1024  }
 0xce2   : > { %v16825_v45 = vld [vmem:[%s11668_s14 + $0x20] sm:$0xff]  ;;  %v16828_v55 = vld [vmem:[%s11668_s14 + $0x30] sm:$0xff]  ;;  %v10604_v43 = vsel %vm10603_vm4, %v16819_v57, 0.0  ;;  %v10605_v39 = vsel %vm10603_vm4, %v16822_v8, 0.0  ;;  %v16845_v10 = vld [vmem:[%s11668_s14 + $0x18] sm:$0xff]  ;;  %v10631_v2 = vsel %vm10603_vm4, %v16840_v44, 0.0 }
 0xce3   : > { %v10607_v1 = vsel %vm10603_vm4, %v16825_v45, 0.0  ;;  %v16837_v5 = vld [vmem:[%s11668_s14 + $0x40] sm:$0xff]  ;;  %v10606_v60 = vadd.f32 %v10605_v39, %v10604_v43  ;;  %v10609_v53 = vsel %vm10603_vm4, %v16828_v55, 0.0  ;;  %v16848_v46 = vld [vmem:[%s11668_s14 + $0x28] sm:$0xff]  ;;  %v16851_v11 = vld [vmem:[%s11668_s14 + $0x38] sm:$0xff]  ;;  %v10632_v18 = vsel %vm10603_vm4, %v16845_v10, 0.0 }
 0xce4   : > { %v16856_v7 = vld [vmem:[%s11668_s14 + $0x50] sm:$0xff]  ;;  %v10634_v49 = vsel %vm10603_vm4, %v16848_v46, 0.0  ;;  %v10611_v17 = vsel %vm10603_vm4, %v16837_v5, 0.0  ;;  %v16865_v23 = vld [vmem:[%s11668_s14 + $0x48] sm:$0xff]  ;;  %v10633_v6 = vadd.f32 %v10632_v18, %v10631_v2  ;;  %v10592_v33 = vld [vmem:[%s11668_s14 + $0x60] sm:$0xff]  ;;  %v10636_v48 = vsel %vm10603_vm4, %v16851_v11, 0.0 }
 0xce5   : > { %v10608_v62 = vadd.f32 %v10607_v1, %v10606_v60  ;;  %v10613_v24 = vsel %vm10603_vm4, %v16856_v7, 0.0  ;;  %v16873_v37 = vld [vmem:[%s11668_s14 + $0x58] sm:$0xff]  ;;  %v16876_v40 = vld [vmem:[%s11668_s14 + $0x70] sm:$0xff]  ;;  %v10638_v19 = vsel %vm10603_vm4, %v16865_v23, 0.0  ;;  %v10615_v38 = vsel %vm10603_vm4, %v10592_v33, 0.0  ;;  %v16882_v52 = vld [vmem:[%s11668_s14 + $0x68] sm:$0xff] }
 0xce6   : > { %v10635_v15 = vadd.f32 %v10634_v49, %v10633_v6  ;;  %v10640_v0 = vsel %vm10603_vm4, %v16873_v37, 0.0  ;;  %v10617_v16 = vsel %vm10603_vm4, %v16876_v40, 0.0  ;;  %v16889_v58 = vld [vmem:[%s11668_s14 + $0x78] sm:$0xff]  ;;  %v10642_v14 = vsel %vm10603_vm4, %v16882_v52, 0.0 }
 0xce7   : > { %v10610_v42 = vadd.f32 %v10609_v53, %v10608_v62  ;;  %v10644_v59 = vsel %vm10603_vm4, %v16889_v58, 0.0  ;;  %v16900_v18 = vshrl.u32 %v10740_v50, 7 }
 0xce8   : > { %v10637_v29 = vadd.f32 %v10636_v48, %v10635_v15 }
 0xce9   : > { %v10612_v35 = vadd.f32 %v10611_v17, %v10610_v42  ;;  %vm10742_vm5 = vcmp.eq.s32.totalorder %v16900_v18, 0 }
 0xcea   : > { %v10639_v61 = vadd.f32 %v10638_v19, %v10637_v29 }
 0xceb   : > { %v10614_v41 = vadd.f32 %v10613_v24, %v10612_v35 }
 0xcec   : > { %v10641_v3 = vadd.f32 %v10640_v0, %v10639_v61 }
 0xced   : > { %v10616_v56 = vadd.f32 %v10615_v38, %v10614_v41 }
 0xcee   : > { %v10643_v31 = vadd.f32 %v10642_v14, %v10641_v3 }
 0xcef   : > { %v10618_v25 = vadd.f32 %v10617_v16, %v10616_v56 }
 0xcf0   : > { %v10645_v47 = vadd.f32 %v10644_v59, %v10643_v31 }
 0xcf1   : > { %10619 = vadd.xlane.f32.xlu0 %v10618_v25 }
 0xcf5   : > { %10646 = vadd.xlane.f32.xlu0 %v10645_v47 }
 0xd7a   : > { %v10620_v30 = vpop.xlane.xlu0 %10619 }
 0xd7b   : > { %v10621_v32 = vrot.slane %v10620_v30, 4 }
 0xd7d   : > { %v10622_v28 = vadd.f32 %v10621_v32, %v10620_v30 }
 0xd7e   : > { %v10647_v36 = vpop.xlane.xlu0 %10646 }
 0xd7f   : > { %v10623_v9 = vrot.slane %v10622_v28, 2  ;;  %v10648_v20 = vrot.slane %v10647_v36, 4 }
 0xd81   : > { %v10649_v4 = vadd.f32 %v10648_v20, %v10647_v36  ;;  %v10624_v51 = vadd.f32 %v10623_v9, %v10622_v28 }
 0xd83   : > { %v10650_v34 = vrot.slane %v10649_v4, 2  ;;  %v10625_v63 = vrot.slane %v10624_v51, 1 }
 0xd85   : > { %v10651_v13 = vadd.f32 %v10650_v34, %v10649_v4  ;;  %v10626_v27 = vadd.f32 %v10625_v63, %v10624_v51 }
 0xd87   : > { %11119 = vpush %v10626_v27  ;;  %v10652_v21 = vrot.slane %v10651_v13, 1 }
 0xd89   : > { %v10653_v22 = vadd.f32 %v10652_v21, %v10651_v13 }
 0xd8b   : > { %11121 = vpush %v10653_v22 }
 0xdb8   : > { %s11120_s21 = spop %11119 }
 0xdb9   : > { %s10630_s12 = smul.f32 0.001953125, %s11120_s21 }
 0xdbb   : > { %v10658_v12 = vstv %s10630_s12 }
 0xdbc   : > { %s11122_s9 = spop %11121  ;;  %v10659_v26 = vsub.f32 %v16819_v57, %v10658_v12  ;;  %v10660_v54 = vsub.f32 %v16822_v8, %v10658_v12  ;;  %v10661_v43 = vsub.f32 %v16825_v45, %v10658_v12  ;;  %v10662_v39 = vsub.f32 %v16828_v55, %v10658_v12 }
 0xdbd   : > { %s10657_s11 = smul.f32 0.001953125, %s11122_s9  ;;  %v10663_v1 = vsub.f32 %v16837_v5, %v10658_v12  ;;  %v10664_v49 = vsub.f32 %v16856_v7, %v10658_v12  ;;  %v10665_v6 = vsub.f32 %v10592_v33, %v10658_v12  ;;  %v10666_v7 = vsub.f32 %v16876_v40, %v10658_v12 }
 0xdbe   : > { %v10667_v60 = vmul.f32 %v10659_v26, %v10659_v26  ;;  %v10668_v53 = vmul.f32 %v10660_v54, %v10660_v54  ;;  %v10669_v2 = vmul.f32 %v10661_v43, %v10661_v43  ;;  %v10670_v17 = vmul.f32 %v10662_v39, %v10662_v39 }
 0xdbf   : > { %v10699_v62 = vstv %s10657_s11  ;;  %v10671_v42 = vmul.f32 %v10663_v1, %v10663_v1  ;;  %v10672_v19 = vmul.f32 %v10664_v49, %v10664_v49  ;;  %v10673_v16 = vmul.f32 %v10665_v6, %v10665_v6 }
 0xdc0   : > { %v10675_v57 = vsel %vm10603_vm4, %v10667_v60, 0.0  ;;  %v10676_v8 = vsel %vm10603_vm4, %v10668_v53, 0.0  ;;  %v10678_v55 = vsel %vm10603_vm4, %v10669_v2, 0.0  ;;  %v10700_v5 = vsub.f32 %v16840_v44, %v10699_v62 }
 0xdc1   : > { %v10677_v45 = vadd.f32 %v10676_v8, %v10675_v57  ;;  %v10701_v48 = vsub.f32 %v16845_v10, %v10699_v62  ;;  %v10702_v15 = vsub.f32 %v16848_v46, %v10699_v62  ;;  %v10703_v35 = vsub.f32 %v16851_v11, %v10699_v62 }
 0xdc2   : > { %v10680_v33 = vsel %vm10603_vm4, %v10670_v17, 0.0  ;;  %v10708_v38 = vmul.f32 %v10700_v5, %v10700_v5  ;;  %v10704_v41 = vsub.f32 %v16865_v23, %v10699_v62  ;;  %v10682_v10 = vsel %vm10603_vm4, %v10671_v42, 0.0 }
 0xdc3   : > { %v10679_v24 = vadd.f32 %v10678_v55, %v10677_v45  ;;  %v10709_v0 = vmul.f32 %v10701_v48, %v10701_v48  ;;  %v10710_v44 = vmul.f32 %v10702_v15, %v10702_v15  ;;  %v10705_v46 = vsub.f32 %v16873_v37, %v10699_v62 }
 0xdc4   : > { %v10711_v61 = vmul.f32 %v10703_v35, %v10703_v35  ;;  %v10716_v40 = vsel %vm10603_vm4, %v10708_v38, 0.0  ;;  %v10674_v14 = vmul.f32 %v10666_v7, %v10666_v7  ;;  %v10684_v3 = vsel %vm10603_vm4, %v10672_v19, 0.0 }
 0xdc5   : > { %v10681_v29 = vadd.f32 %v10680_v33, %v10679_v24  ;;  %v10717_v56 = vsel %vm10603_vm4, %v10709_v0, 0.0  ;;  %v10706_v23 = vsub.f32 %v16882_v52, %v10699_v62  ;;  %v10712_v31 = vmul.f32 %v10704_v41, %v10704_v41 }
 0xdc6   : > { %v10718_v25 = vadd.f32 %v10717_v56, %v10716_v40  ;;  %v10719_v47 = vsel %vm10603_vm4, %v10710_v44, 0.0  ;;  %v10743_v37 = vsel %vm10742_vm5, %v10658_v12, %v10699_v62  ;;  %v10686_v30 = vsel %vm10603_vm4, %v10673_v16, 0.0 }
 0xdc7   : > { %v10683_v11 = vadd.f32 %v10682_v10, %v10681_v29  ;;  %10745 = vst.msk [vmem:[%s11658_s13] sm:$0x3] %vm10744_vm6, %v10743_v37  ;;  %v10707_v36 = vsub.f32 %v16889_v58, %v10699_v62  ;;  %v10713_v9 = vmul.f32 %v10705_v46, %v10705_v46  ;;  %v10721_v20 = vsel %vm10603_vm4, %v10711_v61, 0.0 }
 0xdc8   : > { %v10720_v32 = vadd.f32 %v10719_v47, %v10718_v25  ;;  %v10688_v52 = vsel %vm10603_vm4, %v10674_v14, 0.0  ;;  %v10714_v34 = vmul.f32 %v10706_v23, %v10706_v23  ;;  %v10723_v63 = vsel %vm10603_vm4, %v10712_v31, 0.0 }
 0xdc9   : > { %v10685_v59 = vadd.f32 %v10684_v3, %v10683_v11  ;;  %v10715_v27 = vmul.f32 %v10707_v36, %v10707_v36  ;;  %v10725_v21 = vsel %vm10603_vm4, %v10713_v9, 0.0 }
 0xdca   : > { %v10722_v4 = vadd.f32 %v10721_v20, %v10720_v32  ;;  %v10727_v12 = vsel %vm10603_vm4, %v10714_v34, 0.0 }
 0xdcb   : > { %v10687_v28 = vadd.f32 %v10686_v30, %v10685_v59  ;;  %v10729_v58 = vsel %vm10603_vm4, %v10715_v27, 0.0 }
 0xdcc   : > { %v10724_v13 = vadd.f32 %v10723_v63, %v10722_v4 }
 0xdcd   : > { %v10689_v51 = vadd.f32 %v10688_v52, %v10687_v28 }
 0xdce   : > { %v10726_v22 = vadd.f32 %v10725_v21, %v10724_v13 }
 0xdcf   : > { %10690 = vadd.xlane.f32.xlu1 %v10689_v51 }
 0xdd0   : > { %v10728_v50 = vadd.f32 %v10727_v12, %v10726_v22 }
 0xdd2   : > { %v10730_v26 = vadd.f32 %v10729_v58, %v10728_v50 }
 0xdd4   : > { %10731 = vadd.xlane.f32.xlu1 %v10730_v26 }
 0xe58   : > { %v10691_v54 = vpop.xlane.xlu1 %10690 }
 0xe59   : > { %v10692_v43 = vrot.slane %v10691_v54, 4 }
 0xe5b   : > { %v10693_v39 = vadd.f32 %v10692_v43, %v10691_v54 }
 0xe5d   : > { %v10694_v1 = vrot.slane %v10693_v39, 2  ;;  %v10732_v60 = vpop.xlane.xlu1 %10731 }
 0xe5e   : > { %v10733_v2 = vrot.slane %v10732_v60, 4 }
 0xe5f   : > { %v10695_v53 = vadd.f32 %v10694_v1, %v10693_v39 }
 0xe60   : > { %v10734_v49 = vadd.f32 %v10733_v2, %v10732_v60 }
 0xe61   : > { %v10696_v62 = vrot.slane %v10695_v53, 1 }
 0xe62   : > { %v10735_v57 = vrot.slane %v10734_v49, 2 }
 0xe63   : > { %v10697_v17 = vadd.f32 %v10696_v62, %v10695_v53 }
 0xe64   : > { %v10736_v8 = vadd.f32 %v10735_v57, %v10734_v49 }
 0xe65   : > { %11123 = vpush %v10697_v17 }
 0xe66   : > { %v10737_v6 = vrot.slane %v10736_v8, 1 }
 0xe68   : > { %v10738_v45 = vadd.f32 %v10737_v6, %v10736_v8 }
 0xe6a   : > { %11125 = vpush %v10738_v45 }
 0xe96   : > { %s11124_s13 = spop %11123 }
 0xe97   : > { %v10746_v42 = vstv %s11124_s13 }
 0xe9b   : > { %s11126_s10 = spop %11125 }
 0xe9c   : > { %v10747_v55 = vstv %s11126_s10 }
 0xe9d   : > { %v10748_v5 = vsel %vm10742_vm5, %v10746_v42, %v10747_v55 }
 0xe9e   : > { %10749 = vst.msk [vmem:[%s11663_s29] sm:$0x3] %vm10744_vm6, %v10748_v5 }
 0xe9f PF: > { %s11107_s15 = sshll.u32 %s11420_s22, 11  ;;  %s10781_s23 = sshll.u32 %s11668_s14, 4  ;;  %s16944_s23 = int_to_ptr.vmem [resolvable:$true] %s10781_s23 }
 0xea0   : > { %s16941_s2 = scalar_lea.hbm %s17002_s3, %s11107_s15  ;;  %s17147_s24 = sand.u32 1, %s11408_s19  }
 0xea1   : > { %s16948_s28 = scalar_lea.sflag [#allocation3], %s17147_s24  ;;  %s11336_s29 = scalar_lea.vmem %s16944_s23, 2048 }
 0xea2   : > { %p11337_p1 = scmp.ne.s32.totalorder %s16944_s23, %s11336_s29  ;;  %s11525_s22 = smov [#allocation5]  }
 0xea3   : > { %s11340_s17 = sshll.u32 %s11525_s22, 4  ;;  %s11341_s17 = int_to_ptr.vmem [resolvable:$false] %s11340_s17 }
 0xea4   : > { %p11338_p2 = pnand %p11337_p1, %p11608_p3  ;;  %s11342_s26 = scalar_lea.vmem %s11341_s17, 4096 }
 0xea5   : > { %p11343_p5 = scmp.lt.s32.totalorder %s16944_s23, %s11341_s17  ;;  %p11344_p6 = scmp.lt.s32.totalorder %s11342_s26, %s11336_s29 }
 0xea6   : > { %p11339_p4 = pneg %p11338_p2 }
 0xea7   : > { %p11345_p7 = por %p11344_p6, %p11343_p5 }
 0xea9   : > { %p11346_p8 = pnand %p11345_p7, %p11339_p4 }
 0xeab   : > { %11349 = shalt.err (!%p11346_p8)
}
 0xeac   : > { %s11350_s14 = scalar_lea.hbm %s16941_s2, 2048  ;;  %s11354_s21 = scalar_lea.hbm %s17002_s3, 4096 }
 0xead   : > { %p11351_p9 = scmp.ne.s32.totalorder %s16941_s2, %s11350_s14  ;;  %p11355_p12 = scmp.lt.s32.totalorder %s16941_s2, %s17002_s3 }
 0xeae   : > { %p11356_p13 = scmp.lt.s32.totalorder %s11354_s21, %s11350_s14 }
 0xeaf   : > { %p11352_p11 = pnand %p11351_p9, %p11608_p3 }
 0xeb0   : > { %p11357_p0 = por %p11356_p13, %p11355_p12 }
 0xeb1   : > { %p11353_p10 = pneg %p11352_p11 }
 0xeb3   : > { %p11358_p1 = pnand %p11357_p0, %p11353_p10 }
 0xeb5   : > { %11361 = shalt.err (!%p11358_p1)
}
 0xeb6   : > { %s11526_s11 = smov 128   ;;  %s11527_s13 = smov 8  }
 0xeb7   : > { %11131 = dma.vmem_to_hbm [thread:$0]  (%p11608_p3), %s16944_s23, 2048, %s16941_s2, %s16948_s28, %s11526_s11, %s11526_s11, %s11527_s13  }
 0xeb8 PF: > { %p11143_p2 = scmp.ge.s32.totalorder %s11432_s25, 2  ;;  %s10802_s10 = sand.u32 1, %s11404_s18  }
 0xeb9   : > { %p17148_p4 = scmp.ne.s32.totalorder %s17036_s7, 0  ;;  %s10803_s15 = scalar_lea.sflag [#allocation3], %s10802_s10 }
 0xebb   : > { %p11138_p5 = pnand %p11143_p2, %p17148_p4 }
 0xebd   : > { %p11139_p6 = pneg %p11138_p5 }
 0xebf   : > { %11399 = dma.done.wait (%p11139_p6), %s10803_s15, 2048  }
 0xec0   : > { %11401 = vsyncadd (%p11139_p6), %s10803_s15, 4294965248  ;;  %s20_s25 = sadd.s32 1, %s11432_s25   ;;  %s17149_s16 = sld [smem:[#allocation12_spill]] }
 0xec1   : > { %p17_p7 = scmp.ge.s32.totalorder %s20_s25, 26   ;;  %s17150_s21 = sld [smem:[#allocation8_spill]] }
 0xec2   : > { %s17151_s22 = sld [smem:[#allocation9_spill]]  ;;  %s17154_s18 = smov %s11408_s19 }
 0xec3   : > { %s17152_s23 = sld [smem:[#allocation10_spill]]  ;;  %s17155_s19 = smov %s11412_s20 }
 0xec4   : > { %s17153_s24 = sld [smem:[#allocation11_spill]]  ;;  %19 = sbr.rel (!%p17_p7) target bundleno = 8 (0x8), region = 140 }
 0xec6   : > { %s17156_s20 = smov %s17149_s16 }
 0xec9   :  { %10828 = vsyncpa [#allocation3], 1 }
 0xeca   :  { %10830 = vsyncpa [#allocation3 + $0x1], 1 }
 0xecb   :  { %10831 = vsyncpa [#allocation4], 1 }
 0xecc   :  { %10833 = vsyncpa [#allocation4 + $0x1], 1 }

</bundles_post_ra>
